<compile_context>
chip_gen: v6e
topology: v6e:2x2x1
jax: 0.10.0
libtpu: 0.0.40
codegen_flags: <defaults>
</compile_context>

<pallas_src>
import jax
import jax.numpy as jnp
from jax.experimental import pallas as pl
from jax.experimental.pallas import tpu as pltpu

IN_DIM = 2048
HID_DIM = 512
OUT_DIM = 512


def _round_up(x, m):
    return (x + m - 1) // m * m


def _select_tb(B, tb_max=512):
    """Pick the batch tile.

    - multiples of 16 (dense sublane packing for the bf16 intermediate),
    - capped at tb_max rows (keeps the f32 x tiles + weights inside VMEM on
      every generation, including v5e),
    - >= 2 grid steps once the batch is large enough to split, so both
      TensorCores of a v7x chip get work under "parallel" semantics.
    """
    bp = _round_up(max(B, 1), 16)
    if bp <= 32:
        return bp  # tiny batch: a single step; nothing worth splitting
    return min(tb_max, _round_up(pl.cdiv(bp, 2), 16))


def prepare_params(w1, b1, w2, b2, param_dtype=jnp.bfloat16):
    """One-time parameter preparation (do this OUTSIDE the per-forward path).

    w1: (2048, 512), b1: (512,), w2: (512, 512), b2: (512,).
    Weights are stored in `param_dtype` (bf16 feeds the MXU directly); biases
    are kept in f32 and reshaped to (1, N) for lane-dense VMEM blocks.
    """
    return (
        w1.astype(param_dtype),
        b1.astype(jnp.float32).reshape(1, HID_DIM),
        w2.astype(param_dtype),
        b2.astype(jnp.float32).reshape(1, OUT_DIM),
    )


def _mlp_kernel(x_ref, w1_ref, b1_ref, w2_ref, b2_ref, o_ref):
    # In-kernel activation cast: f32 HBM read, VPU downcast (free filler under
    # the MXU) — avoids a separate wrapper-side convert pass over the input.
    x = x_ref[...].astype(w1_ref.dtype)
    # First linear: (TB, 2048)bf16 @ (2048, 512)bf16 -> f32 accumulate on MXU.
    h = jnp.dot(x, w1_ref[...], preferred_element_type=jnp.float32)
    h = h + b1_ref[...]                       # bias-add in f32 (VPU)
    # Dropout(0.25): eval-mode identity (see TODO at top of file).
    h = jnp.maximum(h, 0.0)                   # ReLU in f32 (VPU)
    # Single downcast to the weight dtype right before the second MXU matmul.
    out = jnp.dot(h.astype(w2_ref.dtype), w2_ref[...],
                  preferred_element_type=jnp.float32)
    out = out + b2_ref[...]
    o_ref[...] = out.astype(o_ref.dtype)


def vqa_image_model_forward(img, params, *, tb=None, out_dtype=None):
    """img: (B, 2048) in its native dtype (no wrapper-side casts).

    params: tuple from prepare_params() — (w1 bf16 (2048,512), b1 f32 (1,512),
            w2 bf16 (512,512), b2 f32 (1,512)).
    tb:     optional batch tile override (auto-selected otherwise).
    out_dtype: output dtype (default img.dtype; bf16 halves writeback traffic).
    """
    w1, b1_2d, w2, b2_2d = params
    B = img.shape[0]
    assert img.shape[1] == IN_DIM

    if out_dtype is None:
        out_dtype = img.dtype

    if tb is None:
        tb = _select_tb(B)
    else:
        tb = max(16, _round_up(min(tb, _round_up(B, 16)), 16))
    Bp = _round_up(B, tb)

    x = img if Bp == B else jnp.pad(img, ((0, Bp - B), (0, 0)))

    def _run(invariant_pipeline_mode):
        inv_kwargs = ({} if invariant_pipeline_mode is None
                      else {"pipeline_mode": invariant_pipeline_mode})
        return pl.pallas_call(
            _mlp_kernel,
            out_shape=jax.ShapeDtypeStruct((Bp, OUT_DIM), out_dtype),
            grid_spec=pltpu.PrefetchScalarGridSpec(
                num_scalar_prefetch=0,
                grid=(Bp // tb,),
                in_specs=[
                    # Batch-varying f32 activation tile: pipelined across steps.
                    pl.BlockSpec((tb, IN_DIM), lambda i: (i, 0)),
                    # Grid-invariant weights/biases: constant block index keeps
                    # them VMEM-resident; Buffered(1) single-buffers them.
                    pl.BlockSpec((IN_DIM, HID_DIM), lambda i: (0, 0), **inv_kwargs),
                    pl.BlockSpec((1, HID_DIM), lambda i: (0, 0), **inv_kwargs),
                    pl.BlockSpec((HID_DIM, OUT_DIM), lambda i: (0, 0), **inv_kwargs),
                    pl.BlockSpec((1, OUT_DIM), lambda i: (0, 0), **inv_kwargs),
                ],
                out_specs=pl.BlockSpec((tb, OUT_DIM), lambda i: (i, 0)),
            ),
            compiler_params=pltpu.CompilerParams(
                # Batch steps are independent -> "parallel" lets a 2-TC v7x
                # split the grid; harmless no-op on single-TC v5e/v6e.
                dimension_semantics=("parallel",),
                # Covers worst-case ~15 MiB footprint (tb=512, f32 x tiles) on
                # v5e's tight 16 MiB default scope; well under v7x's 64 MiB.
                vmem_limit_bytes=32 * 1024 * 1024,
            ),
        )(x, w1, b1_2d, w2, b2_2d)

    try:
        out = _run(pl.Buffered(1))
    except Exception:
        # Fallback for toolchains where pipeline_mode=pl.Buffered(1) on a
        # top-level BlockSpec is unsupported; double-buffered footprint still
        # fits under the 32 MiB limit above.
        out = _run(None)
    return out[:B]


def _reference_forward_f32(img, w1, b1, w2, b2):
    h = img @ w1 + b1
    h = jnp.maximum(h, 0.0)
    return h @ w2 + b2


def _reference_forward_bf16(img, w1, b1, w2, b2):
    # Numerics-matched reference: bf16 operands, f32 accumulation, f32 bias/ReLU.
    x = img.astype(jnp.bfloat16)
    h = jnp.dot(x, w1.astype(jnp.bfloat16),
                preferred_element_type=jnp.float32) + b1
    h = jnp.maximum(h, 0.0)
    out = jnp.dot(h.astype(jnp.bfloat16), w2.astype(jnp.bfloat16),
                  preferred_element_type=jnp.float32) + b2
    return out


if __name__ == "__main__":
    key = jax.random.PRNGKey(0)
    k_img, k_w1, k_b1, k_w2, k_b2 = jax.random.split(key, 5)

    B = 20  # small batch; exercises padding (20 -> 32) and a 2-step grid below
    img = jax.random.normal(k_img, (B, IN_DIM), dtype=jnp.float32)

    # Deterministic parameter init (kaiming-uniform-ish scale, like nn.Linear).
    lim1 = 1.0 / jnp.sqrt(IN_DIM)
    lim2 = 1.0 / jnp.sqrt(HID_DIM)
    w1 = jax.random.uniform(k_w1, (IN_DIM, HID_DIM), jnp.float32, -lim1, lim1)
    b1 = jax.random.uniform(k_b1, (HID_DIM,), jnp.float32, -lim1, lim1)
    w2 = jax.random.uniform(k_w2, (HID_DIM, OUT_DIM), jnp.float32, -lim2, lim2)
    b2 = jax.random.uniform(k_b2, (OUT_DIM,), jnp.float32, -lim2, lim2)

    # One-time parameter prep (outside the per-forward path).
    params = prepare_params(w1, b1, w2, b2)

    # Auto-selected tile: single 32-row step at this tiny batch.
    out_auto = jax.block_until_ready(vqa_image_model_forward(img, params))
    # Forced 16-row tile: padded batch 32, 2-step pipelined grid.
    out_tiled = jax.block_until_ready(vqa_image_model_forward(img, params, tb=16))

    ref_bf16 = _reference_forward_bf16(img, w1, b1, w2, b2)
    ref_f32 = _reference_forward_f32(img, w1, b1, w2, b2)

    assert out_auto.shape == (B, OUT_DIM) and out_auto.dtype == img.dtype
    assert out_tiled.shape == (B, OUT_DIM)
    # Tight check against the numerics-matched bf16/f32-accum reference.
    assert jnp.allclose(out_auto, ref_bf16, atol=1e-2, rtol=1e-2), \
        "mismatch vs bf16 reference (auto tile)"
    assert jnp.allclose(out_tiled, ref_bf16, atol=1e-2, rtol=1e-2), \
        "mismatch vs bf16 reference (tb=16)"
    # Loose semantic sanity check against the pure-f32 PyTorch-equivalent math.
    assert float(jnp.max(jnp.abs(out_auto - ref_f32))) < 5e-2, \
        "drifted too far from f32 reference"

    print("KERNEL_OK")
</pallas_src>

<mosaic_0001>
module attributes {stable_mosaic.version = 11 : i64} {
  func.func @_mlp_kernel(%arg0: i32, %arg1: memref<32x2048xf32, #tpu.memory_space<vmem>>, %arg2: memref<2048x512xbf16, #tpu.memory_space<vmem>>, %arg3: memref<1x512xf32, #tpu.memory_space<vmem>>, %arg4: memref<512x512xbf16, #tpu.memory_space<vmem>>, %arg5: memref<1x512xf32, #tpu.memory_space<vmem>>, %arg6: memref<32x512xf32, #tpu.memory_space<vmem>>) attributes {dimension_semantics = [#tpu.dimension_semantics<parallel>], iteration_bounds = array<i64: 1>, scalar_prefetch = 0 : i64, scratch_operands = 0 : i64, tpu.core_type = #tpu.core_type<tc>, window_params = [{transform_indices = @transform_0, window_bounds = array<i64: 32, 2048>}, {pipeline_mode = #tpu.pipeline_mode<synchronous>, transform_indices = @transform_1, window_bounds = array<i64: 2048, 512>}, {pipeline_mode = #tpu.pipeline_mode<synchronous>, transform_indices = @transform_2, window_bounds = array<i64: 1, 512>}, {pipeline_mode = #tpu.pipeline_mode<synchronous>, transform_indices = @transform_3, window_bounds = array<i64: 512, 512>}, {pipeline_mode = #tpu.pipeline_mode<synchronous>, transform_indices = @transform_4, window_bounds = array<i64: 1, 512>}, {transform_indices = @transform_5, window_bounds = array<i64: 32, 512>}]} {
    %c0 = arith.constant 0 : index
    %c0_0 = arith.constant 0 : index
    %0 = vector.load %arg1[%c0, %c0_0] : memref<32x2048xf32, #tpu.memory_space<vmem>>, vector<32x2048xf32>
    %1 = arith.truncf %0 : vector<32x2048xf32> to vector<32x2048xbf16>
    %c0_1 = arith.constant 0 : index
    %c0_2 = arith.constant 0 : index
    %2 = vector.load %arg2[%c0_1, %c0_2] : memref<2048x512xbf16, #tpu.memory_space<vmem>>, vector<2048x512xbf16>
    %cst = arith.constant dense<0.000000e+00> : vector<32x512xf32>
    %3 = tpu.matmul %1, %2, %cst {dimension_numbers = #tpu.dot_dimension_numbers<[1], [0], [0], [1], [0, 0, 1, 1], [], []>} : vector<32x2048xbf16>, vector<2048x512xbf16>, vector<32x512xf32> -> vector<32x512xf32>
    %c0_3 = arith.constant 0 : index
    %c0_4 = arith.constant 0 : index
    %4 = vector.load %arg3[%c0_3, %c0_4] : memref<1x512xf32, #tpu.memory_space<vmem>>, vector<1x512xf32>
    %5 = vector.broadcast %4 : vector<1x512xf32> to vector<32x512xf32>
    %6 = arith.addf %3, %5 : vector<32x512xf32>
    %cst_5 = arith.constant 0.000000e+00 : f32
    %7 = vector.broadcast %cst_5 : f32 to vector<32x512xf32>
    %8 = arith.maximumf %6, %7 : vector<32x512xf32>
    %9 = arith.truncf %8 : vector<32x512xf32> to vector<32x512xbf16>
    %c0_6 = arith.constant 0 : index
    %c0_7 = arith.constant 0 : index
    %10 = vector.load %arg4[%c0_6, %c0_7] : memref<512x512xbf16, #tpu.memory_space<vmem>>, vector<512x512xbf16>
    %cst_8 = arith.constant dense<0.000000e+00> : vector<32x512xf32>
    %11 = tpu.matmul %9, %10, %cst_8 {dimension_numbers = #tpu.dot_dimension_numbers<[1], [0], [0], [1], [0, 0, 1, 1], [], []>} : vector<32x512xbf16>, vector<512x512xbf16>, vector<32x512xf32> -> vector<32x512xf32>
    %c0_9 = arith.constant 0 : index
    %c0_10 = arith.constant 0 : index
    %12 = vector.load %arg5[%c0_9, %c0_10] : memref<1x512xf32, #tpu.memory_space<vmem>>, vector<1x512xf32>
    %13 = vector.broadcast %12 : vector<1x512xf32> to vector<32x512xf32>
    %14 = arith.addf %11, %13 : vector<32x512xf32>
    %c0_11 = arith.constant 0 : index
    %c0_12 = arith.constant 0 : index
    %15 = vector.load %arg6[%c0_11, %c0_12] : memref<32x512xf32, #tpu.memory_space<vmem>>, vector<32x512xf32>
    tpu.vector_store %arg6[%c0_11, %c0_12], %14 {strides = array<i32>} : memref<32x512xf32, #tpu.memory_space<vmem>>, vector<32x512xf32>,
    return
  }
  func.func @transform_0(%arg0: i32) -> (i32, i32) {
    %c0_i32 = arith.constant 0 : i32
    %c0_i32_0 = arith.constant 0 : i32
    return %arg0, %c0_i32 : i32, i32
  }
  func.func @transform_1(%arg0: i32) -> (i32, i32) {
    %c0_i32 = arith.constant 0 : i32
    %c0_i32_0 = arith.constant 0 : i32
    %c0_i32_1 = arith.constant 0 : i32
    return %c0_i32, %c0_i32_0 : i32, i32
  }
  func.func @transform_2(%arg0: i32) -> (i32, i32) {
    %c0_i32 = arith.constant 0 : i32
    %c0_i32_0 = arith.constant 0 : i32
    %c0_i32_1 = arith.constant 0 : i32
    return %c0_i32, %c0_i32_0 : i32, i32
  }
  func.func @transform_3(%arg0: i32) -> (i32, i32) {
    %c0_i32 = arith.constant 0 : i32
    %c0_i32_0 = arith.constant 0 : i32
    %c0_i32_1 = arith.constant 0 : i32
    return %c0_i32, %c0_i32_0 : i32, i32
  }
  func.func @transform_4(%arg0: i32) -> (i32, i32) {
    %c0_i32 = arith.constant 0 : i32
    %c0_i32_0 = arith.constant 0 : i32
    %c0_i32_1 = arith.constant 0 : i32
    return %c0_i32, %c0_i32_0 : i32, i32
  }
  func.func @transform_5(%arg0: i32) -> (i32, i32) {
    %c0_i32 = arith.constant 0 : i32
    %c0_i32_0 = arith.constant 0 : i32
    return %arg0, %c0_i32 : i32, i32
  }
}

module attributes {stable_mosaic.version = 11 : i64} {
  func.func @_mlp_kernel(%arg0: i32, %arg1: memref<32x2048xf32, #tpu.memory_space<vmem>>, %arg2: memref<2048x512xbf16, #tpu.memory_space<vmem>>, %arg3: memref<1x512xf32, #tpu.memory_space<vmem>>, %arg4: memref<512x512xbf16, #tpu.memory_space<vmem>>, %arg5: memref<1x512xf32, #tpu.memory_space<vmem>>, %arg6: memref<32x512xf32, #tpu.memory_space<vmem>>) attributes {dimension_semantics = [#tpu.dimension_semantics<parallel>], iteration_bounds = array<i64: 1>, scalar_prefetch = 0 : i64, scratch_operands = 0 : i64, tpu.core_type = #tpu.core_type<tc>, window_params = [{transform_indices = @transform_0, window_bounds = array<i64: 32, 2048>}, {pipeline_mode = #tpu.pipeline_mode<synchronous>, transform_indices = @transform_1, window_bounds = array<i64: 2048, 512>}, {pipeline_mode = #tpu.pipeline_mode<synchronous>, transform_indices = @transform_2, window_bounds = array<i64: 1, 512>}, {pipeline_mode = #tpu.pipeline_mode<synchronous>, transform_indices = @transform_3, window_bounds = array<i64: 512, 512>}, {pipeline_mode = #tpu.pipeline_mode<synchronous>, transform_indices = @transform_4, window_bounds = array<i64: 1, 512>}, {transform_indices = @transform_5, window_bounds = array<i64: 32, 512>}]} {
    %c0 = arith.constant 0 : index
    %c0_0 = arith.constant 0 : index
    %0 = vector.load %arg1[%c0, %c0_0] : memref<32x2048xf32, #tpu.memory_space<vmem>>, vector<32x2048xf32>
    %1 = arith.truncf %0 : vector<32x2048xf32> to vector<32x2048xbf16>
    %c0_1 = arith.constant 0 : index
    %c0_2 = arith.constant 0 : index
    %2 = vector.load %arg2[%c0_1, %c0_2] : memref<2048x512xbf16, #tpu.memory_space<vmem>>, vector<2048x512xbf16>
    %cst = arith.constant dense<0.000000e+00> : vector<32x512xf32>
    %3 = tpu.matmul %1, %2, %cst {dimension_numbers = #tpu.dot_dimension_numbers<[1], [0], [0], [1], [0, 0, 1, 1], [], []>} : vector<32x2048xbf16>, vector<2048x512xbf16>, vector<32x512xf32> -> vector<32x512xf32>
    %c0_3 = arith.constant 0 : index
    %c0_4 = arith.constant 0 : index
    %4 = vector.load %arg3[%c0_3, %c0_4] : memref<1x512xf32, #tpu.memory_space<vmem>>, vector<1x512xf32>
    %5 = vector.broadcast %4 : vector<1x512xf32> to vector<32x512xf32>
    %6 = arith.addf %3, %5 : vector<32x512xf32>
    %cst_5 = arith.constant 0.000000e+00 : f32
    %7 = vector.broadcast %cst_5 : f32 to vector<32x512xf32>
    %8 = arith.maximumf %6, %7 : vector<32x512xf32>
    %9 = arith.truncf %8 : vector<32x512xf32> to vector<32x512xbf16>
    %c0_6 = arith.constant 0 : index
    %c0_7 = arith.constant 0 : index
    %10 = vector.load %arg4[%c0_6, %c0_7] : memref<512x512xbf16, #tpu.memory_space<vmem>>, vector<512x512xbf16>
    %cst_8 = arith.constant dense<0.000000e+00> : vector<32x512xf32>
    %11 = tpu.matmul %9, %10, %cst_8 {dimension_numbers = #tpu.dot_dimension_numbers<[1], [0], [0], [1], [0, 0, 1, 1], [], []>} : vector<32x512xbf16>, vector<512x512xbf16>, vector<32x512xf32> -> vector<32x512xf32>
    %c0_9 = arith.constant 0 : index
    %c0_10 = arith.constant 0 : index
    %12 = vector.load %arg5[%c0_9, %c0_10] : memref<1x512xf32, #tpu.memory_space<vmem>>, vector<1x512xf32>
    %13 = vector.broadcast %12 : vector<1x512xf32> to vector<32x512xf32>
    %14 = arith.addf %11, %13 : vector<32x512xf32>
    %c0_11 = arith.constant 0 : index
    %c0_12 = arith.constant 0 : index
    %15 = vector.load %arg6[%c0_11, %c0_12] : memref<32x512xf32, #tpu.memory_space<vmem>>, vector<32x512xf32>
    tpu.vector_store %arg6[%c0_11, %c0_12], %14 {strides = array<i32>} : memref<32x512xf32, #tpu.memory_space<vmem>>, vector<32x512xf32>,
    return
  }
  func.func @transform_0(%arg0: i32) -> (i32, i32) {
    %c0_i32 = arith.constant 0 : i32
    %c0_i32_0 = arith.constant 0 : i32
    return %arg0, %c0_i32 : i32, i32
  }
  func.func @transform_1(%arg0: i32) -> (i32, i32) {
    %c0_i32 = arith.constant 0 : i32
    %c0_i32_0 = arith.constant 0 : i32
    %c0_i32_1 = arith.constant 0 : i32
    return %c0_i32, %c0_i32_0 : i32, i32
  }
  func.func @transform_2(%arg0: i32) -> (i32, i32) {
    %c0_i32 = arith.constant 0 : i32
    %c0_i32_0 = arith.constant 0 : i32
    %c0_i32_1 = arith.constant 0 : i32
    return %c0_i32, %c0_i32_0 : i32, i32
  }
  func.func @transform_3(%arg0: i32) -> (i32, i32) {
    %c0_i32 = arith.constant 0 : i32
    %c0_i32_0 = arith.constant 0 : i32
    %c0_i32_1 = arith.constant 0 : i32
    return %c0_i32, %c0_i32_0 : i32, i32
  }
  func.func @transform_4(%arg0: i32) -> (i32, i32) {
    %c0_i32 = arith.constant 0 : i32
    %c0_i32_0 = arith.constant 0 : i32
    %c0_i32_1 = arith.constant 0 : i32
    return %c0_i32, %c0_i32_0 : i32, i32
  }
  func.func @transform_5(%arg0: i32) -> (i32, i32) {
    %c0_i32 = arith.constant 0 : i32
    %c0_i32_0 = arith.constant 0 : i32
    return %arg0, %c0_i32 : i32, i32
  }
}

</mosaic_0001>

<bundles_post_ra>
// kernel: tpu_custom_call.1
= control target key start
LH: loop header
LB: loop body
LE: loop exit
PB: predicated region body
PF: predicated region fallthrough
CT: control target
= control target key end

     0   :  { %10 = vsyncpa [#allocation3], 0  ;;  %s7303_s0 = inlined_call_operand.hbm [shape: f32[32,2048], index: 0, kind: input, shape index: {}]   ;;  %s7304_s1 = inlined_call_operand.hbm [shape: bf16[2048,512], index: 1, kind: input, shape index: {}]   ;;  %s7305_s2 = inlined_call_operand.hbm [shape: f32[1,512], index: 2, kind: input, shape index: {}]   ;;  %s7306_s3 = inlined_call_operand.hbm [shape: bf16[512,512], index: 3, kind: input, shape index: {}]   ;;  %s7307_s4 = inlined_call_operand.hbm [shape: f32[1,512], index: 4, kind: input, shape index: {}]   ;;  %s7308_s5 = inlined_call_operand.hbm [shape: f32[32,512], index: 5, kind: output, shape index: {}]  }
   0x1   :  { %11 = vsyncpa [#allocation6], 0 }
   0x2   :  { %12 = vsyncpa [#allocation9], 0 }
   0x3   :  { %13 = vsyncpa [#allocation4], 0  ;;  %s6925_s18 = smov [#allocation5]  }
   0x4   :  { %s31_s19 = sshll.u32 %s6925_s18, 4  ;;  %s32_s19 = int_to_ptr.vmem [resolvable:$true] %s31_s19 }
   0x5   :  { %s6805_s20 = scalar_lea.vmem %s32_s19, 65536  ;;  %p6810_p1 = scmp.lt.s32.totalorder %s32_s19, %s32_s19 }
   0x6   :  { %p6806_p0 = scmp.ne.s32.totalorder %s32_s19, %s6805_s20  ;;  %p6811_p2 = scmp.lt.s32.totalorder %s6805_s20, %s6805_s20 }
   0x8   :  { %p6812_p3 = por %p6811_p2, %p6810_p1 }
   0xa   :  { %p6813_p4 = pnand %p6812_p3, %p6806_p0 }
   0xc   :  { %6816 = shalt.err (!%p6813_p4)
}
   0xd   :  { %s6926_s21 = smov 256   ;;  %s6927_s22 = smov 16  }
   0xe   :  { %37 = dma.hbm_to_vmem [thread:$0]  %s7304_s1, 65536, %s32_s19, [#allocation6], %s6926_s21, %s6926_s21, %s6927_s22  }
   0xf   :  { %s6928_s25 = smov [#allocation8]   ;;  %s6929_s27 = smov [#allocation2]  }
  0x10   :  { %s53_s26 = sshll.u32 %s6928_s25, 4  ;;  %s19_s28 = sshll.u32 %s6929_s27, 4  ;;  %s54_s26 = int_to_ptr.vmem [resolvable:$true] %s53_s26  ;;  %s20_s28 = int_to_ptr.vmem [resolvable:$true] %s19_s28 }
  0x11   :  { %s6825_s29 = scalar_lea.vmem %s54_s26, 16384  ;;  %p6830_p6 = scmp.lt.s32.totalorder %s54_s26, %s54_s26 }
  0x12   :  { %p6826_p5 = scmp.ne.s32.totalorder %s54_s26, %s6825_s29  ;;  %p6831_p7 = scmp.lt.s32.totalorder %s6825_s29, %s6825_s29 }
  0x14   :  { %p6832_p8 = por %p6831_p7, %p6830_p6 }
  0x16   :  { %p6833_p9 = pnand %p6832_p8, %p6826_p5 }
  0x18   :  { %6836 = shalt.err (!%p6833_p9)
}
  0x19   :  { %59 = dma.hbm_to_vmem [thread:$0]  %s7306_s3, 16384, %s54_s26, [#allocation9], %s6926_s21, %s6926_s21, %s6927_s22  }
  0x1a   :  { %s6845_s7 = scalar_lea.vmem %s20_s28, 8192  ;;  %p6850_p11 = scmp.lt.s32.totalorder %s20_s28, %s20_s28 }
  0x1b   :  { %p6846_p10 = scmp.ne.s32.totalorder %s20_s28, %s6845_s7  ;;  %p6851_p12 = scmp.lt.s32.totalorder %s6845_s7, %s6845_s7 }
  0x1d   :  { %p6852_p13 = por %p6851_p12, %p6850_p11 }
  0x1f   :  { %p6853_p0 = pnand %p6852_p13, %p6846_p10 }
  0x21   :  { %6856 = shalt.err (!%p6853_p0)
}
  0x22   :  { %s6930_s1 = smov 2048   ;;  %s6931_s8 = smov 128  }
  0x23   :  { %25 = dma.hbm_to_vmem [thread:$0]  %s7303_s0, 8192, %s20_s28, [#allocation3], %s6930_s1, %s6930_s1, %s6931_s8  }
  0x24   :  { %s6932_s11 = smov [#allocation7]   ;;  %s6933_s13 = smov [#allocation10]  }
  0x25   :  { %s44_s12 = sshll.u32 %s6932_s11, 4  ;;  %s66_s14 = sshll.u32 %s6933_s13, 4  ;;  %s45_s12 = int_to_ptr.vmem [resolvable:$true] %s44_s12  ;;  %s67_s14 = int_to_ptr.vmem [resolvable:$true] %s66_s14 }
  0x26   :  { %s6865_s3 = scalar_lea.vmem %s45_s12, 64  ;;  %p6870_p2 = scmp.lt.s32.totalorder %s45_s12, %s45_s12 }
  0x27   :  { %p6866_p1 = scmp.ne.s32.totalorder %s45_s12, %s6865_s3  ;;  %p6871_p3 = scmp.lt.s32.totalorder %s6865_s3, %s6865_s3 }
  0x29   :  { %p6872_p4 = por %p6871_p3, %p6870_p2 }
  0x2b   :  { %p6873_p5 = pnand %p6872_p4, %p6866_p1 }
  0x2d   :  { %6876 = shalt.err (!%p6873_p5)
}
  0x2e   :  { %47 = dma.hbm_to_vmem [thread:$0]  %s7305_s2, 64, %s45_s12, [#allocation6]  }
  0x2f   :  { %s6885_s17 = scalar_lea.vmem %s67_s14, 64  ;;  %p6890_p7 = scmp.lt.s32.totalorder %s67_s14, %s67_s14 }
  0x30   :  { %p6886_p6 = scmp.ne.s32.totalorder %s67_s14, %s6885_s17  ;;  %p6891_p8 = scmp.lt.s32.totalorder %s6885_s17, %s6885_s17 }
  0x32   :  { %p6892_p9 = por %p6891_p8, %p6890_p7 }
  0x34   :  { %p6893_p10 = pnand %p6892_p9, %p6886_p6 }
  0x36   :  { %6896 = shalt.err (!%p6893_p10)
}
  0x37   :  { %69 = dma.hbm_to_vmem [thread:$0]  %s7307_s4, 64, %s67_s14, [#allocation9]  }
  0x38   :  { %6917 = dma.done.wait [#allocation3], 8192  }
  0x39   :  { %6918 = vsyncadd [#allocation3], 4294959104 }
  0x3a   :  { %6919 = dma.done.wait [#allocation6], 65600  }
  0x3b   :  { %6920 = vsyncadd [#allocation6], 4294901696 }
  0x3c   :  { %6921 = dma.done.wait [#allocation9], 16448  }
  0x3d   :  { %6922 = vsyncadd [#allocation9], 4294950848  ;;  %v5836_v0 = vld [vmem:[#allocation5 + $0xe4] ss:$16 sps:$4 sm:$0xff]   ;;  %v5840_v2 = vld [vmem:[#allocation5 + $0xe0] ss:$16 sps:$4 sm:$0xff]  }
  0x3e   :  { %v5838_v1 = vld [vmem:[#allocation5 + $0x2e4] ss:$16 sps:$4 sm:$0xff]   ;;  %3275 = vmatprep.subr.bf16.mxu0 %v5836_v0  ;;  %v5841_v3 = vld [vmem:[#allocation5 + $0x2e0] ss:$16 sps:$4 sm:$0xff]   ;;  %v86_v46 = vld [vmem:[#allocation2 + $0x8] sm:$0xff]  ;;  %s6934_s2 = smov [#allocation11]  }
  0x3f   :  { %3328 = vmatprep.subr.bf16.mxu1 %v5838_v1  ;;  %v5842_v4 = vld [vmem:[#allocation5 + $0xc4] ss:$16 sps:$4 sm:$0xff]   ;;  %3276 = vmatpush1.bf16.msra.mxu0 %v5840_v2  ;;  %v5846_v6 = vld [vmem:[#allocation5 + $0xc0] ss:$16 sps:$4 sm:$0xff]   ;;  %v102_v47 = vld [vmem:[#allocation2 + $0x88] sm:$0xff]  ;;  %s5170_s4 = sshll.u32 %s6934_s2, 4  ;;  %s5171_s4 = int_to_ptr.vmem [resolvable:$true] %s5170_s4 }
  0x40   :  { %3329 = vmatpush1.bf16.msra.mxu1 %v5841_v3  ;;  %v5844_v5 = vld [vmem:[#allocation5 + $0x2c4] ss:$16 sps:$4 sm:$0xff]   ;;  %3277 = vmatprep.subr.bf16.mxu0 %v5842_v4  ;;  %v5847_v7 = vld [vmem:[#allocation5 + $0x2c0] ss:$16 sps:$4 sm:$0xff]   ;;  %v88_v48 = vld [vmem:[#allocation2 + $0x18] sm:$0xff]  ;;  %v6982_v53 = vpack.c.bf16 %v102_v47, %v86_v46  ;;  %s6897_s19 = scalar_lea.vmem %s5171_s4, 2048  ;;  %p6902_p12 = scmp.lt.s32.totalorder %s5171_s4, %s5171_s4 }
  0x41   :  { %3330 = vmatprep.subr.bf16.mxu1 %v5844_v5  ;;  %v5848_v8 = vld [vmem:[#allocation5 + $0xa4] ss:$16 sps:$4 sm:$0xff]   ;;  %v5852_v10 = vld [vmem:[#allocation5 + $0xa0] ss:$16 sps:$4 sm:$0xff]   ;;  %v104_v49 = vld [vmem:[#allocation2 + $0x98] sm:$0xff]  ;;  %p6898_p11 = scmp.ne.s32.totalorder %s5171_s4, %s6897_s19  ;;  %p6903_p13 = scmp.lt.s32.totalorder %s6897_s19, %s6897_s19 }
  0x42   :  { %v5850_v9 = vld [vmem:[#allocation5 + $0x2a4] ss:$16 sps:$4 sm:$0xff]   ;;  %v5853_v11 = vld [vmem:[#allocation5 + $0x2a0] ss:$16 sps:$4 sm:$0xff]   ;;  %v6984_v54 = vpack.c.bf16 %v104_v49, %v88_v48  ;;  %3307 = vmatprep.mubr.bf16.mxu0 %v6982_v53 }
  0x43   :  { %3278 = vmatpush1.bf16.msra.mxu0 %v5846_v6  ;;  %v5854_v12 = vld [vmem:[#allocation5 + $0x84] ss:$16 sps:$4 sm:$0xff]   ;;  %v5858_v14 = vld [vmem:[#allocation5 + $0x80] ss:$16 sps:$4 sm:$0xff]   ;;  %p6904_p0 = por %p6903_p13, %p6902_p12 }
  0x44   :  { %3331 = vmatpush1.bf16.msra.mxu1 %v5847_v7  ;;  %3279 = vmatprep.subr.bf16.mxu0 %v5848_v8  ;;  %v5856_v13 = vld [vmem:[#allocation5 + $0x284] ss:$16 sps:$4 sm:$0xff]   ;;  %v5859_v15 = vld [vmem:[#allocation5 + $0x280] ss:$16 sps:$4 sm:$0xff]  }
  0x45   :  { %3332 = vmatprep.subr.bf16.mxu1 %v5850_v9  ;;  %v5860_v16 = vld [vmem:[#allocation5 + $0x64] ss:$16 sps:$4 sm:$0xff]   ;;  %v5864_v18 = vld [vmem:[#allocation5 + $0x60] ss:$16 sps:$4 sm:$0xff]   ;;  %3360 = vmatprep.mubr.bf16.mxu1 %v6984_v54  ;;  %p6905_p1 = pnand %p6904_p0, %p6898_p11 }
  0x46   :  { %v5862_v17 = vld [vmem:[#allocation5 + $0x264] ss:$16 sps:$4 sm:$0xff]   ;;  %v5865_v19 = vld [vmem:[#allocation5 + $0x260] ss:$16 sps:$4 sm:$0xff]  }
  0x47   :  { %3280 = vmatpush1.bf16.msra.mxu0 %v5852_v10  ;;  %v5866_v20 = vld [vmem:[#allocation5 + $0x44] ss:$16 sps:$4 sm:$0xff]   ;;  %v5870_v22 = vld [vmem:[#allocation5 + $0x40] ss:$16 sps:$4 sm:$0xff]  }
  0x48   :  { %3333 = vmatpush1.bf16.msra.mxu1 %v5853_v11  ;;  %3281 = vmatprep.subr.bf16.mxu0 %v5854_v12  ;;  %v5868_v21 = vld [vmem:[#allocation5 + $0x244] ss:$16 sps:$4 sm:$0xff]   ;;  %v5871_v23 = vld [vmem:[#allocation5 + $0x240] ss:$16 sps:$4 sm:$0xff]  }
  0x49   :  { %3334 = vmatprep.subr.bf16.mxu1 %v5856_v13  ;;  %v5872_v24 = vld [vmem:[#allocation5 + $0x24] ss:$16 sps:$4 sm:$0xff]   ;;  %v5876_v26 = vld [vmem:[#allocation5 + $0x20] ss:$16 sps:$4 sm:$0xff]  }
  0x4a   :  { %v5874_v25 = vld [vmem:[#allocation5 + $0x224] ss:$16 sps:$4 sm:$0xff]   ;;  %v5877_v27 = vld [vmem:[#allocation5 + $0x220] ss:$16 sps:$4 sm:$0xff]  }
  0x4b   :  { %3282 = vmatpush1.bf16.msra.mxu0 %v5858_v14  ;;  %v5878_v28 = vld [vmem:[#allocation5 + $0x4] ss:$16 sps:$4 sm:$0xff]   ;;  %v5882_v30 = vld [vmem:[#allocation5] ss:$16 sps:$4 sm:$0xff]  }
  0x4c   :  { %3335 = vmatpush1.bf16.msra.mxu1 %v5859_v15  ;;  %3283 = vmatprep.subr.bf16.mxu0 %v5860_v16  ;;  %v5880_v29 = vld [vmem:[#allocation5 + $0x204] ss:$16 sps:$4 sm:$0xff]   ;;  %v5883_v31 = vld [vmem:[#allocation5 + $0x200] ss:$16 sps:$4 sm:$0xff]  }
  0x4d   :  { %3336 = vmatprep.subr.bf16.mxu1 %v5862_v17  ;;  %v5884_v32 = vld [vmem:[#allocation5 + $0x1e4] ss:$16 sps:$4 sm:$0xff]   ;;  %v5888_v34 = vld [vmem:[#allocation5 + $0x1e0] ss:$16 sps:$4 sm:$0xff]  }
  0x4e   :  { %v5886_v33 = vld [vmem:[#allocation5 + $0x3e4] ss:$16 sps:$4 sm:$0xff]   ;;  %v5889_v35 = vld [vmem:[#allocation5 + $0x3e0] ss:$16 sps:$4 sm:$0xff]  }
  0x4f   :  { %3284 = vmatpush1.bf16.msra.mxu0 %v5864_v18  ;;  %v5890_v36 = vld [vmem:[#allocation5 + $0x1c4] ss:$16 sps:$4 sm:$0xff]   ;;  %v5894_v38 = vld [vmem:[#allocation5 + $0x1c0] ss:$16 sps:$4 sm:$0xff]  }
  0x50   :  { %3337 = vmatpush1.bf16.msra.mxu1 %v5865_v19  ;;  %3285 = vmatprep.subr.bf16.mxu0 %v5866_v20  ;;  %v5892_v37 = vld [vmem:[#allocation5 + $0x3c4] ss:$16 sps:$4 sm:$0xff]   ;;  %v5895_v39 = vld [vmem:[#allocation5 + $0x3c0] ss:$16 sps:$4 sm:$0xff]  }
  0x51   :  { %3338 = vmatprep.subr.bf16.mxu1 %v5868_v21  ;;  %v5896_v40 = vld [vmem:[#allocation5 + $0x1a4] ss:$16 sps:$4 sm:$0xff]   ;;  %v5900_v42 = vld [vmem:[#allocation5 + $0x1a0] ss:$16 sps:$4 sm:$0xff]  }
  0x52   :  { %v5898_v41 = vld [vmem:[#allocation5 + $0x3a4] ss:$16 sps:$4 sm:$0xff]   ;;  %v5901_v43 = vld [vmem:[#allocation5 + $0x3a0] ss:$16 sps:$4 sm:$0xff]  }
  0x53   :  { %3286 = vmatpush1.bf16.msra.mxu0 %v5870_v22  ;;  %v5902_v44 = vld [vmem:[#allocation5 + $0x184] ss:$16 sps:$4 sm:$0xff]   ;;  %v5906_v50 = vld [vmem:[#allocation5 + $0x180] ss:$16 sps:$4 sm:$0xff]  }
  0x54   :  { %3339 = vmatpush1.bf16.msra.mxu1 %v5871_v23  ;;  %3287 = vmatprep.subr.bf16.mxu0 %v5872_v24  ;;  %v5904_v45 = vld [vmem:[#allocation5 + $0x384] ss:$16 sps:$4 sm:$0xff]   ;;  %v5907_v51 = vld [vmem:[#allocation5 + $0x380] ss:$16 sps:$4 sm:$0xff]  }
  0x55   :  { %3340 = vmatprep.subr.bf16.mxu1 %v5874_v25  ;;  %v5908_v52 = vld [vmem:[#allocation5 + $0x164] ss:$16 sps:$4 sm:$0xff]   ;;  %v5912_v56 = vld [vmem:[#allocation5 + $0x160] ss:$16 sps:$4 sm:$0xff]  }
  0x56   :  { %v5910_v55 = vld [vmem:[#allocation5 + $0x364] ss:$16 sps:$4 sm:$0xff]   ;;  %v5913_v57 = vld [vmem:[#allocation5 + $0x360] ss:$16 sps:$4 sm:$0xff]  }
  0x57   :  { %3288 = vmatpush1.bf16.msra.mxu0 %v5876_v26  ;;  %v5914_v58 = vld [vmem:[#allocation5 + $0x144] ss:$16 sps:$4 sm:$0xff]   ;;  %v5918_v60 = vld [vmem:[#allocation5 + $0x140] ss:$16 sps:$4 sm:$0xff]  }
  0x58   :  { %3341 = vmatpush1.bf16.msra.mxu1 %v5877_v27  ;;  %3289 = vmatprep.subr.bf16.mxu0 %v5878_v28  ;;  %v5916_v59 = vld [vmem:[#allocation5 + $0x344] ss:$16 sps:$4 sm:$0xff]   ;;  %v5919_v61 = vld [vmem:[#allocation5 + $0x340] ss:$16 sps:$4 sm:$0xff]  }
  0x59   :  { %3342 = vmatprep.subr.bf16.mxu1 %v5880_v29  ;;  %v5920_v62 = vld [vmem:[#allocation5 + $0x124] ss:$16 sps:$4 sm:$0xff]   ;;  %v5924_v0 = vld [vmem:[#allocation5 + $0x120] ss:$16 sps:$4 sm:$0xff]  }
  0x5a   :  { %v5922_v63 = vld [vmem:[#allocation5 + $0x324] ss:$16 sps:$4 sm:$0xff]   ;;  %v5925_v1 = vld [vmem:[#allocation5 + $0x320] ss:$16 sps:$4 sm:$0xff]  }
  0x5b   :  { %3290 = vmatpush1.bf16.msra.mxu0 %v5882_v30  ;;  %v5926_v2 = vld [vmem:[#allocation5 + $0x104] ss:$16 sps:$4 sm:$0xff]   ;;  %v5930_v4 = vld [vmem:[#allocation5 + $0x100] ss:$16 sps:$4 sm:$0xff]  }
  0x5c   :  { %3343 = vmatpush1.bf16.msra.mxu1 %v5883_v31  ;;  %3291 = vmatprep.subr.bf16.mxu0 %v5884_v32  ;;  %v5928_v3 = vld [vmem:[#allocation5 + $0x304] ss:$16 sps:$4 sm:$0xff]   ;;  %v5931_v5 = vld [vmem:[#allocation5 + $0x300] ss:$16 sps:$4 sm:$0xff]  }
  0x5d   :  { %3344 = vmatprep.subr.bf16.mxu1 %v5886_v33  ;;  %v85_v6 = vld [vmem:[#allocation2] sm:$0xff]  ;;  %v87_v8 = vld [vmem:[#allocation2 + $0x10] sm:$0xff] }
  0x5e   :  { %v101_v7 = vld [vmem:[#allocation2 + $0x80] sm:$0xff]  ;;  %v103_v9 = vld [vmem:[#allocation2 + $0x90] sm:$0xff] }
  0x5f   :  { %3292 = vmatpush2.bf16.msra.mxu0 %v5888_v34  ;;  %v5934_v10 = vld [vmem:[#allocation5 + $0x4e4] ss:$16 sps:$4 sm:$0xff]   ;;  %v6988_v12 = vpack.c.bf16 %v101_v7, %v85_v6  ;;  %v6990_v13 = vpack.c.bf16 %v103_v9, %v87_v8  ;;  %v5932_v14 = vld [vmem:[#allocation5 + $0x4e0] ss:$16 sps:$4 sm:$0xff]   ;;  %v118_v34 = vld [vmem:[#allocation2 + $0x108] sm:$0xff] }
  0x60   :  { %3345 = vmatpush2.bf16.msra.mxu1 %v5889_v35  ;;  %3293 = vmatprep.subr.bf16.mxu0 %v5890_v36  ;;  %v5937_v11 = vld [vmem:[#allocation5 + $0x6e4] ss:$16 sps:$4 sm:$0xff]   ;;  %v5935_v15 = vld [vmem:[#allocation5 + $0x6e0] ss:$16 sps:$4 sm:$0xff]   ;;  %v134_v35 = vld [vmem:[#allocation2 + $0x188] sm:$0xff] }
  0x61   :  { %3346 = vmatprep.subr.bf16.mxu1 %v5892_v37  ;;  %v5940_v16 = vld [vmem:[#allocation5 + $0x4c4] ss:$16 sps:$4 sm:$0xff]   ;;  %v5938_v18 = vld [vmem:[#allocation5 + $0x4c0] ss:$16 sps:$4 sm:$0xff]   ;;  %v6994_v37 = vpack.c.bf16 %v134_v35, %v118_v34 }
  0x62   :  { %v5943_v17 = vld [vmem:[#allocation5 + $0x6c4] ss:$16 sps:$4 sm:$0xff]   ;;  %v5941_v19 = vld [vmem:[#allocation5 + $0x6c0] ss:$16 sps:$4 sm:$0xff]  }
  0x63   :  { %3294 = vmatpush2.bf16.msra.mxu0 %v5894_v38  ;;  %v5946_v20 = vld [vmem:[#allocation5 + $0x4a4] ss:$16 sps:$4 sm:$0xff]   ;;  %v5944_v22 = vld [vmem:[#allocation5 + $0x4a0] ss:$16 sps:$4 sm:$0xff]  }
  0x64   :  { %3347 = vmatpush2.bf16.msra.mxu1 %v5895_v39  ;;  %3295 = vmatprep.subr.bf16.mxu0 %v5896_v40  ;;  %v5949_v21 = vld [vmem:[#allocation5 + $0x6a4] ss:$16 sps:$4 sm:$0xff]   ;;  %v5947_v23 = vld [vmem:[#allocation5 + $0x6a0] ss:$16 sps:$4 sm:$0xff]   ;;  %v120_v39 = vld [vmem:[#allocation2 + $0x118] sm:$0xff] }
  0x65   :  { %3348 = vmatprep.subr.bf16.mxu1 %v5898_v41  ;;  %v5952_v24 = vld [vmem:[#allocation5 + $0x484] ss:$16 sps:$4 sm:$0xff]   ;;  %v5950_v26 = vld [vmem:[#allocation5 + $0x480] ss:$16 sps:$4 sm:$0xff]   ;;  %v136_v40 = vld [vmem:[#allocation2 + $0x198] sm:$0xff] }
  0x66   :  { %v5955_v25 = vld [vmem:[#allocation5 + $0x684] ss:$16 sps:$4 sm:$0xff]   ;;  %v5953_v27 = vld [vmem:[#allocation5 + $0x680] ss:$16 sps:$4 sm:$0xff]  }
  0x67   :  { %3296 = vmatpush2.bf16.msra.mxu0 %v5900_v42  ;;  %v5958_v28 = vld [vmem:[#allocation5 + $0x464] ss:$16 sps:$4 sm:$0xff]   ;;  %v5956_v30 = vld [vmem:[#allocation5 + $0x460] ss:$16 sps:$4 sm:$0xff]  }
  0x68   :  { %3349 = vmatpush2.bf16.msra.mxu1 %v5901_v43  ;;  %3297 = vmatprep.subr.bf16.mxu0 %v5902_v44  ;;  %v5961_v29 = vld [vmem:[#allocation5 + $0x664] ss:$16 sps:$4 sm:$0xff]   ;;  %v5959_v31 = vld [vmem:[#allocation5 + $0x660] ss:$16 sps:$4 sm:$0xff]   ;;  %v6998_v43 = vpack.c.bf16 %v136_v40, %v120_v39 }
  0x69   :  { %3350 = vmatprep.subr.bf16.mxu1 %v5904_v45  ;;  %v5964_v32 = vld [vmem:[#allocation5 + $0x444] ss:$16 sps:$4 sm:$0xff]   ;;  %v5962_v41 = vld [vmem:[#allocation5 + $0x440] ss:$16 sps:$4 sm:$0xff]  }
  0x6a   :  { %v5967_v33 = vld [vmem:[#allocation5 + $0x644] ss:$16 sps:$4 sm:$0xff]   ;;  %v5965_v44 = vld [vmem:[#allocation5 + $0x640] ss:$16 sps:$4 sm:$0xff]  }
  0x6b   :  { %3298 = vmatpush2.bf16.msra.mxu0 %v5906_v50  ;;  %v117_v36 = vld [vmem:[#allocation2 + $0x100] sm:$0xff]  ;;  %v119_v47 = vld [vmem:[#allocation2 + $0x110] sm:$0xff] }
  0x6c   :  { %3351 = vmatpush2.bf16.msra.mxu1 %v5907_v51  ;;  %3299 = vmatprep.subr.bf16.mxu0 %v5908_v52  ;;  %v133_v38 = vld [vmem:[#allocation2 + $0x180] sm:$0xff]  ;;  %v135_v48 = vld [vmem:[#allocation2 + $0x190] sm:$0xff] }
  0x6d   :  { %3352 = vmatprep.subr.bf16.mxu1 %v5910_v55  ;;  %v6996_v42 = vpack.c.bf16 %v133_v38, %v117_v36  ;;  %v5970_v45 = vld [vmem:[#allocation5 + $0x424] ss:$16 sps:$4 sm:$0xff]   ;;  %v7003_v49 = vpack.c.bf16 %v135_v48, %v119_v47  ;;  %v5968_v50 = vld [vmem:[#allocation5 + $0x420] ss:$16 sps:$4 sm:$0xff]  }
  0x6e   :  { %v5973_v46 = vld [vmem:[#allocation5 + $0x624] ss:$16 sps:$4 sm:$0xff]   ;;  %v5971_v51 = vld [vmem:[#allocation5 + $0x620] ss:$16 sps:$4 sm:$0xff]  }
  0x6f   :  { %3300 = vmatpush2.bf16.msra.mxu0 %v5912_v56  ;;  %v5976_v52 = vld [vmem:[#allocation5 + $0x404] ss:$16 sps:$4 sm:$0xff]   ;;  %v90_v56 = vld [vmem:[#allocation2 + $0x28] sm:$0xff]  ;;  %v5986_v6 = vld [vmem:[#allocation5 + $0x5c0] ss:$16 sps:$4 sm:$0xff]  }
  0x70   :  { %3353 = vmatpush2.bf16.msra.mxu1 %v5913_v57  ;;  %3301 = vmatprep.subr.bf16.mxu0 %v5914_v58  ;;  %v5979_v55 = vld [vmem:[#allocation5 + $0x604] ss:$16 sps:$4 sm:$0xff]   ;;  %v106_v57 = vld [vmem:[#allocation2 + $0xa8] sm:$0xff]  ;;  %v92_v58 = vld [vmem:[#allocation2 + $0x38] sm:$0xff] }
  0x71   :  { %3354 = vmatprep.subr.bf16.mxu1 %v5916_v59  ;;  %v108_v59 = vld [vmem:[#allocation2 + $0xb8] sm:$0xff]  ;;  %v5989_v7 = vld [vmem:[#allocation5 + $0x7c0] ss:$16 sps:$4 sm:$0xff]   ;;  %v5994_v8 = vld [vmem:[#allocation5 + $0x5a4] ss:$16 sps:$4 sm:$0xff]  }
  0x72   :  { %v5997_v9 = vld [vmem:[#allocation5 + $0x7a4] ss:$16 sps:$4 sm:$0xff]  }
  0x73   :  { %3302 = vmatpush2.bf16.msra.mxu0 %v5918_v60  ;;  %v5974_v60 = vld [vmem:[#allocation5 + $0x400] ss:$16 sps:$4 sm:$0xff]   ;;  %v6030_v39 = vld [vmem:[#allocation5 + $0x8e4] ss:$16 sps:$4 sm:$0xff]  }
  0x74   :  { %3355 = vmatpush2.bf16.msra.mxu1 %v5919_v61  ;;  %3303 = vmatprep.subr.bf16.mxu0 %v5920_v62  ;;  %v5977_v61 = vld [vmem:[#allocation5 + $0x600] ss:$16 sps:$4 sm:$0xff]   ;;  %v5982_v62 = vld [vmem:[#allocation5 + $0x5e4] ss:$16 sps:$4 sm:$0xff]  }
  0x75   :  { %3356 = vmatprep.subr.bf16.mxu1 %v5922_v63  ;;  %v7006_v63 = vpack.c.bf16 %v106_v57, %v90_v56  ;;  %v89_v34 = vld [vmem:[#allocation2 + $0x20] sm:$0xff]  ;;  %v91_v36 = vld [vmem:[#allocation2 + $0x30] sm:$0xff] }
  0x76   :  { %v105_v35 = vld [vmem:[#allocation2 + $0xa0] sm:$0xff]  ;;  %v107_v38 = vld [vmem:[#allocation2 + $0xb0] sm:$0xff] }
  0x77   :  { %3304 = vmatpush2.bf16.msra.mxu0 %v5924_v0  ;;  %v7008_v0 = vpack.c.bf16 %v108_v59, %v92_v58  ;;  %v6033_v40 = vld [vmem:[#allocation5 + $0xae4] ss:$16 sps:$4 sm:$0xff]   ;;  %v7012_v47 = vpack.c.bf16 %v105_v35, %v89_v34  ;;  %v7014_v48 = vpack.c.bf16 %v107_v38, %v91_v36  ;;  %v6034_v56 = vld [vmem:[#allocation5 + $0x8c0] ss:$16 sps:$4 sm:$0xff]  }
  0x78   :  { %3357 = vmatpush2.bf16.msra.mxu1 %v5925_v1  ;;  %3305 = vmatprep.subr.bf16.mxu0 %v5926_v2  ;;  %v5985_v1 = vld [vmem:[#allocation5 + $0x7e4] ss:$16 sps:$4 sm:$0xff]   ;;  %v5980_v2 = vld [vmem:[#allocation5 + $0x5e0] ss:$16 sps:$4 sm:$0xff]  }
  0x79   :  { %3358 = vmatprep.subr.bf16.mxu1 %v5928_v3  ;;  %v5983_v3 = vld [vmem:[#allocation5 + $0x7e0] ss:$16 sps:$4 sm:$0xff]   ;;  %v6078_v36 = vld [vmem:[#allocation5 + $0x9e4] ss:$16 sps:$4 sm:$0xff]  }
  0x7a   :  { %v6037_v57 = vld [vmem:[#allocation5 + $0xac0] ss:$16 sps:$4 sm:$0xff]   ;;  %v6081_v38 = vld [vmem:[#allocation5 + $0xbe4] ss:$16 sps:$4 sm:$0xff]  }
  0x7b   :  { %3306 = vmatpush2.bf16.msra.mxu0 %v5930_v4  ;;  %v5988_v4 = vld [vmem:[#allocation5 + $0x5c4] ss:$16 sps:$4 sm:$0xff]   ;;  %v6070_v34 = vld [vmem:[#allocation5 + $0x800] ss:$16 sps:$4 sm:$0xff]  }
  0x7c   :  { %3359 = vmatpush2.bf16.msra.mxu1 %v5931_v5  ;;  %3381 = vmatprep.subr.bf16.mxu0 %v5934_v10  ;;  %v5991_v5 = vld [vmem:[#allocation5 + $0x7c4] ss:$16 sps:$4 sm:$0xff]   ;;  %v5992_v10 = vld [vmem:[#allocation5 + $0x5a0] ss:$16 sps:$4 sm:$0xff]  }
  0x7d   :  { %3434 = vmatprep.subr.bf16.mxu1 %v5937_v11  ;;  %v5995_v11 = vld [vmem:[#allocation5 + $0x7a0] ss:$16 sps:$4 sm:$0xff]  }
  0x7e   :  { %3308 = vmatmul.mubr.bf16.vlgmr.msra.gmra.mxu0 %v6988_v12  ;;  %v121_v59 = vld [vmem:[#allocation2 + $0x120] sm:$0xff] }
  0x7f   :  { %3361 = vmatmul.mubr.bf16.vlgmr.msra.gmra.mxu1 %v6990_v13  ;;  %3382 = vmatpush1.bf16.msra.mxu0 %v5932_v14  ;;  %v6000_v14 = vld [vmem:[#allocation5 + $0x584] ss:$16 sps:$4 sm:$0xff]   ;;  %v6073_v35 = vld [vmem:[#allocation5 + $0xa00] ss:$16 sps:$4 sm:$0xff]  }
  0x80   :  { %3435 = vmatpush1.bf16.msra.mxu1 %v5935_v15  ;;  %3383 = vmatprep.subr.bf16.mxu0 %v5940_v16  ;;  %v6003_v15 = vld [vmem:[#allocation5 + $0x784] ss:$16 sps:$4 sm:$0xff]   ;;  %v5998_v16 = vld [vmem:[#allocation5 + $0x580] ss:$16 sps:$4 sm:$0xff]  }
  0x81   :  { %3436 = vmatprep.subr.bf16.mxu1 %v5943_v17  ;;  %3317 = vmatprep.mubr.bf16.mxu0 %v6994_v37  ;;  %v6001_v17 = vld [vmem:[#allocation5 + $0x780] ss:$16 sps:$4 sm:$0xff]  }
  0x82   :  { %3370 = vmatprep.mubr.bf16.mxu1 %v6998_v43 }
  0x83   :  { %3384 = vmatpush1.bf16.msra.mxu0 %v5938_v18  ;;  %v6006_v18 = vld [vmem:[#allocation5 + $0x564] ss:$16 sps:$4 sm:$0xff]  }
  0x84   :  { %3437 = vmatpush1.bf16.msra.mxu1 %v5941_v19  ;;  %3385 = vmatprep.subr.bf16.mxu0 %v5946_v20  ;;  %v6009_v19 = vld [vmem:[#allocation5 + $0x764] ss:$16 sps:$4 sm:$0xff]   ;;  %v6004_v20 = vld [vmem:[#allocation5 + $0x560] ss:$16 sps:$4 sm:$0xff]  }
  0x85   :  { %3438 = vmatprep.subr.bf16.mxu1 %v5949_v21  ;;  %v6007_v21 = vld [vmem:[#allocation5 + $0x760] ss:$16 sps:$4 sm:$0xff]  }
  0x86   :  { %3318 = vmatmul.mubr.bf16.gmra.mxu0 %v6996_v42 }
  0x87   :  { %3386 = vmatpush1.bf16.msra.mxu0 %v5944_v22  ;;  %3371 = vmatmul.mubr.bf16.gmra.mxu1 %v7003_v49  ;;  %v6012_v22 = vld [vmem:[#allocation5 + $0x544] ss:$16 sps:$4 sm:$0xff]  }
  0x88   :  { %3439 = vmatpush1.bf16.msra.mxu1 %v5947_v23  ;;  %3387 = vmatprep.subr.bf16.mxu0 %v5952_v24  ;;  %v6015_v23 = vld [vmem:[#allocation5 + $0x744] ss:$16 sps:$4 sm:$0xff]   ;;  %v6010_v24 = vld [vmem:[#allocation5 + $0x540] ss:$16 sps:$4 sm:$0xff]  }
  0x89   :  { %3440 = vmatprep.subr.bf16.mxu1 %v5955_v25  ;;  %3413 = vmatprep.mubr.bf16.mxu0 %v7006_v63  ;;  %v6013_v25 = vld [vmem:[#allocation5 + $0x740] ss:$16 sps:$4 sm:$0xff]  }
  0x8a   :  { %3466 = vmatprep.mubr.bf16.mxu1 %v7008_v0 }
  0x8b   :  { %3388 = vmatpush1.bf16.msra.mxu0 %v5950_v26  ;;  %v6018_v26 = vld [vmem:[#allocation5 + $0x524] ss:$16 sps:$4 sm:$0xff]  }
  0x8c   :  { %3441 = vmatpush1.bf16.msra.mxu1 %v5953_v27  ;;  %3389 = vmatprep.subr.bf16.mxu0 %v5958_v28  ;;  %v6021_v27 = vld [vmem:[#allocation5 + $0x724] ss:$16 sps:$4 sm:$0xff]   ;;  %v6016_v28 = vld [vmem:[#allocation5 + $0x520] ss:$16 sps:$4 sm:$0xff]  }
  0x8d   :  { %3442 = vmatprep.subr.bf16.mxu1 %v5961_v29  ;;  %v6019_v29 = vld [vmem:[#allocation5 + $0x720] ss:$16 sps:$4 sm:$0xff]  }
  0x8f   :  { %3390 = vmatpush1.bf16.msra.mxu0 %v5956_v30  ;;  %v6024_v30 = vld [vmem:[#allocation5 + $0x504] ss:$16 sps:$4 sm:$0xff]  }
  0x90   :  { %3443 = vmatpush1.bf16.msra.mxu1 %v5959_v31  ;;  %3391 = vmatprep.subr.bf16.mxu0 %v5964_v32  ;;  %v6027_v31 = vld [vmem:[#allocation5 + $0x704] ss:$16 sps:$4 sm:$0xff]   ;;  %v6022_v32 = vld [vmem:[#allocation5 + $0x500] ss:$16 sps:$4 sm:$0xff]  }
  0x91   :  { %3444 = vmatprep.subr.bf16.mxu1 %v5967_v33  ;;  %v6025_v33 = vld [vmem:[#allocation5 + $0x700] ss:$16 sps:$4 sm:$0xff]  }
  0x93   :  { %3392 = vmatpush1.bf16.msra.mxu0 %v5962_v41  ;;  %v6028_v41 = vld [vmem:[#allocation5 + $0x8e0] ss:$16 sps:$4 sm:$0xff]  }
  0x94   :  { %3445 = vmatpush1.bf16.msra.mxu1 %v5965_v44  ;;  %3393 = vmatprep.subr.bf16.mxu0 %v5970_v45  ;;  %v6031_v44 = vld [vmem:[#allocation5 + $0xae0] ss:$16 sps:$4 sm:$0xff]   ;;  %v122_v45 = vld [vmem:[#allocation2 + $0x128] sm:$0xff] }
  0x95   :  { %3446 = vmatprep.subr.bf16.mxu1 %v5973_v46  ;;  %v138_v46 = vld [vmem:[#allocation2 + $0x1a8] sm:$0xff] }
  0x96   :  { %v7016_v58 = vpack.c.bf16 %v138_v46, %v122_v45  ;;  %v6082_v45 = vld [vmem:[#allocation5 + $0x9c0] ss:$16 sps:$4 sm:$0xff]  }
  0x97   :  { %3394 = vmatpush1.bf16.msra.mxu0 %v5968_v50  ;;  %v124_v50 = vld [vmem:[#allocation2 + $0x138] sm:$0xff]  ;;  %v6085_v46 = vld [vmem:[#allocation5 + $0xbc0] ss:$16 sps:$4 sm:$0xff]  }
  0x98   :  { %3447 = vmatpush1.bf16.msra.mxu1 %v5971_v51  ;;  %3395 = vmatprep.subr.bf16.mxu0 %v5976_v52  ;;  %v140_v51 = vld [vmem:[#allocation2 + $0x1b8] sm:$0xff]  ;;  %v6036_v52 = vld [vmem:[#allocation5 + $0x8c4] ss:$16 sps:$4 sm:$0xff]  }
  0x99   :  { %3448 = vmatprep.subr.bf16.mxu1 %v5979_v55  ;;  %v6039_v55 = vld [vmem:[#allocation5 + $0xac4] ss:$16 sps:$4 sm:$0xff]  }
  0x9b   :  { %3396 = vmatpush1.bf16.msra.mxu0 %v5974_v60  ;;  %v137_v60 = vld [vmem:[#allocation2 + $0x1a0] sm:$0xff] }
  0x9c   :  { %3449 = vmatpush1.bf16.msra.mxu1 %v5977_v61  ;;  %3397 = vmatprep.subr.bf16.mxu0 %v5982_v62  ;;  %v7018_v61 = vpack.c.bf16 %v140_v51, %v124_v50  ;;  %v6042_v62 = vld [vmem:[#allocation5 + $0x8a4] ss:$16 sps:$4 sm:$0xff]  }
  0x9d   :  { %3450 = vmatprep.subr.bf16.mxu1 %v5985_v1  ;;  %v123_v1 = vld [vmem:[#allocation2 + $0x130] sm:$0xff] }
  0x9e   :  { %v6090_v50 = vld [vmem:[#allocation5 + $0x9a4] ss:$16 sps:$4 sm:$0xff]  }
  0x9f   :  { %3398 = vmatpush2.bf16.msra.mxu0 %v5980_v2  ;;  %v139_v2 = vld [vmem:[#allocation2 + $0x1b0] sm:$0xff] }
  0xa0   :  { %3451 = vmatpush2.bf16.msra.mxu1 %v5983_v3  ;;  %3399 = vmatprep.subr.bf16.mxu0 %v5988_v4  ;;  %v6045_v3 = vld [vmem:[#allocation5 + $0xaa4] ss:$16 sps:$4 sm:$0xff]   ;;  %v7024_v4 = vpack.c.bf16 %v137_v60, %v121_v59  ;;  %v6094_v59 = vld [vmem:[#allocation5 + $0x980] ss:$16 sps:$4 sm:$0xff]  }
  0xa1   :  { %3452 = vmatprep.subr.bf16.mxu1 %v5991_v5  ;;  %v6040_v5 = vld [vmem:[#allocation5 + $0x8a0] ss:$16 sps:$4 sm:$0xff]   ;;  %v6093_v51 = vld [vmem:[#allocation5 + $0xba4] ss:$16 sps:$4 sm:$0xff]  }
  0xa2   :  { %v6097_v60 = vld [vmem:[#allocation5 + $0xb80] ss:$16 sps:$4 sm:$0xff]  }
  0xa3   :  { %3400 = vmatpush2.bf16.msra.mxu0 %v5986_v6  ;;  %v6043_v6 = vld [vmem:[#allocation5 + $0xaa0] ss:$16 sps:$4 sm:$0xff]  }
  0xa4   :  { %3453 = vmatpush2.bf16.msra.mxu1 %v5989_v7  ;;  %3401 = vmatprep.subr.bf16.mxu0 %v5994_v8  ;;  %v7026_v7 = vpack.c.bf16 %v139_v2, %v123_v1  ;;  %v6048_v8 = vld [vmem:[#allocation5 + $0x884] ss:$16 sps:$4 sm:$0xff]   ;;  %v6100_v2 = vld [vmem:[#allocation5 + $0x960] ss:$16 sps:$4 sm:$0xff]  }
  0xa5   :  { %3454 = vmatprep.subr.bf16.mxu1 %v5997_v9  ;;  %v6051_v9 = vld [vmem:[#allocation5 + $0xa84] ss:$16 sps:$4 sm:$0xff]  }
  0xa6   :  { %v6105_v1 = vld [vmem:[#allocation5 + $0xb64] ss:$16 sps:$4 sm:$0xff]  }
  0xa7   :  { %3402 = vmatpush2.bf16.msra.mxu0 %v5992_v10  ;;  %v94_v10 = vld [vmem:[#allocation2 + $0x48] sm:$0xff] }
  0xa8   :  { %3455 = vmatpush2.bf16.msra.mxu1 %v5995_v11  ;;  %3403 = vmatprep.subr.bf16.mxu0 %v6000_v14  ;;  %v110_v11 = vld [vmem:[#allocation2 + $0xc8] sm:$0xff]  ;;  %v96_v14 = vld [vmem:[#allocation2 + $0x58] sm:$0xff] }
  0xa9   :  { %3456 = vmatprep.subr.bf16.mxu1 %v6003_v15  ;;  %v112_v15 = vld [vmem:[#allocation2 + $0xd8] sm:$0xff] }
  0xab   :  { %3404 = vmatpush2.bf16.msra.mxu0 %v5998_v16  ;;  %v6046_v16 = vld [vmem:[#allocation5 + $0x880] ss:$16 sps:$4 sm:$0xff]  }
  0xac   :  { %3457 = vmatpush2.bf16.msra.mxu1 %v6001_v17  ;;  %3405 = vmatprep.subr.bf16.mxu0 %v6006_v18  ;;  %v6049_v17 = vld [vmem:[#allocation5 + $0xa80] ss:$16 sps:$4 sm:$0xff]   ;;  %v6054_v18 = vld [vmem:[#allocation5 + $0x864] ss:$16 sps:$4 sm:$0xff]  }
  0xad   :  { %3458 = vmatprep.subr.bf16.mxu1 %v6009_v19  ;;  %v7030_v19 = vpack.c.bf16 %v110_v11, %v94_v10  ;;  %v6114_v10 = vld [vmem:[#allocation5 + $0x924] ss:$16 sps:$4 sm:$0xff]  }
  0xae   :  { %v6117_v11 = vld [vmem:[#allocation5 + $0xb24] ss:$16 sps:$4 sm:$0xff]  }
  0xaf   :  { %3406 = vmatpush2.bf16.msra.mxu0 %v6004_v20  ;;  %v7032_v20 = vpack.c.bf16 %v112_v15, %v96_v14  ;;  %v6112_v14 = vld [vmem:[#allocation5 + $0x920] ss:$16 sps:$4 sm:$0xff]  }
  0xb0   :  { %3459 = vmatpush2.bf16.msra.mxu1 %v6007_v21  ;;  %3407 = vmatprep.subr.bf16.mxu0 %v6012_v22  ;;  %v6057_v21 = vld [vmem:[#allocation5 + $0xa64] ss:$16 sps:$4 sm:$0xff]   ;;  %v6052_v22 = vld [vmem:[#allocation5 + $0x860] ss:$16 sps:$4 sm:$0xff]  }
  0xb1   :  { %3460 = vmatprep.subr.bf16.mxu1 %v6015_v23  ;;  %v6055_v23 = vld [vmem:[#allocation5 + $0xa60] ss:$16 sps:$4 sm:$0xff]  }
  0xb2   :  { %v6115_v15 = vld [vmem:[#allocation5 + $0xb20] ss:$16 sps:$4 sm:$0xff]  }
  0xb3   :  { %3408 = vmatpush2.bf16.msra.mxu0 %v6010_v24  ;;  %v6060_v24 = vld [vmem:[#allocation5 + $0x844] ss:$16 sps:$4 sm:$0xff]  }
  0xb4   :  { %3461 = vmatpush2.bf16.msra.mxu1 %v6013_v25  ;;  %3409 = vmatprep.subr.bf16.mxu0 %v6018_v26  ;;  %v6063_v25 = vld [vmem:[#allocation5 + $0xa44] ss:$16 sps:$4 sm:$0xff]   ;;  %v6058_v26 = vld [vmem:[#allocation5 + $0x840] ss:$16 sps:$4 sm:$0xff]  }
  0xb5   :  { %3462 = vmatprep.subr.bf16.mxu1 %v6021_v27  ;;  %v6061_v27 = vld [vmem:[#allocation5 + $0xa40] ss:$16 sps:$4 sm:$0xff]  }
  0xb7   :  { %3410 = vmatpush2.bf16.msra.mxu0 %v6016_v28  ;;  %v6066_v28 = vld [vmem:[#allocation5 + $0x824] ss:$16 sps:$4 sm:$0xff]  }
  0xb8   :  { %3463 = vmatpush2.bf16.msra.mxu1 %v6019_v29  ;;  %3411 = vmatprep.subr.bf16.mxu0 %v6024_v30  ;;  %v6069_v29 = vld [vmem:[#allocation5 + $0xa24] ss:$16 sps:$4 sm:$0xff]   ;;  %v6064_v30 = vld [vmem:[#allocation5 + $0x820] ss:$16 sps:$4 sm:$0xff]  }
  0xb9   :  { %3464 = vmatprep.subr.bf16.mxu1 %v6027_v31  ;;  %v6067_v31 = vld [vmem:[#allocation5 + $0xa20] ss:$16 sps:$4 sm:$0xff]  }
  0xbb   :  { %3412 = vmatpush2.bf16.msra.mxu0 %v6022_v32  ;;  %v6072_v32 = vld [vmem:[#allocation5 + $0x804] ss:$16 sps:$4 sm:$0xff]  }
  0xbc   :  { %3465 = vmatpush2.bf16.msra.mxu1 %v6025_v33  ;;  %3487 = vmatprep.subr.bf16.mxu0 %v6030_v39  ;;  %v6075_v33 = vld [vmem:[#allocation5 + $0xa04] ss:$16 sps:$4 sm:$0xff]   ;;  %v6076_v39 = vld [vmem:[#allocation5 + $0x9e0] ss:$16 sps:$4 sm:$0xff]  }
  0xbd   :  { %3540 = vmatprep.subr.bf16.mxu1 %v6033_v40  ;;  %v6079_v40 = vld [vmem:[#allocation5 + $0xbe0] ss:$16 sps:$4 sm:$0xff]  }
  0xbe   :  { %3414 = vmatmul.mubr.bf16.vlgmr.msra.gmra.mxu0 %v7012_v47 }
  0xbf   :  { %3467 = vmatmul.mubr.bf16.vlgmr.msra.gmra.mxu1 %v7014_v48  ;;  %3488 = vmatpush1.bf16.msra.mxu0 %v6028_v41  ;;  %v6084_v41 = vld [vmem:[#allocation5 + $0x9c4] ss:$16 sps:$4 sm:$0xff]  }
  0xc0   :  { %3541 = vmatpush1.bf16.msra.mxu1 %v6031_v44  ;;  %3489 = vmatprep.subr.bf16.mxu0 %v6036_v52  ;;  %v6087_v44 = vld [vmem:[#allocation5 + $0xbc4] ss:$16 sps:$4 sm:$0xff]   ;;  %v6088_v52 = vld [vmem:[#allocation5 + $0x9a0] ss:$16 sps:$4 sm:$0xff]  }
  0xc1   :  { %3542 = vmatprep.subr.bf16.mxu1 %v6039_v55  ;;  %3423 = vmatprep.mubr.bf16.mxu0 %v7016_v58  ;;  %v6091_v55 = vld [vmem:[#allocation5 + $0xba0] ss:$16 sps:$4 sm:$0xff]  }
  0xc2   :  { %3476 = vmatprep.mubr.bf16.mxu1 %v7018_v61 }
  0xc3   :  { %3490 = vmatpush1.bf16.msra.mxu0 %v6034_v56  ;;  %v6096_v56 = vld [vmem:[#allocation5 + $0x984] ss:$16 sps:$4 sm:$0xff]  }
  0xc4   :  { %3543 = vmatpush1.bf16.msra.mxu1 %v6037_v57  ;;  %3491 = vmatprep.subr.bf16.mxu0 %v6042_v62  ;;  %v6099_v57 = vld [vmem:[#allocation5 + $0xb84] ss:$16 sps:$4 sm:$0xff]  }
  0xc5   :  { %3544 = vmatprep.subr.bf16.mxu1 %v6045_v3  ;;  %v6102_v62 = vld [vmem:[#allocation5 + $0x964] ss:$16 sps:$4 sm:$0xff]   ;;  %v6103_v3 = vld [vmem:[#allocation5 + $0xb60] ss:$16 sps:$4 sm:$0xff]  }
  0xc6   :  { %3424 = vmatmul.mubr.bf16.gmra.mxu0 %v7024_v4 }
  0xc7   :  { %3477 = vmatmul.mubr.bf16.gmra.mxu1 %v7026_v7  ;;  %3492 = vmatpush1.bf16.msra.mxu0 %v6040_v5  ;;  %v6108_v5 = vld [vmem:[#allocation5 + $0x944] ss:$16 sps:$4 sm:$0xff]  }
  0xc8   :  { %3545 = vmatpush1.bf16.msra.mxu1 %v6043_v6  ;;  %3493 = vmatprep.subr.bf16.mxu0 %v6048_v8  ;;  %v6111_v6 = vld [vmem:[#allocation5 + $0xb44] ss:$16 sps:$4 sm:$0xff]   ;;  %v6106_v8 = vld [vmem:[#allocation5 + $0x940] ss:$16 sps:$4 sm:$0xff]  }
  0xc9   :  { %3546 = vmatprep.subr.bf16.mxu1 %v6051_v9  ;;  %3519 = vmatprep.mubr.bf16.mxu0 %v7030_v19  ;;  %v6109_v9 = vld [vmem:[#allocation5 + $0xb40] ss:$16 sps:$4 sm:$0xff]  }
  0xca   :  { %3572 = vmatprep.mubr.bf16.mxu1 %v7032_v20 }
  0xcb   :  { %3494 = vmatpush1.bf16.msra.mxu0 %v6046_v16  ;;  %v6120_v16 = vld [vmem:[#allocation5 + $0x904] ss:$16 sps:$4 sm:$0xff]  }
  0xcc   :  { %3547 = vmatpush1.bf16.msra.mxu1 %v6049_v17  ;;  %3495 = vmatprep.subr.bf16.mxu0 %v6054_v18  ;;  %v6123_v17 = vld [vmem:[#allocation5 + $0xb04] ss:$16 sps:$4 sm:$0xff]   ;;  %v6118_v18 = vld [vmem:[#allocation5 + $0x900] ss:$16 sps:$4 sm:$0xff]  }
  0xcd   :  { %3548 = vmatprep.subr.bf16.mxu1 %v6057_v21  ;;  %v6121_v21 = vld [vmem:[#allocation5 + $0xb00] ss:$16 sps:$4 sm:$0xff]  }
  0xcf   :  { %3496 = vmatpush1.bf16.msra.mxu0 %v6052_v22  ;;  %v93_v22 = vld [vmem:[#allocation2 + $0x40] sm:$0xff] }
  0xd0   :  { %3549 = vmatpush1.bf16.msra.mxu1 %v6055_v23  ;;  %3497 = vmatprep.subr.bf16.mxu0 %v6060_v24  ;;  %v109_v23 = vld [vmem:[#allocation2 + $0xc0] sm:$0xff]  ;;  %v95_v24 = vld [vmem:[#allocation2 + $0x50] sm:$0xff] }
  0xd1   :  { %3550 = vmatprep.subr.bf16.mxu1 %v6063_v25  ;;  %v111_v25 = vld [vmem:[#allocation2 + $0xd0] sm:$0xff] }
  0xd3   :  { %3498 = vmatpush1.bf16.msra.mxu0 %v6058_v26  ;;  %v6126_v26 = vld [vmem:[#allocation5 + $0xce4] ss:$16 sps:$4 sm:$0xff]  }
  0xd4   :  { %3551 = vmatpush1.bf16.msra.mxu1 %v6061_v27  ;;  %3499 = vmatprep.subr.bf16.mxu0 %v6066_v28  ;;  %v6129_v27 = vld [vmem:[#allocation5 + $0xee4] ss:$16 sps:$4 sm:$0xff]   ;;  %v126_v28 = vld [vmem:[#allocation2 + $0x148] sm:$0xff] }
  0xd5   :  { %3552 = vmatprep.subr.bf16.mxu1 %v6069_v29  ;;  %v6124_v29 = vld [vmem:[#allocation5 + $0xce0] ss:$16 sps:$4 sm:$0xff]  }
  0xd7   :  { %3500 = vmatpush1.bf16.msra.mxu0 %v6064_v30  ;;  %v142_v30 = vld [vmem:[#allocation2 + $0x1c8] sm:$0xff] }
  0xd8   :  { %3553 = vmatpush1.bf16.msra.mxu1 %v6067_v31  ;;  %3501 = vmatprep.subr.bf16.mxu0 %v6072_v32  ;;  %v128_v31 = vld [vmem:[#allocation2 + $0x158] sm:$0xff]  ;;  %v7036_v32 = vpack.c.bf16 %v109_v23, %v93_v22  ;;  %v6154_v22 = vld [vmem:[#allocation5 + $0xc40] ss:$16 sps:$4 sm:$0xff]  }
  0xd9   :  { %3554 = vmatprep.subr.bf16.mxu1 %v6075_v33  ;;  %v7038_v33 = vpack.c.bf16 %v111_v25, %v95_v24  ;;  %v6157_v23 = vld [vmem:[#allocation5 + $0xe40] ss:$16 sps:$4 sm:$0xff]   ;;  %v6162_v24 = vld [vmem:[#allocation5 + $0xc24] ss:$16 sps:$4 sm:$0xff]  }
  0xda   :  { %v6165_v25 = vld [vmem:[#allocation5 + $0xe24] ss:$16 sps:$4 sm:$0xff]  }
  0xdb   :  { %3502 = vmatpush1.bf16.msra.mxu0 %v6070_v34  ;;  %v144_v34 = vld [vmem:[#allocation2 + $0x1d8] sm:$0xff] }
  0xdc   :  { %3555 = vmatpush1.bf16.msra.mxu1 %v6073_v35  ;;  %3503 = vmatprep.subr.bf16.mxu0 %v6078_v36  ;;  %v6127_v35 = vld [vmem:[#allocation5 + $0xee0] ss:$16 sps:$4 sm:$0xff]   ;;  %v6132_v36 = vld [vmem:[#allocation5 + $0xcc4] ss:$16 sps:$4 sm:$0xff]  }
  0xdd   :  { %3556 = vmatprep.subr.bf16.mxu1 %v6081_v38  ;;  %v6135_v38 = vld [vmem:[#allocation5 + $0xec4] ss:$16 sps:$4 sm:$0xff]  }
  0xdf   :  { %3504 = vmatpush2.bf16.msra.mxu0 %v6076_v39  ;;  %v6130_v39 = vld [vmem:[#allocation5 + $0xcc0] ss:$16 sps:$4 sm:$0xff]  }
  0xe0   :  { %3557 = vmatpush2.bf16.msra.mxu1 %v6079_v40  ;;  %3505 = vmatprep.subr.bf16.mxu0 %v6084_v41  ;;  %v6133_v40 = vld [vmem:[#allocation5 + $0xec0] ss:$16 sps:$4 sm:$0xff]   ;;  %v7040_v41 = vpack.c.bf16 %v142_v30, %v126_v28  ;;  %v6168_v28 = vld [vmem:[#allocation5 + $0xc04] ss:$16 sps:$4 sm:$0xff]  }
  0xe1   :  { %3558 = vmatprep.subr.bf16.mxu1 %v6087_v44  ;;  %v7042_v44 = vpack.c.bf16 %v144_v34, %v128_v31  ;;  %v6166_v30 = vld [vmem:[#allocation5 + $0xc00] ss:$16 sps:$4 sm:$0xff]   ;;  %v6174_v34 = vld [vmem:[#allocation5 + $0xde4] ss:$16 sps:$4 sm:$0xff]  }
  0xe2   :  { %v6169_v31 = vld [vmem:[#allocation5 + $0xe00] ss:$16 sps:$4 sm:$0xff]  }
  0xe3   :  { %3506 = vmatpush2.bf16.msra.mxu0 %v6082_v45  ;;  %v125_v45 = vld [vmem:[#allocation2 + $0x140] sm:$0xff] }
  0xe4   :  { %3559 = vmatpush2.bf16.msra.mxu1 %v6085_v46  ;;  %3507 = vmatprep.subr.bf16.mxu0 %v6090_v50  ;;  %v141_v46 = vld [vmem:[#allocation2 + $0x1c0] sm:$0xff]  ;;  %v127_v50 = vld [vmem:[#allocation2 + $0x150] sm:$0xff] }
  0xe5   :  { %3560 = vmatprep.subr.bf16.mxu1 %v6093_v51  ;;  %v143_v51 = vld [vmem:[#allocation2 + $0x1d0] sm:$0xff] }
  0xe7   :  { %3508 = vmatpush2.bf16.msra.mxu0 %v6088_v52  ;;  %v6138_v52 = vld [vmem:[#allocation5 + $0xca4] ss:$16 sps:$4 sm:$0xff]  }
  0xe8   :  { %3561 = vmatpush2.bf16.msra.mxu1 %v6091_v55  ;;  %3509 = vmatprep.subr.bf16.mxu0 %v6096_v56  ;;  %v6141_v55 = vld [vmem:[#allocation5 + $0xea4] ss:$16 sps:$4 sm:$0xff]   ;;  %v6136_v56 = vld [vmem:[#allocation5 + $0xca0] ss:$16 sps:$4 sm:$0xff]  }
  0xe9   :  { %3562 = vmatprep.subr.bf16.mxu1 %v6099_v57  ;;  %v98_v57 = vld [vmem:[#allocation2 + $0x68] sm:$0xff] }
  0xeb   :  { %3510 = vmatpush2.bf16.msra.mxu0 %v6094_v59  ;;  %v7048_v59 = vpack.c.bf16 %v141_v46, %v125_v45  ;;  %v6178_v45 = vld [vmem:[#allocation5 + $0xdc0] ss:$16 sps:$4 sm:$0xff]  }
  0xec   :  { %3563 = vmatpush2.bf16.msra.mxu1 %v6097_v60  ;;  %3511 = vmatprep.subr.bf16.mxu0 %v6102_v62  ;;  %v7050_v60 = vpack.c.bf16 %v143_v51, %v127_v50  ;;  %v114_v62 = vld [vmem:[#allocation2 + $0xe8] sm:$0xff]  ;;  %v6181_v46 = vld [vmem:[#allocation5 + $0xfc0] ss:$16 sps:$4 sm:$0xff]   ;;  %v6186_v50 = vld [vmem:[#allocation5 + $0xda4] ss:$16 sps:$4 sm:$0xff]  }
  0xed   :  { %3564 = vmatprep.subr.bf16.mxu1 %v6105_v1  ;;  %v100_v1 = vld [vmem:[#allocation2 + $0x78] sm:$0xff]  ;;  %v6189_v51 = vld [vmem:[#allocation5 + $0xfa4] ss:$16 sps:$4 sm:$0xff]  }
  0xef   :  { %3512 = vmatpush2.bf16.msra.mxu0 %v6100_v2  ;;  %v116_v2 = vld [vmem:[#allocation2 + $0xf8] sm:$0xff] }
  0xf0   :  { %3565 = vmatpush2.bf16.msra.mxu1 %v6103_v3  ;;  %3513 = vmatprep.subr.bf16.mxu0 %v6108_v5  ;;  %v6139_v3 = vld [vmem:[#allocation5 + $0xea0] ss:$16 sps:$4 sm:$0xff]   ;;  %v6144_v5 = vld [vmem:[#allocation5 + $0xc84] ss:$16 sps:$4 sm:$0xff]  }
  0xf1   :  { %3566 = vmatprep.subr.bf16.mxu1 %v6111_v6  ;;  %v6147_v6 = vld [vmem:[#allocation5 + $0xe84] ss:$16 sps:$4 sm:$0xff]  }
  0xf3   :  { %3514 = vmatpush2.bf16.msra.mxu0 %v6106_v8  ;;  %v7052_v8 = vpack.c.bf16 %v114_v62, %v98_v57  ;;  %v6195_v57 = vld [vmem:[#allocation5 + $0xf84] ss:$16 sps:$4 sm:$0xff]   ;;  %v6190_v62 = vld [vmem:[#allocation5 + $0xd80] ss:$16 sps:$4 sm:$0xff]  }
  0xf4   :  { %3567 = vmatpush2.bf16.msra.mxu1 %v6109_v9  ;;  %3515 = vmatprep.subr.bf16.mxu0 %v6114_v10  ;;  %v7054_v9 = vpack.c.bf16 %v116_v2, %v100_v1  ;;  %v6142_v10 = vld [vmem:[#allocation5 + $0xc80] ss:$16 sps:$4 sm:$0xff]   ;;  %v6198_v2 = vld [vmem:[#allocation5 + $0xd64] ss:$16 sps:$4 sm:$0xff]  }
  0xf5   :  { %3568 = vmatprep.subr.bf16.mxu1 %v6117_v11  ;;  %v6145_v11 = vld [vmem:[#allocation5 + $0xe80] ss:$16 sps:$4 sm:$0xff]  }
  0xf6   :  { %v6193_v1 = vld [vmem:[#allocation5 + $0xf80] ss:$16 sps:$4 sm:$0xff]  }
  0xf7   :  { %3516 = vmatpush2.bf16.msra.mxu0 %v6112_v14  ;;  %v6150_v14 = vld [vmem:[#allocation5 + $0xc64] ss:$16 sps:$4 sm:$0xff]  }
  0xf8   :  { %3569 = vmatpush2.bf16.msra.mxu1 %v6115_v15  ;;  %3517 = vmatprep.subr.bf16.mxu0 %v6120_v16  ;;  %v6153_v15 = vld [vmem:[#allocation5 + $0xe64] ss:$16 sps:$4 sm:$0xff]   ;;  %v6148_v16 = vld [vmem:[#allocation5 + $0xc60] ss:$16 sps:$4 sm:$0xff]  }
  0xf9   :  { %3570 = vmatprep.subr.bf16.mxu1 %v6123_v17  ;;  %v6151_v17 = vld [vmem:[#allocation5 + $0xe60] ss:$16 sps:$4 sm:$0xff]  }
  0xfb   :  { %3518 = vmatpush2.bf16.msra.mxu0 %v6118_v18  ;;  %v6156_v18 = vld [vmem:[#allocation5 + $0xc44] ss:$16 sps:$4 sm:$0xff]  }
  0xfc   :  { %3571 = vmatpush2.bf16.msra.mxu1 %v6121_v21  ;;  %3593 = vmatprep.subr.bf16.mxu0 %v6126_v26  ;;  %v6159_v21 = vld [vmem:[#allocation5 + $0xe44] ss:$16 sps:$4 sm:$0xff]   ;;  %v6160_v26 = vld [vmem:[#allocation5 + $0xc20] ss:$16 sps:$4 sm:$0xff]  }
  0xfd   :  { %3646 = vmatprep.subr.bf16.mxu1 %v6129_v27  ;;  %v6163_v27 = vld [vmem:[#allocation5 + $0xe20] ss:$16 sps:$4 sm:$0xff]  }
  0xfe   :  { %3520 = vmatmul.mubr.bf16.vlgmr.msra.gmra.mxu0 %v7036_v32 }
  0xff   :  { %3573 = vmatmul.mubr.bf16.vlgmr.msra.gmra.mxu1 %v7038_v33  ;;  %3594 = vmatpush1.bf16.msra.mxu0 %v6124_v29  ;;  %v6171_v29 = vld [vmem:[#allocation5 + $0xe04] ss:$16 sps:$4 sm:$0xff]  }
 0x100   :  { %3647 = vmatpush1.bf16.msra.mxu1 %v6127_v35  ;;  %3595 = vmatprep.subr.bf16.mxu0 %v6132_v36  ;;  %v6177_v35 = vld [vmem:[#allocation5 + $0xfe4] ss:$16 sps:$4 sm:$0xff]   ;;  %v6172_v36 = vld [vmem:[#allocation5 + $0xde0] ss:$16 sps:$4 sm:$0xff]  }
 0x101   :  { %3648 = vmatprep.subr.bf16.mxu1 %v6135_v38  ;;  %3529 = vmatprep.mubr.bf16.mxu0 %v7040_v41  ;;  %v6175_v38 = vld [vmem:[#allocation5 + $0xfe0] ss:$16 sps:$4 sm:$0xff]  }
 0x102   :  { %3582 = vmatprep.mubr.bf16.mxu1 %v7042_v44 }
 0x103   :  { %3596 = vmatpush1.bf16.msra.mxu0 %v6130_v39  ;;  %v6180_v39 = vld [vmem:[#allocation5 + $0xdc4] ss:$16 sps:$4 sm:$0xff]  }
 0x104   :  { %3649 = vmatpush1.bf16.msra.mxu1 %v6133_v40  ;;  %3597 = vmatprep.subr.bf16.mxu0 %v6138_v52  ;;  %v6183_v40 = vld [vmem:[#allocation5 + $0xfc4] ss:$16 sps:$4 sm:$0xff]   ;;  %v6184_v52 = vld [vmem:[#allocation5 + $0xda0] ss:$16 sps:$4 sm:$0xff]  }
 0x105   :  { %3650 = vmatprep.subr.bf16.mxu1 %v6141_v55  ;;  %v6187_v55 = vld [vmem:[#allocation5 + $0xfa0] ss:$16 sps:$4 sm:$0xff]  }
 0x106   :  { %3530 = vmatmul.mubr.bf16.gmra.mxu0 %v7048_v59 }
 0x107   :  { %3583 = vmatmul.mubr.bf16.gmra.mxu1 %v7050_v60  ;;  %3598 = vmatpush1.bf16.msra.mxu0 %v6136_v56  ;;  %v6192_v56 = vld [vmem:[#allocation5 + $0xd84] ss:$16 sps:$4 sm:$0xff]  }
 0x108   :  { %3651 = vmatpush1.bf16.msra.mxu1 %v6139_v3  ;;  %3599 = vmatprep.subr.bf16.mxu0 %v6144_v5  ;;  %v6201_v3 = vld [vmem:[#allocation5 + $0xf64] ss:$16 sps:$4 sm:$0xff]   ;;  %v6196_v5 = vld [vmem:[#allocation5 + $0xd60] ss:$16 sps:$4 sm:$0xff]  }
 0x109   :  { %3652 = vmatprep.subr.bf16.mxu1 %v6147_v6  ;;  %3625 = vmatprep.mubr.bf16.mxu0 %v7052_v8  ;;  %v6199_v6 = vld [vmem:[#allocation5 + $0xf60] ss:$16 sps:$4 sm:$0xff]  }
 0x10a   :  { %3678 = vmatprep.mubr.bf16.mxu1 %v7054_v9 }
 0x10b   :  { %3600 = vmatpush1.bf16.msra.mxu0 %v6142_v10  ;;  %v6204_v10 = vld [vmem:[#allocation5 + $0xd44] ss:$16 sps:$4 sm:$0xff]  }
 0x10c   :  { %3653 = vmatpush1.bf16.msra.mxu1 %v6145_v11  ;;  %3601 = vmatprep.subr.bf16.mxu0 %v6150_v14  ;;  %v6207_v11 = vld [vmem:[#allocation5 + $0xf44] ss:$16 sps:$4 sm:$0xff]   ;;  %v6202_v14 = vld [vmem:[#allocation5 + $0xd40] ss:$16 sps:$4 sm:$0xff]  }
 0x10d   :  { %3654 = vmatprep.subr.bf16.mxu1 %v6153_v15  ;;  %v6205_v15 = vld [vmem:[#allocation5 + $0xf40] ss:$16 sps:$4 sm:$0xff]  }
 0x10f   :  { %3602 = vmatpush1.bf16.msra.mxu0 %v6148_v16  ;;  %v695_v16 = vlaneseq }
 0x110   :  { %3655 = vmatpush1.bf16.msra.mxu1 %v6151_v17  ;;  %3603 = vmatprep.subr.bf16.mxu0 %v6156_v18  ;;  %v6210_v17 = vld [vmem:[#allocation5 + $0xd24] ss:$16 sps:$4 sm:$0xff]  }
 0x111   :  { %3656 = vmatprep.subr.bf16.mxu1 %v6159_v21  ;;  %v6213_v18 = vld [vmem:[#allocation5 + $0xf24] ss:$16 sps:$4 sm:$0xff]   ;;  %v6208_v21 = vld [vmem:[#allocation5 + $0xd20] ss:$16 sps:$4 sm:$0xff]  }
 0x113   :  { %3604 = vmatpush1.bf16.msra.mxu0 %v6154_v22  ;;  %v6211_v22 = vld [vmem:[#allocation5 + $0xf20] ss:$16 sps:$4 sm:$0xff]  }
 0x114   :  { %3657 = vmatpush1.bf16.msra.mxu1 %v6157_v23  ;;  %3605 = vmatprep.subr.bf16.mxu0 %v6162_v24  ;;  %v7060_v23 = vshrl.u32 %v695_v16, 7  ;;  %v6216_v24 = vld [vmem:[#allocation5 + $0xd04] ss:$16 sps:$4 sm:$0xff]  }
 0x115   :  { %3658 = vmatprep.subr.bf16.mxu1 %v6165_v25  ;;  %v6219_v25 = vld [vmem:[#allocation5 + $0xf04] ss:$16 sps:$4 sm:$0xff]  }
 0x117   :  { %3606 = vmatpush1.bf16.msra.mxu0 %v6160_v26  ;;  %v6214_v26 = vld [vmem:[#allocation5 + $0xd00] ss:$16 sps:$4 sm:$0xff]  }
 0x118   :  { %3659 = vmatpush1.bf16.msra.mxu1 %v6163_v27  ;;  %3607 = vmatprep.subr.bf16.mxu0 %v6168_v28  ;;  %v6217_v27 = vld [vmem:[#allocation5 + $0xf00] ss:$16 sps:$4 sm:$0xff]  }
 0x119   :  { %3660 = vmatprep.subr.bf16.mxu1 %v6171_v29  ;;  %v97_v28 = vld [vmem:[#allocation2 + $0x60] sm:$0xff] }
 0x11a   :  { %v113_v29 = vld [vmem:[#allocation2 + $0xe0] sm:$0xff] }
 0x11b   :  { %3608 = vmatpush1.bf16.msra.mxu0 %v6166_v30  ;;  %v99_v30 = vld [vmem:[#allocation2 + $0x70] sm:$0xff] }
 0x11c   :  { %3661 = vmatpush1.bf16.msra.mxu1 %v6169_v31  ;;  %3609 = vmatprep.subr.bf16.mxu0 %v6174_v34  ;;  %v7062_v31 = vld [vmem:[#allocation7] sm:$0xf]  ;;  %v115_v34 = vld [vmem:[#allocation2 + $0xf0] sm:$0xff] }
 0x11d   :  { %3662 = vmatprep.subr.bf16.mxu1 %v6177_v35  ;;  %v697_v35 = vsub.s32 0, %v7060_v23 }
 0x11f   :  { %3610 = vmatpush2.bf16.msra.mxu0 %v6172_v36  ;;  %v6222_v36 = vld [vmem:[#allocation5 + $0xec] ss:$16 sps:$4 sm:$0xff]  }
 0x120   :  { %3663 = vmatpush2.bf16.msra.mxu1 %v6175_v38  ;;  %3611 = vmatprep.subr.bf16.mxu0 %v6180_v39  ;;  %v6225_v38 = vld [vmem:[#allocation5 + $0x2ec] ss:$16 sps:$4 sm:$0xff]  }
 0x121   :  { %3664 = vmatprep.subr.bf16.mxu1 %v6183_v40  ;;  %v130_v39 = vld [vmem:[#allocation2 + $0x168] sm:$0xff] }
 0x122   :  { %v6220_v40 = vld [vmem:[#allocation5 + $0xe8] ss:$16 sps:$4 sm:$0xff]  }
 0x123   :  { %3612 = vmatpush2.bf16.msra.mxu0 %v6178_v45  ;;  %v146_v45 = vld [vmem:[#allocation2 + $0x1e8] sm:$0xff] }
 0x124   :  { %3665 = vmatpush2.bf16.msra.mxu1 %v6181_v46  ;;  %3613 = vmatprep.subr.bf16.mxu0 %v6186_v50  ;;  %v132_v46 = vld [vmem:[#allocation2 + $0x178] sm:$0xff]  ;;  %v7065_v50 = vpack.c.bf16 %v113_v29, %v97_v28 }
 0x125   :  { %3666 = vmatprep.subr.bf16.mxu1 %v6189_v51  ;;  %v7067_v51 = vpack.c.bf16 %v115_v34, %v99_v30  ;;  %v6232_v28 = vld [vmem:[#allocation5 + $0xa8] ss:$16 sps:$4 sm:$0xff]  }
 0x126   :  { %v6235_v34 = vld [vmem:[#allocation5 + $0x2a8] ss:$16 sps:$4 sm:$0xff]  }
 0x127   :  { %3614 = vmatpush2.bf16.msra.mxu0 %v6184_v52  ;;  %v148_v52 = vld [vmem:[#allocation2 + $0x1f8] sm:$0xff] }
 0x128   :  { %3667 = vmatpush2.bf16.msra.mxu1 %v6187_v55  ;;  %3615 = vmatprep.subr.bf16.mxu0 %v6192_v56  ;;  %v7072_v55 = vrot.slane %v7062_v31, %v697_v35  ;;  %v6223_v56 = vld [vmem:[#allocation5 + $0x2e8] ss:$16 sps:$4 sm:$0xff]  }
 0x129   :  { %3668 = vmatprep.subr.bf16.mxu1 %v6195_v57  ;;  %v6228_v57 = vld [vmem:[#allocation5 + $0xcc] ss:$16 sps:$4 sm:$0xff]  }
 0x12b   :  { %3616 = vmatpush2.bf16.msra.mxu0 %v6190_v62  ;;  %v6231_v62 = vld [vmem:[#allocation5 + $0x2cc] ss:$16 sps:$4 sm:$0xff]  }
 0x12c   :  { %3669 = vmatpush2.bf16.msra.mxu1 %v6193_v1  ;;  %3617 = vmatprep.subr.bf16.mxu0 %v6198_v2  ;;  %v6226_v1 = vld [vmem:[#allocation5 + $0xc8] ss:$16 sps:$4 sm:$0xff]  }
 0x12d   :  { %3670 = vmatprep.subr.bf16.mxu1 %v6201_v3  ;;  %v6229_v2 = vld [vmem:[#allocation5 + $0x2c8] ss:$16 sps:$4 sm:$0xff]   ;;  %v7074_v3 = vpack.c.bf16 %v146_v45, %v130_v39  ;;  %v6243_v39 = vld [vmem:[#allocation5 + $0x28c] ss:$16 sps:$4 sm:$0xff]  }
 0x12e   :  { %v6238_v45 = vld [vmem:[#allocation5 + $0x88] ss:$16 sps:$4 sm:$0xff]  }
 0x12f   :  { %3618 = vmatpush2.bf16.msra.mxu0 %v6196_v5  ;;  %v129_v5 = vld [vmem:[#allocation2 + $0x160] sm:$0xff] }
 0x130   :  { %3671 = vmatpush2.bf16.msra.mxu1 %v6199_v6  ;;  %3619 = vmatprep.subr.bf16.mxu0 %v6204_v10  ;;  %v145_v6 = vld [vmem:[#allocation2 + $0x1e0] sm:$0xff]  ;;  %v7076_v10 = vpack.c.bf16 %v148_v52, %v132_v46  ;;  %v6241_v46 = vld [vmem:[#allocation5 + $0x288] ss:$16 sps:$4 sm:$0xff]   ;;  %v6246_v52 = vld [vmem:[#allocation5 + $0x6c] ss:$16 sps:$4 sm:$0xff]  }
 0x131   :  { %3672 = vmatprep.subr.bf16.mxu1 %v6207_v11 }
 0x133   :  { %3620 = vmatpush2.bf16.msra.mxu0 %v6202_v14 }
 0x134   :  { %3673 = vmatpush2.bf16.msra.mxu1 %v6205_v15  ;;  %3621 = vmatprep.subr.bf16.mxu0 %v6210_v17  ;;  %v131_v15 = vld [vmem:[#allocation2 + $0x170] sm:$0xff] }
 0x135   :  { %3674 = vmatprep.subr.bf16.mxu1 %v6213_v18  ;;  %v147_v17 = vld [vmem:[#allocation2 + $0x1f0] sm:$0xff] }
 0x136   :  { %v7091_v29 = vpack.c.bf16 %v147_v17, %v131_v15  ;;  %v6256_v17 = vld [vmem:[#allocation5 + $0x28] ss:$16 sps:$4 sm:$0xff]  }
 0x137   :  { %3622 = vmatpush2.bf16.msra.mxu0 %v6208_v21 }
 0x138   :  { %3675 = vmatpush2.bf16.msra.mxu1 %v6211_v22  ;;  %3623 = vmatprep.subr.bf16.mxu0 %v6216_v24  ;;  %v6234_v22 = vld [vmem:[#allocation5 + $0xac] ss:$16 sps:$4 sm:$0xff]  }
 0x139   :  { %3676 = vmatprep.subr.bf16.mxu1 %v6219_v25  ;;  %v6237_v24 = vld [vmem:[#allocation5 + $0x2ac] ss:$16 sps:$4 sm:$0xff]  }
 0x13b   :  { %3624 = vmatpush2.bf16.msra.mxu0 %v6214_v26 }
 0x13c   :  { %3677 = vmatpush2.bf16.msra.mxu1 %v6217_v27  ;;  %3699 = vmatprep.subr.bf16.mxu0 %v6222_v36  ;;  %v7089_v27 = vpack.c.bf16 %v145_v6, %v129_v5  ;;  %v7311_v5 = vsub.s32 1, %v7060_v23  ;;  %v6250_v6 = vld [vmem:[#allocation5 + $0x48] ss:$16 sps:$4 sm:$0xff]  }
 0x13d   :  { %3752 = vmatprep.subr.bf16.mxu1 %v6225_v38  ;;  %v6240_v38 = vld [vmem:[#allocation5 + $0x8c] ss:$16 sps:$4 sm:$0xff]  }
 0x13e   :  { %v3309_v11 = vpop.f32.mrf.mxu0  ;;  %3626 = vmatmul.mubr.bf16.vlgmr.msra.gmra.mxu0 %v7065_v50 }
 0x13f   :  { %v3362_v14 = vpop.f32.mrf.mxu1  ;;  %3679 = vmatmul.mubr.bf16.vlgmr.msra.gmra.mxu1 %v7067_v51  ;;  %v3310_v16 = vadd.f32 %v3309_v11, %v7072_v55  ;;  %3700 = vmatpush1.bf16.msra.mxu0 %v6220_v40 }
 0x140   :  { %3753 = vmatpush1.bf16.msra.mxu1 %v6223_v56  ;;  %v7081_v18 = vpop.f32.mrf.mxu0  ;;  %3701 = vmatprep.subr.bf16.mxu0 %v6228_v57  ;;  %v6249_v56 = vld [vmem:[#allocation5 + $0x26c] ss:$16 sps:$4 sm:$0xff]   ;;  %v6244_v57 = vld [vmem:[#allocation5 + $0x68] ss:$16 sps:$4 sm:$0xff]  }
 0x141   :  { %v7083_v21 = vpop.f32.mrf.mxu1  ;;  %3754 = vmatprep.subr.bf16.mxu1 %v6231_v62  ;;  %v7085_v25 = vadd.f32 %v3362_v14, %v3310_v16  ;;  %3635 = vmatprep.mubr.bf16.mxu0 %v7074_v3  ;;  %v6247_v62 = vld [vmem:[#allocation5 + $0x268] ss:$16 sps:$4 sm:$0xff]   ;;  %v7106_v16 = vrot.slane %v7062_v31, %v7311_v5 }
 0x142   :  { %3688 = vmatprep.mubr.bf16.mxu1 %v7076_v10  ;;  %v3313_v26 = vpop.f32.mrf.mxu0  ;;  %v6253_v14 = vld [vmem:[#allocation5 + $0x248] ss:$16 sps:$4 sm:$0xff]  }
 0x143   :  { %v3314_v30 = vadd.f32 %v3313_v26, %v7072_v55  ;;  %3702 = vmatpush1.bf16.msra.mxu0 %v6226_v1  ;;  %v3366_v36 = vpop.f32.mrf.mxu1  ;;  %v6252_v1 = vld [vmem:[#allocation5 + $0x4c] ss:$16 sps:$4 sm:$0xff]   ;;  %v6259_v26 = vld [vmem:[#allocation5 + $0x228] ss:$16 sps:$4 sm:$0xff]  }
 0x144   :  { %3755 = vmatpush1.bf16.msra.mxu1 %v6229_v2  ;;  %3703 = vmatprep.subr.bf16.mxu0 %v6234_v22  ;;  %v6255_v2 = vld [vmem:[#allocation5 + $0x24c] ss:$16 sps:$4 sm:$0xff]   ;;  %v7101_v11 = vpop.f32.mrf.mxu0 }
 0x145   :  { %3756 = vmatprep.subr.bf16.mxu1 %v6237_v24  ;;  %v7094_v40 = vadd.f32 %v3366_v36, %v3314_v30  ;;  %v7109_v24 = vpop.f32.mrf.mxu1  ;;  %v6264_v30 = vld [vmem:[#allocation5 + $0xc] ss:$16 sps:$4 sm:$0xff]  }
 0x146   :  { %3636 = vmatmul.mubr.bf16.gmra.mxu0 %v7089_v27  ;;  %v3319_v15 = vpop.f32.mrf.mxu0 }
 0x147   :  { %3689 = vmatmul.mubr.bf16.gmra.mxu1 %v7091_v29  ;;  %3704 = vmatpush1.bf16.msra.mxu0 %v6232_v28  ;;  %v3320_v22 = vadd.f32 %v3319_v15, %v7072_v55 }
 0x148   :  { %3757 = vmatpush1.bf16.msra.mxu1 %v6235_v34  ;;  %3705 = vmatprep.subr.bf16.mxu0 %v6240_v38  ;;  %v3321_v28 = vpop.f32.mrf.mxu0  ;;  %v6267_v34 = vld [vmem:[#allocation5 + $0x20c] ss:$16 sps:$4 sm:$0xff]   ;;  %v3372_v38 = vpop.f32.mrf.mxu1 }
 0x149   :  { %3758 = vmatprep.subr.bf16.mxu1 %v6243_v39  ;;  %3731 = vmatprep.mubr.bf16.mxu0 %v6982_v53  ;;  %v6258_v53 = vld [vmem:[#allocation5 + $0x2c] ss:$16 sps:$4 sm:$0xff]   ;;  %v3322_v36 = vadd.f32 %v3321_v28, %v7106_v16  ;;  %v7112_v31 = vadd.f32 %v3372_v38, %v3320_v22  ;;  %v6274_v28 = vld [vmem:[#allocation5 + $0x1c8] ss:$16 sps:$4 sm:$0xff]  }
 0x14a   :  { %3784 = vmatprep.mubr.bf16.mxu1 %v6984_v54  ;;  %v6261_v54 = vld [vmem:[#allocation5 + $0x22c] ss:$16 sps:$4 sm:$0xff]   ;;  %v3323_v39 = vpop.f32.mrf.mxu0  ;;  %v6280_v38 = vld [vmem:[#allocation5 + $0x1a8] ss:$16 sps:$4 sm:$0xff]  }
 0x14b   :  { %3706 = vmatpush1.bf16.msra.mxu0 %v6238_v45  ;;  %v6262_v45 = vld [vmem:[#allocation5 + $0x8] ss:$16 sps:$4 sm:$0xff]   ;;  %v6279_v22 = vld [vmem:[#allocation5 + $0x3cc] ss:$16 sps:$4 sm:$0xff]  }
 0x14c   :  { %3759 = vmatpush1.bf16.msra.mxu1 %v6241_v46  ;;  %3707 = vmatprep.subr.bf16.mxu0 %v6246_v52  ;;  %v3324_v46 = vadd.f32 %v3323_v39, %v7072_v55  ;;  %v6265_v52 = vld [vmem:[#allocation5 + $0x208] ss:$16 sps:$4 sm:$0xff]  }
 0x14d   :  { %3760 = vmatprep.subr.bf16.mxu1 %v6249_v56  ;;  %v3374_v56 = vpop.f32.mrf.mxu1  ;;  %v6271_v55 = vld [vmem:[#allocation5 + $0x3e8] ss:$16 sps:$4 sm:$0xff]  }
 0x14e   :  { %v6283_v39 = vld [vmem:[#allocation5 + $0x3a8] ss:$16 sps:$4 sm:$0xff]  }
 0x14f   :  { %3708 = vmatpush1.bf16.msra.mxu0 %v6244_v57  ;;  %v3325_v57 = vpop.f32.mrf.mxu0 }
 0x150   :  { %3761 = vmatpush1.bf16.msra.mxu1 %v6247_v62  ;;  %3709 = vmatprep.subr.bf16.mxu0 %v6252_v1  ;;  %v6270_v62 = vld [vmem:[#allocation5 + $0x1ec] ss:$16 sps:$4 sm:$0xff]  }
 0x151   :  { %3762 = vmatprep.subr.bf16.mxu1 %v6255_v2  ;;  %v6273_v1 = vld [vmem:[#allocation5 + $0x3ec] ss:$16 sps:$4 sm:$0xff]   ;;  %v7115_v2 = vadd.f32 %v3374_v56, %v3322_v36  ;;  %v6289_v56 = vld [vmem:[#allocation5 + $0x388] ss:$16 sps:$4 sm:$0xff]  }
 0x152   :  { %v6285_v36 = vld [vmem:[#allocation5 + $0x3ac] ss:$16 sps:$4 sm:$0xff]  }
 0x153   :  { %3710 = vmatpush1.bf16.msra.mxu0 %v6250_v6  ;;  %v3326_v6 = vadd.f32 %v3325_v57, %v7106_v16  ;;  %v6294_v57 = vld [vmem:[#allocation5 + $0x16c] ss:$16 sps:$4 sm:$0xff]  }
 0x154   :  { %3763 = vmatpush1.bf16.msra.mxu1 %v6253_v14  ;;  %3711 = vmatprep.subr.bf16.mxu0 %v6258_v53  ;;  %v3376_v14 = vpop.f32.mrf.mxu1  ;;  %v6268_v53 = vld [vmem:[#allocation5 + $0x1e8] ss:$16 sps:$4 sm:$0xff]  }
 0x155   :  { %3764 = vmatprep.subr.bf16.mxu1 %v6261_v54  ;;  %v7118_v54 = vadd.f32 %v3376_v14, %v3324_v46  ;;  %v6291_v46 = vld [vmem:[#allocation5 + $0x38c] ss:$16 sps:$4 sm:$0xff]  }
 0x156   :  { %v3378_v15 = vpop.f32.mrf.mxu1  ;;  %v6300_v14 = vld [vmem:[#allocation5 + $0x14c] ss:$16 sps:$4 sm:$0xff]  }
 0x157   :  { %3712 = vmatpush1.bf16.msra.mxu0 %v6256_v17  ;;  %v6276_v17 = vld [vmem:[#allocation5 + $0x1cc] ss:$16 sps:$4 sm:$0xff]  }
 0x158   :  { %3765 = vmatpush1.bf16.msra.mxu1 %v6259_v26  ;;  %3713 = vmatprep.subr.bf16.mxu0 %v6264_v30  ;;  %v7120_v26 = vadd.f32 %v3378_v15, %v3326_v6  ;;  %v6277_v30 = vld [vmem:[#allocation5 + $0x3c8] ss:$16 sps:$4 sm:$0xff]  }
 0x159   :  { %3766 = vmatprep.subr.bf16.mxu1 %v6267_v34  ;;  %v6282_v34 = vld [vmem:[#allocation5 + $0x1ac] ss:$16 sps:$4 sm:$0xff]   ;;  %v6295_v6 = vld [vmem:[#allocation5 + $0x368] ss:$16 sps:$4 sm:$0xff]  }
 0x15a   :  { %v6301_v15 = vld [vmem:[#allocation5 + $0x348] ss:$16 sps:$4 sm:$0xff]  }
 0x15b   :  { %3714 = vmatpush1.bf16.msra.mxu0 %v6262_v45  ;;  %v6288_v45 = vld [vmem:[#allocation5 + $0x18c] ss:$16 sps:$4 sm:$0xff]  }
 0x15c   :  { %3767 = vmatpush1.bf16.msra.mxu1 %v6265_v52  ;;  %3715 = vmatprep.subr.bf16.mxu0 %v6270_v62  ;;  %v6286_v52 = vld [vmem:[#allocation5 + $0x188] ss:$16 sps:$4 sm:$0xff]   ;;  %v6297_v62 = vld [vmem:[#allocation5 + $0x36c] ss:$16 sps:$4 sm:$0xff]  }
 0x15d   :  { %3768 = vmatprep.subr.bf16.mxu1 %v6273_v1  ;;  %v6292_v1 = vld [vmem:[#allocation5 + $0x168] ss:$16 sps:$4 sm:$0xff]  }
 0x15f   :  { %3716 = vmatpush2.bf16.msra.mxu0 %v6268_v53  ;;  %v6303_v53 = vld [vmem:[#allocation5 + $0x34c] ss:$16 sps:$4 sm:$0xff]  }
 0x160   :  { %3769 = vmatpush2.bf16.msra.mxu1 %v6271_v55  ;;  %3717 = vmatprep.subr.bf16.mxu0 %v6276_v17  ;;  %v6298_v55 = vld [vmem:[#allocation5 + $0x148] ss:$16 sps:$4 sm:$0xff]   ;;  %v6306_v17 = vld [vmem:[#allocation5 + $0x12c] ss:$16 sps:$4 sm:$0xff]  }
 0x161   :  { %3770 = vmatprep.subr.bf16.mxu1 %v6279_v22  ;;  %v6309_v22 = vld [vmem:[#allocation5 + $0x32c] ss:$16 sps:$4 sm:$0xff]  }
 0x163   :  { %3718 = vmatpush2.bf16.msra.mxu0 %v6274_v28  ;;  %v6304_v28 = vld [vmem:[#allocation5 + $0x128] ss:$16 sps:$4 sm:$0xff]  }
 0x164   :  { %3771 = vmatpush2.bf16.msra.mxu1 %v6277_v30  ;;  %3719 = vmatprep.subr.bf16.mxu0 %v6282_v34  ;;  %v6307_v30 = vld [vmem:[#allocation5 + $0x328] ss:$16 sps:$4 sm:$0xff]   ;;  %v6312_v34 = vld [vmem:[#allocation5 + $0x10c] ss:$16 sps:$4 sm:$0xff]  }
 0x165   :  { %3772 = vmatprep.subr.bf16.mxu1 %v6285_v36  ;;  %v6315_v36 = vld [vmem:[#allocation5 + $0x30c] ss:$16 sps:$4 sm:$0xff]  }
 0x167   :  { %3720 = vmatpush2.bf16.msra.mxu0 %v6280_v38  ;;  %v6310_v38 = vld [vmem:[#allocation5 + $0x108] ss:$16 sps:$4 sm:$0xff]  }
 0x168   :  { %3773 = vmatpush2.bf16.msra.mxu1 %v6283_v39  ;;  %3721 = vmatprep.subr.bf16.mxu0 %v6288_v45  ;;  %v6313_v39 = vld [vmem:[#allocation5 + $0x308] ss:$16 sps:$4 sm:$0xff]   ;;  %v6318_v45 = vld [vmem:[#allocation5 + $0x4ec] ss:$16 sps:$4 sm:$0xff]  }
 0x169   :  { %3774 = vmatprep.subr.bf16.mxu1 %v6291_v46  ;;  %v6321_v46 = vld [vmem:[#allocation5 + $0x6ec] ss:$16 sps:$4 sm:$0xff]  }
 0x16b   :  { %3722 = vmatpush2.bf16.msra.mxu0 %v6286_v52  ;;  %v6316_v52 = vld [vmem:[#allocation5 + $0x4e8] ss:$16 sps:$4 sm:$0xff]  }
 0x16c   :  { %3775 = vmatpush2.bf16.msra.mxu1 %v6289_v56  ;;  %3723 = vmatprep.subr.bf16.mxu0 %v6294_v57  ;;  %v6319_v56 = vld [vmem:[#allocation5 + $0x6e8] ss:$16 sps:$4 sm:$0xff]   ;;  %v6324_v57 = vld [vmem:[#allocation5 + $0x4cc] ss:$16 sps:$4 sm:$0xff]  }
 0x16d   :  { %3776 = vmatprep.subr.bf16.mxu1 %v6297_v62  ;;  %v6327_v62 = vld [vmem:[#allocation5 + $0x6cc] ss:$16 sps:$4 sm:$0xff]  }
 0x16f   :  { %3724 = vmatpush2.bf16.msra.mxu0 %v6292_v1  ;;  %v6322_v1 = vld [vmem:[#allocation5 + $0x4c8] ss:$16 sps:$4 sm:$0xff]  }
 0x170   :  { %3777 = vmatpush2.bf16.msra.mxu1 %v6295_v6  ;;  %3725 = vmatprep.subr.bf16.mxu0 %v6300_v14  ;;  %v6325_v6 = vld [vmem:[#allocation5 + $0x6c8] ss:$16 sps:$4 sm:$0xff]  }
 0x171   :  { %3778 = vmatprep.subr.bf16.mxu1 %v6303_v53 }
 0x173   :  { %3726 = vmatpush2.bf16.msra.mxu0 %v6298_v55 }
 0x174   :  { %3779 = vmatpush2.bf16.msra.mxu1 %v6301_v15  ;;  %3727 = vmatprep.subr.bf16.mxu0 %v6306_v17 }
 0x175   :  { %3780 = vmatprep.subr.bf16.mxu1 %v6309_v22  ;;  %v6330_v22 = vld [vmem:[#allocation5 + $0x4ac] ss:$16 sps:$4 sm:$0xff]  }
 0x177   :  { %3728 = vmatpush2.bf16.msra.mxu0 %v6304_v28  ;;  %v6333_v28 = vld [vmem:[#allocation5 + $0x6ac] ss:$16 sps:$4 sm:$0xff]  }
 0x178   :  { %3781 = vmatpush2.bf16.msra.mxu1 %v6307_v30  ;;  %3729 = vmatprep.subr.bf16.mxu0 %v6312_v34  ;;  %v6328_v34 = vld [vmem:[#allocation5 + $0x4a8] ss:$16 sps:$4 sm:$0xff]  }
 0x179   :  { %3782 = vmatprep.subr.bf16.mxu1 %v6315_v36  ;;  %v6331_v36 = vld [vmem:[#allocation5 + $0x6a8] ss:$16 sps:$4 sm:$0xff]  }
 0x17b   :  { %3730 = vmatpush2.bf16.msra.mxu0 %v6310_v38 }
 0x17c   :  { %3783 = vmatpush2.bf16.msra.mxu1 %v6313_v39  ;;  %3805 = vmatprep.subr.bf16.mxu0 %v6318_v45  ;;  %v6336_v45 = vld [vmem:[#allocation5 + $0x48c] ss:$16 sps:$4 sm:$0xff]  }
 0x17d   :  { %3858 = vmatprep.subr.bf16.mxu1 %v6321_v46  ;;  %v6339_v46 = vld [vmem:[#allocation5 + $0x68c] ss:$16 sps:$4 sm:$0xff]  }
 0x17e   :  { %v3415_v14 = vpop.f32.mrf.mxu0  ;;  %3732 = vmatmul.mubr.bf16.vlgmr.msra.gmra.mxu0 %v6988_v12 }
 0x17f   :  { %v3468_v53 = vpop.f32.mrf.mxu1  ;;  %3785 = vmatmul.mubr.bf16.vlgmr.msra.gmra.mxu1 %v6990_v13  ;;  %v3416_v55 = vadd.f32 %v3415_v14, %v7085_v25  ;;  %3806 = vmatpush1.bf16.msra.mxu0 %v6316_v52  ;;  %v6345_v14 = vld [vmem:[#allocation5 + $0x66c] ss:$16 sps:$4 sm:$0xff]  }
 0x180   :  { %3859 = vmatpush1.bf16.msra.mxu1 %v6319_v56  ;;  %v7125_v15 = vpop.f32.mrf.mxu0  ;;  %3807 = vmatprep.subr.bf16.mxu0 %v6324_v57  ;;  %v6334_v56 = vld [vmem:[#allocation5 + $0x488] ss:$16 sps:$4 sm:$0xff]  }
 0x181   :  { %v7127_v17 = vpop.f32.mrf.mxu1  ;;  %3860 = vmatprep.subr.bf16.mxu1 %v6327_v62  ;;  %v7129_v30 = vadd.f32 %v3468_v53, %v3416_v55  ;;  %3741 = vmatprep.mubr.bf16.mxu0 %v6994_v37  ;;  %v6337_v37 = vld [vmem:[#allocation5 + $0x688] ss:$16 sps:$4 sm:$0xff]  }
 0x182   :  { %3794 = vmatprep.mubr.bf16.mxu1 %v6998_v43  ;;  %v3419_v12 = vpop.f32.mrf.mxu0 }
 0x183   :  { %v3472_v13 = vpop.f32.mrf.mxu1  ;;  %v3420_v25 = vadd.f32 %v3419_v12, %v7094_v40  ;;  %3808 = vmatpush1.bf16.msra.mxu0 %v6322_v1 }
 0x184   :  { %3861 = vmatpush1.bf16.msra.mxu1 %v6325_v6  ;;  %v7134_v38 = vpop.f32.mrf.mxu0  ;;  %3809 = vmatprep.subr.bf16.mxu0 %v6330_v22  ;;  %v6342_v6 = vld [vmem:[#allocation5 + $0x46c] ss:$16 sps:$4 sm:$0xff]   ;;  %v6340_v22 = vld [vmem:[#allocation5 + $0x468] ss:$16 sps:$4 sm:$0xff]  }
 0x185   :  { %v7136_v39 = vpop.f32.mrf.mxu1  ;;  %3862 = vmatprep.subr.bf16.mxu1 %v6333_v28  ;;  %v7138_v52 = vadd.f32 %v3472_v13, %v3420_v25  ;;  %v6343_v28 = vld [vmem:[#allocation5 + $0x668] ss:$16 sps:$4 sm:$0xff]   ;;  %v6351_v13 = vld [vmem:[#allocation5 + $0x64c] ss:$16 sps:$4 sm:$0xff]  }
 0x186   :  { %v3425_v57 = vpop.f32.mrf.mxu0  ;;  %3742 = vmatmul.mubr.bf16.gmra.mxu0 %v6996_v42 }
 0x187   :  { %v3478_v43 = vpop.f32.mrf.mxu1  ;;  %3795 = vmatmul.mubr.bf16.gmra.mxu1 %v7003_v49  ;;  %v3426_v40 = vadd.f32 %v3425_v57, %v7112_v31  ;;  %3810 = vmatpush1.bf16.msra.mxu0 %v6328_v34  ;;  %v6355_v57 = vld [vmem:[#allocation5 + $0x628] ss:$16 sps:$4 sm:$0xff]  }
 0x188   :  { %3863 = vmatpush1.bf16.msra.mxu1 %v6331_v36  ;;  %v3427_v62 = vpop.f32.mrf.mxu0  ;;  %3811 = vmatprep.subr.bf16.mxu0 %v6336_v45 }
 0x189   :  { %v3480_v1 = vpop.f32.mrf.mxu1  ;;  %3864 = vmatprep.subr.bf16.mxu1 %v6339_v46  ;;  %v3428_v53 = vadd.f32 %v3427_v62, %v7115_v2  ;;  %v7144_v55 = vadd.f32 %v3478_v43, %v3426_v40  ;;  %3837 = vmatprep.mubr.bf16.mxu0 %v7006_v63  ;;  %v6348_v2 = vld [vmem:[#allocation5 + $0x44c] ss:$16 sps:$4 sm:$0xff]   ;;  %v6346_v63 = vld [vmem:[#allocation5 + $0x448] ss:$16 sps:$4 sm:$0xff]  }
 0x18a   :  { %3890 = vmatprep.mubr.bf16.mxu1 %v7008_v0  ;;  %v3429_v42 = vpop.f32.mrf.mxu0  ;;  %v6349_v0 = vld [vmem:[#allocation5 + $0x648] ss:$16 sps:$4 sm:$0xff]   ;;  %v6360_v43 = vld [vmem:[#allocation5 + $0x40c] ss:$16 sps:$4 sm:$0xff]  }
 0x18b   :  { %v3482_v49 = vpop.f32.mrf.mxu1  ;;  %v3430_v31 = vadd.f32 %v3429_v42, %v7118_v54  ;;  %v7149_v34 = vadd.f32 %v3480_v1, %v3428_v53  ;;  %3812 = vmatpush1.bf16.msra.mxu0 %v6334_v56  ;;  %v6354_v54 = vld [vmem:[#allocation5 + $0x42c] ss:$16 sps:$4 sm:$0xff]   ;;  %v6358_v40 = vld [vmem:[#allocation5 + $0x408] ss:$16 sps:$4 sm:$0xff]  }
 0x18c   :  { %3865 = vmatpush1.bf16.msra.mxu1 %v6337_v37  ;;  %v3431_v36 = vpop.f32.mrf.mxu0  ;;  %3813 = vmatprep.subr.bf16.mxu0 %v6342_v6  ;;  %v6357_v56 = vld [vmem:[#allocation5 + $0x62c] ss:$16 sps:$4 sm:$0xff]   ;;  %v6352_v37 = vld [vmem:[#allocation5 + $0x428] ss:$16 sps:$4 sm:$0xff]  }
 0x18d   :  { %v3484_v12 = vpop.f32.mrf.mxu1  ;;  %3866 = vmatprep.subr.bf16.mxu1 %v6345_v14  ;;  %v3432_v25 = vadd.f32 %v3431_v36, %v7120_v26  ;;  %v7152_v45 = vadd.f32 %v3482_v49, %v3430_v31  ;;  %v6363_v26 = vld [vmem:[#allocation5 + $0x60c] ss:$16 sps:$4 sm:$0xff]   ;;  %v6361_v62 = vld [vmem:[#allocation5 + $0x608] ss:$16 sps:$4 sm:$0xff]  }
 0x18e   :  { %v6366_v1 = vld [vmem:[#allocation5 + $0x5ec] ss:$16 sps:$4 sm:$0xff]   ;;  %v6364_v14 = vld [vmem:[#allocation5 + $0x5e8] ss:$16 sps:$4 sm:$0xff]  }
 0x18f   :  { %v7154_v46 = vadd.f32 %v3484_v12, %v3432_v25  ;;  %3814 = vmatpush1.bf16.msra.mxu0 %v6340_v22  ;;  %v6369_v6 = vld [vmem:[#allocation5 + $0x7ec] ss:$16 sps:$4 sm:$0xff]   ;;  %v6367_v53 = vld [vmem:[#allocation5 + $0x7e8] ss:$16 sps:$4 sm:$0xff]  }
 0x190   :  { %3867 = vmatpush1.bf16.msra.mxu1 %v6343_v28  ;;  %3815 = vmatprep.subr.bf16.mxu0 %v6348_v2  ;;  %v6372_v22 = vld [vmem:[#allocation5 + $0x5cc] ss:$16 sps:$4 sm:$0xff]   ;;  %v6370_v42 = vld [vmem:[#allocation5 + $0x5c8] ss:$16 sps:$4 sm:$0xff]  }
 0x191   :  { %3868 = vmatprep.subr.bf16.mxu1 %v6351_v13  ;;  %v6375_v28 = vld [vmem:[#allocation5 + $0x7cc] ss:$16 sps:$4 sm:$0xff]   ;;  %v6373_v49 = vld [vmem:[#allocation5 + $0x7c8] ss:$16 sps:$4 sm:$0xff]  }
 0x192   :  { %v6378_v31 = vld [vmem:[#allocation5 + $0x5ac] ss:$16 sps:$4 sm:$0xff]   ;;  %v6376_v12 = vld [vmem:[#allocation5 + $0x5a8] ss:$16 sps:$4 sm:$0xff]  }
 0x193   :  { %3816 = vmatpush1.bf16.msra.mxu0 %v6346_v63  ;;  %v6381_v36 = vld [vmem:[#allocation5 + $0x7ac] ss:$16 sps:$4 sm:$0xff]   ;;  %v6379_v2 = vld [vmem:[#allocation5 + $0x7a8] ss:$16 sps:$4 sm:$0xff]  }
 0x194   :  { %3869 = vmatpush1.bf16.msra.mxu1 %v6349_v0  ;;  %3817 = vmatprep.subr.bf16.mxu0 %v6354_v54  ;;  %v6384_v13 = vld [vmem:[#allocation5 + $0x58c] ss:$16 sps:$4 sm:$0xff]   ;;  %v6382_v63 = vld [vmem:[#allocation5 + $0x588] ss:$16 sps:$4 sm:$0xff]  }
 0x195   :  { %3870 = vmatprep.subr.bf16.mxu1 %v6357_v56  ;;  %v6387_v25 = vld [vmem:[#allocation5 + $0x78c] ss:$16 sps:$4 sm:$0xff]   ;;  %v6385_v0 = vld [vmem:[#allocation5 + $0x788] ss:$16 sps:$4 sm:$0xff]  }
 0x196   :  { %v6390_v54 = vld [vmem:[#allocation5 + $0x56c] ss:$16 sps:$4 sm:$0xff]  }
 0x197   :  { %3818 = vmatpush1.bf16.msra.mxu0 %v6352_v37  ;;  %v6393_v56 = vld [vmem:[#allocation5 + $0x76c] ss:$16 sps:$4 sm:$0xff]   ;;  %v6388_v37 = vld [vmem:[#allocation5 + $0x568] ss:$16 sps:$4 sm:$0xff]  }
 0x198   :  { %3871 = vmatpush1.bf16.msra.mxu1 %v6355_v57  ;;  %3819 = vmatprep.subr.bf16.mxu0 %v6360_v43  ;;  %v6391_v57 = vld [vmem:[#allocation5 + $0x768] ss:$16 sps:$4 sm:$0xff]   ;;  %v6396_v43 = vld [vmem:[#allocation5 + $0x54c] ss:$16 sps:$4 sm:$0xff]  }
 0x199   :  { %3872 = vmatprep.subr.bf16.mxu1 %v6363_v26  ;;  %v6399_v26 = vld [vmem:[#allocation5 + $0x74c] ss:$16 sps:$4 sm:$0xff]  }
 0x19b   :  { %3820 = vmatpush1.bf16.msra.mxu0 %v6358_v40  ;;  %v6394_v40 = vld [vmem:[#allocation5 + $0x548] ss:$16 sps:$4 sm:$0xff]  }
 0x19c   :  { %3873 = vmatpush1.bf16.msra.mxu1 %v6361_v62  ;;  %3821 = vmatprep.subr.bf16.mxu0 %v6366_v1  ;;  %v6397_v62 = vld [vmem:[#allocation5 + $0x748] ss:$16 sps:$4 sm:$0xff]   ;;  %v6402_v1 = vld [vmem:[#allocation5 + $0x52c] ss:$16 sps:$4 sm:$0xff]  }
 0x19d   :  { %3874 = vmatprep.subr.bf16.mxu1 %v6369_v6  ;;  %v6405_v6 = vld [vmem:[#allocation5 + $0x72c] ss:$16 sps:$4 sm:$0xff]  }
 0x19f   :  { %3822 = vmatpush2.bf16.msra.mxu0 %v6364_v14  ;;  %v6400_v14 = vld [vmem:[#allocation5 + $0x528] ss:$16 sps:$4 sm:$0xff]  }
 0x1a0   :  { %3875 = vmatpush2.bf16.msra.mxu1 %v6367_v53  ;;  %3823 = vmatprep.subr.bf16.mxu0 %v6372_v22  ;;  %v6403_v53 = vld [vmem:[#allocation5 + $0x728] ss:$16 sps:$4 sm:$0xff]   ;;  %v6408_v22 = vld [vmem:[#allocation5 + $0x50c] ss:$16 sps:$4 sm:$0xff]  }
 0x1a1   :  { %3876 = vmatprep.subr.bf16.mxu1 %v6375_v28  ;;  %v6411_v28 = vld [vmem:[#allocation5 + $0x70c] ss:$16 sps:$4 sm:$0xff]  }
 0x1a3   :  { %3824 = vmatpush2.bf16.msra.mxu0 %v6370_v42  ;;  %v6406_v42 = vld [vmem:[#allocation5 + $0x508] ss:$16 sps:$4 sm:$0xff]  }
 0x1a4   :  { %3877 = vmatpush2.bf16.msra.mxu1 %v6373_v49  ;;  %3825 = vmatprep.subr.bf16.mxu0 %v6378_v31  ;;  %v6409_v49 = vld [vmem:[#allocation5 + $0x708] ss:$16 sps:$4 sm:$0xff]   ;;  %v6414_v31 = vld [vmem:[#allocation5 + $0x8ec] ss:$16 sps:$4 sm:$0xff]  }
 0x1a5   :  { %3878 = vmatprep.subr.bf16.mxu1 %v6381_v36  ;;  %v6417_v36 = vld [vmem:[#allocation5 + $0xaec] ss:$16 sps:$4 sm:$0xff]  }
 0x1a7   :  { %3826 = vmatpush2.bf16.msra.mxu0 %v6376_v12  ;;  %v6412_v12 = vld [vmem:[#allocation5 + $0x8e8] ss:$16 sps:$4 sm:$0xff]  }
 0x1a8   :  { %3879 = vmatpush2.bf16.msra.mxu1 %v6379_v2  ;;  %3827 = vmatprep.subr.bf16.mxu0 %v6384_v13  ;;  %v6415_v2 = vld [vmem:[#allocation5 + $0xae8] ss:$16 sps:$4 sm:$0xff]   ;;  %v6420_v13 = vld [vmem:[#allocation5 + $0x8cc] ss:$16 sps:$4 sm:$0xff]  }
 0x1a9   :  { %3880 = vmatprep.subr.bf16.mxu1 %v6387_v25  ;;  %v6423_v25 = vld [vmem:[#allocation5 + $0xacc] ss:$16 sps:$4 sm:$0xff]  }
 0x1ab   :  { %3828 = vmatpush2.bf16.msra.mxu0 %v6382_v63  ;;  %v6418_v63 = vld [vmem:[#allocation5 + $0x8c8] ss:$16 sps:$4 sm:$0xff]  }
 0x1ac   :  { %3881 = vmatpush2.bf16.msra.mxu1 %v6385_v0  ;;  %3829 = vmatprep.subr.bf16.mxu0 %v6390_v54  ;;  %v6421_v0 = vld [vmem:[#allocation5 + $0xac8] ss:$16 sps:$4 sm:$0xff]  }
 0x1ad   :  { %3882 = vmatprep.subr.bf16.mxu1 %v6393_v56 }
 0x1af   :  { %3830 = vmatpush2.bf16.msra.mxu0 %v6388_v37  ;;  %v6426_v37 = vld [vmem:[#allocation5 + $0x8ac] ss:$16 sps:$4 sm:$0xff]  }
 0x1b0   :  { %3883 = vmatpush2.bf16.msra.mxu1 %v6391_v57  ;;  %3831 = vmatprep.subr.bf16.mxu0 %v6396_v43 }
 0x1b1   :  { %3884 = vmatprep.subr.bf16.mxu1 %v6399_v26 }
 0x1b3   :  { %3832 = vmatpush2.bf16.msra.mxu0 %v6394_v40  ;;  %v6429_v40 = vld [vmem:[#allocation5 + $0xaac] ss:$16 sps:$4 sm:$0xff]  }
 0x1b4   :  { %3885 = vmatpush2.bf16.msra.mxu1 %v6397_v62  ;;  %3833 = vmatprep.subr.bf16.mxu0 %v6402_v1  ;;  %v6424_v1 = vld [vmem:[#allocation5 + $0x8a8] ss:$16 sps:$4 sm:$0xff]  }
 0x1b5   :  { %3886 = vmatprep.subr.bf16.mxu1 %v6405_v6 }
 0x1b7   :  { %3834 = vmatpush2.bf16.msra.mxu0 %v6400_v14 }
 0x1b8   :  { %3887 = vmatpush2.bf16.msra.mxu1 %v6403_v53  ;;  %3835 = vmatprep.subr.bf16.mxu0 %v6408_v22 }
 0x1b9   :  { %3888 = vmatprep.subr.bf16.mxu1 %v6411_v28  ;;  %v6435_v28 = vld [vmem:[#allocation5 + $0xa8c] ss:$16 sps:$4 sm:$0xff]  }
 0x1bb   :  { %3836 = vmatpush2.bf16.msra.mxu0 %v6406_v42 }
 0x1bc   :  { %3889 = vmatpush2.bf16.msra.mxu1 %v6409_v49  ;;  %3911 = vmatprep.subr.bf16.mxu0 %v6414_v31  ;;  %v6433_v49 = vld [vmem:[#allocation5 + $0xa88] ss:$16 sps:$4 sm:$0xff]  }
 0x1bd   :  { %3964 = vmatprep.subr.bf16.mxu1 %v6417_v36  ;;  %v6438_v36 = vld [vmem:[#allocation5 + $0x86c] ss:$16 sps:$4 sm:$0xff]  }
 0x1be   :  { %v3521_v54 = vpop.f32.mrf.mxu0  ;;  %3838 = vmatmul.mubr.bf16.vlgmr.msra.gmra.mxu0 %v7012_v47  ;;  %v6427_v47 = vld [vmem:[#allocation5 + $0xaa8] ss:$16 sps:$4 sm:$0xff]  }
 0x1bf   :  { %v3574_v56 = vpop.f32.mrf.mxu1  ;;  %3891 = vmatmul.mubr.bf16.vlgmr.msra.gmra.mxu1 %v7014_v48  ;;  %v3522_v57 = vadd.f32 %v3521_v54, %v7129_v30  ;;  %3912 = vmatpush1.bf16.msra.mxu0 %v6412_v12  ;;  %v6432_v30 = vld [vmem:[#allocation5 + $0x88c] ss:$16 sps:$4 sm:$0xff]   ;;  %v6439_v54 = vld [vmem:[#allocation5 + $0xa68] ss:$16 sps:$4 sm:$0xff]  }
 0x1c0   :  { %3965 = vmatpush1.bf16.msra.mxu1 %v6415_v2  ;;  %v7159_v43 = vpop.f32.mrf.mxu0  ;;  %3913 = vmatprep.subr.bf16.mxu0 %v6420_v13  ;;  %v6441_v12 = vld [vmem:[#allocation5 + $0xa6c] ss:$16 sps:$4 sm:$0xff]  }
 0x1c1   :  { %v7161_v26 = vpop.f32.mrf.mxu1  ;;  %3966 = vmatprep.subr.bf16.mxu1 %v6423_v25  ;;  %v7163_v62 = vadd.f32 %v3574_v56, %v3522_v57  ;;  %3847 = vmatprep.mubr.bf16.mxu0 %v7016_v58  ;;  %v6430_v58 = vld [vmem:[#allocation5 + $0x888] ss:$16 sps:$4 sm:$0xff]   ;;  %v6447_v57 = vld [vmem:[#allocation5 + $0xa4c] ss:$16 sps:$4 sm:$0xff]  }
 0x1c2   :  { %3900 = vmatprep.mubr.bf16.mxu1 %v7018_v61  ;;  %v3525_v48 = vpop.f32.mrf.mxu0 }
 0x1c3   :  { %v3578_v6 = vpop.f32.mrf.mxu1  ;;  %v3526_v14 = vadd.f32 %v3525_v48, %v7138_v52  ;;  %3914 = vmatpush1.bf16.msra.mxu0 %v6418_v63  ;;  %v6456_v48 = vld [vmem:[#allocation5 + $0x80c] ss:$16 sps:$4 sm:$0xff]  }
 0x1c4   :  { %3967 = vmatpush1.bf16.msra.mxu1 %v6421_v0  ;;  %v7168_v53 = vpop.f32.mrf.mxu0  ;;  %3915 = vmatprep.subr.bf16.mxu0 %v6426_v37  ;;  %v6436_v0 = vld [vmem:[#allocation5 + $0x868] ss:$16 sps:$4 sm:$0xff]   ;;  %v6444_v37 = vld [vmem:[#allocation5 + $0x84c] ss:$16 sps:$4 sm:$0xff]  }
 0x1c5   :  { %v7170_v22 = vpop.f32.mrf.mxu1  ;;  %3968 = vmatprep.subr.bf16.mxu1 %v6429_v40  ;;  %v7172_v42 = vadd.f32 %v3578_v6, %v3526_v14  ;;  %v6442_v40 = vld [vmem:[#allocation5 + $0x848] ss:$16 sps:$4 sm:$0xff]   ;;  %v6459_v6 = vld [vmem:[#allocation5 + $0xa0c] ss:$16 sps:$4 sm:$0xff]  }
 0x1c6   :  { %v3531_v31 = vpop.f32.mrf.mxu0  ;;  %3848 = vmatmul.mubr.bf16.gmra.mxu0 %v7024_v4  ;;  %v6457_v14 = vld [vmem:[#allocation5 + $0xa08] ss:$16 sps:$4 sm:$0xff]  }
 0x1c7   :  { %v3584_v61 = vpop.f32.mrf.mxu1  ;;  %3901 = vmatmul.mubr.bf16.gmra.mxu1 %v7026_v7  ;;  %v3532_v52 = vadd.f32 %v3531_v31, %v7144_v55  ;;  %3916 = vmatpush1.bf16.msra.mxu0 %v6424_v1  ;;  %v6445_v1 = vld [vmem:[#allocation5 + $0xa48] ss:$16 sps:$4 sm:$0xff]  }
 0x1c8   :  { %3969 = vmatpush1.bf16.msra.mxu1 %v6427_v47  ;;  %v3533_v2 = vpop.f32.mrf.mxu0  ;;  %3917 = vmatprep.subr.bf16.mxu0 %v6432_v30  ;;  %v6448_v47 = vld [vmem:[#allocation5 + $0x828] ss:$16 sps:$4 sm:$0xff]  }
 0x1c9   :  { %v3586_v13 = vpop.f32.mrf.mxu1  ;;  %3970 = vmatprep.subr.bf16.mxu1 %v6435_v28  ;;  %v3534_v25 = vadd.f32 %v3533_v2, %v7149_v34  ;;  %v7178_v63 = vadd.f32 %v3584_v61, %v3532_v52  ;;  %3943 = vmatprep.mubr.bf16.mxu0 %v7030_v19  ;;  %v6450_v19 = vld [vmem:[#allocation5 + $0x82c] ss:$16 sps:$4 sm:$0xff]   ;;  %v6454_v30 = vld [vmem:[#allocation5 + $0x808] ss:$16 sps:$4 sm:$0xff]  }
 0x1ca   :  { %3996 = vmatprep.mubr.bf16.mxu1 %v7032_v20  ;;  %v3535_v4 = vpop.f32.mrf.mxu0  ;;  %v6453_v20 = vld [vmem:[#allocation5 + $0xa2c] ss:$16 sps:$4 sm:$0xff]   ;;  %v6463_v31 = vld [vmem:[#allocation5 + $0xbe8] ss:$16 sps:$4 sm:$0xff]  }
 0x1cb   :  { %v3588_v7 = vpop.f32.mrf.mxu1  ;;  %v3536_v55 = vadd.f32 %v3535_v4, %v7152_v45  ;;  %v7183_v56 = vadd.f32 %v3586_v13, %v3534_v25  ;;  %3918 = vmatpush1.bf16.msra.mxu0 %v6430_v58  ;;  %v6451_v45 = vld [vmem:[#allocation5 + $0xa28] ss:$16 sps:$4 sm:$0xff]   ;;  %v6462_v28 = vld [vmem:[#allocation5 + $0x9ec] ss:$16 sps:$4 sm:$0xff]  }
 0x1cc   :  { %3971 = vmatpush1.bf16.msra.mxu1 %v6433_v49  ;;  %3919 = vmatprep.subr.bf16.mxu0 %v6438_v36  ;;  %v6465_v58 = vld [vmem:[#allocation5 + $0xbec] ss:$16 sps:$4 sm:$0xff]   ;;  %v6460_v49 = vld [vmem:[#allocation5 + $0x9e8] ss:$16 sps:$4 sm:$0xff]  }
 0x1cd   :  { %3972 = vmatprep.subr.bf16.mxu1 %v6441_v12  ;;  %v7185_v34 = vadd.f32 %v3588_v7, %v3536_v55  ;;  %v6468_v61 = vld [vmem:[#allocation5 + $0x9cc] ss:$16 sps:$4 sm:$0xff]   ;;  %v6466_v36 = vld [vmem:[#allocation5 + $0x9c8] ss:$16 sps:$4 sm:$0xff]  }
 0x1ce   :  { %v6471_v52 = vld [vmem:[#allocation5 + $0xbcc] ss:$16 sps:$4 sm:$0xff]   ;;  %v6469_v12 = vld [vmem:[#allocation5 + $0xbc8] ss:$16 sps:$4 sm:$0xff]  }
 0x1cf   :  { %3920 = vmatpush1.bf16.msra.mxu0 %v6436_v0  ;;  %v6474_v2 = vld [vmem:[#allocation5 + $0x9ac] ss:$16 sps:$4 sm:$0xff]   ;;  %v6472_v25 = vld [vmem:[#allocation5 + $0x9a8] ss:$16 sps:$4 sm:$0xff]  }
 0x1d0   :  { %3973 = vmatpush1.bf16.msra.mxu1 %v6439_v54  ;;  %3921 = vmatprep.subr.bf16.mxu0 %v6444_v37  ;;  %v6477_v13 = vld [vmem:[#allocation5 + $0xbac] ss:$16 sps:$4 sm:$0xff]   ;;  %v6475_v0 = vld [vmem:[#allocation5 + $0xba8] ss:$16 sps:$4 sm:$0xff]  }
 0x1d1   :  { %3974 = vmatprep.subr.bf16.mxu1 %v6447_v57  ;;  %v6480_v54 = vld [vmem:[#allocation5 + $0x98c] ss:$16 sps:$4 sm:$0xff]   ;;  %v6478_v7 = vld [vmem:[#allocation5 + $0x988] ss:$16 sps:$4 sm:$0xff]  }
 0x1d2   :  { %v6483_v4 = vld [vmem:[#allocation5 + $0xb8c] ss:$16 sps:$4 sm:$0xff]   ;;  %v6481_v55 = vld [vmem:[#allocation5 + $0xb88] ss:$16 sps:$4 sm:$0xff]  }
 0x1d3   :  { %3922 = vmatpush1.bf16.msra.mxu0 %v6442_v40  ;;  %v6486_v37 = vld [vmem:[#allocation5 + $0x96c] ss:$16 sps:$4 sm:$0xff]   ;;  %v6484_v40 = vld [vmem:[#allocation5 + $0x968] ss:$16 sps:$4 sm:$0xff]  }
 0x1d4   :  { %3975 = vmatpush1.bf16.msra.mxu1 %v6445_v1  ;;  %3923 = vmatprep.subr.bf16.mxu0 %v6450_v19  ;;  %v6489_v57 = vld [vmem:[#allocation5 + $0xb6c] ss:$16 sps:$4 sm:$0xff]   ;;  %v6487_v1 = vld [vmem:[#allocation5 + $0xb68] ss:$16 sps:$4 sm:$0xff]  }
 0x1d5   :  { %3976 = vmatprep.subr.bf16.mxu1 %v6453_v20  ;;  %v6492_v19 = vld [vmem:[#allocation5 + $0x94c] ss:$16 sps:$4 sm:$0xff]  }
 0x1d6   :  { %v6495_v20 = vld [vmem:[#allocation5 + $0xb4c] ss:$16 sps:$4 sm:$0xff]  }
 0x1d7   :  { %3924 = vmatpush1.bf16.msra.mxu0 %v6448_v47  ;;  %v6490_v47 = vld [vmem:[#allocation5 + $0x948] ss:$16 sps:$4 sm:$0xff]  }
 0x1d8   :  { %3977 = vmatpush1.bf16.msra.mxu1 %v6451_v45  ;;  %3925 = vmatprep.subr.bf16.mxu0 %v6456_v48  ;;  %v6493_v45 = vld [vmem:[#allocation5 + $0xb48] ss:$16 sps:$4 sm:$0xff]   ;;  %v6498_v48 = vld [vmem:[#allocation5 + $0x92c] ss:$16 sps:$4 sm:$0xff]  }
 0x1d9   :  { %3978 = vmatprep.subr.bf16.mxu1 %v6459_v6  ;;  %v6501_v6 = vld [vmem:[#allocation5 + $0xb2c] ss:$16 sps:$4 sm:$0xff]  }
 0x1db   :  { %3926 = vmatpush1.bf16.msra.mxu0 %v6454_v30  ;;  %v6496_v30 = vld [vmem:[#allocation5 + $0x928] ss:$16 sps:$4 sm:$0xff]  }
 0x1dc   :  { %3979 = vmatpush1.bf16.msra.mxu1 %v6457_v14  ;;  %3927 = vmatprep.subr.bf16.mxu0 %v6462_v28  ;;  %v6499_v14 = vld [vmem:[#allocation5 + $0xb28] ss:$16 sps:$4 sm:$0xff]   ;;  %v6504_v28 = vld [vmem:[#allocation5 + $0x90c] ss:$16 sps:$4 sm:$0xff]  }
 0x1dd   :  { %3980 = vmatprep.subr.bf16.mxu1 %v6465_v58  ;;  %v6507_v58 = vld [vmem:[#allocation5 + $0xb0c] ss:$16 sps:$4 sm:$0xff]  }
 0x1df   :  { %3928 = vmatpush2.bf16.msra.mxu0 %v6460_v49  ;;  %v6502_v49 = vld [vmem:[#allocation5 + $0x908] ss:$16 sps:$4 sm:$0xff]  }
 0x1e0   :  { %3981 = vmatpush2.bf16.msra.mxu1 %v6463_v31  ;;  %3929 = vmatprep.subr.bf16.mxu0 %v6468_v61  ;;  %v6505_v31 = vld [vmem:[#allocation5 + $0xb08] ss:$16 sps:$4 sm:$0xff]   ;;  %v6510_v61 = vld [vmem:[#allocation5 + $0xcec] ss:$16 sps:$4 sm:$0xff]  }
 0x1e1   :  { %3982 = vmatprep.subr.bf16.mxu1 %v6471_v52  ;;  %v6513_v52 = vld [vmem:[#allocation5 + $0xeec] ss:$16 sps:$4 sm:$0xff]  }
 0x1e3   :  { %3930 = vmatpush2.bf16.msra.mxu0 %v6466_v36  ;;  %v6508_v36 = vld [vmem:[#allocation5 + $0xce8] ss:$16 sps:$4 sm:$0xff]  }
 0x1e4   :  { %3983 = vmatpush2.bf16.msra.mxu1 %v6469_v12  ;;  %3931 = vmatprep.subr.bf16.mxu0 %v6474_v2  ;;  %v6511_v12 = vld [vmem:[#allocation5 + $0xee8] ss:$16 sps:$4 sm:$0xff]   ;;  %v3537_v2 = vpop.f32.mrf.mxu0 }
 0x1e5   :  { %3984 = vmatprep.subr.bf16.mxu1 %v6477_v13  ;;  %v3590_v13 = vpop.f32.mrf.mxu1 }
 0x1e7   :  { %3932 = vmatpush2.bf16.msra.mxu0 %v6472_v25  ;;  %v6516_v25 = vld [vmem:[#allocation5 + $0xccc] ss:$16 sps:$4 sm:$0xff]  }
 0x1e8   :  { %3985 = vmatpush2.bf16.msra.mxu1 %v6475_v0  ;;  %3933 = vmatprep.subr.bf16.mxu0 %v6480_v54  ;;  %v6519_v0 = vld [vmem:[#allocation5 + $0xecc] ss:$16 sps:$4 sm:$0xff]  }
 0x1e9   :  { %3986 = vmatprep.subr.bf16.mxu1 %v6483_v4 }
 0x1eb   :  { %3934 = vmatpush2.bf16.msra.mxu0 %v6478_v7 }
 0x1ec   :  { %3987 = vmatpush2.bf16.msra.mxu1 %v6481_v55  ;;  %3935 = vmatprep.subr.bf16.mxu0 %v6486_v37  ;;  %v6514_v55 = vld [vmem:[#allocation5 + $0xcc8] ss:$16 sps:$4 sm:$0xff]  }
 0x1ed   :  { %3988 = vmatprep.subr.bf16.mxu1 %v6489_v57  ;;  %v6517_v37 = vld [vmem:[#allocation5 + $0xec8] ss:$16 sps:$4 sm:$0xff]  }
 0x1ef   :  { %3936 = vmatpush2.bf16.msra.mxu0 %v6484_v40 }
 0x1f0   :  { %3989 = vmatpush2.bf16.msra.mxu1 %v6487_v1  ;;  %3937 = vmatprep.subr.bf16.mxu0 %v6492_v19  ;;  %v6522_v1 = vld [vmem:[#allocation5 + $0xcac] ss:$16 sps:$4 sm:$0xff]  }
 0x1f1   :  { %3990 = vmatprep.subr.bf16.mxu1 %v6495_v20  ;;  %v6525_v19 = vld [vmem:[#allocation5 + $0xeac] ss:$16 sps:$4 sm:$0xff]  }
 0x1f3   :  { %3938 = vmatpush2.bf16.msra.mxu0 %v6490_v47  ;;  %v6520_v47 = vld [vmem:[#allocation5 + $0xca8] ss:$16 sps:$4 sm:$0xff]  }
 0x1f4   :  { %3991 = vmatpush2.bf16.msra.mxu1 %v6493_v45  ;;  %3939 = vmatprep.subr.bf16.mxu0 %v6498_v48  ;;  %v6523_v45 = vld [vmem:[#allocation5 + $0xea8] ss:$16 sps:$4 sm:$0xff]  }
 0x1f5   :  { %3992 = vmatprep.subr.bf16.mxu1 %v6501_v6 }
 0x1f7   :  { %3940 = vmatpush2.bf16.msra.mxu0 %v6496_v30  ;;  %v6528_v30 = vld [vmem:[#allocation5 + $0xc8c] ss:$16 sps:$4 sm:$0xff]  }
 0x1f8   :  { %3993 = vmatpush2.bf16.msra.mxu1 %v6499_v14  ;;  %3941 = vmatprep.subr.bf16.mxu0 %v6504_v28  ;;  %v6531_v14 = vld [vmem:[#allocation5 + $0xe8c] ss:$16 sps:$4 sm:$0xff]  }
 0x1f9   :  { %3994 = vmatprep.subr.bf16.mxu1 %v6507_v58 }
 0x1fb   :  { %3942 = vmatpush2.bf16.msra.mxu0 %v6502_v49 }
 0x1fc   :  { %3995 = vmatpush2.bf16.msra.mxu1 %v6505_v31  ;;  %4017 = vmatprep.subr.bf16.mxu0 %v6510_v61  ;;  %v6526_v61 = vld [vmem:[#allocation5 + $0xc88] ss:$16 sps:$4 sm:$0xff]  }
 0x1fd   :  { %4070 = vmatprep.subr.bf16.mxu1 %v6513_v52  ;;  %v6529_v52 = vld [vmem:[#allocation5 + $0xe88] ss:$16 sps:$4 sm:$0xff]  }
 0x1fe   :  { %v3627_v54 = vpop.f32.mrf.mxu0  ;;  %3944 = vmatmul.mubr.bf16.vlgmr.msra.gmra.mxu0 %v7036_v32 }
 0x1ff   :  { %v3680_v4 = vpop.f32.mrf.mxu1  ;;  %3997 = vmatmul.mubr.bf16.vlgmr.msra.gmra.mxu1 %v7038_v33  ;;  %v3628_v7 = vadd.f32 %v3627_v54, %v7163_v62  ;;  %4018 = vmatpush1.bf16.msra.mxu0 %v6508_v36 }
 0x200   :  { %4071 = vmatpush1.bf16.msra.mxu1 %v6511_v12  ;;  %v7190_v57 = vpop.f32.mrf.mxu0  ;;  %4019 = vmatprep.subr.bf16.mxu0 %v6516_v25  ;;  %v6534_v25 = vld [vmem:[#allocation5 + $0xc6c] ss:$16 sps:$4 sm:$0xff]  }
 0x201   :  { %v7192_v40 = vpop.f32.mrf.mxu1  ;;  %4072 = vmatprep.subr.bf16.mxu1 %v6519_v0  ;;  %3953 = vmatprep.mubr.bf16.mxu0 %v7040_v41  ;;  %v3681_v20 = vadd.f32 %v3680_v4, %v3628_v7  ;;  %v6537_v0 = vld [vmem:[#allocation5 + $0xe6c] ss:$16 sps:$4 sm:$0xff]   ;;  %v6532_v7 = vld [vmem:[#allocation5 + $0xc68] ss:$16 sps:$4 sm:$0xff]  }
 0x202   :  { %4006 = vmatprep.mubr.bf16.mxu1 %v7042_v44  ;;  %v3631_v32 = vpop.f32.mrf.mxu0 }
 0x203   :  { %v3684_v33 = vpop.f32.mrf.mxu1  ;;  %v3632_v62 = vadd.f32 %v3631_v32, %v7172_v42  ;;  %4020 = vmatpush1.bf16.msra.mxu0 %v6514_v55  ;;  %v3538_v42 = vadd.f32 %v3537_v2, %v7154_v46  ;;  %v4123_v58 = vmax.f32 %v3681_v20, 0.0  ;;  %v6535_v55 = vld [vmem:[#allocation5 + $0xe68] ss:$16 sps:$4 sm:$0xff]  }
 0x204   :  { %4073 = vmatpush1.bf16.msra.mxu1 %v6517_v37  ;;  %v7197_v48 = vpop.f32.mrf.mxu0  ;;  %4021 = vmatprep.subr.bf16.mxu0 %v6522_v1 }
 0x205   :  { %v7199_v6 = vpop.f32.mrf.mxu1  ;;  %4074 = vmatprep.subr.bf16.mxu1 %v6525_v19  ;;  %v3685_v41 = vadd.f32 %v3684_v33, %v3632_v62  ;;  %v3591_v2 = vadd.f32 %v3590_v13, %v3538_v42  ;;  %v6540_v19 = vld [vmem:[#allocation5 + $0xc4c] ss:$16 sps:$4 sm:$0xff]   ;;  %v6538_v13 = vld [vmem:[#allocation5 + $0xc48] ss:$16 sps:$4 sm:$0xff]  }
 0x206   :  { %v3637_v28 = vpop.f32.mrf.mxu0  ;;  %3954 = vmatmul.mubr.bf16.gmra.mxu0 %v7048_v59  ;;  %v6547_v42 = vld [vmem:[#allocation5 + $0xe28] ss:$16 sps:$4 sm:$0xff]  }
 0x207   :  { %v3690_v44 = vpop.f32.mrf.mxu1  ;;  %4007 = vmatmul.mubr.bf16.gmra.mxu1 %v7050_v60  ;;  %v4127_v49 = vmax.f32 %v3685_v41, 0.0  ;;  %v3638_v31 = vadd.f32 %v3637_v28, %v7178_v63  ;;  %4022 = vmatpush1.bf16.msra.mxu0 %v6520_v47  ;;  %v6546_v47 = vld [vmem:[#allocation5 + $0xc2c] ss:$16 sps:$4 sm:$0xff]  }
 0x208   :  { %4075 = vmatpush1.bf16.msra.mxu1 %v6523_v45  ;;  %v3639_v36 = vpop.f32.mrf.mxu0  ;;  %4023 = vmatprep.subr.bf16.mxu0 %v6528_v30  ;;  %v6549_v45 = vld [vmem:[#allocation5 + $0xe2c] ss:$16 sps:$4 sm:$0xff]  }
 0x209   :  { %v3692_v12 = vpop.f32.mrf.mxu1  ;;  %4076 = vmatprep.subr.bf16.mxu1 %v6531_v14  ;;  %v7205_v59 = vpack.c.bf16 %v4127_v49, %v4123_v58  ;;  %v3640_v60 = vadd.f32 %v3639_v36, %v7183_v56  ;;  %4049 = vmatprep.mubr.bf16.mxu0 %v7052_v8  ;;  %v3691_v54 = vadd.f32 %v3690_v44, %v3638_v31  ;;  %v6543_v56 = vld [vmem:[#allocation5 + $0xe4c] ss:$16 sps:$4 sm:$0xff]   ;;  %v6544_v44 = vld [vmem:[#allocation5 + $0xc28] ss:$16 sps:$4 sm:$0xff]  }
 0x20a   :  { %4102 = vmatprep.mubr.bf16.mxu1 %v7054_v9  ;;  %v3641_v46 = vpop.f32.mrf.mxu0  ;;  %v6552_v58 = vld [vmem:[#allocation5 + $0xc0c] ss:$16 sps:$4 sm:$0xff]   ;;  %v6550_v31 = vld [vmem:[#allocation5 + $0xc08] ss:$16 sps:$4 sm:$0xff]  }
 0x20b   :  { %v3694_v63 = vpop.f32.mrf.mxu1  ;;  %v3642_v4 = vadd.f32 %v3641_v46, %v7185_v34  ;;  %4024 = vmatpush1.bf16.msra.mxu0 %v6526_v61  ;;  %v3693_v32 = vadd.f32 %v3692_v12, %v3640_v60  ;;  %v4131_v9 = vmax.f32 %v3691_v54, 0.0  ;;  %v6541_v34 = vld [vmem:[#allocation5 + $0xe48] ss:$16 sps:$4 sm:$0xff]   ;;  %v6555_v49 = vld [vmem:[#allocation5 + $0xe0c] ss:$16 sps:$4 sm:$0xff]  }
 0x20c   :  { %4077 = vmatpush1.bf16.msra.mxu1 %v6529_v52  ;;  %v3643_v37 = vpop.f32.mrf.mxu0  ;;  %4025 = vmatprep.subr.bf16.mxu0 %v6534_v25  ;;  %v6553_v61 = vld [vmem:[#allocation5 + $0xe08] ss:$16 sps:$4 sm:$0xff]   ;;  %v6558_v52 = vld [vmem:[#allocation5 + $0xdec] ss:$16 sps:$4 sm:$0xff]  }
 0x20d   :  { %v3696_v1 = vpop.f32.mrf.mxu1  ;;  %4078 = vmatprep.subr.bf16.mxu1 %v6537_v0  ;;  %v3644_v8 = vadd.f32 %v3643_v37, %v3591_v2  ;;  %v3695_v33 = vadd.f32 %v3694_v63, %v3642_v4  ;;  %v4132_v30 = vmax.f32 %v3693_v32, 0.0  ;;  %v6561_v36 = vld [vmem:[#allocation5 + $0xfec] ss:$16 sps:$4 sm:$0xff]   ;;  %v6556_v12 = vld [vmem:[#allocation5 + $0xde8] ss:$16 sps:$4 sm:$0xff]  }
 0x20e   :  { %v6559_v25 = vld [vmem:[#allocation5 + $0xfe8] ss:$16 sps:$4 sm:$0xff]   ;;  %v6564_v0 = vld [vmem:[#allocation5 + $0xdcc] ss:$16 sps:$4 sm:$0xff]  }
 0x20f   :  { %v4135_v20 = vmax.f32 %v3695_v33, 0.0  ;;  %v3697_v62 = vadd.f32 %v3696_v1, %v3644_v8  ;;  %4026 = vmatpush1.bf16.msra.mxu0 %v6532_v7  ;;  %v6567_v60 = vld [vmem:[#allocation5 + $0xfcc] ss:$16 sps:$4 sm:$0xff]   ;;  %v6562_v46 = vld [vmem:[#allocation5 + $0xdc8] ss:$16 sps:$4 sm:$0xff]   ;;  %v3316_v1 = vadd.f32 %v7101_v11, %v7106_v16  ;;  %v3312_v33 = vadd.f32 %v7081_v18, %v7106_v16 }
 0x210   :  { %4079 = vmatpush1.bf16.msra.mxu1 %v6535_v55  ;;  %4027 = vmatprep.subr.bf16.mxu0 %v6540_v19  ;;  %v6565_v63 = vld [vmem:[#allocation5 + $0xfc8] ss:$16 sps:$4 sm:$0xff]   ;;  %v6570_v2 = vld [vmem:[#allocation5 + $0xdac] ss:$16 sps:$4 sm:$0xff]  }
 0x211   :  { %4080 = vmatprep.subr.bf16.mxu1 %v6543_v56  ;;  %v7211_v14 = vpack.c.bf16 %v4135_v20, %v4131_v9  ;;  %v4136_v41 = vmax.f32 %v3697_v62, 0.0  ;;  %v6573_v54 = vld [vmem:[#allocation5 + $0xfac] ss:$16 sps:$4 sm:$0xff]   ;;  %v6568_v4 = vld [vmem:[#allocation5 + $0xda8] ss:$16 sps:$4 sm:$0xff]   ;;  %v3369_v9 = vadd.f32 %v7109_v24, %v3316_v1 }
 0x212   :  { %v6571_v7 = vld [vmem:[#allocation5 + $0xfa8] ss:$16 sps:$4 sm:$0xff]   ;;  %v6576_v55 = vld [vmem:[#allocation5 + $0xd8c] ss:$16 sps:$4 sm:$0xff]  }
 0x213   :  { %v7213_v28 = vpack.c.bf16 %v4136_v41, %v4132_v30  ;;  %4028 = vmatpush1.bf16.msra.mxu0 %v6538_v13  ;;  %v6579_v37 = vld [vmem:[#allocation5 + $0xf8c] ss:$16 sps:$4 sm:$0xff]   ;;  %v6574_v19 = vld [vmem:[#allocation5 + $0xd88] ss:$16 sps:$4 sm:$0xff]  }
 0x214   :  { %4081 = vmatpush1.bf16.msra.mxu1 %v6541_v34  ;;  %4029 = vmatprep.subr.bf16.mxu0 %v6546_v47  ;;  %v6577_v56 = vld [vmem:[#allocation5 + $0xf88] ss:$16 sps:$4 sm:$0xff]   ;;  %v6582_v32 = vld [vmem:[#allocation5 + $0xd6c] ss:$16 sps:$4 sm:$0xff]   ;;  %v3365_v34 = vadd.f32 %v7083_v21, %v3312_v33  ;;  %v3422_v47 = vadd.f32 %v7134_v38, %v3369_v9  ;;  %v6712_v33 = vld [vmem:[#allocation8 + $0x260] ss:$16 sps:$4 sm:$0xff]  }
 0x215   :  { %4082 = vmatprep.subr.bf16.mxu1 %v6549_v45  ;;  %v6585_v8 = vld [vmem:[#allocation5 + $0xf6c] ss:$16 sps:$4 sm:$0xff]   ;;  %v6580_v20 = vld [vmem:[#allocation5 + $0xd68] ss:$16 sps:$4 sm:$0xff]   ;;  %v6628_v9 = vld [vmem:[#allocation8 + $0x1e0] ss:$16 sps:$4 sm:$0xff]  }
 0x216   :  { %v6583_v62 = vld [vmem:[#allocation5 + $0xf68] ss:$16 sps:$4 sm:$0xff]   ;;  %v6588_v11 = vld [vmem:[#allocation5 + $0xd4c] ss:$16 sps:$4 sm:$0xff]   ;;  %v3418_v45 = vadd.f32 %v7125_v15, %v3365_v34  ;;  %v3475_v41 = vadd.f32 %v7136_v39, %v3422_v47 }
 0x217   :  { %4030 = vmatpush1.bf16.msra.mxu0 %v6544_v44  ;;  %v6591_v13 = vld [vmem:[#allocation5 + $0xf4c] ss:$16 sps:$4 sm:$0xff]   ;;  %v6586_v30 = vld [vmem:[#allocation5 + $0xd48] ss:$16 sps:$4 sm:$0xff]  }
 0x218   :  { %4083 = vmatpush1.bf16.msra.mxu1 %v6547_v42  ;;  %4031 = vmatprep.subr.bf16.mxu0 %v6552_v58  ;;  %v6589_v18 = vld [vmem:[#allocation5 + $0xf48] ss:$16 sps:$4 sm:$0xff]   ;;  %v6594_v16 = vld [vmem:[#allocation5 + $0xd2c] ss:$16 sps:$4 sm:$0xff]   ;;  %v3471_v44 = vadd.f32 %v7127_v17, %v3418_v45  ;;  %v3528_v42 = vadd.f32 %v7168_v53, %v3475_v41  ;;  %v6718_v45 = vld [vmem:[#allocation8 + $0x220] ss:$16 sps:$4 sm:$0xff]  }
 0x219   :  { %4084 = vmatprep.subr.bf16.mxu1 %v6555_v49  ;;  %v6597_v24 = vld [vmem:[#allocation5 + $0xf2c] ss:$16 sps:$4 sm:$0xff]   ;;  %v6592_v21 = vld [vmem:[#allocation5 + $0xd28] ss:$16 sps:$4 sm:$0xff]   ;;  %v6637_v41 = vld [vmem:[#allocation8 + $0x180] ss:$16 sps:$4 sm:$0xff]  }
 0x21a   :  { %v6595_v38 = vld [vmem:[#allocation5 + $0xf28] ss:$16 sps:$4 sm:$0xff]   ;;  %v6600_v15 = vld [vmem:[#allocation5 + $0xd0c] ss:$16 sps:$4 sm:$0xff]   ;;  %v3524_v49 = vadd.f32 %v7159_v43, %v3471_v44 }
 0x21b   :  { %4032 = vmatpush1.bf16.msra.mxu0 %v6550_v31  ;;  %v6603_v58 = vld [vmem:[#allocation5 + $0xf0c] ss:$16 sps:$4 sm:$0xff]   ;;  %v3581_v31 = vadd.f32 %v7170_v22, %v3528_v42  ;;  %v6601_v39 = vld [vmem:[#allocation5 + $0xf08] ss:$16 sps:$4 sm:$0xff]  }
 0x21c   :  { %4085 = vmatpush1.bf16.msra.mxu1 %v6553_v61  ;;  %4033 = vmatprep.subr.bf16.mxu0 %v6558_v52  ;;  %v6598_v61 = vld [vmem:[#allocation5 + $0xd08] ss:$16 sps:$4 sm:$0xff]   ;;  %v3577_v53 = vadd.f32 %v7161_v26, %v3524_v49  ;;  %v6727_v49 = vld [vmem:[#allocation8 + $0x3c0] ss:$16 sps:$4 sm:$0xff]  }
 0x21d   :  { %4086 = vmatprep.subr.bf16.mxu1 %v6561_v36  ;;  %v6606_v17 = vld [vmem:[#allocation8 + $0xe4] ss:$16 sps:$4 sm:$0xff]   ;;  %v3634_v52 = vadd.f32 %v7197_v48, %v3581_v31  ;;  %v6643_v31 = vld [vmem:[#allocation8 + $0x140] ss:$16 sps:$4 sm:$0xff]  }
 0x21e   :  { %v3630_v36 = vadd.f32 %v7190_v57, %v3577_v53  ;;  %v6609_v43 = vld [vmem:[#allocation8 + $0xc4] ss:$16 sps:$4 sm:$0xff]   ;;  %v6646_v53 = vld [vmem:[#allocation8 + $0x120] ss:$16 sps:$4 sm:$0xff]  }
 0x21f   :  { %4034 = vmatpush2.bf16.msra.mxu0 %v6556_v12  ;;  %v6604_v12 = vld [vmem:[#allocation8 + $0xe0] ss:$16 sps:$4 sm:$0xff]   ;;  %v3687_v22 = vadd.f32 %v7199_v6, %v3634_v52  ;;  %v6612_v26 = vld [vmem:[#allocation8 + $0xa4] ss:$16 sps:$4 sm:$0xff]  }
 0x220   :  { %4087 = vmatpush2.bf16.msra.mxu1 %v6559_v25  ;;  %4035 = vmatprep.subr.bf16.mxu0 %v6564_v0  ;;  %v3683_v25 = vadd.f32 %v7192_v40, %v3630_v36  ;;  %v6607_v0 = vld [vmem:[#allocation8 + $0xc0] ss:$16 sps:$4 sm:$0xff]   ;;  %v6615_v6 = vld [vmem:[#allocation8 + $0x84] ss:$16 sps:$4 sm:$0xff]  }
 0x221   :  { %4088 = vmatprep.subr.bf16.mxu1 %v6567_v60  ;;  %v4128_v57 = vmax.f32 %v3687_v22, 0.0  ;;  %v6610_v60 = vld [vmem:[#allocation8 + $0xa0] ss:$16 sps:$4 sm:$0xff]   ;;  %v6621_v40 = vld [vmem:[#allocation8 + $0x44] ss:$16 sps:$4 sm:$0xff]  }
 0x222   :  { %v4124_v48 = vmax.f32 %v3683_v25, 0.0  ;;  %v6627_v1 = vld [vmem:[#allocation8 + $0x4] ss:$16 sps:$4 sm:$0xff]   ;;  %v6654_v25 = vld [vmem:[#allocation8 + $0xec] ss:$16 sps:$4 sm:$0xff]  }
 0x223   :  { %4036 = vmatpush2.bf16.msra.mxu0 %v6562_v46  ;;  %v6720_v34 = vld [vmem:[#allocation8 + $0x224] ss:$16 sps:$4 sm:$0xff]  }
 0x224   :  { %4089 = vmatpush2.bf16.msra.mxu1 %v6565_v63  ;;  %4037 = vmatprep.subr.bf16.mxu0 %v6570_v2  ;;  %v7237_v46 = vpack.c.bf16 %v4128_v57, %v4124_v48  ;;  %v6700_v63 = vld [vmem:[#allocation8 + $0x2e0] ss:$16 sps:$4 sm:$0xff]   ;;  %v6636_v47 = vld [vmem:[#allocation8 + $0x1a4] ss:$16 sps:$4 sm:$0xff]   ;;  %v6657_v57 = vld [vmem:[#allocation8 + $0xcc] ss:$16 sps:$4 sm:$0xff]  }
 0x225   :  { %4090 = vmatprep.subr.bf16.mxu1 %v6573_v54  ;;  %v6619_v2 = vld [vmem:[#allocation8 + $0x40] ss:$16 sps:$4 sm:$0xff]   ;;  %v6726_v44 = vld [vmem:[#allocation8 + $0x3e4] ss:$16 sps:$4 sm:$0xff]   ;;  %v6655_v48 = vld [vmem:[#allocation8 + $0xc8] ss:$16 sps:$4 sm:$0xff]  }
 0x226   :  { %v6703_v54 = vld [vmem:[#allocation8 + $0x2c0] ss:$16 sps:$4 sm:$0xff]   ;;  %v6642_v42 = vld [vmem:[#allocation8 + $0x164] ss:$16 sps:$4 sm:$0xff]  }
 0x227   :  { %4038 = vmatpush2.bf16.msra.mxu0 %v6568_v4  ;;  %v6708_v4 = vld [vmem:[#allocation8 + $0x2a4] ss:$16 sps:$4 sm:$0xff]  }
 0x228   :  { %4091 = vmatpush2.bf16.msra.mxu1 %v6571_v7  ;;  %4039 = vmatprep.subr.bf16.mxu0 %v6576_v55  ;;  %v6706_v7 = vld [vmem:[#allocation8 + $0x2a0] ss:$16 sps:$4 sm:$0xff]   ;;  %v6735_v52 = vld [vmem:[#allocation8 + $0x384] ss:$16 sps:$4 sm:$0xff]  }
 0x229   :  { %4092 = vmatprep.subr.bf16.mxu1 %v6579_v37  ;;  %v6622_v55 = vld [vmem:[#allocation8 + $0x20] ss:$16 sps:$4 sm:$0xff]   ;;  %v6711_v37 = vld [vmem:[#allocation8 + $0x284] ss:$16 sps:$4 sm:$0xff]  }
 0x22a   :  { %v6651_v36 = vld [vmem:[#allocation8 + $0x104] ss:$16 sps:$4 sm:$0xff]  }
 0x22b   :  { %4040 = vmatpush2.bf16.msra.mxu0 %v6574_v19  ;;  %v6709_v19 = vld [vmem:[#allocation8 + $0x280] ss:$16 sps:$4 sm:$0xff]   ;;  %v6738_v22 = vld [vmem:[#allocation8 + $0x364] ss:$16 sps:$4 sm:$0xff]  }
 0x22c   :  { %4093 = vmatpush2.bf16.msra.mxu1 %v6577_v56  ;;  %4041 = vmatprep.subr.bf16.mxu0 %v6582_v32  ;;  %v6625_v56 = vld [vmem:[#allocation8] ss:$16 sps:$4 sm:$0xff]   ;;  %v6714_v32 = vld [vmem:[#allocation8 + $0x264] ss:$16 sps:$4 sm:$0xff]  }
 0x22d   :  { %4094 = vmatprep.subr.bf16.mxu1 %v6585_v8  ;;  %v6630_v8 = vld [vmem:[#allocation8 + $0x1e4] ss:$16 sps:$4 sm:$0xff]  }
 0x22f   :  { %4042 = vmatpush2.bf16.msra.mxu0 %v6580_v20  ;;  %v6717_v20 = vld [vmem:[#allocation8 + $0x244] ss:$16 sps:$4 sm:$0xff]  }
 0x230   :  { %4095 = vmatpush2.bf16.msra.mxu1 %v6583_v62  ;;  %4043 = vmatprep.subr.bf16.mxu0 %v6588_v11  ;;  %v6633_v62 = vld [vmem:[#allocation8 + $0x1c4] ss:$16 sps:$4 sm:$0xff]   ;;  %v6715_v11 = vld [vmem:[#allocation8 + $0x240] ss:$16 sps:$4 sm:$0xff]  }
 0x231   :  { %4096 = vmatprep.subr.bf16.mxu1 %v6591_v13  ;;  %v6631_v13 = vld [vmem:[#allocation8 + $0x1c0] ss:$16 sps:$4 sm:$0xff]  }
 0x233   :  { %4044 = vmatpush2.bf16.msra.mxu0 %v6586_v30  ;;  %v6634_v30 = vld [vmem:[#allocation8 + $0x1a0] ss:$16 sps:$4 sm:$0xff]  }
 0x234   :  { %4097 = vmatpush2.bf16.msra.mxu1 %v6589_v18  ;;  %4045 = vmatprep.subr.bf16.mxu0 %v6594_v16  ;;  %v6723_v18 = vld [vmem:[#allocation8 + $0x204] ss:$16 sps:$4 sm:$0xff]  }
 0x235   :  { %4098 = vmatprep.subr.bf16.mxu1 %v6597_v24  ;;  %v6639_v16 = vld [vmem:[#allocation8 + $0x184] ss:$16 sps:$4 sm:$0xff]   ;;  %v6721_v24 = vld [vmem:[#allocation8 + $0x200] ss:$16 sps:$4 sm:$0xff]  }
 0x237   :  { %4046 = vmatpush2.bf16.msra.mxu0 %v6592_v21  ;;  %v6724_v21 = vld [vmem:[#allocation8 + $0x3e0] ss:$16 sps:$4 sm:$0xff]  }
 0x238   :  { %4099 = vmatpush2.bf16.msra.mxu1 %v6595_v38  ;;  %4047 = vmatprep.subr.bf16.mxu0 %v6600_v15  ;;  %v6640_v38 = vld [vmem:[#allocation8 + $0x160] ss:$16 sps:$4 sm:$0xff]   ;;  %v6729_v15 = vld [vmem:[#allocation8 + $0x3c4] ss:$16 sps:$4 sm:$0xff]  }
 0x239   :  { %4100 = vmatprep.subr.bf16.mxu1 %v6603_v58  ;;  %v6645_v58 = vld [vmem:[#allocation8 + $0x144] ss:$16 sps:$4 sm:$0xff]  }
 0x23b   :  { %4048 = vmatpush2.bf16.msra.mxu0 %v6598_v61  ;;  %v6732_v61 = vld [vmem:[#allocation8 + $0x3a4] ss:$16 sps:$4 sm:$0xff]  }
 0x23c   :  { %4101 = vmatpush2.bf16.msra.mxu1 %v6601_v39  ;;  %4937 = vmatprep.subr.bf16.mxu0 %v6606_v17  ;;  %v6648_v39 = vld [vmem:[#allocation8 + $0x124] ss:$16 sps:$4 sm:$0xff]   ;;  %v6730_v17 = vld [vmem:[#allocation8 + $0x3a0] ss:$16 sps:$4 sm:$0xff]  }
 0x23e   :  { %4050 = vmatmul.mubr.bf16.vlgmr.msra.gmra.mxu0 %v7065_v50  ;;  %v6613_v50 = vld [vmem:[#allocation8 + $0x80] ss:$16 sps:$4 sm:$0xff]  }
 0x23f   :  { %4103 = vmatmul.mubr.bf16.vlgmr.msra.gmra.mxu1 %v7067_v51  ;;  %4938 = vmatpush1.bf16.msra.mxu0 %v6604_v12  ;;  %v6618_v51 = vld [vmem:[#allocation8 + $0x64] ss:$16 sps:$4 sm:$0xff]   ;;  %v6733_v12 = vld [vmem:[#allocation8 + $0x380] ss:$16 sps:$4 sm:$0xff]  }
 0x240   :  { %4059 = vmatprep.mubr.bf16.mxu0 %v7074_v3  ;;  %4939 = vmatprep.subr.bf16.mxu0 %v6609_v43  ;;  %v6616_v3 = vld [vmem:[#allocation8 + $0x60] ss:$16 sps:$4 sm:$0xff]  }
 0x241   :  { %4112 = vmatprep.mubr.bf16.mxu1 %v7076_v10  ;;  %v6702_v10 = vld [vmem:[#allocation8 + $0x2e4] ss:$16 sps:$4 sm:$0xff]   ;;  %v6649_v43 = vld [vmem:[#allocation8 + $0x100] ss:$16 sps:$4 sm:$0xff]  }
 0x242   :  { %4990 = vmatprep.subr.bf16.mxu1 %v6702_v10  ;;  %v6663_v10 = vld [vmem:[#allocation8 + $0x8c] ss:$16 sps:$4 sm:$0xff]  }
 0x243   :  { %4940 = vmatpush1.bf16.msra.mxu0 %v6607_v0  ;;  %4991 = vmatpush1.bf16.msra.mxu1 %v6700_v63  ;;  %v6736_v0 = vld [vmem:[#allocation8 + $0x360] ss:$16 sps:$4 sm:$0xff]   ;;  %v6661_v63 = vld [vmem:[#allocation8 + $0x88] ss:$16 sps:$4 sm:$0xff]  }
 0x244   :  { %4941 = vmatprep.subr.bf16.mxu0 %v6612_v26  ;;  %v6652_v26 = vld [vmem:[#allocation8 + $0xe8] ss:$16 sps:$4 sm:$0xff]  }
 0x246   :  { %4060 = vmatmul.mubr.bf16.gmra.mxu0 %v7089_v27  ;;  %v6705_v27 = vld [vmem:[#allocation8 + $0x2c4] ss:$16 sps:$4 sm:$0xff]  }
 0x247   :  { %4113 = vmatmul.mubr.bf16.gmra.mxu1 %v7091_v29  ;;  %4942 = vmatpush1.bf16.msra.mxu0 %v6610_v60  ;;  %v6624_v29 = vld [vmem:[#allocation8 + $0x24] ss:$16 sps:$4 sm:$0xff]  }
 0x248   :  { %4969 = vmatprep.mubr.bf16.mxu0 %v7237_v46  ;;  %4943 = vmatprep.subr.bf16.mxu0 %v6615_v6  ;;  %v6741_v60 = vld [vmem:[#allocation8 + $0x344] ss:$16 sps:$4 sm:$0xff]   ;;  %v6660_v6 = vld [vmem:[#allocation8 + $0xac] ss:$16 sps:$4 sm:$0xff]  }
 0x249   :  { %4992 = vmatprep.subr.bf16.mxu1 %v6705_v27  ;;  %v6745_v27 = vld [vmem:[#allocation8 + $0x300] ss:$16 sps:$4 sm:$0xff]  }
 0x24a   :  { %4993 = vmatpush1.bf16.msra.mxu1 %v6703_v54  ;;  %v6666_v54 = vld [vmem:[#allocation8 + $0x6c] ss:$16 sps:$4 sm:$0xff]  }
 0x24b   :  { %4944 = vmatpush1.bf16.msra.mxu0 %v6613_v50  ;;  %4994 = vmatprep.subr.bf16.mxu1 %v6708_v4  ;;  %v6739_v50 = vld [vmem:[#allocation8 + $0x340] ss:$16 sps:$4 sm:$0xff]   ;;  %v6750_v4 = vld [vmem:[#allocation8 + $0x2ec] ss:$16 sps:$4 sm:$0xff]  }
 0x24c   :  { %4945 = vmatprep.subr.bf16.mxu0 %v6618_v51  ;;  %v6658_v51 = vld [vmem:[#allocation8 + $0xa8] ss:$16 sps:$4 sm:$0xff]  }
 0x24e   :  { %4995 = vmatpush1.bf16.msra.mxu1 %v6706_v7  ;;  %v6669_v7 = vld [vmem:[#allocation8 + $0x4c] ss:$16 sps:$4 sm:$0xff]  }
 0x24f   :  { %4946 = vmatpush1.bf16.msra.mxu0 %v6616_v3  ;;  %4996 = vmatprep.subr.bf16.mxu1 %v6711_v37  ;;  %v6744_v3 = vld [vmem:[#allocation8 + $0x324] ss:$16 sps:$4 sm:$0xff]   ;;  %v6672_v37 = vld [vmem:[#allocation8 + $0x2c] ss:$16 sps:$4 sm:$0xff]  }
 0x250   :  { %4947 = vmatprep.subr.bf16.mxu0 %v6621_v40  ;;  %v6742_v40 = vld [vmem:[#allocation8 + $0x320] ss:$16 sps:$4 sm:$0xff]  }
 0x252   :  { %4997 = vmatpush1.bf16.msra.mxu1 %v6709_v19  ;;  %v6673_v19 = vld [vmem:[#allocation8 + $0x8] ss:$16 sps:$4 sm:$0xff]  }
 0x253   :  { %4948 = vmatpush1.bf16.msra.mxu0 %v6619_v2  ;;  %4998 = vmatprep.subr.bf16.mxu1 %v6714_v32  ;;  %v6747_v2 = vld [vmem:[#allocation8 + $0x304] ss:$16 sps:$4 sm:$0xff]   ;;  %v6676_v32 = vld [vmem:[#allocation8 + $0x1e8] ss:$16 sps:$4 sm:$0xff]  }
 0x254   :  { %4949 = vmatprep.subr.bf16.mxu0 %v6624_v29  ;;  %v6664_v29 = vld [vmem:[#allocation8 + $0x68] ss:$16 sps:$4 sm:$0xff]  }
 0x256   :  { %4999 = vmatpush1.bf16.msra.mxu1 %v6712_v33  ;;  %v6679_v33 = vld [vmem:[#allocation8 + $0x1c8] ss:$16 sps:$4 sm:$0xff]  }
 0x257   :  { %4950 = vmatpush1.bf16.msra.mxu0 %v6622_v55  ;;  %5000 = vmatprep.subr.bf16.mxu1 %v6717_v20  ;;  %v6667_v55 = vld [vmem:[#allocation8 + $0x48] ss:$16 sps:$4 sm:$0xff]  }
 0x258   :  { %4951 = vmatprep.subr.bf16.mxu0 %v6627_v1  ;;  %v6670_v1 = vld [vmem:[#allocation8 + $0x28] ss:$16 sps:$4 sm:$0xff]  }
 0x259   :  { %v6682_v20 = vld [vmem:[#allocation8 + $0x1a8] ss:$16 sps:$4 sm:$0xff]  }
 0x25a   :  { %5001 = vmatpush1.bf16.msra.mxu1 %v6715_v11  ;;  %v7246_v11 = vpop.f32.mrf.mxu0 }
 0x25b   :  { %4952 = vmatpush1.bf16.msra.mxu0 %v6625_v56  ;;  %5002 = vmatprep.subr.bf16.mxu1 %v6720_v34  ;;  %v6678_v56 = vld [vmem:[#allocation8 + $0x1ec] ss:$16 sps:$4 sm:$0xff]  }
 0x25c   :  { %4953 = vmatprep.subr.bf16.mxu0 %v6630_v8  ;;  %v6681_v8 = vld [vmem:[#allocation8 + $0x1cc] ss:$16 sps:$4 sm:$0xff]  }
 0x25d   :  { %v6690_v34 = vld [vmem:[#allocation8 + $0x16c] ss:$16 sps:$4 sm:$0xff]  }
 0x25e   :  { %5003 = vmatpush1.bf16.msra.mxu1 %v6718_v45  ;;  %v3735_v45 = vpop.f32.mrf.mxu0 }
 0x25f   :  { %4954 = vmatpush2.bf16.msra.mxu0 %v6628_v9  ;;  %5004 = vmatprep.subr.bf16.mxu1 %v6723_v18  ;;  %v6684_v9 = vld [vmem:[#allocation8 + $0x1ac] ss:$16 sps:$4 sm:$0xff]  }
 0x260   :  { %4955 = vmatprep.subr.bf16.mxu0 %v6633_v62  ;;  %v6687_v62 = vld [vmem:[#allocation8 + $0x18c] ss:$16 sps:$4 sm:$0xff]  }
 0x261   :  { %v6693_v18 = vld [vmem:[#allocation8 + $0x14c] ss:$16 sps:$4 sm:$0xff]  }
 0x262   :  { %5005 = vmatpush1.bf16.msra.mxu1 %v6721_v24  ;;  %v3737_v24 = vpop.f32.mrf.mxu0 }
 0x263   :  { %4956 = vmatpush2.bf16.msra.mxu0 %v6631_v13  ;;  %5006 = vmatprep.subr.bf16.mxu1 %v6726_v44  ;;  %v6685_v13 = vld [vmem:[#allocation8 + $0x188] ss:$16 sps:$4 sm:$0xff]   ;;  %v6696_v44 = vld [vmem:[#allocation8 + $0x12c] ss:$16 sps:$4 sm:$0xff]  }
 0x264   :  { %4957 = vmatprep.subr.bf16.mxu0 %v6636_v47  ;;  %v7248_v47 = vpop.f32.mrf.mxu1 }
 0x266   :  { %5007 = vmatpush2.bf16.msra.mxu1 %v6724_v21  ;;  %v3739_v21 = vpop.f32.mrf.mxu0 }
 0x267   :  { %4958 = vmatpush2.bf16.msra.mxu0 %v6634_v30  ;;  %5008 = vmatprep.subr.bf16.mxu1 %v6729_v15  ;;  %v6688_v30 = vld [vmem:[#allocation8 + $0x168] ss:$16 sps:$4 sm:$0xff]  }
 0x268   :  { %4959 = vmatprep.subr.bf16.mxu0 %v6639_v16  ;;  %v3788_v16 = vpop.f32.mrf.mxu1  ;;  %v7250_v15 = vpop.f32.mrf.mxu0 }
 0x26a   :  { %5009 = vmatpush2.bf16.msra.mxu1 %v6727_v49 }
 0x26b   :  { %4960 = vmatpush2.bf16.msra.mxu0 %v6637_v41  ;;  %5010 = vmatprep.subr.bf16.mxu1 %v6732_v61  ;;  %v6691_v41 = vld [vmem:[#allocation8 + $0x148] ss:$16 sps:$4 sm:$0xff]   ;;  %v3745_v61 = vpop.f32.mrf.mxu0 }
 0x26c   :  { %4961 = vmatprep.subr.bf16.mxu0 %v6642_v42  ;;  %v3790_v42 = vpop.f32.mrf.mxu1 }
 0x26e   :  { %5011 = vmatpush2.bf16.msra.mxu1 %v6730_v17  ;;  %v3792_v49 = vpop.f32.mrf.mxu1  ;;  %v3747_v17 = vpop.f32.mrf.mxu0 }
 0x26f   :  { %4962 = vmatpush2.bf16.msra.mxu0 %v6640_v38  ;;  %5012 = vmatprep.subr.bf16.mxu1 %v6735_v52  ;;  %v6694_v38 = vld [vmem:[#allocation8 + $0x128] ss:$16 sps:$4 sm:$0xff]  }
 0x270   :  { %4963 = vmatprep.subr.bf16.mxu0 %v6645_v58  ;;  %v6699_v58 = vld [vmem:[#allocation8 + $0x10c] ss:$16 sps:$4 sm:$0xff]   ;;  %v3749_v52 = vpop.f32.mrf.mxu0 }
 0x272   :  { %5013 = vmatpush2.bf16.msra.mxu1 %v6733_v12 }
 0x273   :  { %4964 = vmatpush2.bf16.msra.mxu0 %v6643_v31  ;;  %5014 = vmatprep.subr.bf16.mxu1 %v6738_v22  ;;  %v6697_v31 = vld [vmem:[#allocation8 + $0x108] ss:$16 sps:$4 sm:$0xff]  }
 0x274   :  { %4965 = vmatprep.subr.bf16.mxu0 %v6648_v39  ;;  %v7252_v39 = vpop.f32.mrf.mxu1 }
 0x276   :  { %5015 = vmatpush2.bf16.msra.mxu1 %v6736_v0 }
 0x277   :  { %4966 = vmatpush2.bf16.msra.mxu0 %v6646_v53  ;;  %5016 = vmatprep.subr.bf16.mxu1 %v6741_v60  ;;  %v3798_v53 = vpop.f32.mrf.mxu1 }
 0x278   :  { %4967 = vmatprep.subr.bf16.mxu0 %v6651_v36 }
 0x279   :  { %v7256_v36 = vpop.f32.mrf.mxu1 }
 0x27a   :  { %5017 = vmatpush2.bf16.msra.mxu1 %v6739_v50 }
 0x27b   :  { %4968 = vmatpush2.bf16.msra.mxu0 %v6649_v43  ;;  %5018 = vmatprep.subr.bf16.mxu1 %v6744_v3  ;;  %v7258_v43 = vpop.f32.mrf.mxu1 }
 0x27c   :  { %5043 = vmatprep.subr.bf16.mxu0 %v6654_v25 }
 0x27e   :  { %4970 = vmatmul.mubr.bf16.vlgmr.msra.gmra.mxu0 %v7205_v59  ;;  %5019 = vmatpush2.bf16.msra.mxu1 %v6742_v40  ;;  %v3839_v12 = vpop.f32.mrf.mxu0 }
 0x27f   :  { %4979 = vmatprep.mubr.bf16.mxu0 %v7213_v28  ;;  %5044 = vmatpush1.bf16.msra.mxu0 %v6652_v26  ;;  %v3892_v22 = vpop.f32.mrf.mxu1 }
 0x280   :  { %5045 = vmatprep.subr.bf16.mxu0 %v6657_v57  ;;  %5020 = vmatprep.subr.bf16.mxu1 %v6747_v2  ;;  %v3841_v25 = vpop.f32.mrf.mxu0 }
 0x281   :  { %v3894_v0 = vpop.f32.mrf.mxu1 }
 0x282   :  { %5021 = vmatpush2.bf16.msra.mxu1 %v6745_v27  ;;  %v3843_v26 = vpop.f32.mrf.mxu0  ;;  %v7309_v27 = vsub.s32 3, %v7060_v23 }
 0x283   :  { %5046 = vmatpush1.bf16.msra.mxu0 %v6655_v48  ;;  %5096 = vmatprep.subr.bf16.mxu1 %v6750_v4  ;;  %v3896_v57 = vpop.f32.mrf.mxu1 }
 0x284   :  { %5047 = vmatprep.subr.bf16.mxu0 %v6660_v6  ;;  %v3845_v48 = vpop.f32.mrf.mxu0 }
 0x285   :  { %v3898_v60 = vpop.f32.mrf.mxu1 }
 0x286   :  { %4980 = vmatmul.mubr.bf16.gmra.mxu0 %v7211_v14  ;;  %v3849_v6 = vpop.f32.mrf.mxu0 }
 0x287   :  { %5048 = vmatpush1.bf16.msra.mxu0 %v6658_v51  ;;  %5075 = vmatprep.mubr.bf16.mxu0 %v7237_v46  ;;  %v6675_v46 = vld [vmem:[#allocation8 + $0xc] ss:$16 sps:$4 sm:$0xff]   ;;  %v7261_v50 = vpop.f32.mrf.mxu1 }
 0x288   :  { %5049 = vmatprep.subr.bf16.mxu0 %v6663_v10 }
 0x28b   :  { %5050 = vmatpush1.bf16.msra.mxu0 %v6661_v63 }
 0x28c   :  { %5051 = vmatprep.subr.bf16.mxu0 %v6666_v54 }
 0x28f   :  { %5052 = vmatpush1.bf16.msra.mxu0 %v6664_v29  ;;  %v7310_v29 = vsub.s32 2, %v7060_v23 }
 0x290   :  { %5053 = vmatprep.subr.bf16.mxu0 %v6669_v7 }
 0x293   :  { %5054 = vmatpush1.bf16.msra.mxu0 %v6667_v55  ;;  %v6796_v55 = vld [vmem:[#allocation7] sm:$0xf] }
 0x294   :  { %5055 = vmatprep.subr.bf16.mxu0 %v6672_v37  ;;  %v710_v37 = vrot.slane %v6796_v55, %v7309_v27 }
 0x297   :  { %5056 = vmatpush1.bf16.msra.mxu0 %v6670_v1  ;;  %v706_v1 = vrot.slane %v6796_v55, %v7310_v29 }
 0x298   :  { %5057 = vmatprep.subr.bf16.mxu0 %v6675_v46 }
 0x299   :  { %v3748_v27 = vadd.f32 %v3747_v17, %v706_v1 }
 0x29b   :  { %5058 = vmatpush1.bf16.msra.mxu0 %v6673_v19 }
 0x29c   :  { %5059 = vmatprep.subr.bf16.mxu0 %v6678_v56  ;;  %v3736_v56 = vadd.f32 %v3735_v45, %v710_v37  ;;  %v3744_v45 = vadd.f32 %v7250_v15, %v706_v1 }
 0x29f   :  { %5060 = vmatpush2.bf16.msra.mxu0 %v6676_v32  ;;  %v3734_v32 = vadd.f32 %v7246_v11, %v706_v1 }
 0x2a0   :  { %5061 = vmatprep.subr.bf16.mxu0 %v6681_v8 }
 0x2a3   :  { %5062 = vmatpush2.bf16.msra.mxu0 %v6679_v33 }
 0x2a4   :  { %5063 = vmatprep.subr.bf16.mxu0 %v6684_v9  ;;  %v3738_v9 = vadd.f32 %v3737_v24, %v706_v1  ;;  %v3750_v24 = vadd.f32 %v3749_v52, %v710_v37 }
 0x2a7   :  { %5064 = vmatpush2.bf16.msra.mxu0 %v6682_v20  ;;  %v3789_v20 = vadd.f32 %v3788_v16, %v3736_v56 }
 0x2a8   :  { %5065 = vmatprep.subr.bf16.mxu0 %v6687_v62  ;;  %v3740_v62 = vadd.f32 %v3739_v21, %v710_v37 }
 0x2ab   :  { %5066 = vmatpush2.bf16.msra.mxu0 %v6685_v13  ;;  %v3787_v13 = vadd.f32 %v7248_v47, %v3734_v32  ;;  %v3797_v32 = vadd.f32 %v7252_v39, %v3744_v45 }
 0x2ac   :  { %5067 = vmatprep.subr.bf16.mxu0 %v6690_v34 }
 0x2ad   :  { %v3850_v17 = vadd.f32 %v3849_v6, %v3797_v32  ;;  %v6748_v32 = vld [vmem:[#allocation8 + $0x2e8] ss:$16 sps:$4 sm:$0xff]  }
 0x2af   :  { %5068 = vmatpush2.bf16.msra.mxu0 %v6688_v30 }
 0x2b0   :  { %5069 = vmatprep.subr.bf16.mxu0 %v6693_v18  ;;  %v3791_v18 = vadd.f32 %v3790_v42, %v3738_v9  ;;  %v3803_v9 = vadd.f32 %v7258_v43, %v3750_v24 }
 0x2b3   :  { %5070 = vmatpush2.bf16.msra.mxu0 %v6691_v41  ;;  %v3842_v41 = vadd.f32 %v3841_v25, %v3789_v20 }
 0x2b4   :  { %5071 = vmatprep.subr.bf16.mxu0 %v6696_v44  ;;  %v3840_v44 = vadd.f32 %v3839_v12, %v3787_v13 }
 0x2b5   :  { %v3895_v29 = vadd.f32 %v3894_v0, %v3842_v41 }
 0x2b6   :  { %v3893_v16 = vadd.f32 %v3892_v22, %v3840_v44 }
 0x2b7   :  { %5072 = vmatpush2.bf16.msra.mxu0 %v6694_v38  ;;  %v3793_v38 = vadd.f32 %v3792_v49, %v3740_v62  ;;  %v3801_v49 = vadd.f32 %v7256_v36, %v3748_v27 }
 0x2b8   :  { %5073 = vmatprep.subr.bf16.mxu0 %v6699_v58  ;;  %v3746_v58 = vadd.f32 %v3745_v61, %v710_v37 }
 0x2b9   :  { %v3846_v5 = vadd.f32 %v3845_v48, %v3793_v38 }
 0x2ba   :  { %v3799_v21 = vadd.f32 %v3798_v53, %v3746_v58 }
 0x2bb   :  { %5074 = vmatpush2.bf16.msra.mxu0 %v6697_v31  ;;  %v3844_v31 = vadd.f32 %v3843_v26, %v3791_v18  ;;  %v3899_v61 = vadd.f32 %v3898_v60, %v3846_v5  ;;  %v3903_v5 = vadd.f32 %v7261_v50, %v3850_v17 }
 0x2bd   :  { %v3897_v56 = vadd.f32 %v3896_v57, %v3844_v31 }
 0x2be   :  { %5076 = vmatmul.mubr.bf16.vlgmr.msra.gmra.mxu0 %v7205_v59  ;;  %v3851_v59 = vpop.f32.mrf.mxu0 }
 0x2bf   :  { %5085 = vmatprep.mubr.bf16.mxu0 %v7213_v28  ;;  %v7263_v28 = vpop.f32.mrf.mxu1  ;;  %v3852_v26 = vadd.f32 %v3851_v59, %v3799_v21 }
 0x2c0   :  { %v3853_v51 = vpop.f32.mrf.mxu0 }
 0x2c1   :  { %v7265_v3 = vpop.f32.mrf.mxu1  ;;  %v3854_v52 = vadd.f32 %v3853_v51, %v3801_v49 }
 0x2c2   :  { %v3855_v10 = vpop.f32.mrf.mxu0 }
 0x2c3   :  { %v7267_v40 = vpop.f32.mrf.mxu1  ;;  %v3856_v57 = vadd.f32 %v3855_v10, %v3803_v9  ;;  %v3907_v43 = vadd.f32 %v7265_v3, %v3854_v52  ;;  %v6751_v9 = vld [vmem:[#allocation8 + $0x2c8] ss:$16 sps:$4 sm:$0xff]  }
 0x2c4   :  { %v3945_v63 = vpop.f32.mrf.mxu0 }
 0x2c5   :  { %v3998_v2 = vpop.f32.mrf.mxu1  ;;  %v3946_v42 = vadd.f32 %v3945_v63, %v3893_v16  ;;  %v3905_v63 = vadd.f32 %v7263_v28, %v3852_v26 }
 0x2c6   :  { %5086 = vmatmul.mubr.bf16.gmra.mxu0 %v7211_v14  ;;  %v3947_v14 = vpop.f32.mrf.mxu0 }
 0x2c7   :  { %v4000_v54 = vpop.f32.mrf.mxu1  ;;  %v3948_v47 = vadd.f32 %v3947_v14, %v3895_v29  ;;  %v3999_v14 = vadd.f32 %v3998_v2, %v3946_v42 }
 0x2c8   :  { %v3949_v4 = vpop.f32.mrf.mxu0 }
 0x2c9   :  { %v4002_v7 = vpop.f32.mrf.mxu1  ;;  %v3950_v15 = vadd.f32 %v3949_v4, %v3897_v56  ;;  %v4001_v22 = vadd.f32 %v4000_v54, %v3948_v47  ;;  %v3909_v54 = vadd.f32 %v7267_v40, %v3856_v57 }
 0x2ca   :  { %v3951_v46 = vpop.f32.mrf.mxu0 }
 0x2cb   :  { %v4004_v19 = vpop.f32.mrf.mxu1  ;;  %v3952_v53 = vadd.f32 %v3951_v46, %v3899_v61  ;;  %v4003_v37 = vadd.f32 %v4002_v7, %v3950_v15 }
 0x2cc   :  { %v3955_v8 = vpop.f32.mrf.mxu0 }
 0x2cd   :  { %v7276_v33 = vpop.f32.mrf.mxu1  ;;  %v4005_v6 = vadd.f32 %v4004_v19, %v3952_v53  ;;  %v3956_v10 = vadd.f32 %v3955_v8, %v3903_v5  ;;  %v6754_v53 = vld [vmem:[#allocation8 + $0x2a8] ss:$16 sps:$4 sm:$0xff]   ;;  %v6768_v5 = vld [vmem:[#allocation8 + $0x22c] ss:$16 sps:$4 sm:$0xff]  }
 0x2ce   :  { %v3957_v34 = vpop.f32.mrf.mxu0 }
 0x2cf   :  { %v4010_v30 = vpop.f32.mrf.mxu1  ;;  %v3958_v27 = vadd.f32 %v3957_v34, %v3905_v63  ;;  %v4009_v3 = vadd.f32 %v7276_v33, %v3956_v10  ;;  %v6753_v33 = vld [vmem:[#allocation8 + $0x2cc] ss:$16 sps:$4 sm:$0xff]   ;;  %v6760_v63 = vld [vmem:[#allocation8 + $0x268] ss:$16 sps:$4 sm:$0xff]  }
 0x2d0   :  { %v3959_v55 = vpop.f32.mrf.mxu0  ;;  %v6778_v10 = vld [vmem:[#allocation8 + $0x3a8] ss:$16 sps:$4 sm:$0xff]  }
 0x2d1   :  { %v4012_v11 = vpop.f32.mrf.mxu1  ;;  %v3960_v46 = vadd.f32 %v3959_v55, %v3907_v43  ;;  %v4011_v18 = vadd.f32 %v4010_v30, %v3958_v27  ;;  %v6774_v43 = vld [vmem:[#allocation8 + $0x3ec] ss:$16 sps:$4 sm:$0xff]  }
 0x2d2   :  { %v3961_v25 = vpop.f32.mrf.mxu0  ;;  %v6777_v27 = vld [vmem:[#allocation8 + $0x3cc] ss:$16 sps:$4 sm:$0xff]  }
 0x2d3   :  { %v4014_v12 = vpop.f32.mrf.mxu1  ;;  %v3962_v41 = vadd.f32 %v3961_v25, %v3909_v54  ;;  %v4013_v58 = vadd.f32 %v4012_v11, %v3960_v46  ;;  %v6780_v54 = vld [vmem:[#allocation8 + $0x3ac] ss:$16 sps:$4 sm:$0xff]  }
 0x2d4   :  { %v6786_v46 = vld [vmem:[#allocation8 + $0x36c] ss:$16 sps:$4 sm:$0xff]  }
 0x2d5   :  { %v4015_v21 = vadd.f32 %v4014_v12, %v3962_v41  ;;  %v6756_v12 = vld [vmem:[#allocation8 + $0x2ac] ss:$16 sps:$4 sm:$0xff]  }
 0x2fe   :  { %v4051_v0 = vpop.f32.mrf.mxu0 }
 0x2ff   :  { %v4104_v48 = vpop.f32.mrf.mxu1  ;;  %v4052_v36 = vadd.f32 %v4051_v0, %v3999_v14  ;;  %v6759_v14 = vld [vmem:[#allocation8 + $0x28c] ss:$16 sps:$4 sm:$0xff]  }
 0x300   :  { %v4053_v29 = vpop.f32.mrf.mxu0 }
 0x301   :  { %v4106_v39 = vpop.f32.mrf.mxu1  ;;  %v4054_v1 = vadd.f32 %v4053_v29, %v4001_v22  ;;  %v4105_v62 = vadd.f32 %v4104_v48, %v4052_v36  ;;  %v6757_v29 = vld [vmem:[#allocation8 + $0x288] ss:$16 sps:$4 sm:$0xff]  }
 0x302   :  { %v4055_v60 = vpop.f32.mrf.mxu0  ;;  %v6766_v36 = vld [vmem:[#allocation8 + $0x228] ss:$16 sps:$4 sm:$0xff]  }
 0x303   :  { %v4108_v59 = vpop.f32.mrf.mxu1  ;;  %v4056_v51 = vadd.f32 %v4055_v60, %v4003_v37  ;;  %v4107_v20 = vadd.f32 %v4106_v39, %v4054_v1  ;;  %v4125_v45 = vmax.f32 %v4105_v62, 0.0  ;;  %v6762_v39 = vld [vmem:[#allocation8 + $0x26c] ss:$16 sps:$4 sm:$0xff]   ;;  %v6763_v1 = vld [vmem:[#allocation8 + $0x248] ss:$16 sps:$4 sm:$0xff]  }
 0x304   :  { %v4057_v2 = vpop.f32.mrf.mxu0  ;;  %v6765_v37 = vld [vmem:[#allocation8 + $0x24c] ss:$16 sps:$4 sm:$0xff]  }
 0x305   :  { %v4110_v4 = vpop.f32.mrf.mxu1  ;;  %v4109_v28 = vadd.f32 %v4108_v59, %v4056_v51  ;;  %v4058_v7 = vadd.f32 %v4057_v2, %v4005_v6  ;;  %v4126_v40 = vmax.f32 %v4107_v20, 0.0  ;;  %v6771_v60 = vld [vmem:[#allocation8 + $0x20c] ss:$16 sps:$4 sm:$0xff]   ;;  %v6769_v59 = vld [vmem:[#allocation8 + $0x208] ss:$16 sps:$4 sm:$0xff]  }
 0x306   :  { %v4061_v13 = vpop.f32.mrf.mxu0  ;;  %v6772_v6 = vld [vmem:[#allocation8 + $0x3e8] ss:$16 sps:$4 sm:$0xff]   ;;  %v6783_v2 = vld [vmem:[#allocation8 + $0x38c] ss:$16 sps:$4 sm:$0xff]  }
 0x307   :  { %v4114_v50 = vpop.f32.mrf.mxu1  ;;  %v4111_v44 = vadd.f32 %v4110_v4, %v4058_v7  ;;  %v4129_v19 = vmax.f32 %v4109_v28, 0.0  ;;  %v4062_v55 = vadd.f32 %v4061_v13, %v4009_v3  ;;  %v6775_v51 = vld [vmem:[#allocation8 + $0x3c8] ss:$16 sps:$4 sm:$0xff]   ;;  %v6789_v28 = vld [vmem:[#allocation8 + $0x34c] ss:$16 sps:$4 sm:$0xff]  }
 0x308   :  { %v4063_v34 = vpop.f32.mrf.mxu0  ;;  %v6781_v4 = vld [vmem:[#allocation8 + $0x388] ss:$16 sps:$4 sm:$0xff]   ;;  %v6792_v62 = vld [vmem:[#allocation8 + $0x32c] ss:$16 sps:$4 sm:$0xff]  }
 0x309   :  { %v4116_v38 = vpop.f32.mrf.mxu1  ;;  %v4130_v8 = vmax.f32 %v4111_v44, 0.0  ;;  %v4064_v31 = vadd.f32 %v4063_v34, %v4011_v18  ;;  %v7288_v30 = vpack.c.bf16 %v4129_v19, %v4125_v45  ;;  %v4115_v11 = vadd.f32 %v4114_v50, %v4062_v55  ;;  %v6784_v20 = vld [vmem:[#allocation8 + $0x368] ss:$16 sps:$4 sm:$0xff]   ;;  %v6795_v50 = vld [vmem:[#allocation8 + $0x30c] ss:$16 sps:$4 sm:$0xff]  }
 0x30a   :  { %v4065_v24 = vpop.f32.mrf.mxu0  ;;  %v6787_v7 = vld [vmem:[#allocation8 + $0x348] ss:$16 sps:$4 sm:$0xff]   ;;  %v4275_v19 = vld [vmem:[#allocation10] sm:$0xf] }
 0x30b   :  { %v4118_v16 = vpop.f32.mrf.mxu1  ;;  %v4142_v56 = vpack.c.bf16 %v4130_v8, %v4126_v40  ;;  %v4066_v47 = vadd.f32 %v4065_v24, %v4013_v58  ;;  %v4117_v49 = vadd.f32 %v4116_v38, %v4064_v31  ;;  %v4133_v52 = vmax.f32 %v4115_v11, 0.0  ;;  %v6790_v13 = vld [vmem:[#allocation8 + $0x328] ss:$16 sps:$4 sm:$0xff]  }
 0x30c   :  { %v4067_v42 = vpop.f32.mrf.mxu0  ;;  %v6793_v18 = vld [vmem:[#allocation8 + $0x308] ss:$16 sps:$4 sm:$0xff]   ;;  %v4280_v38 = vrot.slane %v4275_v19, %v697_v35  ;;  %v7312_v58 = vsub.s32 1, %v7060_v23 }
 0x30d   :  { %v4120_v25 = vpop.f32.mrf.mxu1  ;;  %v4068_v61 = vadd.f32 %v4067_v42, %v4015_v21  ;;  %v4119_v26 = vadd.f32 %v4118_v16, %v4066_v47  ;;  %5022 = vmatprep.mubr.bf16.mxu1 %v4142_v56  ;;  %v4134_v0 = vmax.f32 %v4117_v49, 0.0 }
 0x30e   :  { %5023 = vmatmul.mubr.bf16.vlgmr.msra.gmra.mxu1 %v7288_v30  ;;  %v4284_v40 = vrot.slane %v4275_v19, %v7312_v58 }
 0x30f   :  { %v4121_v15 = vadd.f32 %v4120_v25, %v4068_v61  ;;  %5097 = vmatpush1.bf16.msra.mxu1 %v6748_v32  ;;  %v4137_v17 = vmax.f32 %v4119_v26, 0.0 }
 0x310   :  { %5098 = vmatprep.subr.bf16.mxu1 %v6753_v33 }
 0x311   :  { %v4138_v48 = vmax.f32 %v4121_v15, 0.0  ;;  %v4145_v57 = vpack.c.bf16 %v4137_v17, %v4133_v52 }
 0x313   :  { %v4146_v22 = vpack.c.bf16 %v4138_v48, %v4134_v0  ;;  %5099 = vmatpush1.bf16.msra.mxu1 %v6751_v9 }
 0x314   :  { %5100 = vmatprep.subr.bf16.mxu1 %v6756_v12 }
 0x315   :  { %5032 = vmatprep.mubr.bf16.mxu1 %v4146_v22 }
 0x316   :  { %5033 = vmatmul.mubr.bf16.gmra.mxu1 %v4145_v57 }
 0x317   :  { %5101 = vmatpush1.bf16.msra.mxu1 %v6754_v53  ;;  %5128 = vmatprep.mubr.bf16.mxu1 %v4142_v56 }
 0x318   :  { %5102 = vmatprep.subr.bf16.mxu1 %v6759_v14 }
 0x31b   :  { %5103 = vmatpush1.bf16.msra.mxu1 %v6757_v29 }
 0x31c   :  { %5104 = vmatprep.subr.bf16.mxu1 %v6762_v39 }
 0x31f   :  { %5105 = vmatpush1.bf16.msra.mxu1 %v6760_v63  ;;  %v7313_v63 = vsub.s32 2, %v7060_v23 }
 0x320   :  { %5106 = vmatprep.subr.bf16.mxu1 %v6765_v37 }
 0x321   :  { %v4288_v37 = vrot.slane %v4275_v19, %v7313_v63 }
 0x323   :  { %5107 = vmatpush1.bf16.msra.mxu1 %v6763_v1  ;;  %v7314_v1 = vsub.s32 3, %v7060_v23 }
 0x324   :  { %5108 = vmatprep.subr.bf16.mxu1 %v6768_v5 }
 0x325   :  { %v4292_v5 = vrot.slane %v4275_v19, %v7314_v1 }
 0x327   :  { %5109 = vmatpush1.bf16.msra.mxu1 %v6766_v36 }
 0x328   :  { %5110 = vmatprep.subr.bf16.mxu1 %v6771_v60 }
 0x32b   :  { %5111 = vmatpush1.bf16.msra.mxu1 %v6769_v59 }
 0x32c   :  { %5112 = vmatprep.subr.bf16.mxu1 %v6774_v43 }
 0x32f   :  { %5113 = vmatpush2.bf16.msra.mxu1 %v6772_v6 }
 0x330   :  { %5114 = vmatprep.subr.bf16.mxu1 %v6777_v27 }
 0x333   :  { %5115 = vmatpush2.bf16.msra.mxu1 %v6775_v51 }
 0x334   :  { %5116 = vmatprep.subr.bf16.mxu1 %v6780_v54 }
 0x337   :  { %5117 = vmatpush2.bf16.msra.mxu1 %v6778_v10 }
 0x338   :  { %5118 = vmatprep.subr.bf16.mxu1 %v6783_v2 }
 0x33b   :  { %5119 = vmatpush2.bf16.msra.mxu1 %v6781_v4 }
 0x33c   :  { %5120 = vmatprep.subr.bf16.mxu1 %v6786_v46 }
 0x33e   :  { %v4971_v41 = vpop.f32.mrf.mxu0 }
 0x33f   :  { %5121 = vmatpush2.bf16.msra.mxu1 %v6784_v20  ;;  %v4972_v31 = vadd.f32 %v4971_v41, %v4280_v38 }
 0x340   :  { %5122 = vmatprep.subr.bf16.mxu1 %v6789_v28  ;;  %v4973_v44 = vpop.f32.mrf.mxu0 }
 0x341   :  { %v4974_v55 = vadd.f32 %v4973_v44, %v4284_v40 }
 0x342   :  { %v4975_v3 = vpop.f32.mrf.mxu0 }
 0x343   :  { %5123 = vmatpush2.bf16.msra.mxu1 %v6787_v7  ;;  %v4976_v56 = vadd.f32 %v4975_v3, %v4280_v38 }
 0x344   :  { %5124 = vmatprep.subr.bf16.mxu1 %v6792_v62  ;;  %v4977_v34 = vpop.f32.mrf.mxu0 }
 0x346   :  { %v4981_v8 = vpop.f32.mrf.mxu0 }
 0x347   :  { %5125 = vmatpush2.bf16.msra.mxu1 %v6790_v13  ;;  %v4982_v35 = vadd.f32 %v4981_v8, %v4280_v38 }
 0x348   :  { %5126 = vmatprep.subr.bf16.mxu1 %v6795_v50  ;;  %v4983_v16 = vpop.f32.mrf.mxu0 }
 0x349   :  { %v4984_v26 = vadd.f32 %v4983_v16, %v4284_v40 }
 0x34a   :  { %v4985_v25 = vpop.f32.mrf.mxu0 }
 0x34b   :  { %5127 = vmatpush2.bf16.msra.mxu1 %v6793_v18  ;;  %v4986_v17 = vadd.f32 %v4985_v25, %v4280_v38 }
 0x34c   :  { %v4987_v15 = vpop.f32.mrf.mxu0 }
 0x34d   :  { %v4988_v48 = vadd.f32 %v4987_v15, %v4284_v40 }
 0x34e   :  { %5129 = vmatmul.mubr.bf16.vlgmr.msra.gmra.mxu1 %v7288_v30  ;;  %v4978_v30 = vadd.f32 %v4977_v34, %v4284_v40 }
 0x34f   :  { %5138 = vmatprep.mubr.bf16.mxu1 %v4146_v22 }
 0x356   :  { %5139 = vmatmul.mubr.bf16.gmra.mxu1 %v4145_v57 }
 0x37e   :  { %v5077_v57 = vpop.f32.mrf.mxu0 }
 0x37f   :  { %v5078_v60 = vadd.f32 %v5077_v57, %v4288_v37 }
 0x380   :  { %v5079_v14 = vpop.f32.mrf.mxu0 }
 0x381   :  { %v5080_v43 = vadd.f32 %v5079_v14, %v4292_v5 }
 0x382   :  { %v5081_v29 = vpop.f32.mrf.mxu0 }
 0x383   :  { %v5082_v54 = vadd.f32 %v5081_v29, %v4288_v37 }
 0x384   :  { %v5083_v39 = vpop.f32.mrf.mxu0 }
 0x385   :  { %v5084_v4 = vadd.f32 %v5083_v39, %v4292_v5 }
 0x386   :  { %v5087_v36 = vpop.f32.mrf.mxu0 }
 0x387   :  { %v5088_v7 = vadd.f32 %v5087_v36, %v4288_v37 }
 0x388   :  { %v5089_v27 = vpop.f32.mrf.mxu0 }
 0x389   :  { %v5090_v13 = vadd.f32 %v5089_v27, %v4292_v5 }
 0x38a   :  { %v5091_v20 = vpop.f32.mrf.mxu0 }
 0x38b   :  { %v5092_v44 = vadd.f32 %v5091_v20, %v4288_v37 }
 0x38c   :  { %v5093_v18 = vpop.f32.mrf.mxu0 }
 0x38d   :  { %v5094_v34 = vadd.f32 %v5093_v18, %v4292_v5 }
 0x3ce   :  { %v5024_v45 = vpop.f32.mrf.mxu1 }
 0x3cf   :  { %v5025_v24 = vadd.f32 %v5024_v45, %v4972_v31 }
 0x3d0   :  { %v5026_v21 = vpop.f32.mrf.mxu1 }
 0x3d1   :  { %5149 = vst [vmem:[#allocation11] sm:$0xff] %v5025_v24  ;;  %v5027_v47 = vadd.f32 %v5026_v21, %v4974_v55 }
 0x3d2   :  { %v5028_v32 = vpop.f32.mrf.mxu1 }
 0x3d3   :  { %5150 = vst [vmem:[#allocation11 + $0x8] sm:$0xff] %v5027_v47  ;;  %v5029_v42 = vadd.f32 %v5028_v32, %v4976_v56 }
 0x3d4   :  { %v5030_v33 = vpop.f32.mrf.mxu1 }
 0x3d5   :  { %5153 = vst [vmem:[#allocation11 + $0x20] sm:$0xff] %v5029_v42  ;;  %v5031_v49 = vadd.f32 %v5030_v33, %v4978_v30 }
 0x3d6   :  { %v5034_v61 = vpop.f32.mrf.mxu1 }
 0x3d7   :  { %5154 = vst [vmem:[#allocation11 + $0x28] sm:$0xff] %v5031_v49  ;;  %v5035_v11 = vadd.f32 %v5034_v61, %v4982_v35 }
 0x3d8   :  { %v5036_v9 = vpop.f32.mrf.mxu1 }
 0x3d9   :  { %5157 = vst [vmem:[#allocation11 + $0x40] sm:$0xff] %v5035_v11  ;;  %v5037_v12 = vadd.f32 %v5036_v9, %v4984_v26 }
 0x3da   :  { %v5038_v0 = vpop.f32.mrf.mxu1 }
 0x3db   :  { %5158 = vst [vmem:[#allocation11 + $0x48] sm:$0xff] %v5037_v12  ;;  %v5039_v52 = vadd.f32 %v5038_v0, %v4986_v17 }
 0x3dc   :  { %v5040_v22 = vpop.f32.mrf.mxu1 }
 0x3dd   :  { %5161 = vst [vmem:[#allocation11 + $0x60] sm:$0xff] %v5039_v52  ;;  %v5041_v53 = vadd.f32 %v5040_v22, %v4988_v48 }
 0x3df   :  { %5162 = vst [vmem:[#allocation11 + $0x68] sm:$0xff] %v5041_v53 }
 0x40e   :  { %v5130_v59 = vpop.f32.mrf.mxu1 }
 0x40f   :  { %v5131_v6 = vadd.f32 %v5130_v59, %v5078_v60 }
 0x410   :  { %v5132_v51 = vpop.f32.mrf.mxu1 }
 0x411   :  { %5151 = vst [vmem:[#allocation11 + $0x10] sm:$0xff] %v5131_v6  ;;  %v5133_v10 = vadd.f32 %v5132_v51, %v5080_v43 }
 0x412   :  { %v5134_v2 = vpop.f32.mrf.mxu1 }
 0x413   :  { %5152 = vst [vmem:[#allocation11 + $0x18] sm:$0xff] %v5133_v10  ;;  %v5135_v46 = vadd.f32 %v5134_v2, %v5082_v54 }
 0x414   :  { %v5136_v28 = vpop.f32.mrf.mxu1 }
 0x415   :  { %5155 = vst [vmem:[#allocation11 + $0x30] sm:$0xff] %v5135_v46  ;;  %v5137_v23 = vadd.f32 %v5136_v28, %v5084_v4 }
 0x416   :  { %v5140_v62 = vpop.f32.mrf.mxu1 }
 0x417   :  { %5156 = vst [vmem:[#allocation11 + $0x38] sm:$0xff] %v5137_v23  ;;  %v5141_v50 = vadd.f32 %v5140_v62, %v5088_v7 }
 0x418   :  { %v5142_v41 = vpop.f32.mrf.mxu1 }
 0x419   :  { %5159 = vst [vmem:[#allocation11 + $0x50] sm:$0xff] %v5141_v50  ;;  %v5143_v3 = vadd.f32 %v5142_v41, %v5090_v13 }
 0x41a   :  { %v5144_v19 = vpop.f32.mrf.mxu1 }
 0x41b   :  { %5160 = vst [vmem:[#allocation11 + $0x58] sm:$0xff] %v5143_v3  ;;  %v5145_v38 = vadd.f32 %v5144_v19, %v5092_v44 }
 0x41c   :  { %v5146_v58 = vpop.f32.mrf.mxu1 }
 0x41d   :  { %5163 = vst [vmem:[#allocation11 + $0x70] sm:$0xff] %v5145_v38  ;;  %v5147_v40 = vadd.f32 %v5146_v58, %v5094_v34 }
 0x41f   :  { %5164 = vst [vmem:[#allocation11 + $0x78] sm:$0xff] %v5147_v40 }
 0x420   :  { %6908 = shalt.err (!%p6905_p1)
}
 0x421   :  { %s6935_s20 = smov 512   ;;  %s6936_s21 = smov 32  }
 0x422   :  { %5176 = dma.vmem_to_hbm [thread:$0]  %s5171_s4, 2048, %s7308_s5, [#allocation4], %s6935_s20, %s6935_s20, %s6936_s21  }
 0x423   :  { %6923 = dma.done.wait [#allocation4], 2048  }
 0x424   :  { %6924 = vsyncadd [#allocation4], 4294965248 }
 0x425   :  { %5180 = vsyncpa [#allocation3], 1 }
 0x426   :  { %5181 = vsyncpa [#allocation6], 1 }
 0x427   :  { %5182 = vsyncpa [#allocation9], 1 }
 0x428   :  { %5183 = vsyncpa [#allocation4], 1 }

// kernel: tpu_custom_call.1
= control target key start
LH: loop header
LB: loop body
LE: loop exit
PB: predicated region body
PF: predicated region fallthrough
CT: control target
= control target key end

     0   :  { %10 = vsyncpa [#allocation3], 0  ;;  %s7303_s0 = inlined_call_operand.hbm [shape: f32[32,2048], index: 0, kind: input, shape index: {}]   ;;  %s7304_s1 = inlined_call_operand.hbm [shape: bf16[2048,512], index: 1, kind: input, shape index: {}]   ;;  %s7305_s2 = inlined_call_operand.hbm [shape: f32[1,512], index: 2, kind: input, shape index: {}]   ;;  %s7306_s3 = inlined_call_operand.hbm [shape: bf16[512,512], index: 3, kind: input, shape index: {}]   ;;  %s7307_s4 = inlined_call_operand.hbm [shape: f32[1,512], index: 4, kind: input, shape index: {}]   ;;  %s7308_s5 = inlined_call_operand.hbm [shape: f32[32,512], index: 5, kind: output, shape index: {}]  }
   0x1   :  { %11 = vsyncpa [#allocation6], 0 }
   0x2   :  { %12 = vsyncpa [#allocation9], 0 }
   0x3   :  { %13 = vsyncpa [#allocation4], 0  ;;  %s6925_s18 = smov [#allocation5]  }
   0x4   :  { %s31_s19 = sshll.u32 %s6925_s18, 4  ;;  %s32_s19 = int_to_ptr.vmem [resolvable:$true] %s31_s19 }
   0x5   :  { %s6805_s20 = scalar_lea.vmem %s32_s19, 65536  ;;  %p6810_p1 = scmp.lt.s32.totalorder %s32_s19, %s32_s19 }
   0x6   :  { %p6806_p0 = scmp.ne.s32.totalorder %s32_s19, %s6805_s20  ;;  %p6811_p2 = scmp.lt.s32.totalorder %s6805_s20, %s6805_s20 }
   0x8   :  { %p6812_p3 = por %p6811_p2, %p6810_p1 }
   0xa   :  { %p6813_p4 = pnand %p6812_p3, %p6806_p0 }
   0xc   :  { %6816 = shalt.err (!%p6813_p4)
}
   0xd   :  { %s6926_s21 = smov 256   ;;  %s6927_s22 = smov 16  }
   0xe   :  { %37 = dma.hbm_to_vmem [thread:$0]  %s7304_s1, 65536, %s32_s19, [#allocation6], %s6926_s21, %s6926_s21, %s6927_s22  }
   0xf   :  { %s6928_s25 = smov [#allocation8]   ;;  %s6929_s27 = smov [#allocation2]  }
  0x10   :  { %s53_s26 = sshll.u32 %s6928_s25, 4  ;;  %s19_s28 = sshll.u32 %s6929_s27, 4  ;;  %s54_s26 = int_to_ptr.vmem [resolvable:$true] %s53_s26  ;;  %s20_s28 = int_to_ptr.vmem [resolvable:$true] %s19_s28 }
  0x11   :  { %s6825_s29 = scalar_lea.vmem %s54_s26, 16384  ;;  %p6830_p6 = scmp.lt.s32.totalorder %s54_s26, %s54_s26 }
  0x12   :  { %p6826_p5 = scmp.ne.s32.totalorder %s54_s26, %s6825_s29  ;;  %p6831_p7 = scmp.lt.s32.totalorder %s6825_s29, %s6825_s29 }
  0x14   :  { %p6832_p8 = por %p6831_p7, %p6830_p6 }
  0x16   :  { %p6833_p9 = pnand %p6832_p8, %p6826_p5 }
  0x18   :  { %6836 = shalt.err (!%p6833_p9)
}
  0x19   :  { %59 = dma.hbm_to_vmem [thread:$0]  %s7306_s3, 16384, %s54_s26, [#allocation9], %s6926_s21, %s6926_s21, %s6927_s22  }
  0x1a   :  { %s6845_s7 = scalar_lea.vmem %s20_s28, 8192  ;;  %p6850_p11 = scmp.lt.s32.totalorder %s20_s28, %s20_s28 }
  0x1b   :  { %p6846_p10 = scmp.ne.s32.totalorder %s20_s28, %s6845_s7  ;;  %p6851_p12 = scmp.lt.s32.totalorder %s6845_s7, %s6845_s7 }
  0x1d   :  { %p6852_p13 = por %p6851_p12, %p6850_p11 }
  0x1f   :  { %p6853_p0 = pnand %p6852_p13, %p6846_p10 }
  0x21   :  { %6856 = shalt.err (!%p6853_p0)
}
  0x22   :  { %s6930_s1 = smov 2048   ;;  %s6931_s8 = smov 128  }
  0x23   :  { %25 = dma.hbm_to_vmem [thread:$0]  %s7303_s0, 8192, %s20_s28, [#allocation3], %s6930_s1, %s6930_s1, %s6931_s8  }
  0x24   :  { %s6932_s11 = smov [#allocation7]   ;;  %s6933_s13 = smov [#allocation10]  }
  0x25   :  { %s44_s12 = sshll.u32 %s6932_s11, 4  ;;  %s66_s14 = sshll.u32 %s6933_s13, 4  ;;  %s45_s12 = int_to_ptr.vmem [resolvable:$true] %s44_s12  ;;  %s67_s14 = int_to_ptr.vmem [resolvable:$true] %s66_s14 }
  0x26   :  { %s6865_s3 = scalar_lea.vmem %s45_s12, 64  ;;  %p6870_p2 = scmp.lt.s32.totalorder %s45_s12, %s45_s12 }
  0x27   :  { %p6866_p1 = scmp.ne.s32.totalorder %s45_s12, %s6865_s3  ;;  %p6871_p3 = scmp.lt.s32.totalorder %s6865_s3, %s6865_s3 }
  0x29   :  { %p6872_p4 = por %p6871_p3, %p6870_p2 }
  0x2b   :  { %p6873_p5 = pnand %p6872_p4, %p6866_p1 }
  0x2d   :  { %6876 = shalt.err (!%p6873_p5)
}
  0x2e   :  { %47 = dma.hbm_to_vmem [thread:$0]  %s7305_s2, 64, %s45_s12, [#allocation6]  }
  0x2f   :  { %s6885_s17 = scalar_lea.vmem %s67_s14, 64  ;;  %p6890_p7 = scmp.lt.s32.totalorder %s67_s14, %s67_s14 }
  0x30   :  { %p6886_p6 = scmp.ne.s32.totalorder %s67_s14, %s6885_s17  ;;  %p6891_p8 = scmp.lt.s32.totalorder %s6885_s17, %s6885_s17 }
  0x32   :  { %p6892_p9 = por %p6891_p8, %p6890_p7 }
  0x34   :  { %p6893_p10 = pnand %p6892_p9, %p6886_p6 }
  0x36   :  { %6896 = shalt.err (!%p6893_p10)
}
  0x37   :  { %69 = dma.hbm_to_vmem [thread:$0]  %s7307_s4, 64, %s67_s14, [#allocation9]  }
  0x38   :  { %6917 = dma.done.wait [#allocation3], 8192  }
  0x39   :  { %6918 = vsyncadd [#allocation3], 4294959104 }
  0x3a   :  { %6919 = dma.done.wait [#allocation6], 65600  }
  0x3b   :  { %6920 = vsyncadd [#allocation6], 4294901696 }
  0x3c   :  { %6921 = dma.done.wait [#allocation9], 16448  }
  0x3d   :  { %6922 = vsyncadd [#allocation9], 4294950848  ;;  %v5836_v0 = vld [vmem:[#allocation5 + $0xe4] ss:$16 sps:$4 sm:$0xff]   ;;  %v5840_v2 = vld [vmem:[#allocation5 + $0xe0] ss:$16 sps:$4 sm:$0xff]  }
  0x3e   :  { %v5838_v1 = vld [vmem:[#allocation5 + $0x2e4] ss:$16 sps:$4 sm:$0xff]   ;;  %3275 = vmatprep.subr.bf16.mxu0 %v5836_v0  ;;  %v5841_v3 = vld [vmem:[#allocation5 + $0x2e0] ss:$16 sps:$4 sm:$0xff]   ;;  %v86_v46 = vld [vmem:[#allocation2 + $0x8] sm:$0xff]  ;;  %s6934_s2 = smov [#allocation11]  }
  0x3f   :  { %3328 = vmatprep.subr.bf16.mxu1 %v5838_v1  ;;  %v5842_v4 = vld [vmem:[#allocation5 + $0xc4] ss:$16 sps:$4 sm:$0xff]   ;;  %3276 = vmatpush1.bf16.msra.mxu0 %v5840_v2  ;;  %v5846_v6 = vld [vmem:[#allocation5 + $0xc0] ss:$16 sps:$4 sm:$0xff]   ;;  %v102_v47 = vld [vmem:[#allocation2 + $0x88] sm:$0xff]  ;;  %s5170_s4 = sshll.u32 %s6934_s2, 4  ;;  %s5171_s4 = int_to_ptr.vmem [resolvable:$true] %s5170_s4 }
  0x40   :  { %3329 = vmatpush1.bf16.msra.mxu1 %v5841_v3  ;;  %v5844_v5 = vld [vmem:[#allocation5 + $0x2c4] ss:$16 sps:$4 sm:$0xff]   ;;  %3277 = vmatprep.subr.bf16.mxu0 %v5842_v4  ;;  %v5847_v7 = vld [vmem:[#allocation5 + $0x2c0] ss:$16 sps:$4 sm:$0xff]   ;;  %v88_v48 = vld [vmem:[#allocation2 + $0x18] sm:$0xff]  ;;  %v6982_v53 = vpack.c.bf16 %v102_v47, %v86_v46  ;;  %s6897_s19 = scalar_lea.vmem %s5171_s4, 2048  ;;  %p6902_p12 = scmp.lt.s32.totalorder %s5171_s4, %s5171_s4 }
  0x41   :  { %3330 = vmatprep.subr.bf16.mxu1 %v5844_v5  ;;  %v5848_v8 = vld [vmem:[#allocation5 + $0xa4] ss:$16 sps:$4 sm:$0xff]   ;;  %v5852_v10 = vld [vmem:[#allocation5 + $0xa0] ss:$16 sps:$4 sm:$0xff]   ;;  %v104_v49 = vld [vmem:[#allocation2 + $0x98] sm:$0xff]  ;;  %p6898_p11 = scmp.ne.s32.totalorder %s5171_s4, %s6897_s19  ;;  %p6903_p13 = scmp.lt.s32.totalorder %s6897_s19, %s6897_s19 }
  0x42   :  { %v5850_v9 = vld [vmem:[#allocation5 + $0x2a4] ss:$16 sps:$4 sm:$0xff]   ;;  %v5853_v11 = vld [vmem:[#allocation5 + $0x2a0] ss:$16 sps:$4 sm:$0xff]   ;;  %v6984_v54 = vpack.c.bf16 %v104_v49, %v88_v48  ;;  %3307 = vmatprep.mubr.bf16.mxu0 %v6982_v53 }
  0x43   :  { %3278 = vmatpush1.bf16.msra.mxu0 %v5846_v6  ;;  %v5854_v12 = vld [vmem:[#allocation5 + $0x84] ss:$16 sps:$4 sm:$0xff]   ;;  %v5858_v14 = vld [vmem:[#allocation5 + $0x80] ss:$16 sps:$4 sm:$0xff]   ;;  %p6904_p0 = por %p6903_p13, %p6902_p12 }
  0x44   :  { %3331 = vmatpush1.bf16.msra.mxu1 %v5847_v7  ;;  %3279 = vmatprep.subr.bf16.mxu0 %v5848_v8  ;;  %v5856_v13 = vld [vmem:[#allocation5 + $0x284] ss:$16 sps:$4 sm:$0xff]   ;;  %v5859_v15 = vld [vmem:[#allocation5 + $0x280] ss:$16 sps:$4 sm:$0xff]  }
  0x45   :  { %3332 = vmatprep.subr.bf16.mxu1 %v5850_v9  ;;  %v5860_v16 = vld [vmem:[#allocation5 + $0x64] ss:$16 sps:$4 sm:$0xff]   ;;  %v5864_v18 = vld [vmem:[#allocation5 + $0x60] ss:$16 sps:$4 sm:$0xff]   ;;  %3360 = vmatprep.mubr.bf16.mxu1 %v6984_v54  ;;  %p6905_p1 = pnand %p6904_p0, %p6898_p11 }
  0x46   :  { %v5862_v17 = vld [vmem:[#allocation5 + $0x264] ss:$16 sps:$4 sm:$0xff]   ;;  %v5865_v19 = vld [vmem:[#allocation5 + $0x260] ss:$16 sps:$4 sm:$0xff]  }
  0x47   :  { %3280 = vmatpush1.bf16.msra.mxu0 %v5852_v10  ;;  %v5866_v20 = vld [vmem:[#allocation5 + $0x44] ss:$16 sps:$4 sm:$0xff]   ;;  %v5870_v22 = vld [vmem:[#allocation5 + $0x40] ss:$16 sps:$4 sm:$0xff]  }
  0x48   :  { %3333 = vmatpush1.bf16.msra.mxu1 %v5853_v11  ;;  %3281 = vmatprep.subr.bf16.mxu0 %v5854_v12  ;;  %v5868_v21 = vld [vmem:[#allocation5 + $0x244] ss:$16 sps:$4 sm:$0xff]   ;;  %v5871_v23 = vld [vmem:[#allocation5 + $0x240] ss:$16 sps:$4 sm:$0xff]  }
  0x49   :  { %3334 = vmatprep.subr.bf16.mxu1 %v5856_v13  ;;  %v5872_v24 = vld [vmem:[#allocation5 + $0x24] ss:$16 sps:$4 sm:$0xff]   ;;  %v5876_v26 = vld [vmem:[#allocation5 + $0x20] ss:$16 sps:$4 sm:$0xff]  }
  0x4a   :  { %v5874_v25 = vld [vmem:[#allocation5 + $0x224] ss:$16 sps:$4 sm:$0xff]   ;;  %v5877_v27 = vld [vmem:[#allocation5 + $0x220] ss:$16 sps:$4 sm:$0xff]  }
  0x4b   :  { %3282 = vmatpush1.bf16.msra.mxu0 %v5858_v14  ;;  %v5878_v28 = vld [vmem:[#allocation5 + $0x4] ss:$16 sps:$4 sm:$0xff]   ;;  %v5882_v30 = vld [vmem:[#allocation5] ss:$16 sps:$4 sm:$0xff]  }
  0x4c   :  { %3335 = vmatpush1.bf16.msra.mxu1 %v5859_v15  ;;  %3283 = vmatprep.subr.bf16.mxu0 %v5860_v16  ;;  %v5880_v29 = vld [vmem:[#allocation5 + $0x204] ss:$16 sps:$4 sm:$0xff]   ;;  %v5883_v31 = vld [vmem:[#allocation5 + $0x200] ss:$16 sps:$4 sm:$0xff]  }
  0x4d   :  { %3336 = vmatprep.subr.bf16.mxu1 %v5862_v17  ;;  %v5884_v32 = vld [vmem:[#allocation5 + $0x1e4] ss:$16 sps:$4 sm:$0xff]   ;;  %v5888_v34 = vld [vmem:[#allocation5 + $0x1e0] ss:$16 sps:$4 sm:$0xff]  }
  0x4e   :  { %v5886_v33 = vld [vmem:[#allocation5 + $0x3e4] ss:$16 sps:$4 sm:$0xff]   ;;  %v5889_v35 = vld [vmem:[#allocation5 + $0x3e0] ss:$16 sps:$4 sm:$0xff]  }
  0x4f   :  { %3284 = vmatpush1.bf16.msra.mxu0 %v5864_v18  ;;  %v5890_v36 = vld [vmem:[#allocation5 + $0x1c4] ss:$16 sps:$4 sm:$0xff]   ;;  %v5894_v38 = vld [vmem:[#allocation5 + $0x1c0] ss:$16 sps:$4 sm:$0xff]  }
  0x50   :  { %3337 = vmatpush1.bf16.msra.mxu1 %v5865_v19  ;;  %3285 = vmatprep.subr.bf16.mxu0 %v5866_v20  ;;  %v5892_v37 = vld [vmem:[#allocation5 + $0x3c4] ss:$16 sps:$4 sm:$0xff]   ;;  %v5895_v39 = vld [vmem:[#allocation5 + $0x3c0] ss:$16 sps:$4 sm:$0xff]  }
  0x51   :  { %3338 = vmatprep.subr.bf16.mxu1 %v5868_v21  ;;  %v5896_v40 = vld [vmem:[#allocation5 + $0x1a4] ss:$16 sps:$4 sm:$0xff]   ;;  %v5900_v42 = vld [vmem:[#allocation5 + $0x1a0] ss:$16 sps:$4 sm:$0xff]  }
  0x52   :  { %v5898_v41 = vld [vmem:[#allocation5 + $0x3a4] ss:$16 sps:$4 sm:$0xff]   ;;  %v5901_v43 = vld [vmem:[#allocation5 + $0x3a0] ss:$16 sps:$4 sm:$0xff]  }
  0x53   :  { %3286 = vmatpush1.bf16.msra.mxu0 %v5870_v22  ;;  %v5902_v44 = vld [vmem:[#allocation5 + $0x184] ss:$16 sps:$4 sm:$0xff]   ;;  %v5906_v50 = vld [vmem:[#allocation5 + $0x180] ss:$16 sps:$4 sm:$0xff]  }
  0x54   :  { %3339 = vmatpush1.bf16.msra.mxu1 %v5871_v23  ;;  %3287 = vmatprep.subr.bf16.mxu0 %v5872_v24  ;;  %v5904_v45 = vld [vmem:[#allocation5 + $0x384] ss:$16 sps:$4 sm:$0xff]   ;;  %v5907_v51 = vld [vmem:[#allocation5 + $0x380] ss:$16 sps:$4 sm:$0xff]  }
  0x55   :  { %3340 = vmatprep.subr.bf16.mxu1 %v5874_v25  ;;  %v5908_v52 = vld [vmem:[#allocation5 + $0x164] ss:$16 sps:$4 sm:$0xff]   ;;  %v5912_v56 = vld [vmem:[#allocation5 + $0x160] ss:$16 sps:$4 sm:$0xff]  }
  0x56   :  { %v5910_v55 = vld [vmem:[#allocation5 + $0x364] ss:$16 sps:$4 sm:$0xff]   ;;  %v5913_v57 = vld [vmem:[#allocation5 + $0x360] ss:$16 sps:$4 sm:$0xff]  }
  0x57   :  { %3288 = vmatpush1.bf16.msra.mxu0 %v5876_v26  ;;  %v5914_v58 = vld [vmem:[#allocation5 + $0x144] ss:$16 sps:$4 sm:$0xff]   ;;  %v5918_v60 = vld [vmem:[#allocation5 + $0x140] ss:$16 sps:$4 sm:$0xff]  }
  0x58   :  { %3341 = vmatpush1.bf16.msra.mxu1 %v5877_v27  ;;  %3289 = vmatprep.subr.bf16.mxu0 %v5878_v28  ;;  %v5916_v59 = vld [vmem:[#allocation5 + $0x344] ss:$16 sps:$4 sm:$0xff]   ;;  %v5919_v61 = vld [vmem:[#allocation5 + $0x340] ss:$16 sps:$4 sm:$0xff]  }
  0x59   :  { %3342 = vmatprep.subr.bf16.mxu1 %v5880_v29  ;;  %v5920_v62 = vld [vmem:[#allocation5 + $0x124] ss:$16 sps:$4 sm:$0xff]   ;;  %v5924_v0 = vld [vmem:[#allocation5 + $0x120] ss:$16 sps:$4 sm:$0xff]  }
  0x5a   :  { %v5922_v63 = vld [vmem:[#allocation5 + $0x324] ss:$16 sps:$4 sm:$0xff]   ;;  %v5925_v1 = vld [vmem:[#allocation5 + $0x320] ss:$16 sps:$4 sm:$0xff]  }
  0x5b   :  { %3290 = vmatpush1.bf16.msra.mxu0 %v5882_v30  ;;  %v5926_v2 = vld [vmem:[#allocation5 + $0x104] ss:$16 sps:$4 sm:$0xff]   ;;  %v5930_v4 = vld [vmem:[#allocation5 + $0x100] ss:$16 sps:$4 sm:$0xff]  }
  0x5c   :  { %3343 = vmatpush1.bf16.msra.mxu1 %v5883_v31  ;;  %3291 = vmatprep.subr.bf16.mxu0 %v5884_v32  ;;  %v5928_v3 = vld [vmem:[#allocation5 + $0x304] ss:$16 sps:$4 sm:$0xff]   ;;  %v5931_v5 = vld [vmem:[#allocation5 + $0x300] ss:$16 sps:$4 sm:$0xff]  }
  0x5d   :  { %3344 = vmatprep.subr.bf16.mxu1 %v5886_v33  ;;  %v85_v6 = vld [vmem:[#allocation2] sm:$0xff]  ;;  %v87_v8 = vld [vmem:[#allocation2 + $0x10] sm:$0xff] }
  0x5e   :  { %v101_v7 = vld [vmem:[#allocation2 + $0x80] sm:$0xff]  ;;  %v103_v9 = vld [vmem:[#allocation2 + $0x90] sm:$0xff] }
  0x5f   :  { %3292 = vmatpush2.bf16.msra.mxu0 %v5888_v34  ;;  %v5934_v10 = vld [vmem:[#allocation5 + $0x4e4] ss:$16 sps:$4 sm:$0xff]   ;;  %v6988_v12 = vpack.c.bf16 %v101_v7, %v85_v6  ;;  %v6990_v13 = vpack.c.bf16 %v103_v9, %v87_v8  ;;  %v5932_v14 = vld [vmem:[#allocation5 + $0x4e0] ss:$16 sps:$4 sm:$0xff]   ;;  %v118_v34 = vld [vmem:[#allocation2 + $0x108] sm:$0xff] }
  0x60   :  { %3345 = vmatpush2.bf16.msra.mxu1 %v5889_v35  ;;  %3293 = vmatprep.subr.bf16.mxu0 %v5890_v36  ;;  %v5937_v11 = vld [vmem:[#allocation5 + $0x6e4] ss:$16 sps:$4 sm:$0xff]   ;;  %v5935_v15 = vld [vmem:[#allocation5 + $0x6e0] ss:$16 sps:$4 sm:$0xff]   ;;  %v134_v35 = vld [vmem:[#allocation2 + $0x188] sm:$0xff] }
  0x61   :  { %3346 = vmatprep.subr.bf16.mxu1 %v5892_v37  ;;  %v5940_v16 = vld [vmem:[#allocation5 + $0x4c4] ss:$16 sps:$4 sm:$0xff]   ;;  %v5938_v18 = vld [vmem:[#allocation5 + $0x4c0] ss:$16 sps:$4 sm:$0xff]   ;;  %v6994_v37 = vpack.c.bf16 %v134_v35, %v118_v34 }
  0x62   :  { %v5943_v17 = vld [vmem:[#allocation5 + $0x6c4] ss:$16 sps:$4 sm:$0xff]   ;;  %v5941_v19 = vld [vmem:[#allocation5 + $0x6c0] ss:$16 sps:$4 sm:$0xff]  }
  0x63   :  { %3294 = vmatpush2.bf16.msra.mxu0 %v5894_v38  ;;  %v5946_v20 = vld [vmem:[#allocation5 + $0x4a4] ss:$16 sps:$4 sm:$0xff]   ;;  %v5944_v22 = vld [vmem:[#allocation5 + $0x4a0] ss:$16 sps:$4 sm:$0xff]  }
  0x64   :  { %3347 = vmatpush2.bf16.msra.mxu1 %v5895_v39  ;;  %3295 = vmatprep.subr.bf16.mxu0 %v5896_v40  ;;  %v5949_v21 = vld [vmem:[#allocation5 + $0x6a4] ss:$16 sps:$4 sm:$0xff]   ;;  %v5947_v23 = vld [vmem:[#allocation5 + $0x6a0] ss:$16 sps:$4 sm:$0xff]   ;;  %v120_v39 = vld [vmem:[#allocation2 + $0x118] sm:$0xff] }
  0x65   :  { %3348 = vmatprep.subr.bf16.mxu1 %v5898_v41  ;;  %v5952_v24 = vld [vmem:[#allocation5 + $0x484] ss:$16 sps:$4 sm:$0xff]   ;;  %v5950_v26 = vld [vmem:[#allocation5 + $0x480] ss:$16 sps:$4 sm:$0xff]   ;;  %v136_v40 = vld [vmem:[#allocation2 + $0x198] sm:$0xff] }
  0x66   :  { %v5955_v25 = vld [vmem:[#allocation5 + $0x684] ss:$16 sps:$4 sm:$0xff]   ;;  %v5953_v27 = vld [vmem:[#allocation5 + $0x680] ss:$16 sps:$4 sm:$0xff]  }
  0x67   :  { %3296 = vmatpush2.bf16.msra.mxu0 %v5900_v42  ;;  %v5958_v28 = vld [vmem:[#allocation5 + $0x464] ss:$16 sps:$4 sm:$0xff]   ;;  %v5956_v30 = vld [vmem:[#allocation5 + $0x460] ss:$16 sps:$4 sm:$0xff]  }
  0x68   :  { %3349 = vmatpush2.bf16.msra.mxu1 %v5901_v43  ;;  %3297 = vmatprep.subr.bf16.mxu0 %v5902_v44  ;;  %v5961_v29 = vld [vmem:[#allocation5 + $0x664] ss:$16 sps:$4 sm:$0xff]   ;;  %v5959_v31 = vld [vmem:[#allocation5 + $0x660] ss:$16 sps:$4 sm:$0xff]   ;;  %v6998_v43 = vpack.c.bf16 %v136_v40, %v120_v39 }
  0x69   :  { %3350 = vmatprep.subr.bf16.mxu1 %v5904_v45  ;;  %v5964_v32 = vld [vmem:[#allocation5 + $0x444] ss:$16 sps:$4 sm:$0xff]   ;;  %v5962_v41 = vld [vmem:[#allocation5 + $0x440] ss:$16 sps:$4 sm:$0xff]  }
  0x6a   :  { %v5967_v33 = vld [vmem:[#allocation5 + $0x644] ss:$16 sps:$4 sm:$0xff]   ;;  %v5965_v44 = vld [vmem:[#allocation5 + $0x640] ss:$16 sps:$4 sm:$0xff]  }
  0x6b   :  { %3298 = vmatpush2.bf16.msra.mxu0 %v5906_v50  ;;  %v117_v36 = vld [vmem:[#allocation2 + $0x100] sm:$0xff]  ;;  %v119_v47 = vld [vmem:[#allocation2 + $0x110] sm:$0xff] }
  0x6c   :  { %3351 = vmatpush2.bf16.msra.mxu1 %v5907_v51  ;;  %3299 = vmatprep.subr.bf16.mxu0 %v5908_v52  ;;  %v133_v38 = vld [vmem:[#allocation2 + $0x180] sm:$0xff]  ;;  %v135_v48 = vld [vmem:[#allocation2 + $0x190] sm:$0xff] }
  0x6d   :  { %3352 = vmatprep.subr.bf16.mxu1 %v5910_v55  ;;  %v6996_v42 = vpack.c.bf16 %v133_v38, %v117_v36  ;;  %v5970_v45 = vld [vmem:[#allocation5 + $0x424] ss:$16 sps:$4 sm:$0xff]   ;;  %v7003_v49 = vpack.c.bf16 %v135_v48, %v119_v47  ;;  %v5968_v50 = vld [vmem:[#allocation5 + $0x420] ss:$16 sps:$4 sm:$0xff]  }
  0x6e   :  { %v5973_v46 = vld [vmem:[#allocation5 + $0x624] ss:$16 sps:$4 sm:$0xff]   ;;  %v5971_v51 = vld [vmem:[#allocation5 + $0x620] ss:$16 sps:$4 sm:$0xff]  }
  0x6f   :  { %3300 = vmatpush2.bf16.msra.mxu0 %v5912_v56  ;;  %v5976_v52 = vld [vmem:[#allocation5 + $0x404] ss:$16 sps:$4 sm:$0xff]   ;;  %v90_v56 = vld [vmem:[#allocation2 + $0x28] sm:$0xff]  ;;  %v5986_v6 = vld [vmem:[#allocation5 + $0x5c0] ss:$16 sps:$4 sm:$0xff]  }
  0x70   :  { %3353 = vmatpush2.bf16.msra.mxu1 %v5913_v57  ;;  %3301 = vmatprep.subr.bf16.mxu0 %v5914_v58  ;;  %v5979_v55 = vld [vmem:[#allocation5 + $0x604] ss:$16 sps:$4 sm:$0xff]   ;;  %v106_v57 = vld [vmem:[#allocation2 + $0xa8] sm:$0xff]  ;;  %v92_v58 = vld [vmem:[#allocation2 + $0x38] sm:$0xff] }
  0x71   :  { %3354 = vmatprep.subr.bf16.mxu1 %v5916_v59  ;;  %v108_v59 = vld [vmem:[#allocation2 + $0xb8] sm:$0xff]  ;;  %v5989_v7 = vld [vmem:[#allocation5 + $0x7c0] ss:$16 sps:$4 sm:$0xff]   ;;  %v5994_v8 = vld [vmem:[#allocation5 + $0x5a4] ss:$16 sps:$4 sm:$0xff]  }
  0x72   :  { %v5997_v9 = vld [vmem:[#allocation5 + $0x7a4] ss:$16 sps:$4 sm:$0xff]  }
  0x73   :  { %3302 = vmatpush2.bf16.msra.mxu0 %v5918_v60  ;;  %v5974_v60 = vld [vmem:[#allocation5 + $0x400] ss:$16 sps:$4 sm:$0xff]   ;;  %v6030_v39 = vld [vmem:[#allocation5 + $0x8e4] ss:$16 sps:$4 sm:$0xff]  }
  0x74   :  { %3355 = vmatpush2.bf16.msra.mxu1 %v5919_v61  ;;  %3303 = vmatprep.subr.bf16.mxu0 %v5920_v62  ;;  %v5977_v61 = vld [vmem:[#allocation5 + $0x600] ss:$16 sps:$4 sm:$0xff]   ;;  %v5982_v62 = vld [vmem:[#allocation5 + $0x5e4] ss:$16 sps:$4 sm:$0xff]  }
  0x75   :  { %3356 = vmatprep.subr.bf16.mxu1 %v5922_v63  ;;  %v7006_v63 = vpack.c.bf16 %v106_v57, %v90_v56  ;;  %v89_v34 = vld [vmem:[#allocation2 + $0x20] sm:$0xff]  ;;  %v91_v36 = vld [vmem:[#allocation2 + $0x30] sm:$0xff] }
  0x76   :  { %v105_v35 = vld [vmem:[#allocation2 + $0xa0] sm:$0xff]  ;;  %v107_v38 = vld [vmem:[#allocation2 + $0xb0] sm:$0xff] }
  0x77   :  { %3304 = vmatpush2.bf16.msra.mxu0 %v5924_v0  ;;  %v7008_v0 = vpack.c.bf16 %v108_v59, %v92_v58  ;;  %v6033_v40 = vld [vmem:[#allocation5 + $0xae4] ss:$16 sps:$4 sm:$0xff]   ;;  %v7012_v47 = vpack.c.bf16 %v105_v35, %v89_v34  ;;  %v7014_v48 = vpack.c.bf16 %v107_v38, %v91_v36  ;;  %v6034_v56 = vld [vmem:[#allocation5 + $0x8c0] ss:$16 sps:$4 sm:$0xff]  }
  0x78   :  { %3357 = vmatpush2.bf16.msra.mxu1 %v5925_v1  ;;  %3305 = vmatprep.subr.bf16.mxu0 %v5926_v2  ;;  %v5985_v1 = vld [vmem:[#allocation5 + $0x7e4] ss:$16 sps:$4 sm:$0xff]   ;;  %v5980_v2 = vld [vmem:[#allocation5 + $0x5e0] ss:$16 sps:$4 sm:$0xff]  }
  0x79   :  { %3358 = vmatprep.subr.bf16.mxu1 %v5928_v3  ;;  %v5983_v3 = vld [vmem:[#allocation5 + $0x7e0] ss:$16 sps:$4 sm:$0xff]   ;;  %v6078_v36 = vld [vmem:[#allocation5 + $0x9e4] ss:$16 sps:$4 sm:$0xff]  }
  0x7a   :  { %v6037_v57 = vld [vmem:[#allocation5 + $0xac0] ss:$16 sps:$4 sm:$0xff]   ;;  %v6081_v38 = vld [vmem:[#allocation5 + $0xbe4] ss:$16 sps:$4 sm:$0xff]  }
  0x7b   :  { %3306 = vmatpush2.bf16.msra.mxu0 %v5930_v4  ;;  %v5988_v4 = vld [vmem:[#allocation5 + $0x5c4] ss:$16 sps:$4 sm:$0xff]   ;;  %v6070_v34 = vld [vmem:[#allocation5 + $0x800] ss:$16 sps:$4 sm:$0xff]  }
  0x7c   :  { %3359 = vmatpush2.bf16.msra.mxu1 %v5931_v5  ;;  %3381 = vmatprep.subr.bf16.mxu0 %v5934_v10  ;;  %v5991_v5 = vld [vmem:[#allocation5 + $0x7c4] ss:$16 sps:$4 sm:$0xff]   ;;  %v5992_v10 = vld [vmem:[#allocation5 + $0x5a0] ss:$16 sps:$4 sm:$0xff]  }
  0x7d   :  { %3434 = vmatprep.subr.bf16.mxu1 %v5937_v11  ;;  %v5995_v11 = vld [vmem:[#allocation5 + $0x7a0] ss:$16 sps:$4 sm:$0xff]  }
  0x7e   :  { %3308 = vmatmul.mubr.bf16.vlgmr.msra.gmra.mxu0 %v6988_v12  ;;  %v121_v59 = vld [vmem:[#allocation2 + $0x120] sm:$0xff] }
  0x7f   :  { %3361 = vmatmul.mubr.bf16.vlgmr.msra.gmra.mxu1 %v6990_v13  ;;  %3382 = vmatpush1.bf16.msra.mxu0 %v5932_v14  ;;  %v6000_v14 = vld [vmem:[#allocation5 + $0x584] ss:$16 sps:$4 sm:$0xff]   ;;  %v6073_v35 = vld [vmem:[#allocation5 + $0xa00] ss:$16 sps:$4 sm:$0xff]  }
  0x80   :  { %3435 = vmatpush1.bf16.msra.mxu1 %v5935_v15  ;;  %3383 = vmatprep.subr.bf16.mxu0 %v5940_v16  ;;  %v6003_v15 = vld [vmem:[#allocation5 + $0x784] ss:$16 sps:$4 sm:$0xff]   ;;  %v5998_v16 = vld [vmem:[#allocation5 + $0x580] ss:$16 sps:$4 sm:$0xff]  }
  0x81   :  { %3436 = vmatprep.subr.bf16.mxu1 %v5943_v17  ;;  %3317 = vmatprep.mubr.bf16.mxu0 %v6994_v37  ;;  %v6001_v17 = vld [vmem:[#allocation5 + $0x780] ss:$16 sps:$4 sm:$0xff]  }
  0x82   :  { %3370 = vmatprep.mubr.bf16.mxu1 %v6998_v43 }
  0x83   :  { %3384 = vmatpush1.bf16.msra.mxu0 %v5938_v18  ;;  %v6006_v18 = vld [vmem:[#allocation5 + $0x564] ss:$16 sps:$4 sm:$0xff]  }
  0x84   :  { %3437 = vmatpush1.bf16.msra.mxu1 %v5941_v19  ;;  %3385 = vmatprep.subr.bf16.mxu0 %v5946_v20  ;;  %v6009_v19 = vld [vmem:[#allocation5 + $0x764] ss:$16 sps:$4 sm:$0xff]   ;;  %v6004_v20 = vld [vmem:[#allocation5 + $0x560] ss:$16 sps:$4 sm:$0xff]  }
  0x85   :  { %3438 = vmatprep.subr.bf16.mxu1 %v5949_v21  ;;  %v6007_v21 = vld [vmem:[#allocation5 + $0x760] ss:$16 sps:$4 sm:$0xff]  }
  0x86   :  { %3318 = vmatmul.mubr.bf16.gmra.mxu0 %v6996_v42 }
  0x87   :  { %3386 = vmatpush1.bf16.msra.mxu0 %v5944_v22  ;;  %3371 = vmatmul.mubr.bf16.gmra.mxu1 %v7003_v49  ;;  %v6012_v22 = vld [vmem:[#allocation5 + $0x544] ss:$16 sps:$4 sm:$0xff]  }
  0x88   :  { %3439 = vmatpush1.bf16.msra.mxu1 %v5947_v23  ;;  %3387 = vmatprep.subr.bf16.mxu0 %v5952_v24  ;;  %v6015_v23 = vld [vmem:[#allocation5 + $0x744] ss:$16 sps:$4 sm:$0xff]   ;;  %v6010_v24 = vld [vmem:[#allocation5 + $0x540] ss:$16 sps:$4 sm:$0xff]  }
  0x89   :  { %3440 = vmatprep.subr.bf16.mxu1 %v5955_v25  ;;  %3413 = vmatprep.mubr.bf16.mxu0 %v7006_v63  ;;  %v6013_v25 = vld [vmem:[#allocation5 + $0x740] ss:$16 sps:$4 sm:$0xff]  }
  0x8a   :  { %3466 = vmatprep.mubr.bf16.mxu1 %v7008_v0 }
  0x8b   :  { %3388 = vmatpush1.bf16.msra.mxu0 %v5950_v26  ;;  %v6018_v26 = vld [vmem:[#allocation5 + $0x524] ss:$16 sps:$4 sm:$0xff]  }
  0x8c   :  { %3441 = vmatpush1.bf16.msra.mxu1 %v5953_v27  ;;  %3389 = vmatprep.subr.bf16.mxu0 %v5958_v28  ;;  %v6021_v27 = vld [vmem:[#allocation5 + $0x724] ss:$16 sps:$4 sm:$0xff]   ;;  %v6016_v28 = vld [vmem:[#allocation5 + $0x520] ss:$16 sps:$4 sm:$0xff]  }
  0x8d   :  { %3442 = vmatprep.subr.bf16.mxu1 %v5961_v29  ;;  %v6019_v29 = vld [vmem:[#allocation5 + $0x720] ss:$16 sps:$4 sm:$0xff]  }
  0x8f   :  { %3390 = vmatpush1.bf16.msra.mxu0 %v5956_v30  ;;  %v6024_v30 = vld [vmem:[#allocation5 + $0x504] ss:$16 sps:$4 sm:$0xff]  }
  0x90   :  { %3443 = vmatpush1.bf16.msra.mxu1 %v5959_v31  ;;  %3391 = vmatprep.subr.bf16.mxu0 %v5964_v32  ;;  %v6027_v31 = vld [vmem:[#allocation5 + $0x704] ss:$16 sps:$4 sm:$0xff]   ;;  %v6022_v32 = vld [vmem:[#allocation5 + $0x500] ss:$16 sps:$4 sm:$0xff]  }
  0x91   :  { %3444 = vmatprep.subr.bf16.mxu1 %v5967_v33  ;;  %v6025_v33 = vld [vmem:[#allocation5 + $0x700] ss:$16 sps:$4 sm:$0xff]  }
  0x93   :  { %3392 = vmatpush1.bf16.msra.mxu0 %v5962_v41  ;;  %v6028_v41 = vld [vmem:[#allocation5 + $0x8e0] ss:$16 sps:$4 sm:$0xff]  }
  0x94   :  { %3445 = vmatpush1.bf16.msra.mxu1 %v5965_v44  ;;  %3393 = vmatprep.subr.bf16.mxu0 %v5970_v45  ;;  %v6031_v44 = vld [vmem:[#allocation5 + $0xae0] ss:$16 sps:$4 sm:$0xff]   ;;  %v122_v45 = vld [vmem:[#allocation2 + $0x128] sm:$0xff] }
  0x95   :  { %3446 = vmatprep.subr.bf16.mxu1 %v5973_v46  ;;  %v138_v46 = vld [vmem:[#allocation2 + $0x1a8] sm:$0xff] }
  0x96   :  { %v7016_v58 = vpack.c.bf16 %v138_v46, %v122_v45  ;;  %v6082_v45 = vld [vmem:[#allocation5 + $0x9c0] ss:$16 sps:$4 sm:$0xff]  }
  0x97   :  { %3394 = vmatpush1.bf16.msra.mxu0 %v5968_v50  ;;  %v124_v50 = vld [vmem:[#allocation2 + $0x138] sm:$0xff]  ;;  %v6085_v46 = vld [vmem:[#allocation5 + $0xbc0] ss:$16 sps:$4 sm:$0xff]  }
  0x98   :  { %3447 = vmatpush1.bf16.msra.mxu1 %v5971_v51  ;;  %3395 = vmatprep.subr.bf16.mxu0 %v5976_v52  ;;  %v140_v51 = vld [vmem:[#allocation2 + $0x1b8] sm:$0xff]  ;;  %v6036_v52 = vld [vmem:[#allocation5 + $0x8c4] ss:$16 sps:$4 sm:$0xff]  }
  0x99   :  { %3448 = vmatprep.subr.bf16.mxu1 %v5979_v55  ;;  %v6039_v55 = vld [vmem:[#allocation5 + $0xac4] ss:$16 sps:$4 sm:$0xff]  }
  0x9b   :  { %3396 = vmatpush1.bf16.msra.mxu0 %v5974_v60  ;;  %v137_v60 = vld [vmem:[#allocation2 + $0x1a0] sm:$0xff] }
  0x9c   :  { %3449 = vmatpush1.bf16.msra.mxu1 %v5977_v61  ;;  %3397 = vmatprep.subr.bf16.mxu0 %v5982_v62  ;;  %v7018_v61 = vpack.c.bf16 %v140_v51, %v124_v50  ;;  %v6042_v62 = vld [vmem:[#allocation5 + $0x8a4] ss:$16 sps:$4 sm:$0xff]  }
  0x9d   :  { %3450 = vmatprep.subr.bf16.mxu1 %v5985_v1  ;;  %v123_v1 = vld [vmem:[#allocation2 + $0x130] sm:$0xff] }
  0x9e   :  { %v6090_v50 = vld [vmem:[#allocation5 + $0x9a4] ss:$16 sps:$4 sm:$0xff]  }
  0x9f   :  { %3398 = vmatpush2.bf16.msra.mxu0 %v5980_v2  ;;  %v139_v2 = vld [vmem:[#allocation2 + $0x1b0] sm:$0xff] }
  0xa0   :  { %3451 = vmatpush2.bf16.msra.mxu1 %v5983_v3  ;;  %3399 = vmatprep.subr.bf16.mxu0 %v5988_v4  ;;  %v6045_v3 = vld [vmem:[#allocation5 + $0xaa4] ss:$16 sps:$4 sm:$0xff]   ;;  %v7024_v4 = vpack.c.bf16 %v137_v60, %v121_v59  ;;  %v6094_v59 = vld [vmem:[#allocation5 + $0x980] ss:$16 sps:$4 sm:$0xff]  }
  0xa1   :  { %3452 = vmatprep.subr.bf16.mxu1 %v5991_v5  ;;  %v6040_v5 = vld [vmem:[#allocation5 + $0x8a0] ss:$16 sps:$4 sm:$0xff]   ;;  %v6093_v51 = vld [vmem:[#allocation5 + $0xba4] ss:$16 sps:$4 sm:$0xff]  }
  0xa2   :  { %v6097_v60 = vld [vmem:[#allocation5 + $0xb80] ss:$16 sps:$4 sm:$0xff]  }
  0xa3   :  { %3400 = vmatpush2.bf16.msra.mxu0 %v5986_v6  ;;  %v6043_v6 = vld [vmem:[#allocation5 + $0xaa0] ss:$16 sps:$4 sm:$0xff]  }
  0xa4   :  { %3453 = vmatpush2.bf16.msra.mxu1 %v5989_v7  ;;  %3401 = vmatprep.subr.bf16.mxu0 %v5994_v8  ;;  %v7026_v7 = vpack.c.bf16 %v139_v2, %v123_v1  ;;  %v6048_v8 = vld [vmem:[#allocation5 + $0x884] ss:$16 sps:$4 sm:$0xff]   ;;  %v6100_v2 = vld [vmem:[#allocation5 + $0x960] ss:$16 sps:$4 sm:$0xff]  }
  0xa5   :  { %3454 = vmatprep.subr.bf16.mxu1 %v5997_v9  ;;  %v6051_v9 = vld [vmem:[#allocation5 + $0xa84] ss:$16 sps:$4 sm:$0xff]  }
  0xa6   :  { %v6105_v1 = vld [vmem:[#allocation5 + $0xb64] ss:$16 sps:$4 sm:$0xff]  }
  0xa7   :  { %3402 = vmatpush2.bf16.msra.mxu0 %v5992_v10  ;;  %v94_v10 = vld [vmem:[#allocation2 + $0x48] sm:$0xff] }
  0xa8   :  { %3455 = vmatpush2.bf16.msra.mxu1 %v5995_v11  ;;  %3403 = vmatprep.subr.bf16.mxu0 %v6000_v14  ;;  %v110_v11 = vld [vmem:[#allocation2 + $0xc8] sm:$0xff]  ;;  %v96_v14 = vld [vmem:[#allocation2 + $0x58] sm:$0xff] }
  0xa9   :  { %3456 = vmatprep.subr.bf16.mxu1 %v6003_v15  ;;  %v112_v15 = vld [vmem:[#allocation2 + $0xd8] sm:$0xff] }
  0xab   :  { %3404 = vmatpush2.bf16.msra.mxu0 %v5998_v16  ;;  %v6046_v16 = vld [vmem:[#allocation5 + $0x880] ss:$16 sps:$4 sm:$0xff]  }
  0xac   :  { %3457 = vmatpush2.bf16.msra.mxu1 %v6001_v17  ;;  %3405 = vmatprep.subr.bf16.mxu0 %v6006_v18  ;;  %v6049_v17 = vld [vmem:[#allocation5 + $0xa80] ss:$16 sps:$4 sm:$0xff]   ;;  %v6054_v18 = vld [vmem:[#allocation5 + $0x864] ss:$16 sps:$4 sm:$0xff]  }
  0xad   :  { %3458 = vmatprep.subr.bf16.mxu1 %v6009_v19  ;;  %v7030_v19 = vpack.c.bf16 %v110_v11, %v94_v10  ;;  %v6114_v10 = vld [vmem:[#allocation5 + $0x924] ss:$16 sps:$4 sm:$0xff]  }
  0xae   :  { %v6117_v11 = vld [vmem:[#allocation5 + $0xb24] ss:$16 sps:$4 sm:$0xff]  }
  0xaf   :  { %3406 = vmatpush2.bf16.msra.mxu0 %v6004_v20  ;;  %v7032_v20 = vpack.c.bf16 %v112_v15, %v96_v14  ;;  %v6112_v14 = vld [vmem:[#allocation5 + $0x920] ss:$16 sps:$4 sm:$0xff]  }
  0xb0   :  { %3459 = vmatpush2.bf16.msra.mxu1 %v6007_v21  ;;  %3407 = vmatprep.subr.bf16.mxu0 %v6012_v22  ;;  %v6057_v21 = vld [vmem:[#allocation5 + $0xa64] ss:$16 sps:$4 sm:$0xff]   ;;  %v6052_v22 = vld [vmem:[#allocation5 + $0x860] ss:$16 sps:$4 sm:$0xff]  }
  0xb1   :  { %3460 = vmatprep.subr.bf16.mxu1 %v6015_v23  ;;  %v6055_v23 = vld [vmem:[#allocation5 + $0xa60] ss:$16 sps:$4 sm:$0xff]  }
  0xb2   :  { %v6115_v15 = vld [vmem:[#allocation5 + $0xb20] ss:$16 sps:$4 sm:$0xff]  }
  0xb3   :  { %3408 = vmatpush2.bf16.msra.mxu0 %v6010_v24  ;;  %v6060_v24 = vld [vmem:[#allocation5 + $0x844] ss:$16 sps:$4 sm:$0xff]  }
  0xb4   :  { %3461 = vmatpush2.bf16.msra.mxu1 %v6013_v25  ;;  %3409 = vmatprep.subr.bf16.mxu0 %v6018_v26  ;;  %v6063_v25 = vld [vmem:[#allocation5 + $0xa44] ss:$16 sps:$4 sm:$0xff]   ;;  %v6058_v26 = vld [vmem:[#allocation5 + $0x840] ss:$16 sps:$4 sm:$0xff]  }
  0xb5   :  { %3462 = vmatprep.subr.bf16.mxu1 %v6021_v27  ;;  %v6061_v27 = vld [vmem:[#allocation5 + $0xa40] ss:$16 sps:$4 sm:$0xff]  }
  0xb7   :  { %3410 = vmatpush2.bf16.msra.mxu0 %v6016_v28  ;;  %v6066_v28 = vld [vmem:[#allocation5 + $0x824] ss:$16 sps:$4 sm:$0xff]  }
  0xb8   :  { %3463 = vmatpush2.bf16.msra.mxu1 %v6019_v29  ;;  %3411 = vmatprep.subr.bf16.mxu0 %v6024_v30  ;;  %v6069_v29 = vld [vmem:[#allocation5 + $0xa24] ss:$16 sps:$4 sm:$0xff]   ;;  %v6064_v30 = vld [vmem:[#allocation5 + $0x820] ss:$16 sps:$4 sm:$0xff]  }
  0xb9   :  { %3464 = vmatprep.subr.bf16.mxu1 %v6027_v31  ;;  %v6067_v31 = vld [vmem:[#allocation5 + $0xa20] ss:$16 sps:$4 sm:$0xff]  }
  0xbb   :  { %3412 = vmatpush2.bf16.msra.mxu0 %v6022_v32  ;;  %v6072_v32 = vld [vmem:[#allocation5 + $0x804] ss:$16 sps:$4 sm:$0xff]  }
  0xbc   :  { %3465 = vmatpush2.bf16.msra.mxu1 %v6025_v33  ;;  %3487 = vmatprep.subr.bf16.mxu0 %v6030_v39  ;;  %v6075_v33 = vld [vmem:[#allocation5 + $0xa04] ss:$16 sps:$4 sm:$0xff]   ;;  %v6076_v39 = vld [vmem:[#allocation5 + $0x9e0] ss:$16 sps:$4 sm:$0xff]  }
  0xbd   :  { %3540 = vmatprep.subr.bf16.mxu1 %v6033_v40  ;;  %v6079_v40 = vld [vmem:[#allocation5 + $0xbe0] ss:$16 sps:$4 sm:$0xff]  }
  0xbe   :  { %3414 = vmatmul.mubr.bf16.vlgmr.msra.gmra.mxu0 %v7012_v47 }
  0xbf   :  { %3467 = vmatmul.mubr.bf16.vlgmr.msra.gmra.mxu1 %v7014_v48  ;;  %3488 = vmatpush1.bf16.msra.mxu0 %v6028_v41  ;;  %v6084_v41 = vld [vmem:[#allocation5 + $0x9c4] ss:$16 sps:$4 sm:$0xff]  }
  0xc0   :  { %3541 = vmatpush1.bf16.msra.mxu1 %v6031_v44  ;;  %3489 = vmatprep.subr.bf16.mxu0 %v6036_v52  ;;  %v6087_v44 = vld [vmem:[#allocation5 + $0xbc4] ss:$16 sps:$4 sm:$0xff]   ;;  %v6088_v52 = vld [vmem:[#allocation5 + $0x9a0] ss:$16 sps:$4 sm:$0xff]  }
  0xc1   :  { %3542 = vmatprep.subr.bf16.mxu1 %v6039_v55  ;;  %3423 = vmatprep.mubr.bf16.mxu0 %v7016_v58  ;;  %v6091_v55 = vld [vmem:[#allocation5 + $0xba0] ss:$16 sps:$4 sm:$0xff]  }
  0xc2   :  { %3476 = vmatprep.mubr.bf16.mxu1 %v7018_v61 }
  0xc3   :  { %3490 = vmatpush1.bf16.msra.mxu0 %v6034_v56  ;;  %v6096_v56 = vld [vmem:[#allocation5 + $0x984] ss:$16 sps:$4 sm:$0xff]  }
  0xc4   :  { %3543 = vmatpush1.bf16.msra.mxu1 %v6037_v57  ;;  %3491 = vmatprep.subr.bf16.mxu0 %v6042_v62  ;;  %v6099_v57 = vld [vmem:[#allocation5 + $0xb84] ss:$16 sps:$4 sm:$0xff]  }
  0xc5   :  { %3544 = vmatprep.subr.bf16.mxu1 %v6045_v3  ;;  %v6102_v62 = vld [vmem:[#allocation5 + $0x964] ss:$16 sps:$4 sm:$0xff]   ;;  %v6103_v3 = vld [vmem:[#allocation5 + $0xb60] ss:$16 sps:$4 sm:$0xff]  }
  0xc6   :  { %3424 = vmatmul.mubr.bf16.gmra.mxu0 %v7024_v4 }
  0xc7   :  { %3477 = vmatmul.mubr.bf16.gmra.mxu1 %v7026_v7  ;;  %3492 = vmatpush1.bf16.msra.mxu0 %v6040_v5  ;;  %v6108_v5 = vld [vmem:[#allocation5 + $0x944] ss:$16 sps:$4 sm:$0xff]  }
  0xc8   :  { %3545 = vmatpush1.bf16.msra.mxu1 %v6043_v6  ;;  %3493 = vmatprep.subr.bf16.mxu0 %v6048_v8  ;;  %v6111_v6 = vld [vmem:[#allocation5 + $0xb44] ss:$16 sps:$4 sm:$0xff]   ;;  %v6106_v8 = vld [vmem:[#allocation5 + $0x940] ss:$16 sps:$4 sm:$0xff]  }
  0xc9   :  { %3546 = vmatprep.subr.bf16.mxu1 %v6051_v9  ;;  %3519 = vmatprep.mubr.bf16.mxu0 %v7030_v19  ;;  %v6109_v9 = vld [vmem:[#allocation5 + $0xb40] ss:$16 sps:$4 sm:$0xff]  }
  0xca   :  { %3572 = vmatprep.mubr.bf16.mxu1 %v7032_v20 }
  0xcb   :  { %3494 = vmatpush1.bf16.msra.mxu0 %v6046_v16  ;;  %v6120_v16 = vld [vmem:[#allocation5 + $0x904] ss:$16 sps:$4 sm:$0xff]  }
  0xcc   :  { %3547 = vmatpush1.bf16.msra.mxu1 %v6049_v17  ;;  %3495 = vmatprep.subr.bf16.mxu0 %v6054_v18  ;;  %v6123_v17 = vld [vmem:[#allocation5 + $0xb04] ss:$16 sps:$4 sm:$0xff]   ;;  %v6118_v18 = vld [vmem:[#allocation5 + $0x900] ss:$16 sps:$4 sm:$0xff]  }
  0xcd   :  { %3548 = vmatprep.subr.bf16.mxu1 %v6057_v21  ;;  %v6121_v21 = vld [vmem:[#allocation5 + $0xb00] ss:$16 sps:$4 sm:$0xff]  }
  0xcf   :  { %3496 = vmatpush1.bf16.msra.mxu0 %v6052_v22  ;;  %v93_v22 = vld [vmem:[#allocation2 + $0x40] sm:$0xff] }
  0xd0   :  { %3549 = vmatpush1.bf16.msra.mxu1 %v6055_v23  ;;  %3497 = vmatprep.subr.bf16.mxu0 %v6060_v24  ;;  %v109_v23 = vld [vmem:[#allocation2 + $0xc0] sm:$0xff]  ;;  %v95_v24 = vld [vmem:[#allocation2 + $0x50] sm:$0xff] }
  0xd1   :  { %3550 = vmatprep.subr.bf16.mxu1 %v6063_v25  ;;  %v111_v25 = vld [vmem:[#allocation2 + $0xd0] sm:$0xff] }
  0xd3   :  { %3498 = vmatpush1.bf16.msra.mxu0 %v6058_v26  ;;  %v6126_v26 = vld [vmem:[#allocation5 + $0xce4] ss:$16 sps:$4 sm:$0xff]  }
  0xd4   :  { %3551 = vmatpush1.bf16.msra.mxu1 %v6061_v27  ;;  %3499 = vmatprep.subr.bf16.mxu0 %v6066_v28  ;;  %v6129_v27 = vld [vmem:[#allocation5 + $0xee4] ss:$16 sps:$4 sm:$0xff]   ;;  %v126_v28 = vld [vmem:[#allocation2 + $0x148] sm:$0xff] }
  0xd5   :  { %3552 = vmatprep.subr.bf16.mxu1 %v6069_v29  ;;  %v6124_v29 = vld [vmem:[#allocation5 + $0xce0] ss:$16 sps:$4 sm:$0xff]  }
  0xd7   :  { %3500 = vmatpush1.bf16.msra.mxu0 %v6064_v30  ;;  %v142_v30 = vld [vmem:[#allocation2 + $0x1c8] sm:$0xff] }
  0xd8   :  { %3553 = vmatpush1.bf16.msra.mxu1 %v6067_v31  ;;  %3501 = vmatprep.subr.bf16.mxu0 %v6072_v32  ;;  %v128_v31 = vld [vmem:[#allocation2 + $0x158] sm:$0xff]  ;;  %v7036_v32 = vpack.c.bf16 %v109_v23, %v93_v22  ;;  %v6154_v22 = vld [vmem:[#allocation5 + $0xc40] ss:$16 sps:$4 sm:$0xff]  }
  0xd9   :  { %3554 = vmatprep.subr.bf16.mxu1 %v6075_v33  ;;  %v7038_v33 = vpack.c.bf16 %v111_v25, %v95_v24  ;;  %v6157_v23 = vld [vmem:[#allocation5 + $0xe40] ss:$16 sps:$4 sm:$0xff]   ;;  %v6162_v24 = vld [vmem:[#allocation5 + $0xc24] ss:$16 sps:$4 sm:$0xff]  }
  0xda   :  { %v6165_v25 = vld [vmem:[#allocation5 + $0xe24] ss:$16 sps:$4 sm:$0xff]  }
  0xdb   :  { %3502 = vmatpush1.bf16.msra.mxu0 %v6070_v34  ;;  %v144_v34 = vld [vmem:[#allocation2 + $0x1d8] sm:$0xff] }
  0xdc   :  { %3555 = vmatpush1.bf16.msra.mxu1 %v6073_v35  ;;  %3503 = vmatprep.subr.bf16.mxu0 %v6078_v36  ;;  %v6127_v35 = vld [vmem:[#allocation5 + $0xee0] ss:$16 sps:$4 sm:$0xff]   ;;  %v6132_v36 = vld [vmem:[#allocation5 + $0xcc4] ss:$16 sps:$4 sm:$0xff]  }
  0xdd   :  { %3556 = vmatprep.subr.bf16.mxu1 %v6081_v38  ;;  %v6135_v38 = vld [vmem:[#allocation5 + $0xec4] ss:$16 sps:$4 sm:$0xff]  }
  0xdf   :  { %3504 = vmatpush2.bf16.msra.mxu0 %v6076_v39  ;;  %v6130_v39 = vld [vmem:[#allocation5 + $0xcc0] ss:$16 sps:$4 sm:$0xff]  }
  0xe0   :  { %3557 = vmatpush2.bf16.msra.mxu1 %v6079_v40  ;;  %3505 = vmatprep.subr.bf16.mxu0 %v6084_v41  ;;  %v6133_v40 = vld [vmem:[#allocation5 + $0xec0] ss:$16 sps:$4 sm:$0xff]   ;;  %v7040_v41 = vpack.c.bf16 %v142_v30, %v126_v28  ;;  %v6168_v28 = vld [vmem:[#allocation5 + $0xc04] ss:$16 sps:$4 sm:$0xff]  }
  0xe1   :  { %3558 = vmatprep.subr.bf16.mxu1 %v6087_v44  ;;  %v7042_v44 = vpack.c.bf16 %v144_v34, %v128_v31  ;;  %v6166_v30 = vld [vmem:[#allocation5 + $0xc00] ss:$16 sps:$4 sm:$0xff]   ;;  %v6174_v34 = vld [vmem:[#allocation5 + $0xde4] ss:$16 sps:$4 sm:$0xff]  }
  0xe2   :  { %v6169_v31 = vld [vmem:[#allocation5 + $0xe00] ss:$16 sps:$4 sm:$0xff]  }
  0xe3   :  { %3506 = vmatpush2.bf16.msra.mxu0 %v6082_v45  ;;  %v125_v45 = vld [vmem:[#allocation2 + $0x140] sm:$0xff] }
  0xe4   :  { %3559 = vmatpush2.bf16.msra.mxu1 %v6085_v46  ;;  %3507 = vmatprep.subr.bf16.mxu0 %v6090_v50  ;;  %v141_v46 = vld [vmem:[#allocation2 + $0x1c0] sm:$0xff]  ;;  %v127_v50 = vld [vmem:[#allocation2 + $0x150] sm:$0xff] }
  0xe5   :  { %3560 = vmatprep.subr.bf16.mxu1 %v6093_v51  ;;  %v143_v51 = vld [vmem:[#allocation2 + $0x1d0] sm:$0xff] }
  0xe7   :  { %3508 = vmatpush2.bf16.msra.mxu0 %v6088_v52  ;;  %v6138_v52 = vld [vmem:[#allocation5 + $0xca4] ss:$16 sps:$4 sm:$0xff]  }
  0xe8   :  { %3561 = vmatpush2.bf16.msra.mxu1 %v6091_v55  ;;  %3509 = vmatprep.subr.bf16.mxu0 %v6096_v56  ;;  %v6141_v55 = vld [vmem:[#allocation5 + $0xea4] ss:$16 sps:$4 sm:$0xff]   ;;  %v6136_v56 = vld [vmem:[#allocation5 + $0xca0] ss:$16 sps:$4 sm:$0xff]  }
  0xe9   :  { %3562 = vmatprep.subr.bf16.mxu1 %v6099_v57  ;;  %v98_v57 = vld [vmem:[#allocation2 + $0x68] sm:$0xff] }
  0xeb   :  { %3510 = vmatpush2.bf16.msra.mxu0 %v6094_v59  ;;  %v7048_v59 = vpack.c.bf16 %v141_v46, %v125_v45  ;;  %v6178_v45 = vld [vmem:[#allocation5 + $0xdc0] ss:$16 sps:$4 sm:$0xff]  }
  0xec   :  { %3563 = vmatpush2.bf16.msra.mxu1 %v6097_v60  ;;  %3511 = vmatprep.subr.bf16.mxu0 %v6102_v62  ;;  %v7050_v60 = vpack.c.bf16 %v143_v51, %v127_v50  ;;  %v114_v62 = vld [vmem:[#allocation2 + $0xe8] sm:$0xff]  ;;  %v6181_v46 = vld [vmem:[#allocation5 + $0xfc0] ss:$16 sps:$4 sm:$0xff]   ;;  %v6186_v50 = vld [vmem:[#allocation5 + $0xda4] ss:$16 sps:$4 sm:$0xff]  }
  0xed   :  { %3564 = vmatprep.subr.bf16.mxu1 %v6105_v1  ;;  %v100_v1 = vld [vmem:[#allocation2 + $0x78] sm:$0xff]  ;;  %v6189_v51 = vld [vmem:[#allocation5 + $0xfa4] ss:$16 sps:$4 sm:$0xff]  }
  0xef   :  { %3512 = vmatpush2.bf16.msra.mxu0 %v6100_v2  ;;  %v116_v2 = vld [vmem:[#allocation2 + $0xf8] sm:$0xff] }
  0xf0   :  { %3565 = vmatpush2.bf16.msra.mxu1 %v6103_v3  ;;  %3513 = vmatprep.subr.bf16.mxu0 %v6108_v5  ;;  %v6139_v3 = vld [vmem:[#allocation5 + $0xea0] ss:$16 sps:$4 sm:$0xff]   ;;  %v6144_v5 = vld [vmem:[#allocation5 + $0xc84] ss:$16 sps:$4 sm:$0xff]  }
  0xf1   :  { %3566 = vmatprep.subr.bf16.mxu1 %v6111_v6  ;;  %v6147_v6 = vld [vmem:[#allocation5 + $0xe84] ss:$16 sps:$4 sm:$0xff]  }
  0xf3   :  { %3514 = vmatpush2.bf16.msra.mxu0 %v6106_v8  ;;  %v7052_v8 = vpack.c.bf16 %v114_v62, %v98_v57  ;;  %v6195_v57 = vld [vmem:[#allocation5 + $0xf84] ss:$16 sps:$4 sm:$0xff]   ;;  %v6190_v62 = vld [vmem:[#allocation5 + $0xd80] ss:$16 sps:$4 sm:$0xff]  }
  0xf4   :  { %3567 = vmatpush2.bf16.msra.mxu1 %v6109_v9  ;;  %3515 = vmatprep.subr.bf16.mxu0 %v6114_v10  ;;  %v7054_v9 = vpack.c.bf16 %v116_v2, %v100_v1  ;;  %v6142_v10 = vld [vmem:[#allocation5 + $0xc80] ss:$16 sps:$4 sm:$0xff]   ;;  %v6198_v2 = vld [vmem:[#allocation5 + $0xd64] ss:$16 sps:$4 sm:$0xff]  }
  0xf5   :  { %3568 = vmatprep.subr.bf16.mxu1 %v6117_v11  ;;  %v6145_v11 = vld [vmem:[#allocation5 + $0xe80] ss:$16 sps:$4 sm:$0xff]  }
  0xf6   :  { %v6193_v1 = vld [vmem:[#allocation5 + $0xf80] ss:$16 sps:$4 sm:$0xff]  }
  0xf7   :  { %3516 = vmatpush2.bf16.msra.mxu0 %v6112_v14  ;;  %v6150_v14 = vld [vmem:[#allocation5 + $0xc64] ss:$16 sps:$4 sm:$0xff]  }
  0xf8   :  { %3569 = vmatpush2.bf16.msra.mxu1 %v6115_v15  ;;  %3517 = vmatprep.subr.bf16.mxu0 %v6120_v16  ;;  %v6153_v15 = vld [vmem:[#allocation5 + $0xe64] ss:$16 sps:$4 sm:$0xff]   ;;  %v6148_v16 = vld [vmem:[#allocation5 + $0xc60] ss:$16 sps:$4 sm:$0xff]  }
  0xf9   :  { %3570 = vmatprep.subr.bf16.mxu1 %v6123_v17  ;;  %v6151_v17 = vld [vmem:[#allocation5 + $0xe60] ss:$16 sps:$4 sm:$0xff]  }
  0xfb   :  { %3518 = vmatpush2.bf16.msra.mxu0 %v6118_v18  ;;  %v6156_v18 = vld [vmem:[#allocation5 + $0xc44] ss:$16 sps:$4 sm:$0xff]  }
  0xfc   :  { %3571 = vmatpush2.bf16.msra.mxu1 %v6121_v21  ;;  %3593 = vmatprep.subr.bf16.mxu0 %v6126_v26  ;;  %v6159_v21 = vld [vmem:[#allocation5 + $0xe44] ss:$16 sps:$4 sm:$0xff]   ;;  %v6160_v26 = vld [vmem:[#allocation5 + $0xc20] ss:$16 sps:$4 sm:$0xff]  }
  0xfd   :  { %3646 = vmatprep.subr.bf16.mxu1 %v6129_v27  ;;  %v6163_v27 = vld [vmem:[#allocation5 + $0xe20] ss:$16 sps:$4 sm:$0xff]  }
  0xfe   :  { %3520 = vmatmul.mubr.bf16.vlgmr.msra.gmra.mxu0 %v7036_v32 }
  0xff   :  { %3573 = vmatmul.mubr.bf16.vlgmr.msra.gmra.mxu1 %v7038_v33  ;;  %3594 = vmatpush1.bf16.msra.mxu0 %v6124_v29  ;;  %v6171_v29 = vld [vmem:[#allocation5 + $0xe04] ss:$16 sps:$4 sm:$0xff]  }
 0x100   :  { %3647 = vmatpush1.bf16.msra.mxu1 %v6127_v35  ;;  %3595 = vmatprep.subr.bf16.mxu0 %v6132_v36  ;;  %v6177_v35 = vld [vmem:[#allocation5 + $0xfe4] ss:$16 sps:$4 sm:$0xff]   ;;  %v6172_v36 = vld [vmem:[#allocation5 + $0xde0] ss:$16 sps:$4 sm:$0xff]  }
 0x101   :  { %3648 = vmatprep.subr.bf16.mxu1 %v6135_v38  ;;  %3529 = vmatprep.mubr.bf16.mxu0 %v7040_v41  ;;  %v6175_v38 = vld [vmem:[#allocation5 + $0xfe0] ss:$16 sps:$4 sm:$0xff]  }
 0x102   :  { %3582 = vmatprep.mubr.bf16.mxu1 %v7042_v44 }
 0x103   :  { %3596 = vmatpush1.bf16.msra.mxu0 %v6130_v39  ;;  %v6180_v39 = vld [vmem:[#allocation5 + $0xdc4] ss:$16 sps:$4 sm:$0xff]  }
 0x104   :  { %3649 = vmatpush1.bf16.msra.mxu1 %v6133_v40  ;;  %3597 = vmatprep.subr.bf16.mxu0 %v6138_v52  ;;  %v6183_v40 = vld [vmem:[#allocation5 + $0xfc4] ss:$16 sps:$4 sm:$0xff]   ;;  %v6184_v52 = vld [vmem:[#allocation5 + $0xda0] ss:$16 sps:$4 sm:$0xff]  }
 0x105   :  { %3650 = vmatprep.subr.bf16.mxu1 %v6141_v55  ;;  %v6187_v55 = vld [vmem:[#allocation5 + $0xfa0] ss:$16 sps:$4 sm:$0xff]  }
 0x106   :  { %3530 = vmatmul.mubr.bf16.gmra.mxu0 %v7048_v59 }
 0x107   :  { %3583 = vmatmul.mubr.bf16.gmra.mxu1 %v7050_v60  ;;  %3598 = vmatpush1.bf16.msra.mxu0 %v6136_v56  ;;  %v6192_v56 = vld [vmem:[#allocation5 + $0xd84] ss:$16 sps:$4 sm:$0xff]  }
 0x108   :  { %3651 = vmatpush1.bf16.msra.mxu1 %v6139_v3  ;;  %3599 = vmatprep.subr.bf16.mxu0 %v6144_v5  ;;  %v6201_v3 = vld [vmem:[#allocation5 + $0xf64] ss:$16 sps:$4 sm:$0xff]   ;;  %v6196_v5 = vld [vmem:[#allocation5 + $0xd60] ss:$16 sps:$4 sm:$0xff]  }
 0x109   :  { %3652 = vmatprep.subr.bf16.mxu1 %v6147_v6  ;;  %3625 = vmatprep.mubr.bf16.mxu0 %v7052_v8  ;;  %v6199_v6 = vld [vmem:[#allocation5 + $0xf60] ss:$16 sps:$4 sm:$0xff]  }
 0x10a   :  { %3678 = vmatprep.mubr.bf16.mxu1 %v7054_v9 }
 0x10b   :  { %3600 = vmatpush1.bf16.msra.mxu0 %v6142_v10  ;;  %v6204_v10 = vld [vmem:[#allocation5 + $0xd44] ss:$16 sps:$4 sm:$0xff]  }
 0x10c   :  { %3653 = vmatpush1.bf16.msra.mxu1 %v6145_v11  ;;  %3601 = vmatprep.subr.bf16.mxu0 %v6150_v14  ;;  %v6207_v11 = vld [vmem:[#allocation5 + $0xf44] ss:$16 sps:$4 sm:$0xff]   ;;  %v6202_v14 = vld [vmem:[#allocation5 + $0xd40] ss:$16 sps:$4 sm:$0xff]  }
 0x10d   :  { %3654 = vmatprep.subr.bf16.mxu1 %v6153_v15  ;;  %v6205_v15 = vld [vmem:[#allocation5 + $0xf40] ss:$16 sps:$4 sm:$0xff]  }
 0x10f   :  { %3602 = vmatpush1.bf16.msra.mxu0 %v6148_v16  ;;  %v695_v16 = vlaneseq }
 0x110   :  { %3655 = vmatpush1.bf16.msra.mxu1 %v6151_v17  ;;  %3603 = vmatprep.subr.bf16.mxu0 %v6156_v18  ;;  %v6210_v17 = vld [vmem:[#allocation5 + $0xd24] ss:$16 sps:$4 sm:$0xff]  }
 0x111   :  { %3656 = vmatprep.subr.bf16.mxu1 %v6159_v21  ;;  %v6213_v18 = vld [vmem:[#allocation5 + $0xf24] ss:$16 sps:$4 sm:$0xff]   ;;  %v6208_v21 = vld [vmem:[#allocation5 + $0xd20] ss:$16 sps:$4 sm:$0xff]  }
 0x113   :  { %3604 = vmatpush1.bf16.msra.mxu0 %v6154_v22  ;;  %v6211_v22 = vld [vmem:[#allocation5 + $0xf20] ss:$16 sps:$4 sm:$0xff]  }
 0x114   :  { %3657 = vmatpush1.bf16.msra.mxu1 %v6157_v23  ;;  %3605 = vmatprep.subr.bf16.mxu0 %v6162_v24  ;;  %v7060_v23 = vshrl.u32 %v695_v16, 7  ;;  %v6216_v24 = vld [vmem:[#allocation5 + $0xd04] ss:$16 sps:$4 sm:$0xff]  }
 0x115   :  { %3658 = vmatprep.subr.bf16.mxu1 %v6165_v25  ;;  %v6219_v25 = vld [vmem:[#allocation5 + $0xf04] ss:$16 sps:$4 sm:$0xff]  }
 0x117   :  { %3606 = vmatpush1.bf16.msra.mxu0 %v6160_v26  ;;  %v6214_v26 = vld [vmem:[#allocation5 + $0xd00] ss:$16 sps:$4 sm:$0xff]  }
 0x118   :  { %3659 = vmatpush1.bf16.msra.mxu1 %v6163_v27  ;;  %3607 = vmatprep.subr.bf16.mxu0 %v6168_v28  ;;  %v6217_v27 = vld [vmem:[#allocation5 + $0xf00] ss:$16 sps:$4 sm:$0xff]  }
 0x119   :  { %3660 = vmatprep.subr.bf16.mxu1 %v6171_v29  ;;  %v97_v28 = vld [vmem:[#allocation2 + $0x60] sm:$0xff] }
 0x11a   :  { %v113_v29 = vld [vmem:[#allocation2 + $0xe0] sm:$0xff] }
 0x11b   :  { %3608 = vmatpush1.bf16.msra.mxu0 %v6166_v30  ;;  %v99_v30 = vld [vmem:[#allocation2 + $0x70] sm:$0xff] }
 0x11c   :  { %3661 = vmatpush1.bf16.msra.mxu1 %v6169_v31  ;;  %3609 = vmatprep.subr.bf16.mxu0 %v6174_v34  ;;  %v7062_v31 = vld [vmem:[#allocation7] sm:$0xf]  ;;  %v115_v34 = vld [vmem:[#allocation2 + $0xf0] sm:$0xff] }
 0x11d   :  { %3662 = vmatprep.subr.bf16.mxu1 %v6177_v35  ;;  %v697_v35 = vsub.s32 0, %v7060_v23 }
 0x11f   :  { %3610 = vmatpush2.bf16.msra.mxu0 %v6172_v36  ;;  %v6222_v36 = vld [vmem:[#allocation5 + $0xec] ss:$16 sps:$4 sm:$0xff]  }
 0x120   :  { %3663 = vmatpush2.bf16.msra.mxu1 %v6175_v38  ;;  %3611 = vmatprep.subr.bf16.mxu0 %v6180_v39  ;;  %v6225_v38 = vld [vmem:[#allocation5 + $0x2ec] ss:$16 sps:$4 sm:$0xff]  }
 0x121   :  { %3664 = vmatprep.subr.bf16.mxu1 %v6183_v40  ;;  %v130_v39 = vld [vmem:[#allocation2 + $0x168] sm:$0xff] }
 0x122   :  { %v6220_v40 = vld [vmem:[#allocation5 + $0xe8] ss:$16 sps:$4 sm:$0xff]  }
 0x123   :  { %3612 = vmatpush2.bf16.msra.mxu0 %v6178_v45  ;;  %v146_v45 = vld [vmem:[#allocation2 + $0x1e8] sm:$0xff] }
 0x124   :  { %3665 = vmatpush2.bf16.msra.mxu1 %v6181_v46  ;;  %3613 = vmatprep.subr.bf16.mxu0 %v6186_v50  ;;  %v132_v46 = vld [vmem:[#allocation2 + $0x178] sm:$0xff]  ;;  %v7065_v50 = vpack.c.bf16 %v113_v29, %v97_v28 }
 0x125   :  { %3666 = vmatprep.subr.bf16.mxu1 %v6189_v51  ;;  %v7067_v51 = vpack.c.bf16 %v115_v34, %v99_v30  ;;  %v6232_v28 = vld [vmem:[#allocation5 + $0xa8] ss:$16 sps:$4 sm:$0xff]  }
 0x126   :  { %v6235_v34 = vld [vmem:[#allocation5 + $0x2a8] ss:$16 sps:$4 sm:$0xff]  }
 0x127   :  { %3614 = vmatpush2.bf16.msra.mxu0 %v6184_v52  ;;  %v148_v52 = vld [vmem:[#allocation2 + $0x1f8] sm:$0xff] }
 0x128   :  { %3667 = vmatpush2.bf16.msra.mxu1 %v6187_v55  ;;  %3615 = vmatprep.subr.bf16.mxu0 %v6192_v56  ;;  %v7072_v55 = vrot.slane %v7062_v31, %v697_v35  ;;  %v6223_v56 = vld [vmem:[#allocation5 + $0x2e8] ss:$16 sps:$4 sm:$0xff]  }
 0x129   :  { %3668 = vmatprep.subr.bf16.mxu1 %v6195_v57  ;;  %v6228_v57 = vld [vmem:[#allocation5 + $0xcc] ss:$16 sps:$4 sm:$0xff]  }
 0x12b   :  { %3616 = vmatpush2.bf16.msra.mxu0 %v6190_v62  ;;  %v6231_v62 = vld [vmem:[#allocation5 + $0x2cc] ss:$16 sps:$4 sm:$0xff]  }
 0x12c   :  { %3669 = vmatpush2.bf16.msra.mxu1 %v6193_v1  ;;  %3617 = vmatprep.subr.bf16.mxu0 %v6198_v2  ;;  %v6226_v1 = vld [vmem:[#allocation5 + $0xc8] ss:$16 sps:$4 sm:$0xff]  }
 0x12d   :  { %3670 = vmatprep.subr.bf16.mxu1 %v6201_v3  ;;  %v6229_v2 = vld [vmem:[#allocation5 + $0x2c8] ss:$16 sps:$4 sm:$0xff]   ;;  %v7074_v3 = vpack.c.bf16 %v146_v45, %v130_v39  ;;  %v6243_v39 = vld [vmem:[#allocation5 + $0x28c] ss:$16 sps:$4 sm:$0xff]  }
 0x12e   :  { %v6238_v45 = vld [vmem:[#allocation5 + $0x88] ss:$16 sps:$4 sm:$0xff]  }
 0x12f   :  { %3618 = vmatpush2.bf16.msra.mxu0 %v6196_v5  ;;  %v129_v5 = vld [vmem:[#allocation2 + $0x160] sm:$0xff] }
 0x130   :  { %3671 = vmatpush2.bf16.msra.mxu1 %v6199_v6  ;;  %3619 = vmatprep.subr.bf16.mxu0 %v6204_v10  ;;  %v145_v6 = vld [vmem:[#allocation2 + $0x1e0] sm:$0xff]  ;;  %v7076_v10 = vpack.c.bf16 %v148_v52, %v132_v46  ;;  %v6241_v46 = vld [vmem:[#allocation5 + $0x288] ss:$16 sps:$4 sm:$0xff]   ;;  %v6246_v52 = vld [vmem:[#allocation5 + $0x6c] ss:$16 sps:$4 sm:$0xff]  }
 0x131   :  { %3672 = vmatprep.subr.bf16.mxu1 %v6207_v11 }
 0x133   :  { %3620 = vmatpush2.bf16.msra.mxu0 %v6202_v14 }
 0x134   :  { %3673 = vmatpush2.bf16.msra.mxu1 %v6205_v15  ;;  %3621 = vmatprep.subr.bf16.mxu0 %v6210_v17  ;;  %v131_v15 = vld [vmem:[#allocation2 + $0x170] sm:$0xff] }
 0x135   :  { %3674 = vmatprep.subr.bf16.mxu1 %v6213_v18  ;;  %v147_v17 = vld [vmem:[#allocation2 + $0x1f0] sm:$0xff] }
 0x136   :  { %v7091_v29 = vpack.c.bf16 %v147_v17, %v131_v15  ;;  %v6256_v17 = vld [vmem:[#allocation5 + $0x28] ss:$16 sps:$4 sm:$0xff]  }
 0x137   :  { %3622 = vmatpush2.bf16.msra.mxu0 %v6208_v21 }
 0x138   :  { %3675 = vmatpush2.bf16.msra.mxu1 %v6211_v22  ;;  %3623 = vmatprep.subr.bf16.mxu0 %v6216_v24  ;;  %v6234_v22 = vld [vmem:[#allocation5 + $0xac] ss:$16 sps:$4 sm:$0xff]  }
 0x139   :  { %3676 = vmatprep.subr.bf16.mxu1 %v6219_v25  ;;  %v6237_v24 = vld [vmem:[#allocation5 + $0x2ac] ss:$16 sps:$4 sm:$0xff]  }
 0x13b   :  { %3624 = vmatpush2.bf16.msra.mxu0 %v6214_v26 }
 0x13c   :  { %3677 = vmatpush2.bf16.msra.mxu1 %v6217_v27  ;;  %3699 = vmatprep.subr.bf16.mxu0 %v6222_v36  ;;  %v7089_v27 = vpack.c.bf16 %v145_v6, %v129_v5  ;;  %v7311_v5 = vsub.s32 1, %v7060_v23  ;;  %v6250_v6 = vld [vmem:[#allocation5 + $0x48] ss:$16 sps:$4 sm:$0xff]  }
 0x13d   :  { %3752 = vmatprep.subr.bf16.mxu1 %v6225_v38  ;;  %v6240_v38 = vld [vmem:[#allocation5 + $0x8c] ss:$16 sps:$4 sm:$0xff]  }
 0x13e   :  { %v3309_v11 = vpop.f32.mrf.mxu0  ;;  %3626 = vmatmul.mubr.bf16.vlgmr.msra.gmra.mxu0 %v7065_v50 }
 0x13f   :  { %v3362_v14 = vpop.f32.mrf.mxu1  ;;  %3679 = vmatmul.mubr.bf16.vlgmr.msra.gmra.mxu1 %v7067_v51  ;;  %v3310_v16 = vadd.f32 %v3309_v11, %v7072_v55  ;;  %3700 = vmatpush1.bf16.msra.mxu0 %v6220_v40 }
 0x140   :  { %3753 = vmatpush1.bf16.msra.mxu1 %v6223_v56  ;;  %v7081_v18 = vpop.f32.mrf.mxu0  ;;  %3701 = vmatprep.subr.bf16.mxu0 %v6228_v57  ;;  %v6249_v56 = vld [vmem:[#allocation5 + $0x26c] ss:$16 sps:$4 sm:$0xff]   ;;  %v6244_v57 = vld [vmem:[#allocation5 + $0x68] ss:$16 sps:$4 sm:$0xff]  }
 0x141   :  { %v7083_v21 = vpop.f32.mrf.mxu1  ;;  %3754 = vmatprep.subr.bf16.mxu1 %v6231_v62  ;;  %v7085_v25 = vadd.f32 %v3362_v14, %v3310_v16  ;;  %3635 = vmatprep.mubr.bf16.mxu0 %v7074_v3  ;;  %v6247_v62 = vld [vmem:[#allocation5 + $0x268] ss:$16 sps:$4 sm:$0xff]   ;;  %v7106_v16 = vrot.slane %v7062_v31, %v7311_v5 }
 0x142   :  { %3688 = vmatprep.mubr.bf16.mxu1 %v7076_v10  ;;  %v3313_v26 = vpop.f32.mrf.mxu0  ;;  %v6253_v14 = vld [vmem:[#allocation5 + $0x248] ss:$16 sps:$4 sm:$0xff]  }
 0x143   :  { %v3314_v30 = vadd.f32 %v3313_v26, %v7072_v55  ;;  %3702 = vmatpush1.bf16.msra.mxu0 %v6226_v1  ;;  %v3366_v36 = vpop.f32.mrf.mxu1  ;;  %v6252_v1 = vld [vmem:[#allocation5 + $0x4c] ss:$16 sps:$4 sm:$0xff]   ;;  %v6259_v26 = vld [vmem:[#allocation5 + $0x228] ss:$16 sps:$4 sm:$0xff]  }
 0x144   :  { %3755 = vmatpush1.bf16.msra.mxu1 %v6229_v2  ;;  %3703 = vmatprep.subr.bf16.mxu0 %v6234_v22  ;;  %v6255_v2 = vld [vmem:[#allocation5 + $0x24c] ss:$16 sps:$4 sm:$0xff]   ;;  %v7101_v11 = vpop.f32.mrf.mxu0 }
 0x145   :  { %3756 = vmatprep.subr.bf16.mxu1 %v6237_v24  ;;  %v7094_v40 = vadd.f32 %v3366_v36, %v3314_v30  ;;  %v7109_v24 = vpop.f32.mrf.mxu1  ;;  %v6264_v30 = vld [vmem:[#allocation5 + $0xc] ss:$16 sps:$4 sm:$0xff]  }
 0x146   :  { %3636 = vmatmul.mubr.bf16.gmra.mxu0 %v7089_v27  ;;  %v3319_v15 = vpop.f32.mrf.mxu0 }
 0x147   :  { %3689 = vmatmul.mubr.bf16.gmra.mxu1 %v7091_v29  ;;  %3704 = vmatpush1.bf16.msra.mxu0 %v6232_v28  ;;  %v3320_v22 = vadd.f32 %v3319_v15, %v7072_v55 }
 0x148   :  { %3757 = vmatpush1.bf16.msra.mxu1 %v6235_v34  ;;  %3705 = vmatprep.subr.bf16.mxu0 %v6240_v38  ;;  %v3321_v28 = vpop.f32.mrf.mxu0  ;;  %v6267_v34 = vld [vmem:[#allocation5 + $0x20c] ss:$16 sps:$4 sm:$0xff]   ;;  %v3372_v38 = vpop.f32.mrf.mxu1 }
 0x149   :  { %3758 = vmatprep.subr.bf16.mxu1 %v6243_v39  ;;  %3731 = vmatprep.mubr.bf16.mxu0 %v6982_v53  ;;  %v6258_v53 = vld [vmem:[#allocation5 + $0x2c] ss:$16 sps:$4 sm:$0xff]   ;;  %v3322_v36 = vadd.f32 %v3321_v28, %v7106_v16  ;;  %v7112_v31 = vadd.f32 %v3372_v38, %v3320_v22  ;;  %v6274_v28 = vld [vmem:[#allocation5 + $0x1c8] ss:$16 sps:$4 sm:$0xff]  }
 0x14a   :  { %3784 = vmatprep.mubr.bf16.mxu1 %v6984_v54  ;;  %v6261_v54 = vld [vmem:[#allocation5 + $0x22c] ss:$16 sps:$4 sm:$0xff]   ;;  %v3323_v39 = vpop.f32.mrf.mxu0  ;;  %v6280_v38 = vld [vmem:[#allocation5 + $0x1a8] ss:$16 sps:$4 sm:$0xff]  }
 0x14b   :  { %3706 = vmatpush1.bf16.msra.mxu0 %v6238_v45  ;;  %v6262_v45 = vld [vmem:[#allocation5 + $0x8] ss:$16 sps:$4 sm:$0xff]   ;;  %v6279_v22 = vld [vmem:[#allocation5 + $0x3cc] ss:$16 sps:$4 sm:$0xff]  }
 0x14c   :  { %3759 = vmatpush1.bf16.msra.mxu1 %v6241_v46  ;;  %3707 = vmatprep.subr.bf16.mxu0 %v6246_v52  ;;  %v3324_v46 = vadd.f32 %v3323_v39, %v7072_v55  ;;  %v6265_v52 = vld [vmem:[#allocation5 + $0x208] ss:$16 sps:$4 sm:$0xff]  }
 0x14d   :  { %3760 = vmatprep.subr.bf16.mxu1 %v6249_v56  ;;  %v3374_v56 = vpop.f32.mrf.mxu1  ;;  %v6271_v55 = vld [vmem:[#allocation5 + $0x3e8] ss:$16 sps:$4 sm:$0xff]  }
 0x14e   :  { %v6283_v39 = vld [vmem:[#allocation5 + $0x3a8] ss:$16 sps:$4 sm:$0xff]  }
 0x14f   :  { %3708 = vmatpush1.bf16.msra.mxu0 %v6244_v57  ;;  %v3325_v57 = vpop.f32.mrf.mxu0 }
 0x150   :  { %3761 = vmatpush1.bf16.msra.mxu1 %v6247_v62  ;;  %3709 = vmatprep.subr.bf16.mxu0 %v6252_v1  ;;  %v6270_v62 = vld [vmem:[#allocation5 + $0x1ec] ss:$16 sps:$4 sm:$0xff]  }
 0x151   :  { %3762 = vmatprep.subr.bf16.mxu1 %v6255_v2  ;;  %v6273_v1 = vld [vmem:[#allocation5 + $0x3ec] ss:$16 sps:$4 sm:$0xff]   ;;  %v7115_v2 = vadd.f32 %v3374_v56, %v3322_v36  ;;  %v6289_v56 = vld [vmem:[#allocation5 + $0x388] ss:$16 sps:$4 sm:$0xff]  }
 0x152   :  { %v6285_v36 = vld [vmem:[#allocation5 + $0x3ac] ss:$16 sps:$4 sm:$0xff]  }
 0x153   :  { %3710 = vmatpush1.bf16.msra.mxu0 %v6250_v6  ;;  %v3326_v6 = vadd.f32 %v3325_v57, %v7106_v16  ;;  %v6294_v57 = vld [vmem:[#allocation5 + $0x16c] ss:$16 sps:$4 sm:$0xff]  }
 0x154   :  { %3763 = vmatpush1.bf16.msra.mxu1 %v6253_v14  ;;  %3711 = vmatprep.subr.bf16.mxu0 %v6258_v53  ;;  %v3376_v14 = vpop.f32.mrf.mxu1  ;;  %v6268_v53 = vld [vmem:[#allocation5 + $0x1e8] ss:$16 sps:$4 sm:$0xff]  }
 0x155   :  { %3764 = vmatprep.subr.bf16.mxu1 %v6261_v54  ;;  %v7118_v54 = vadd.f32 %v3376_v14, %v3324_v46  ;;  %v6291_v46 = vld [vmem:[#allocation5 + $0x38c] ss:$16 sps:$4 sm:$0xff]  }
 0x156   :  { %v3378_v15 = vpop.f32.mrf.mxu1  ;;  %v6300_v14 = vld [vmem:[#allocation5 + $0x14c] ss:$16 sps:$4 sm:$0xff]  }
 0x157   :  { %3712 = vmatpush1.bf16.msra.mxu0 %v6256_v17  ;;  %v6276_v17 = vld [vmem:[#allocation5 + $0x1cc] ss:$16 sps:$4 sm:$0xff]  }
 0x158   :  { %3765 = vmatpush1.bf16.msra.mxu1 %v6259_v26  ;;  %3713 = vmatprep.subr.bf16.mxu0 %v6264_v30  ;;  %v7120_v26 = vadd.f32 %v3378_v15, %v3326_v6  ;;  %v6277_v30 = vld [vmem:[#allocation5 + $0x3c8] ss:$16 sps:$4 sm:$0xff]  }
 0x159   :  { %3766 = vmatprep.subr.bf16.mxu1 %v6267_v34  ;;  %v6282_v34 = vld [vmem:[#allocation5 + $0x1ac] ss:$16 sps:$4 sm:$0xff]   ;;  %v6295_v6 = vld [vmem:[#allocation5 + $0x368] ss:$16 sps:$4 sm:$0xff]  }
 0x15a   :  { %v6301_v15 = vld [vmem:[#allocation5 + $0x348] ss:$16 sps:$4 sm:$0xff]  }
 0x15b   :  { %3714 = vmatpush1.bf16.msra.mxu0 %v6262_v45  ;;  %v6288_v45 = vld [vmem:[#allocation5 + $0x18c] ss:$16 sps:$4 sm:$0xff]  }
 0x15c   :  { %3767 = vmatpush1.bf16.msra.mxu1 %v6265_v52  ;;  %3715 = vmatprep.subr.bf16.mxu0 %v6270_v62  ;;  %v6286_v52 = vld [vmem:[#allocation5 + $0x188] ss:$16 sps:$4 sm:$0xff]   ;;  %v6297_v62 = vld [vmem:[#allocation5 + $0x36c] ss:$16 sps:$4 sm:$0xff]  }
 0x15d   :  { %3768 = vmatprep.subr.bf16.mxu1 %v6273_v1  ;;  %v6292_v1 = vld [vmem:[#allocation5 + $0x168] ss:$16 sps:$4 sm:$0xff]  }
 0x15f   :  { %3716 = vmatpush2.bf16.msra.mxu0 %v6268_v53  ;;  %v6303_v53 = vld [vmem:[#allocation5 + $0x34c] ss:$16 sps:$4 sm:$0xff]  }
 0x160   :  { %3769 = vmatpush2.bf16.msra.mxu1 %v6271_v55  ;;  %3717 = vmatprep.subr.bf16.mxu0 %v6276_v17  ;;  %v6298_v55 = vld [vmem:[#allocation5 + $0x148] ss:$16 sps:$4 sm:$0xff]   ;;  %v6306_v17 = vld [vmem:[#allocation5 + $0x12c] ss:$16 sps:$4 sm:$0xff]  }
 0x161   :  { %3770 = vmatprep.subr.bf16.mxu1 %v6279_v22  ;;  %v6309_v22 = vld [vmem:[#allocation5 + $0x32c] ss:$16 sps:$4 sm:$0xff]  }
 0x163   :  { %3718 = vmatpush2.bf16.msra.mxu0 %v6274_v28  ;;  %v6304_v28 = vld [vmem:[#allocation5 + $0x128] ss:$16 sps:$4 sm:$0xff]  }
 0x164   :  { %3771 = vmatpush2.bf16.msra.mxu1 %v6277_v30  ;;  %3719 = vmatprep.subr.bf16.mxu0 %v6282_v34  ;;  %v6307_v30 = vld [vmem:[#allocation5 + $0x328] ss:$16 sps:$4 sm:$0xff]   ;;  %v6312_v34 = vld [vmem:[#allocation5 + $0x10c] ss:$16 sps:$4 sm:$0xff]  }
 0x165   :  { %3772 = vmatprep.subr.bf16.mxu1 %v6285_v36  ;;  %v6315_v36 = vld [vmem:[#allocation5 + $0x30c] ss:$16 sps:$4 sm:$0xff]  }
 0x167   :  { %3720 = vmatpush2.bf16.msra.mxu0 %v6280_v38  ;;  %v6310_v38 = vld [vmem:[#allocation5 + $0x108] ss:$16 sps:$4 sm:$0xff]  }
 0x168   :  { %3773 = vmatpush2.bf16.msra.mxu1 %v6283_v39  ;;  %3721 = vmatprep.subr.bf16.mxu0 %v6288_v45  ;;  %v6313_v39 = vld [vmem:[#allocation5 + $0x308] ss:$16 sps:$4 sm:$0xff]   ;;  %v6318_v45 = vld [vmem:[#allocation5 + $0x4ec] ss:$16 sps:$4 sm:$0xff]  }
 0x169   :  { %3774 = vmatprep.subr.bf16.mxu1 %v6291_v46  ;;  %v6321_v46 = vld [vmem:[#allocation5 + $0x6ec] ss:$16 sps:$4 sm:$0xff]  }
 0x16b   :  { %3722 = vmatpush2.bf16.msra.mxu0 %v6286_v52  ;;  %v6316_v52 = vld [vmem:[#allocation5 + $0x4e8] ss:$16 sps:$4 sm:$0xff]  }
 0x16c   :  { %3775 = vmatpush2.bf16.msra.mxu1 %v6289_v56  ;;  %3723 = vmatprep.subr.bf16.mxu0 %v6294_v57  ;;  %v6319_v56 = vld [vmem:[#allocation5 + $0x6e8] ss:$16 sps:$4 sm:$0xff]   ;;  %v6324_v57 = vld [vmem:[#allocation5 + $0x4cc] ss:$16 sps:$4 sm:$0xff]  }
 0x16d   :  { %3776 = vmatprep.subr.bf16.mxu1 %v6297_v62  ;;  %v6327_v62 = vld [vmem:[#allocation5 + $0x6cc] ss:$16 sps:$4 sm:$0xff]  }
 0x16f   :  { %3724 = vmatpush2.bf16.msra.mxu0 %v6292_v1  ;;  %v6322_v1 = vld [vmem:[#allocation5 + $0x4c8] ss:$16 sps:$4 sm:$0xff]  }
 0x170   :  { %3777 = vmatpush2.bf16.msra.mxu1 %v6295_v6  ;;  %3725 = vmatprep.subr.bf16.mxu0 %v6300_v14  ;;  %v6325_v6 = vld [vmem:[#allocation5 + $0x6c8] ss:$16 sps:$4 sm:$0xff]  }
 0x171   :  { %3778 = vmatprep.subr.bf16.mxu1 %v6303_v53 }
 0x173   :  { %3726 = vmatpush2.bf16.msra.mxu0 %v6298_v55 }
 0x174   :  { %3779 = vmatpush2.bf16.msra.mxu1 %v6301_v15  ;;  %3727 = vmatprep.subr.bf16.mxu0 %v6306_v17 }
 0x175   :  { %3780 = vmatprep.subr.bf16.mxu1 %v6309_v22  ;;  %v6330_v22 = vld [vmem:[#allocation5 + $0x4ac] ss:$16 sps:$4 sm:$0xff]  }
 0x177   :  { %3728 = vmatpush2.bf16.msra.mxu0 %v6304_v28  ;;  %v6333_v28 = vld [vmem:[#allocation5 + $0x6ac] ss:$16 sps:$4 sm:$0xff]  }
 0x178   :  { %3781 = vmatpush2.bf16.msra.mxu1 %v6307_v30  ;;  %3729 = vmatprep.subr.bf16.mxu0 %v6312_v34  ;;  %v6328_v34 = vld [vmem:[#allocation5 + $0x4a8] ss:$16 sps:$4 sm:$0xff]  }
 0x179   :  { %3782 = vmatprep.subr.bf16.mxu1 %v6315_v36  ;;  %v6331_v36 = vld [vmem:[#allocation5 + $0x6a8] ss:$16 sps:$4 sm:$0xff]  }
 0x17b   :  { %3730 = vmatpush2.bf16.msra.mxu0 %v6310_v38 }
 0x17c   :  { %3783 = vmatpush2.bf16.msra.mxu1 %v6313_v39  ;;  %3805 = vmatprep.subr.bf16.mxu0 %v6318_v45  ;;  %v6336_v45 = vld [vmem:[#allocation5 + $0x48c] ss:$16 sps:$4 sm:$0xff]  }
 0x17d   :  { %3858 = vmatprep.subr.bf16.mxu1 %v6321_v46  ;;  %v6339_v46 = vld [vmem:[#allocation5 + $0x68c] ss:$16 sps:$4 sm:$0xff]  }
 0x17e   :  { %v3415_v14 = vpop.f32.mrf.mxu0  ;;  %3732 = vmatmul.mubr.bf16.vlgmr.msra.gmra.mxu0 %v6988_v12 }
 0x17f   :  { %v3468_v53 = vpop.f32.mrf.mxu1  ;;  %3785 = vmatmul.mubr.bf16.vlgmr.msra.gmra.mxu1 %v6990_v13  ;;  %v3416_v55 = vadd.f32 %v3415_v14, %v7085_v25  ;;  %3806 = vmatpush1.bf16.msra.mxu0 %v6316_v52  ;;  %v6345_v14 = vld [vmem:[#allocation5 + $0x66c] ss:$16 sps:$4 sm:$0xff]  }
 0x180   :  { %3859 = vmatpush1.bf16.msra.mxu1 %v6319_v56  ;;  %v7125_v15 = vpop.f32.mrf.mxu0  ;;  %3807 = vmatprep.subr.bf16.mxu0 %v6324_v57  ;;  %v6334_v56 = vld [vmem:[#allocation5 + $0x488] ss:$16 sps:$4 sm:$0xff]  }
 0x181   :  { %v7127_v17 = vpop.f32.mrf.mxu1  ;;  %3860 = vmatprep.subr.bf16.mxu1 %v6327_v62  ;;  %v7129_v30 = vadd.f32 %v3468_v53, %v3416_v55  ;;  %3741 = vmatprep.mubr.bf16.mxu0 %v6994_v37  ;;  %v6337_v37 = vld [vmem:[#allocation5 + $0x688] ss:$16 sps:$4 sm:$0xff]  }
 0x182   :  { %3794 = vmatprep.mubr.bf16.mxu1 %v6998_v43  ;;  %v3419_v12 = vpop.f32.mrf.mxu0 }
 0x183   :  { %v3472_v13 = vpop.f32.mrf.mxu1  ;;  %v3420_v25 = vadd.f32 %v3419_v12, %v7094_v40  ;;  %3808 = vmatpush1.bf16.msra.mxu0 %v6322_v1 }
 0x184   :  { %3861 = vmatpush1.bf16.msra.mxu1 %v6325_v6  ;;  %v7134_v38 = vpop.f32.mrf.mxu0  ;;  %3809 = vmatprep.subr.bf16.mxu0 %v6330_v22  ;;  %v6342_v6 = vld [vmem:[#allocation5 + $0x46c] ss:$16 sps:$4 sm:$0xff]   ;;  %v6340_v22 = vld [vmem:[#allocation5 + $0x468] ss:$16 sps:$4 sm:$0xff]  }
 0x185   :  { %v7136_v39 = vpop.f32.mrf.mxu1  ;;  %3862 = vmatprep.subr.bf16.mxu1 %v6333_v28  ;;  %v7138_v52 = vadd.f32 %v3472_v13, %v3420_v25  ;;  %v6343_v28 = vld [vmem:[#allocation5 + $0x668] ss:$16 sps:$4 sm:$0xff]   ;;  %v6351_v13 = vld [vmem:[#allocation5 + $0x64c] ss:$16 sps:$4 sm:$0xff]  }
 0x186   :  { %v3425_v57 = vpop.f32.mrf.mxu0  ;;  %3742 = vmatmul.mubr.bf16.gmra.mxu0 %v6996_v42 }
 0x187   :  { %v3478_v43 = vpop.f32.mrf.mxu1  ;;  %3795 = vmatmul.mubr.bf16.gmra.mxu1 %v7003_v49  ;;  %v3426_v40 = vadd.f32 %v3425_v57, %v7112_v31  ;;  %3810 = vmatpush1.bf16.msra.mxu0 %v6328_v34  ;;  %v6355_v57 = vld [vmem:[#allocation5 + $0x628] ss:$16 sps:$4 sm:$0xff]  }
 0x188   :  { %3863 = vmatpush1.bf16.msra.mxu1 %v6331_v36  ;;  %v3427_v62 = vpop.f32.mrf.mxu0  ;;  %3811 = vmatprep.subr.bf16.mxu0 %v6336_v45 }
 0x189   :  { %v3480_v1 = vpop.f32.mrf.mxu1  ;;  %3864 = vmatprep.subr.bf16.mxu1 %v6339_v46  ;;  %v3428_v53 = vadd.f32 %v3427_v62, %v7115_v2  ;;  %v7144_v55 = vadd.f32 %v3478_v43, %v3426_v40  ;;  %3837 = vmatprep.mubr.bf16.mxu0 %v7006_v63  ;;  %v6348_v2 = vld [vmem:[#allocation5 + $0x44c] ss:$16 sps:$4 sm:$0xff]   ;;  %v6346_v63 = vld [vmem:[#allocation5 + $0x448] ss:$16 sps:$4 sm:$0xff]  }
 0x18a   :  { %3890 = vmatprep.mubr.bf16.mxu1 %v7008_v0  ;;  %v3429_v42 = vpop.f32.mrf.mxu0  ;;  %v6349_v0 = vld [vmem:[#allocation5 + $0x648] ss:$16 sps:$4 sm:$0xff]   ;;  %v6360_v43 = vld [vmem:[#allocation5 + $0x40c] ss:$16 sps:$4 sm:$0xff]  }
 0x18b   :  { %v3482_v49 = vpop.f32.mrf.mxu1  ;;  %v3430_v31 = vadd.f32 %v3429_v42, %v7118_v54  ;;  %v7149_v34 = vadd.f32 %v3480_v1, %v3428_v53  ;;  %3812 = vmatpush1.bf16.msra.mxu0 %v6334_v56  ;;  %v6354_v54 = vld [vmem:[#allocation5 + $0x42c] ss:$16 sps:$4 sm:$0xff]   ;;  %v6358_v40 = vld [vmem:[#allocation5 + $0x408] ss:$16 sps:$4 sm:$0xff]  }
 0x18c   :  { %3865 = vmatpush1.bf16.msra.mxu1 %v6337_v37  ;;  %v3431_v36 = vpop.f32.mrf.mxu0  ;;  %3813 = vmatprep.subr.bf16.mxu0 %v6342_v6  ;;  %v6357_v56 = vld [vmem:[#allocation5 + $0x62c] ss:$16 sps:$4 sm:$0xff]   ;;  %v6352_v37 = vld [vmem:[#allocation5 + $0x428] ss:$16 sps:$4 sm:$0xff]  }
 0x18d   :  { %v3484_v12 = vpop.f32.mrf.mxu1  ;;  %3866 = vmatprep.subr.bf16.mxu1 %v6345_v14  ;;  %v3432_v25 = vadd.f32 %v3431_v36, %v7120_v26  ;;  %v7152_v45 = vadd.f32 %v3482_v49, %v3430_v31  ;;  %v6363_v26 = vld [vmem:[#allocation5 + $0x60c] ss:$16 sps:$4 sm:$0xff]   ;;  %v6361_v62 = vld [vmem:[#allocation5 + $0x608] ss:$16 sps:$4 sm:$0xff]  }
 0x18e   :  { %v6366_v1 = vld [vmem:[#allocation5 + $0x5ec] ss:$16 sps:$4 sm:$0xff]   ;;  %v6364_v14 = vld [vmem:[#allocation5 + $0x5e8] ss:$16 sps:$4 sm:$0xff]  }
 0x18f   :  { %v7154_v46 = vadd.f32 %v3484_v12, %v3432_v25  ;;  %3814 = vmatpush1.bf16.msra.mxu0 %v6340_v22  ;;  %v6369_v6 = vld [vmem:[#allocation5 + $0x7ec] ss:$16 sps:$4 sm:$0xff]   ;;  %v6367_v53 = vld [vmem:[#allocation5 + $0x7e8] ss:$16 sps:$4 sm:$0xff]  }
 0x190   :  { %3867 = vmatpush1.bf16.msra.mxu1 %v6343_v28  ;;  %3815 = vmatprep.subr.bf16.mxu0 %v6348_v2  ;;  %v6372_v22 = vld [vmem:[#allocation5 + $0x5cc] ss:$16 sps:$4 sm:$0xff]   ;;  %v6370_v42 = vld [vmem:[#allocation5 + $0x5c8] ss:$16 sps:$4 sm:$0xff]  }
 0x191   :  { %3868 = vmatprep.subr.bf16.mxu1 %v6351_v13  ;;  %v6375_v28 = vld [vmem:[#allocation5 + $0x7cc] ss:$16 sps:$4 sm:$0xff]   ;;  %v6373_v49 = vld [vmem:[#allocation5 + $0x7c8] ss:$16 sps:$4 sm:$0xff]  }
 0x192   :  { %v6378_v31 = vld [vmem:[#allocation5 + $0x5ac] ss:$16 sps:$4 sm:$0xff]   ;;  %v6376_v12 = vld [vmem:[#allocation5 + $0x5a8] ss:$16 sps:$4 sm:$0xff]  }
 0x193   :  { %3816 = vmatpush1.bf16.msra.mxu0 %v6346_v63  ;;  %v6381_v36 = vld [vmem:[#allocation5 + $0x7ac] ss:$16 sps:$4 sm:$0xff]   ;;  %v6379_v2 = vld [vmem:[#allocation5 + $0x7a8] ss:$16 sps:$4 sm:$0xff]  }
 0x194   :  { %3869 = vmatpush1.bf16.msra.mxu1 %v6349_v0  ;;  %3817 = vmatprep.subr.bf16.mxu0 %v6354_v54  ;;  %v6384_v13 = vld [vmem:[#allocation5 + $0x58c] ss:$16 sps:$4 sm:$0xff]   ;;  %v6382_v63 = vld [vmem:[#allocation5 + $0x588] ss:$16 sps:$4 sm:$0xff]  }
 0x195   :  { %3870 = vmatprep.subr.bf16.mxu1 %v6357_v56  ;;  %v6387_v25 = vld [vmem:[#allocation5 + $0x78c] ss:$16 sps:$4 sm:$0xff]   ;;  %v6385_v0 = vld [vmem:[#allocation5 + $0x788] ss:$16 sps:$4 sm:$0xff]  }
 0x196   :  { %v6390_v54 = vld [vmem:[#allocation5 + $0x56c] ss:$16 sps:$4 sm:$0xff]  }
 0x197   :  { %3818 = vmatpush1.bf16.msra.mxu0 %v6352_v37  ;;  %v6393_v56 = vld [vmem:[#allocation5 + $0x76c] ss:$16 sps:$4 sm:$0xff]   ;;  %v6388_v37 = vld [vmem:[#allocation5 + $0x568] ss:$16 sps:$4 sm:$0xff]  }
 0x198   :  { %3871 = vmatpush1.bf16.msra.mxu1 %v6355_v57  ;;  %3819 = vmatprep.subr.bf16.mxu0 %v6360_v43  ;;  %v6391_v57 = vld [vmem:[#allocation5 + $0x768] ss:$16 sps:$4 sm:$0xff]   ;;  %v6396_v43 = vld [vmem:[#allocation5 + $0x54c] ss:$16 sps:$4 sm:$0xff]  }
 0x199   :  { %3872 = vmatprep.subr.bf16.mxu1 %v6363_v26  ;;  %v6399_v26 = vld [vmem:[#allocation5 + $0x74c] ss:$16 sps:$4 sm:$0xff]  }
 0x19b   :  { %3820 = vmatpush1.bf16.msra.mxu0 %v6358_v40  ;;  %v6394_v40 = vld [vmem:[#allocation5 + $0x548] ss:$16 sps:$4 sm:$0xff]  }
 0x19c   :  { %3873 = vmatpush1.bf16.msra.mxu1 %v6361_v62  ;;  %3821 = vmatprep.subr.bf16.mxu0 %v6366_v1  ;;  %v6397_v62 = vld [vmem:[#allocation5 + $0x748] ss:$16 sps:$4 sm:$0xff]   ;;  %v6402_v1 = vld [vmem:[#allocation5 + $0x52c] ss:$16 sps:$4 sm:$0xff]  }
 0x19d   :  { %3874 = vmatprep.subr.bf16.mxu1 %v6369_v6  ;;  %v6405_v6 = vld [vmem:[#allocation5 + $0x72c] ss:$16 sps:$4 sm:$0xff]  }
 0x19f   :  { %3822 = vmatpush2.bf16.msra.mxu0 %v6364_v14  ;;  %v6400_v14 = vld [vmem:[#allocation5 + $0x528] ss:$16 sps:$4 sm:$0xff]  }
 0x1a0   :  { %3875 = vmatpush2.bf16.msra.mxu1 %v6367_v53  ;;  %3823 = vmatprep.subr.bf16.mxu0 %v6372_v22  ;;  %v6403_v53 = vld [vmem:[#allocation5 + $0x728] ss:$16 sps:$4 sm:$0xff]   ;;  %v6408_v22 = vld [vmem:[#allocation5 + $0x50c] ss:$16 sps:$4 sm:$0xff]  }
 0x1a1   :  { %3876 = vmatprep.subr.bf16.mxu1 %v6375_v28  ;;  %v6411_v28 = vld [vmem:[#allocation5 + $0x70c] ss:$16 sps:$4 sm:$0xff]  }
 0x1a3   :  { %3824 = vmatpush2.bf16.msra.mxu0 %v6370_v42  ;;  %v6406_v42 = vld [vmem:[#allocation5 + $0x508] ss:$16 sps:$4 sm:$0xff]  }
 0x1a4   :  { %3877 = vmatpush2.bf16.msra.mxu1 %v6373_v49  ;;  %3825 = vmatprep.subr.bf16.mxu0 %v6378_v31  ;;  %v6409_v49 = vld [vmem:[#allocation5 + $0x708] ss:$16 sps:$4 sm:$0xff]   ;;  %v6414_v31 = vld [vmem:[#allocation5 + $0x8ec] ss:$16 sps:$4 sm:$0xff]  }
 0x1a5   :  { %3878 = vmatprep.subr.bf16.mxu1 %v6381_v36  ;;  %v6417_v36 = vld [vmem:[#allocation5 + $0xaec] ss:$16 sps:$4 sm:$0xff]  }
 0x1a7   :  { %3826 = vmatpush2.bf16.msra.mxu0 %v6376_v12  ;;  %v6412_v12 = vld [vmem:[#allocation5 + $0x8e8] ss:$16 sps:$4 sm:$0xff]  }
 0x1a8   :  { %3879 = vmatpush2.bf16.msra.mxu1 %v6379_v2  ;;  %3827 = vmatprep.subr.bf16.mxu0 %v6384_v13  ;;  %v6415_v2 = vld [vmem:[#allocation5 + $0xae8] ss:$16 sps:$4 sm:$0xff]   ;;  %v6420_v13 = vld [vmem:[#allocation5 + $0x8cc] ss:$16 sps:$4 sm:$0xff]  }
 0x1a9   :  { %3880 = vmatprep.subr.bf16.mxu1 %v6387_v25  ;;  %v6423_v25 = vld [vmem:[#allocation5 + $0xacc] ss:$16 sps:$4 sm:$0xff]  }
 0x1ab   :  { %3828 = vmatpush2.bf16.msra.mxu0 %v6382_v63  ;;  %v6418_v63 = vld [vmem:[#allocation5 + $0x8c8] ss:$16 sps:$4 sm:$0xff]  }
 0x1ac   :  { %3881 = vmatpush2.bf16.msra.mxu1 %v6385_v0  ;;  %3829 = vmatprep.subr.bf16.mxu0 %v6390_v54  ;;  %v6421_v0 = vld [vmem:[#allocation5 + $0xac8] ss:$16 sps:$4 sm:$0xff]  }
 0x1ad   :  { %3882 = vmatprep.subr.bf16.mxu1 %v6393_v56 }
 0x1af   :  { %3830 = vmatpush2.bf16.msra.mxu0 %v6388_v37  ;;  %v6426_v37 = vld [vmem:[#allocation5 + $0x8ac] ss:$16 sps:$4 sm:$0xff]  }
 0x1b0   :  { %3883 = vmatpush2.bf16.msra.mxu1 %v6391_v57  ;;  %3831 = vmatprep.subr.bf16.mxu0 %v6396_v43 }
 0x1b1   :  { %3884 = vmatprep.subr.bf16.mxu1 %v6399_v26 }
 0x1b3   :  { %3832 = vmatpush2.bf16.msra.mxu0 %v6394_v40  ;;  %v6429_v40 = vld [vmem:[#allocation5 + $0xaac] ss:$16 sps:$4 sm:$0xff]  }
 0x1b4   :  { %3885 = vmatpush2.bf16.msra.mxu1 %v6397_v62  ;;  %3833 = vmatprep.subr.bf16.mxu0 %v6402_v1  ;;  %v6424_v1 = vld [vmem:[#allocation5 + $0x8a8] ss:$16 sps:$4 sm:$0xff]  }
 0x1b5   :  { %3886 = vmatprep.subr.bf16.mxu1 %v6405_v6 }
 0x1b7   :  { %3834 = vmatpush2.bf16.msra.mxu0 %v6400_v14 }
 0x1b8   :  { %3887 = vmatpush2.bf16.msra.mxu1 %v6403_v53  ;;  %3835 = vmatprep.subr.bf16.mxu0 %v6408_v22 }
 0x1b9   :  { %3888 = vmatprep.subr.bf16.mxu1 %v6411_v28  ;;  %v6435_v28 = vld [vmem:[#allocation5 + $0xa8c] ss:$16 sps:$4 sm:$0xff]  }
 0x1bb   :  { %3836 = vmatpush2.bf16.msra.mxu0 %v6406_v42 }
 0x1bc   :  { %3889 = vmatpush2.bf16.msra.mxu1 %v6409_v49  ;;  %3911 = vmatprep.subr.bf16.mxu0 %v6414_v31  ;;  %v6433_v49 = vld [vmem:[#allocation5 + $0xa88] ss:$16 sps:$4 sm:$0xff]  }
 0x1bd   :  { %3964 = vmatprep.subr.bf16.mxu1 %v6417_v36  ;;  %v6438_v36 = vld [vmem:[#allocation5 + $0x86c] ss:$16 sps:$4 sm:$0xff]  }
 0x1be   :  { %v3521_v54 = vpop.f32.mrf.mxu0  ;;  %3838 = vmatmul.mubr.bf16.vlgmr.msra.gmra.mxu0 %v7012_v47  ;;  %v6427_v47 = vld [vmem:[#allocation5 + $0xaa8] ss:$16 sps:$4 sm:$0xff]  }
 0x1bf   :  { %v3574_v56 = vpop.f32.mrf.mxu1  ;;  %3891 = vmatmul.mubr.bf16.vlgmr.msra.gmra.mxu1 %v7014_v48  ;;  %v3522_v57 = vadd.f32 %v3521_v54, %v7129_v30  ;;  %3912 = vmatpush1.bf16.msra.mxu0 %v6412_v12  ;;  %v6432_v30 = vld [vmem:[#allocation5 + $0x88c] ss:$16 sps:$4 sm:$0xff]   ;;  %v6439_v54 = vld [vmem:[#allocation5 + $0xa68] ss:$16 sps:$4 sm:$0xff]  }
 0x1c0   :  { %3965 = vmatpush1.bf16.msra.mxu1 %v6415_v2  ;;  %v7159_v43 = vpop.f32.mrf.mxu0  ;;  %3913 = vmatprep.subr.bf16.mxu0 %v6420_v13  ;;  %v6441_v12 = vld [vmem:[#allocation5 + $0xa6c] ss:$16 sps:$4 sm:$0xff]  }
 0x1c1   :  { %v7161_v26 = vpop.f32.mrf.mxu1  ;;  %3966 = vmatprep.subr.bf16.mxu1 %v6423_v25  ;;  %v7163_v62 = vadd.f32 %v3574_v56, %v3522_v57  ;;  %3847 = vmatprep.mubr.bf16.mxu0 %v7016_v58  ;;  %v6430_v58 = vld [vmem:[#allocation5 + $0x888] ss:$16 sps:$4 sm:$0xff]   ;;  %v6447_v57 = vld [vmem:[#allocation5 + $0xa4c] ss:$16 sps:$4 sm:$0xff]  }
 0x1c2   :  { %3900 = vmatprep.mubr.bf16.mxu1 %v7018_v61  ;;  %v3525_v48 = vpop.f32.mrf.mxu0 }
 0x1c3   :  { %v3578_v6 = vpop.f32.mrf.mxu1  ;;  %v3526_v14 = vadd.f32 %v3525_v48, %v7138_v52  ;;  %3914 = vmatpush1.bf16.msra.mxu0 %v6418_v63  ;;  %v6456_v48 = vld [vmem:[#allocation5 + $0x80c] ss:$16 sps:$4 sm:$0xff]  }
 0x1c4   :  { %3967 = vmatpush1.bf16.msra.mxu1 %v6421_v0  ;;  %v7168_v53 = vpop.f32.mrf.mxu0  ;;  %3915 = vmatprep.subr.bf16.mxu0 %v6426_v37  ;;  %v6436_v0 = vld [vmem:[#allocation5 + $0x868] ss:$16 sps:$4 sm:$0xff]   ;;  %v6444_v37 = vld [vmem:[#allocation5 + $0x84c] ss:$16 sps:$4 sm:$0xff]  }
 0x1c5   :  { %v7170_v22 = vpop.f32.mrf.mxu1  ;;  %3968 = vmatprep.subr.bf16.mxu1 %v6429_v40  ;;  %v7172_v42 = vadd.f32 %v3578_v6, %v3526_v14  ;;  %v6442_v40 = vld [vmem:[#allocation5 + $0x848] ss:$16 sps:$4 sm:$0xff]   ;;  %v6459_v6 = vld [vmem:[#allocation5 + $0xa0c] ss:$16 sps:$4 sm:$0xff]  }
 0x1c6   :  { %v3531_v31 = vpop.f32.mrf.mxu0  ;;  %3848 = vmatmul.mubr.bf16.gmra.mxu0 %v7024_v4  ;;  %v6457_v14 = vld [vmem:[#allocation5 + $0xa08] ss:$16 sps:$4 sm:$0xff]  }
 0x1c7   :  { %v3584_v61 = vpop.f32.mrf.mxu1  ;;  %3901 = vmatmul.mubr.bf16.gmra.mxu1 %v7026_v7  ;;  %v3532_v52 = vadd.f32 %v3531_v31, %v7144_v55  ;;  %3916 = vmatpush1.bf16.msra.mxu0 %v6424_v1  ;;  %v6445_v1 = vld [vmem:[#allocation5 + $0xa48] ss:$16 sps:$4 sm:$0xff]  }
 0x1c8   :  { %3969 = vmatpush1.bf16.msra.mxu1 %v6427_v47  ;;  %v3533_v2 = vpop.f32.mrf.mxu0  ;;  %3917 = vmatprep.subr.bf16.mxu0 %v6432_v30  ;;  %v6448_v47 = vld [vmem:[#allocation5 + $0x828] ss:$16 sps:$4 sm:$0xff]  }
 0x1c9   :  { %v3586_v13 = vpop.f32.mrf.mxu1  ;;  %3970 = vmatprep.subr.bf16.mxu1 %v6435_v28  ;;  %v3534_v25 = vadd.f32 %v3533_v2, %v7149_v34  ;;  %v7178_v63 = vadd.f32 %v3584_v61, %v3532_v52  ;;  %3943 = vmatprep.mubr.bf16.mxu0 %v7030_v19  ;;  %v6450_v19 = vld [vmem:[#allocation5 + $0x82c] ss:$16 sps:$4 sm:$0xff]   ;;  %v6454_v30 = vld [vmem:[#allocation5 + $0x808] ss:$16 sps:$4 sm:$0xff]  }
 0x1ca   :  { %3996 = vmatprep.mubr.bf16.mxu1 %v7032_v20  ;;  %v3535_v4 = vpop.f32.mrf.mxu0  ;;  %v6453_v20 = vld [vmem:[#allocation5 + $0xa2c] ss:$16 sps:$4 sm:$0xff]   ;;  %v6463_v31 = vld [vmem:[#allocation5 + $0xbe8] ss:$16 sps:$4 sm:$0xff]  }
 0x1cb   :  { %v3588_v7 = vpop.f32.mrf.mxu1  ;;  %v3536_v55 = vadd.f32 %v3535_v4, %v7152_v45  ;;  %v7183_v56 = vadd.f32 %v3586_v13, %v3534_v25  ;;  %3918 = vmatpush1.bf16.msra.mxu0 %v6430_v58  ;;  %v6451_v45 = vld [vmem:[#allocation5 + $0xa28] ss:$16 sps:$4 sm:$0xff]   ;;  %v6462_v28 = vld [vmem:[#allocation5 + $0x9ec] ss:$16 sps:$4 sm:$0xff]  }
 0x1cc   :  { %3971 = vmatpush1.bf16.msra.mxu1 %v6433_v49  ;;  %3919 = vmatprep.subr.bf16.mxu0 %v6438_v36  ;;  %v6465_v58 = vld [vmem:[#allocation5 + $0xbec] ss:$16 sps:$4 sm:$0xff]   ;;  %v6460_v49 = vld [vmem:[#allocation5 + $0x9e8] ss:$16 sps:$4 sm:$0xff]  }
 0x1cd   :  { %3972 = vmatprep.subr.bf16.mxu1 %v6441_v12  ;;  %v7185_v34 = vadd.f32 %v3588_v7, %v3536_v55  ;;  %v6468_v61 = vld [vmem:[#allocation5 + $0x9cc] ss:$16 sps:$4 sm:$0xff]   ;;  %v6466_v36 = vld [vmem:[#allocation5 + $0x9c8] ss:$16 sps:$4 sm:$0xff]  }
 0x1ce   :  { %v6471_v52 = vld [vmem:[#allocation5 + $0xbcc] ss:$16 sps:$4 sm:$0xff]   ;;  %v6469_v12 = vld [vmem:[#allocation5 + $0xbc8] ss:$16 sps:$4 sm:$0xff]  }
 0x1cf   :  { %3920 = vmatpush1.bf16.msra.mxu0 %v6436_v0  ;;  %v6474_v2 = vld [vmem:[#allocation5 + $0x9ac] ss:$16 sps:$4 sm:$0xff]   ;;  %v6472_v25 = vld [vmem:[#allocation5 + $0x9a8] ss:$16 sps:$4 sm:$0xff]  }
 0x1d0   :  { %3973 = vmatpush1.bf16.msra.mxu1 %v6439_v54  ;;  %3921 = vmatprep.subr.bf16.mxu0 %v6444_v37  ;;  %v6477_v13 = vld [vmem:[#allocation5 + $0xbac] ss:$16 sps:$4 sm:$0xff]   ;;  %v6475_v0 = vld [vmem:[#allocation5 + $0xba8] ss:$16 sps:$4 sm:$0xff]  }
 0x1d1   :  { %3974 = vmatprep.subr.bf16.mxu1 %v6447_v57  ;;  %v6480_v54 = vld [vmem:[#allocation5 + $0x98c] ss:$16 sps:$4 sm:$0xff]   ;;  %v6478_v7 = vld [vmem:[#allocation5 + $0x988] ss:$16 sps:$4 sm:$0xff]  }
 0x1d2   :  { %v6483_v4 = vld [vmem:[#allocation5 + $0xb8c] ss:$16 sps:$4 sm:$0xff]   ;;  %v6481_v55 = vld [vmem:[#allocation5 + $0xb88] ss:$16 sps:$4 sm:$0xff]  }
 0x1d3   :  { %3922 = vmatpush1.bf16.msra.mxu0 %v6442_v40  ;;  %v6486_v37 = vld [vmem:[#allocation5 + $0x96c] ss:$16 sps:$4 sm:$0xff]   ;;  %v6484_v40 = vld [vmem:[#allocation5 + $0x968] ss:$16 sps:$4 sm:$0xff]  }
 0x1d4   :  { %3975 = vmatpush1.bf16.msra.mxu1 %v6445_v1  ;;  %3923 = vmatprep.subr.bf16.mxu0 %v6450_v19  ;;  %v6489_v57 = vld [vmem:[#allocation5 + $0xb6c] ss:$16 sps:$4 sm:$0xff]   ;;  %v6487_v1 = vld [vmem:[#allocation5 + $0xb68] ss:$16 sps:$4 sm:$0xff]  }
 0x1d5   :  { %3976 = vmatprep.subr.bf16.mxu1 %v6453_v20  ;;  %v6492_v19 = vld [vmem:[#allocation5 + $0x94c] ss:$16 sps:$4 sm:$0xff]  }
 0x1d6   :  { %v6495_v20 = vld [vmem:[#allocation5 + $0xb4c] ss:$16 sps:$4 sm:$0xff]  }
 0x1d7   :  { %3924 = vmatpush1.bf16.msra.mxu0 %v6448_v47  ;;  %v6490_v47 = vld [vmem:[#allocation5 + $0x948] ss:$16 sps:$4 sm:$0xff]  }
 0x1d8   :  { %3977 = vmatpush1.bf16.msra.mxu1 %v6451_v45  ;;  %3925 = vmatprep.subr.bf16.mxu0 %v6456_v48  ;;  %v6493_v45 = vld [vmem:[#allocation5 + $0xb48] ss:$16 sps:$4 sm:$0xff]   ;;  %v6498_v48 = vld [vmem:[#allocation5 + $0x92c] ss:$16 sps:$4 sm:$0xff]  }
 0x1d9   :  { %3978 = vmatprep.subr.bf16.mxu1 %v6459_v6  ;;  %v6501_v6 = vld [vmem:[#allocation5 + $0xb2c] ss:$16 sps:$4 sm:$0xff]  }
 0x1db   :  { %3926 = vmatpush1.bf16.msra.mxu0 %v6454_v30  ;;  %v6496_v30 = vld [vmem:[#allocation5 + $0x928] ss:$16 sps:$4 sm:$0xff]  }
 0x1dc   :  { %3979 = vmatpush1.bf16.msra.mxu1 %v6457_v14  ;;  %3927 = vmatprep.subr.bf16.mxu0 %v6462_v28  ;;  %v6499_v14 = vld [vmem:[#allocation5 + $0xb28] ss:$16 sps:$4 sm:$0xff]   ;;  %v6504_v28 = vld [vmem:[#allocation5 + $0x90c] ss:$16 sps:$4 sm:$0xff]  }
 0x1dd   :  { %3980 = vmatprep.subr.bf16.mxu1 %v6465_v58  ;;  %v6507_v58 = vld [vmem:[#allocation5 + $0xb0c] ss:$16 sps:$4 sm:$0xff]  }
 0x1df   :  { %3928 = vmatpush2.bf16.msra.mxu0 %v6460_v49  ;;  %v6502_v49 = vld [vmem:[#allocation5 + $0x908] ss:$16 sps:$4 sm:$0xff]  }
 0x1e0   :  { %3981 = vmatpush2.bf16.msra.mxu1 %v6463_v31  ;;  %3929 = vmatprep.subr.bf16.mxu0 %v6468_v61  ;;  %v6505_v31 = vld [vmem:[#allocation5 + $0xb08] ss:$16 sps:$4 sm:$0xff]   ;;  %v6510_v61 = vld [vmem:[#allocation5 + $0xcec] ss:$16 sps:$4 sm:$0xff]  }
 0x1e1   :  { %3982 = vmatprep.subr.bf16.mxu1 %v6471_v52  ;;  %v6513_v52 = vld [vmem:[#allocation5 + $0xeec] ss:$16 sps:$4 sm:$0xff]  }
 0x1e3   :  { %3930 = vmatpush2.bf16.msra.mxu0 %v6466_v36  ;;  %v6508_v36 = vld [vmem:[#allocation5 + $0xce8] ss:$16 sps:$4 sm:$0xff]  }
 0x1e4   :  { %3983 = vmatpush2.bf16.msra.mxu1 %v6469_v12  ;;  %3931 = vmatprep.subr.bf16.mxu0 %v6474_v2  ;;  %v6511_v12 = vld [vmem:[#allocation5 + $0xee8] ss:$16 sps:$4 sm:$0xff]   ;;  %v3537_v2 = vpop.f32.mrf.mxu0 }
 0x1e5   :  { %3984 = vmatprep.subr.bf16.mxu1 %v6477_v13  ;;  %v3590_v13 = vpop.f32.mrf.mxu1 }
 0x1e7   :  { %3932 = vmatpush2.bf16.msra.mxu0 %v6472_v25  ;;  %v6516_v25 = vld [vmem:[#allocation5 + $0xccc] ss:$16 sps:$4 sm:$0xff]  }
 0x1e8   :  { %3985 = vmatpush2.bf16.msra.mxu1 %v6475_v0  ;;  %3933 = vmatprep.subr.bf16.mxu0 %v6480_v54  ;;  %v6519_v0 = vld [vmem:[#allocation5 + $0xecc] ss:$16 sps:$4 sm:$0xff]  }
 0x1e9   :  { %3986 = vmatprep.subr.bf16.mxu1 %v6483_v4 }
 0x1eb   :  { %3934 = vmatpush2.bf16.msra.mxu0 %v6478_v7 }
 0x1ec   :  { %3987 = vmatpush2.bf16.msra.mxu1 %v6481_v55  ;;  %3935 = vmatprep.subr.bf16.mxu0 %v6486_v37  ;;  %v6514_v55 = vld [vmem:[#allocation5 + $0xcc8] ss:$16 sps:$4 sm:$0xff]  }
 0x1ed   :  { %3988 = vmatprep.subr.bf16.mxu1 %v6489_v57  ;;  %v6517_v37 = vld [vmem:[#allocation5 + $0xec8] ss:$16 sps:$4 sm:$0xff]  }
 0x1ef   :  { %3936 = vmatpush2.bf16.msra.mxu0 %v6484_v40 }
 0x1f0   :  { %3989 = vmatpush2.bf16.msra.mxu1 %v6487_v1  ;;  %3937 = vmatprep.subr.bf16.mxu0 %v6492_v19  ;;  %v6522_v1 = vld [vmem:[#allocation5 + $0xcac] ss:$16 sps:$4 sm:$0xff]  }
 0x1f1   :  { %3990 = vmatprep.subr.bf16.mxu1 %v6495_v20  ;;  %v6525_v19 = vld [vmem:[#allocation5 + $0xeac] ss:$16 sps:$4 sm:$0xff]  }
 0x1f3   :  { %3938 = vmatpush2.bf16.msra.mxu0 %v6490_v47  ;;  %v6520_v47 = vld [vmem:[#allocation5 + $0xca8] ss:$16 sps:$4 sm:$0xff]  }
 0x1f4   :  { %3991 = vmatpush2.bf16.msra.mxu1 %v6493_v45  ;;  %3939 = vmatprep.subr.bf16.mxu0 %v6498_v48  ;;  %v6523_v45 = vld [vmem:[#allocation5 + $0xea8] ss:$16 sps:$4 sm:$0xff]  }
 0x1f5   :  { %3992 = vmatprep.subr.bf16.mxu1 %v6501_v6 }
 0x1f7   :  { %3940 = vmatpush2.bf16.msra.mxu0 %v6496_v30  ;;  %v6528_v30 = vld [vmem:[#allocation5 + $0xc8c] ss:$16 sps:$4 sm:$0xff]  }
 0x1f8   :  { %3993 = vmatpush2.bf16.msra.mxu1 %v6499_v14  ;;  %3941 = vmatprep.subr.bf16.mxu0 %v6504_v28  ;;  %v6531_v14 = vld [vmem:[#allocation5 + $0xe8c] ss:$16 sps:$4 sm:$0xff]  }
 0x1f9   :  { %3994 = vmatprep.subr.bf16.mxu1 %v6507_v58 }
 0x1fb   :  { %3942 = vmatpush2.bf16.msra.mxu0 %v6502_v49 }
 0x1fc   :  { %3995 = vmatpush2.bf16.msra.mxu1 %v6505_v31  ;;  %4017 = vmatprep.subr.bf16.mxu0 %v6510_v61  ;;  %v6526_v61 = vld [vmem:[#allocation5 + $0xc88] ss:$16 sps:$4 sm:$0xff]  }
 0x1fd   :  { %4070 = vmatprep.subr.bf16.mxu1 %v6513_v52  ;;  %v6529_v52 = vld [vmem:[#allocation5 + $0xe88] ss:$16 sps:$4 sm:$0xff]  }
 0x1fe   :  { %v3627_v54 = vpop.f32.mrf.mxu0  ;;  %3944 = vmatmul.mubr.bf16.vlgmr.msra.gmra.mxu0 %v7036_v32 }
 0x1ff   :  { %v3680_v4 = vpop.f32.mrf.mxu1  ;;  %3997 = vmatmul.mubr.bf16.vlgmr.msra.gmra.mxu1 %v7038_v33  ;;  %v3628_v7 = vadd.f32 %v3627_v54, %v7163_v62  ;;  %4018 = vmatpush1.bf16.msra.mxu0 %v6508_v36 }
 0x200   :  { %4071 = vmatpush1.bf16.msra.mxu1 %v6511_v12  ;;  %v7190_v57 = vpop.f32.mrf.mxu0  ;;  %4019 = vmatprep.subr.bf16.mxu0 %v6516_v25  ;;  %v6534_v25 = vld [vmem:[#allocation5 + $0xc6c] ss:$16 sps:$4 sm:$0xff]  }
 0x201   :  { %v7192_v40 = vpop.f32.mrf.mxu1  ;;  %4072 = vmatprep.subr.bf16.mxu1 %v6519_v0  ;;  %3953 = vmatprep.mubr.bf16.mxu0 %v7040_v41  ;;  %v3681_v20 = vadd.f32 %v3680_v4, %v3628_v7  ;;  %v6537_v0 = vld [vmem:[#allocation5 + $0xe6c] ss:$16 sps:$4 sm:$0xff]   ;;  %v6532_v7 = vld [vmem:[#allocation5 + $0xc68] ss:$16 sps:$4 sm:$0xff]  }
 0x202   :  { %4006 = vmatprep.mubr.bf16.mxu1 %v7042_v44  ;;  %v3631_v32 = vpop.f32.mrf.mxu0 }
 0x203   :  { %v3684_v33 = vpop.f32.mrf.mxu1  ;;  %v3632_v62 = vadd.f32 %v3631_v32, %v7172_v42  ;;  %4020 = vmatpush1.bf16.msra.mxu0 %v6514_v55  ;;  %v3538_v42 = vadd.f32 %v3537_v2, %v7154_v46  ;;  %v4123_v58 = vmax.f32 %v3681_v20, 0.0  ;;  %v6535_v55 = vld [vmem:[#allocation5 + $0xe68] ss:$16 sps:$4 sm:$0xff]  }
 0x204   :  { %4073 = vmatpush1.bf16.msra.mxu1 %v6517_v37  ;;  %v7197_v48 = vpop.f32.mrf.mxu0  ;;  %4021 = vmatprep.subr.bf16.mxu0 %v6522_v1 }
 0x205   :  { %v7199_v6 = vpop.f32.mrf.mxu1  ;;  %4074 = vmatprep.subr.bf16.mxu1 %v6525_v19  ;;  %v3685_v41 = vadd.f32 %v3684_v33, %v3632_v62  ;;  %v3591_v2 = vadd.f32 %v3590_v13, %v3538_v42  ;;  %v6540_v19 = vld [vmem:[#allocation5 + $0xc4c] ss:$16 sps:$4 sm:$0xff]   ;;  %v6538_v13 = vld [vmem:[#allocation5 + $0xc48] ss:$16 sps:$4 sm:$0xff]  }
 0x206   :  { %v3637_v28 = vpop.f32.mrf.mxu0  ;;  %3954 = vmatmul.mubr.bf16.gmra.mxu0 %v7048_v59  ;;  %v6547_v42 = vld [vmem:[#allocation5 + $0xe28] ss:$16 sps:$4 sm:$0xff]  }
 0x207   :  { %v3690_v44 = vpop.f32.mrf.mxu1  ;;  %4007 = vmatmul.mubr.bf16.gmra.mxu1 %v7050_v60  ;;  %v4127_v49 = vmax.f32 %v3685_v41, 0.0  ;;  %v3638_v31 = vadd.f32 %v3637_v28, %v7178_v63  ;;  %4022 = vmatpush1.bf16.msra.mxu0 %v6520_v47  ;;  %v6546_v47 = vld [vmem:[#allocation5 + $0xc2c] ss:$16 sps:$4 sm:$0xff]  }
 0x208   :  { %4075 = vmatpush1.bf16.msra.mxu1 %v6523_v45  ;;  %v3639_v36 = vpop.f32.mrf.mxu0  ;;  %4023 = vmatprep.subr.bf16.mxu0 %v6528_v30  ;;  %v6549_v45 = vld [vmem:[#allocation5 + $0xe2c] ss:$16 sps:$4 sm:$0xff]  }
 0x209   :  { %v3692_v12 = vpop.f32.mrf.mxu1  ;;  %4076 = vmatprep.subr.bf16.mxu1 %v6531_v14  ;;  %v7205_v59 = vpack.c.bf16 %v4127_v49, %v4123_v58  ;;  %v3640_v60 = vadd.f32 %v3639_v36, %v7183_v56  ;;  %4049 = vmatprep.mubr.bf16.mxu0 %v7052_v8  ;;  %v3691_v54 = vadd.f32 %v3690_v44, %v3638_v31  ;;  %v6543_v56 = vld [vmem:[#allocation5 + $0xe4c] ss:$16 sps:$4 sm:$0xff]   ;;  %v6544_v44 = vld [vmem:[#allocation5 + $0xc28] ss:$16 sps:$4 sm:$0xff]  }
 0x20a   :  { %4102 = vmatprep.mubr.bf16.mxu1 %v7054_v9  ;;  %v3641_v46 = vpop.f32.mrf.mxu0  ;;  %v6552_v58 = vld [vmem:[#allocation5 + $0xc0c] ss:$16 sps:$4 sm:$0xff]   ;;  %v6550_v31 = vld [vmem:[#allocation5 + $0xc08] ss:$16 sps:$4 sm:$0xff]  }
 0x20b   :  { %v3694_v63 = vpop.f32.mrf.mxu1  ;;  %v3642_v4 = vadd.f32 %v3641_v46, %v7185_v34  ;;  %4024 = vmatpush1.bf16.msra.mxu0 %v6526_v61  ;;  %v3693_v32 = vadd.f32 %v3692_v12, %v3640_v60  ;;  %v4131_v9 = vmax.f32 %v3691_v54, 0.0  ;;  %v6541_v34 = vld [vmem:[#allocation5 + $0xe48] ss:$16 sps:$4 sm:$0xff]   ;;  %v6555_v49 = vld [vmem:[#allocation5 + $0xe0c] ss:$16 sps:$4 sm:$0xff]  }
 0x20c   :  { %4077 = vmatpush1.bf16.msra.mxu1 %v6529_v52  ;;  %v3643_v37 = vpop.f32.mrf.mxu0  ;;  %4025 = vmatprep.subr.bf16.mxu0 %v6534_v25  ;;  %v6553_v61 = vld [vmem:[#allocation5 + $0xe08] ss:$16 sps:$4 sm:$0xff]   ;;  %v6558_v52 = vld [vmem:[#allocation5 + $0xdec] ss:$16 sps:$4 sm:$0xff]  }
 0x20d   :  { %v3696_v1 = vpop.f32.mrf.mxu1  ;;  %4078 = vmatprep.subr.bf16.mxu1 %v6537_v0  ;;  %v3644_v8 = vadd.f32 %v3643_v37, %v3591_v2  ;;  %v3695_v33 = vadd.f32 %v3694_v63, %v3642_v4  ;;  %v4132_v30 = vmax.f32 %v3693_v32, 0.0  ;;  %v6561_v36 = vld [vmem:[#allocation5 + $0xfec] ss:$16 sps:$4 sm:$0xff]   ;;  %v6556_v12 = vld [vmem:[#allocation5 + $0xde8] ss:$16 sps:$4 sm:$0xff]  }
 0x20e   :  { %v6559_v25 = vld [vmem:[#allocation5 + $0xfe8] ss:$16 sps:$4 sm:$0xff]   ;;  %v6564_v0 = vld [vmem:[#allocation5 + $0xdcc] ss:$16 sps:$4 sm:$0xff]  }
 0x20f   :  { %v4135_v20 = vmax.f32 %v3695_v33, 0.0  ;;  %v3697_v62 = vadd.f32 %v3696_v1, %v3644_v8  ;;  %4026 = vmatpush1.bf16.msra.mxu0 %v6532_v7  ;;  %v6567_v60 = vld [vmem:[#allocation5 + $0xfcc] ss:$16 sps:$4 sm:$0xff]   ;;  %v6562_v46 = vld [vmem:[#allocation5 + $0xdc8] ss:$16 sps:$4 sm:$0xff]   ;;  %v3316_v1 = vadd.f32 %v7101_v11, %v7106_v16  ;;  %v3312_v33 = vadd.f32 %v7081_v18, %v7106_v16 }
 0x210   :  { %4079 = vmatpush1.bf16.msra.mxu1 %v6535_v55  ;;  %4027 = vmatprep.subr.bf16.mxu0 %v6540_v19  ;;  %v6565_v63 = vld [vmem:[#allocation5 + $0xfc8] ss:$16 sps:$4 sm:$0xff]   ;;  %v6570_v2 = vld [vmem:[#allocation5 + $0xdac] ss:$16 sps:$4 sm:$0xff]  }
 0x211   :  { %4080 = vmatprep.subr.bf16.mxu1 %v6543_v56  ;;  %v7211_v14 = vpack.c.bf16 %v4135_v20, %v4131_v9  ;;  %v4136_v41 = vmax.f32 %v3697_v62, 0.0  ;;  %v6573_v54 = vld [vmem:[#allocation5 + $0xfac] ss:$16 sps:$4 sm:$0xff]   ;;  %v6568_v4 = vld [vmem:[#allocation5 + $0xda8] ss:$16 sps:$4 sm:$0xff]   ;;  %v3369_v9 = vadd.f32 %v7109_v24, %v3316_v1 }
 0x212   :  { %v6571_v7 = vld [vmem:[#allocation5 + $0xfa8] ss:$16 sps:$4 sm:$0xff]   ;;  %v6576_v55 = vld [vmem:[#allocation5 + $0xd8c] ss:$16 sps:$4 sm:$0xff]  }
 0x213   :  { %v7213_v28 = vpack.c.bf16 %v4136_v41, %v4132_v30  ;;  %4028 = vmatpush1.bf16.msra.mxu0 %v6538_v13  ;;  %v6579_v37 = vld [vmem:[#allocation5 + $0xf8c] ss:$16 sps:$4 sm:$0xff]   ;;  %v6574_v19 = vld [vmem:[#allocation5 + $0xd88] ss:$16 sps:$4 sm:$0xff]  }
 0x214   :  { %4081 = vmatpush1.bf16.msra.mxu1 %v6541_v34  ;;  %4029 = vmatprep.subr.bf16.mxu0 %v6546_v47  ;;  %v6577_v56 = vld [vmem:[#allocation5 + $0xf88] ss:$16 sps:$4 sm:$0xff]   ;;  %v6582_v32 = vld [vmem:[#allocation5 + $0xd6c] ss:$16 sps:$4 sm:$0xff]   ;;  %v3365_v34 = vadd.f32 %v7083_v21, %v3312_v33  ;;  %v3422_v47 = vadd.f32 %v7134_v38, %v3369_v9  ;;  %v6712_v33 = vld [vmem:[#allocation8 + $0x260] ss:$16 sps:$4 sm:$0xff]  }
 0x215   :  { %4082 = vmatprep.subr.bf16.mxu1 %v6549_v45  ;;  %v6585_v8 = vld [vmem:[#allocation5 + $0xf6c] ss:$16 sps:$4 sm:$0xff]   ;;  %v6580_v20 = vld [vmem:[#allocation5 + $0xd68] ss:$16 sps:$4 sm:$0xff]   ;;  %v6628_v9 = vld [vmem:[#allocation8 + $0x1e0] ss:$16 sps:$4 sm:$0xff]  }
 0x216   :  { %v6583_v62 = vld [vmem:[#allocation5 + $0xf68] ss:$16 sps:$4 sm:$0xff]   ;;  %v6588_v11 = vld [vmem:[#allocation5 + $0xd4c] ss:$16 sps:$4 sm:$0xff]   ;;  %v3418_v45 = vadd.f32 %v7125_v15, %v3365_v34  ;;  %v3475_v41 = vadd.f32 %v7136_v39, %v3422_v47 }
 0x217   :  { %4030 = vmatpush1.bf16.msra.mxu0 %v6544_v44  ;;  %v6591_v13 = vld [vmem:[#allocation5 + $0xf4c] ss:$16 sps:$4 sm:$0xff]   ;;  %v6586_v30 = vld [vmem:[#allocation5 + $0xd48] ss:$16 sps:$4 sm:$0xff]  }
 0x218   :  { %4083 = vmatpush1.bf16.msra.mxu1 %v6547_v42  ;;  %4031 = vmatprep.subr.bf16.mxu0 %v6552_v58  ;;  %v6589_v18 = vld [vmem:[#allocation5 + $0xf48] ss:$16 sps:$4 sm:$0xff]   ;;  %v6594_v16 = vld [vmem:[#allocation5 + $0xd2c] ss:$16 sps:$4 sm:$0xff]   ;;  %v3471_v44 = vadd.f32 %v7127_v17, %v3418_v45  ;;  %v3528_v42 = vadd.f32 %v7168_v53, %v3475_v41  ;;  %v6718_v45 = vld [vmem:[#allocation8 + $0x220] ss:$16 sps:$4 sm:$0xff]  }
 0x219   :  { %4084 = vmatprep.subr.bf16.mxu1 %v6555_v49  ;;  %v6597_v24 = vld [vmem:[#allocation5 + $0xf2c] ss:$16 sps:$4 sm:$0xff]   ;;  %v6592_v21 = vld [vmem:[#allocation5 + $0xd28] ss:$16 sps:$4 sm:$0xff]   ;;  %v6637_v41 = vld [vmem:[#allocation8 + $0x180] ss:$16 sps:$4 sm:$0xff]  }
 0x21a   :  { %v6595_v38 = vld [vmem:[#allocation5 + $0xf28] ss:$16 sps:$4 sm:$0xff]   ;;  %v6600_v15 = vld [vmem:[#allocation5 + $0xd0c] ss:$16 sps:$4 sm:$0xff]   ;;  %v3524_v49 = vadd.f32 %v7159_v43, %v3471_v44 }
 0x21b   :  { %4032 = vmatpush1.bf16.msra.mxu0 %v6550_v31  ;;  %v6603_v58 = vld [vmem:[#allocation5 + $0xf0c] ss:$16 sps:$4 sm:$0xff]   ;;  %v3581_v31 = vadd.f32 %v7170_v22, %v3528_v42  ;;  %v6601_v39 = vld [vmem:[#allocation5 + $0xf08] ss:$16 sps:$4 sm:$0xff]  }
 0x21c   :  { %4085 = vmatpush1.bf16.msra.mxu1 %v6553_v61  ;;  %4033 = vmatprep.subr.bf16.mxu0 %v6558_v52  ;;  %v6598_v61 = vld [vmem:[#allocation5 + $0xd08] ss:$16 sps:$4 sm:$0xff]   ;;  %v3577_v53 = vadd.f32 %v7161_v26, %v3524_v49  ;;  %v6727_v49 = vld [vmem:[#allocation8 + $0x3c0] ss:$16 sps:$4 sm:$0xff]  }
 0x21d   :  { %4086 = vmatprep.subr.bf16.mxu1 %v6561_v36  ;;  %v6606_v17 = vld [vmem:[#allocation8 + $0xe4] ss:$16 sps:$4 sm:$0xff]   ;;  %v3634_v52 = vadd.f32 %v7197_v48, %v3581_v31  ;;  %v6643_v31 = vld [vmem:[#allocation8 + $0x140] ss:$16 sps:$4 sm:$0xff]  }
 0x21e   :  { %v3630_v36 = vadd.f32 %v7190_v57, %v3577_v53  ;;  %v6609_v43 = vld [vmem:[#allocation8 + $0xc4] ss:$16 sps:$4 sm:$0xff]   ;;  %v6646_v53 = vld [vmem:[#allocation8 + $0x120] ss:$16 sps:$4 sm:$0xff]  }
 0x21f   :  { %4034 = vmatpush2.bf16.msra.mxu0 %v6556_v12  ;;  %v6604_v12 = vld [vmem:[#allocation8 + $0xe0] ss:$16 sps:$4 sm:$0xff]   ;;  %v3687_v22 = vadd.f32 %v7199_v6, %v3634_v52  ;;  %v6612_v26 = vld [vmem:[#allocation8 + $0xa4] ss:$16 sps:$4 sm:$0xff]  }
 0x220   :  { %4087 = vmatpush2.bf16.msra.mxu1 %v6559_v25  ;;  %4035 = vmatprep.subr.bf16.mxu0 %v6564_v0  ;;  %v3683_v25 = vadd.f32 %v7192_v40, %v3630_v36  ;;  %v6607_v0 = vld [vmem:[#allocation8 + $0xc0] ss:$16 sps:$4 sm:$0xff]   ;;  %v6615_v6 = vld [vmem:[#allocation8 + $0x84] ss:$16 sps:$4 sm:$0xff]  }
 0x221   :  { %4088 = vmatprep.subr.bf16.mxu1 %v6567_v60  ;;  %v4128_v57 = vmax.f32 %v3687_v22, 0.0  ;;  %v6610_v60 = vld [vmem:[#allocation8 + $0xa0] ss:$16 sps:$4 sm:$0xff]   ;;  %v6621_v40 = vld [vmem:[#allocation8 + $0x44] ss:$16 sps:$4 sm:$0xff]  }
 0x222   :  { %v4124_v48 = vmax.f32 %v3683_v25, 0.0  ;;  %v6627_v1 = vld [vmem:[#allocation8 + $0x4] ss:$16 sps:$4 sm:$0xff]   ;;  %v6654_v25 = vld [vmem:[#allocation8 + $0xec] ss:$16 sps:$4 sm:$0xff]  }
 0x223   :  { %4036 = vmatpush2.bf16.msra.mxu0 %v6562_v46  ;;  %v6720_v34 = vld [vmem:[#allocation8 + $0x224] ss:$16 sps:$4 sm:$0xff]  }
 0x224   :  { %4089 = vmatpush2.bf16.msra.mxu1 %v6565_v63  ;;  %4037 = vmatprep.subr.bf16.mxu0 %v6570_v2  ;;  %v7237_v46 = vpack.c.bf16 %v4128_v57, %v4124_v48  ;;  %v6700_v63 = vld [vmem:[#allocation8 + $0x2e0] ss:$16 sps:$4 sm:$0xff]   ;;  %v6636_v47 = vld [vmem:[#allocation8 + $0x1a4] ss:$16 sps:$4 sm:$0xff]   ;;  %v6657_v57 = vld [vmem:[#allocation8 + $0xcc] ss:$16 sps:$4 sm:$0xff]  }
 0x225   :  { %4090 = vmatprep.subr.bf16.mxu1 %v6573_v54  ;;  %v6619_v2 = vld [vmem:[#allocation8 + $0x40] ss:$16 sps:$4 sm:$0xff]   ;;  %v6726_v44 = vld [vmem:[#allocation8 + $0x3e4] ss:$16 sps:$4 sm:$0xff]   ;;  %v6655_v48 = vld [vmem:[#allocation8 + $0xc8] ss:$16 sps:$4 sm:$0xff]  }
 0x226   :  { %v6703_v54 = vld [vmem:[#allocation8 + $0x2c0] ss:$16 sps:$4 sm:$0xff]   ;;  %v6642_v42 = vld [vmem:[#allocation8 + $0x164] ss:$16 sps:$4 sm:$0xff]  }
 0x227   :  { %4038 = vmatpush2.bf16.msra.mxu0 %v6568_v4  ;;  %v6708_v4 = vld [vmem:[#allocation8 + $0x2a4] ss:$16 sps:$4 sm:$0xff]  }
 0x228   :  { %4091 = vmatpush2.bf16.msra.mxu1 %v6571_v7  ;;  %4039 = vmatprep.subr.bf16.mxu0 %v6576_v55  ;;  %v6706_v7 = vld [vmem:[#allocation8 + $0x2a0] ss:$16 sps:$4 sm:$0xff]   ;;  %v6735_v52 = vld [vmem:[#allocation8 + $0x384] ss:$16 sps:$4 sm:$0xff]  }
 0x229   :  { %4092 = vmatprep.subr.bf16.mxu1 %v6579_v37  ;;  %v6622_v55 = vld [vmem:[#allocation8 + $0x20] ss:$16 sps:$4 sm:$0xff]   ;;  %v6711_v37 = vld [vmem:[#allocation8 + $0x284] ss:$16 sps:$4 sm:$0xff]  }
 0x22a   :  { %v6651_v36 = vld [vmem:[#allocation8 + $0x104] ss:$16 sps:$4 sm:$0xff]  }
 0x22b   :  { %4040 = vmatpush2.bf16.msra.mxu0 %v6574_v19  ;;  %v6709_v19 = vld [vmem:[#allocation8 + $0x280] ss:$16 sps:$4 sm:$0xff]   ;;  %v6738_v22 = vld [vmem:[#allocation8 + $0x364] ss:$16 sps:$4 sm:$0xff]  }
 0x22c   :  { %4093 = vmatpush2.bf16.msra.mxu1 %v6577_v56  ;;  %4041 = vmatprep.subr.bf16.mxu0 %v6582_v32  ;;  %v6625_v56 = vld [vmem:[#allocation8] ss:$16 sps:$4 sm:$0xff]   ;;  %v6714_v32 = vld [vmem:[#allocation8 + $0x264] ss:$16 sps:$4 sm:$0xff]  }
 0x22d   :  { %4094 = vmatprep.subr.bf16.mxu1 %v6585_v8  ;;  %v6630_v8 = vld [vmem:[#allocation8 + $0x1e4] ss:$16 sps:$4 sm:$0xff]  }
 0x22f   :  { %4042 = vmatpush2.bf16.msra.mxu0 %v6580_v20  ;;  %v6717_v20 = vld [vmem:[#allocation8 + $0x244] ss:$16 sps:$4 sm:$0xff]  }
 0x230   :  { %4095 = vmatpush2.bf16.msra.mxu1 %v6583_v62  ;;  %4043 = vmatprep.subr.bf16.mxu0 %v6588_v11  ;;  %v6633_v62 = vld [vmem:[#allocation8 + $0x1c4] ss:$16 sps:$4 sm:$0xff]   ;;  %v6715_v11 = vld [vmem:[#allocation8 + $0x240] ss:$16 sps:$4 sm:$0xff]  }
 0x231   :  { %4096 = vmatprep.subr.bf16.mxu1 %v6591_v13  ;;  %v6631_v13 = vld [vmem:[#allocation8 + $0x1c0] ss:$16 sps:$4 sm:$0xff]  }
 0x233   :  { %4044 = vmatpush2.bf16.msra.mxu0 %v6586_v30  ;;  %v6634_v30 = vld [vmem:[#allocation8 + $0x1a0] ss:$16 sps:$4 sm:$0xff]  }
 0x234   :  { %4097 = vmatpush2.bf16.msra.mxu1 %v6589_v18  ;;  %4045 = vmatprep.subr.bf16.mxu0 %v6594_v16  ;;  %v6723_v18 = vld [vmem:[#allocation8 + $0x204] ss:$16 sps:$4 sm:$0xff]  }
 0x235   :  { %4098 = vmatprep.subr.bf16.mxu1 %v6597_v24  ;;  %v6639_v16 = vld [vmem:[#allocation8 + $0x184] ss:$16 sps:$4 sm:$0xff]   ;;  %v6721_v24 = vld [vmem:[#allocation8 + $0x200] ss:$16 sps:$4 sm:$0xff]  }
 0x237   :  { %4046 = vmatpush2.bf16.msra.mxu0 %v6592_v21  ;;  %v6724_v21 = vld [vmem:[#allocation8 + $0x3e0] ss:$16 sps:$4 sm:$0xff]  }
 0x238   :  { %4099 = vmatpush2.bf16.msra.mxu1 %v6595_v38  ;;  %4047 = vmatprep.subr.bf16.mxu0 %v6600_v15  ;;  %v6640_v38 = vld [vmem:[#allocation8 + $0x160] ss:$16 sps:$4 sm:$0xff]   ;;  %v6729_v15 = vld [vmem:[#allocation8 + $0x3c4] ss:$16 sps:$4 sm:$0xff]  }
 0x239   :  { %4100 = vmatprep.subr.bf16.mxu1 %v6603_v58  ;;  %v6645_v58 = vld [vmem:[#allocation8 + $0x144] ss:$16 sps:$4 sm:$0xff]  }
 0x23b   :  { %4048 = vmatpush2.bf16.msra.mxu0 %v6598_v61  ;;  %v6732_v61 = vld [vmem:[#allocation8 + $0x3a4] ss:$16 sps:$4 sm:$0xff]  }
 0x23c   :  { %4101 = vmatpush2.bf16.msra.mxu1 %v6601_v39  ;;  %4937 = vmatprep.subr.bf16.mxu0 %v6606_v17  ;;  %v6648_v39 = vld [vmem:[#allocation8 + $0x124] ss:$16 sps:$4 sm:$0xff]   ;;  %v6730_v17 = vld [vmem:[#allocation8 + $0x3a0] ss:$16 sps:$4 sm:$0xff]  }
 0x23e   :  { %4050 = vmatmul.mubr.bf16.vlgmr.msra.gmra.mxu0 %v7065_v50  ;;  %v6613_v50 = vld [vmem:[#allocation8 + $0x80] ss:$16 sps:$4 sm:$0xff]  }
 0x23f   :  { %4103 = vmatmul.mubr.bf16.vlgmr.msra.gmra.mxu1 %v7067_v51  ;;  %4938 = vmatpush1.bf16.msra.mxu0 %v6604_v12  ;;  %v6618_v51 = vld [vmem:[#allocation8 + $0x64] ss:$16 sps:$4 sm:$0xff]   ;;  %v6733_v12 = vld [vmem:[#allocation8 + $0x380] ss:$16 sps:$4 sm:$0xff]  }
 0x240   :  { %4059 = vmatprep.mubr.bf16.mxu0 %v7074_v3  ;;  %4939 = vmatprep.subr.bf16.mxu0 %v6609_v43  ;;  %v6616_v3 = vld [vmem:[#allocation8 + $0x60] ss:$16 sps:$4 sm:$0xff]  }
 0x241   :  { %4112 = vmatprep.mubr.bf16.mxu1 %v7076_v10  ;;  %v6702_v10 = vld [vmem:[#allocation8 + $0x2e4] ss:$16 sps:$4 sm:$0xff]   ;;  %v6649_v43 = vld [vmem:[#allocation8 + $0x100] ss:$16 sps:$4 sm:$0xff]  }
 0x242   :  { %4990 = vmatprep.subr.bf16.mxu1 %v6702_v10  ;;  %v6663_v10 = vld [vmem:[#allocation8 + $0x8c] ss:$16 sps:$4 sm:$0xff]  }
 0x243   :  { %4940 = vmatpush1.bf16.msra.mxu0 %v6607_v0  ;;  %4991 = vmatpush1.bf16.msra.mxu1 %v6700_v63  ;;  %v6736_v0 = vld [vmem:[#allocation8 + $0x360] ss:$16 sps:$4 sm:$0xff]   ;;  %v6661_v63 = vld [vmem:[#allocation8 + $0x88] ss:$16 sps:$4 sm:$0xff]  }
 0x244   :  { %4941 = vmatprep.subr.bf16.mxu0 %v6612_v26  ;;  %v6652_v26 = vld [vmem:[#allocation8 + $0xe8] ss:$16 sps:$4 sm:$0xff]  }
 0x246   :  { %4060 = vmatmul.mubr.bf16.gmra.mxu0 %v7089_v27  ;;  %v6705_v27 = vld [vmem:[#allocation8 + $0x2c4] ss:$16 sps:$4 sm:$0xff]  }
 0x247   :  { %4113 = vmatmul.mubr.bf16.gmra.mxu1 %v7091_v29  ;;  %4942 = vmatpush1.bf16.msra.mxu0 %v6610_v60  ;;  %v6624_v29 = vld [vmem:[#allocation8 + $0x24] ss:$16 sps:$4 sm:$0xff]  }
 0x248   :  { %4969 = vmatprep.mubr.bf16.mxu0 %v7237_v46  ;;  %4943 = vmatprep.subr.bf16.mxu0 %v6615_v6  ;;  %v6741_v60 = vld [vmem:[#allocation8 + $0x344] ss:$16 sps:$4 sm:$0xff]   ;;  %v6660_v6 = vld [vmem:[#allocation8 + $0xac] ss:$16 sps:$4 sm:$0xff]  }
 0x249   :  { %4992 = vmatprep.subr.bf16.mxu1 %v6705_v27  ;;  %v6745_v27 = vld [vmem:[#allocation8 + $0x300] ss:$16 sps:$4 sm:$0xff]  }
 0x24a   :  { %4993 = vmatpush1.bf16.msra.mxu1 %v6703_v54  ;;  %v6666_v54 = vld [vmem:[#allocation8 + $0x6c] ss:$16 sps:$4 sm:$0xff]  }
 0x24b   :  { %4944 = vmatpush1.bf16.msra.mxu0 %v6613_v50  ;;  %4994 = vmatprep.subr.bf16.mxu1 %v6708_v4  ;;  %v6739_v50 = vld [vmem:[#allocation8 + $0x340] ss:$16 sps:$4 sm:$0xff]   ;;  %v6750_v4 = vld [vmem:[#allocation8 + $0x2ec] ss:$16 sps:$4 sm:$0xff]  }
 0x24c   :  { %4945 = vmatprep.subr.bf16.mxu0 %v6618_v51  ;;  %v6658_v51 = vld [vmem:[#allocation8 + $0xa8] ss:$16 sps:$4 sm:$0xff]  }
 0x24e   :  { %4995 = vmatpush1.bf16.msra.mxu1 %v6706_v7  ;;  %v6669_v7 = vld [vmem:[#allocation8 + $0x4c] ss:$16 sps:$4 sm:$0xff]  }
 0x24f   :  { %4946 = vmatpush1.bf16.msra.mxu0 %v6616_v3  ;;  %4996 = vmatprep.subr.bf16.mxu1 %v6711_v37  ;;  %v6744_v3 = vld [vmem:[#allocation8 + $0x324] ss:$16 sps:$4 sm:$0xff]   ;;  %v6672_v37 = vld [vmem:[#allocation8 + $0x2c] ss:$16 sps:$4 sm:$0xff]  }
 0x250   :  { %4947 = vmatprep.subr.bf16.mxu0 %v6621_v40  ;;  %v6742_v40 = vld [vmem:[#allocation8 + $0x320] ss:$16 sps:$4 sm:$0xff]  }
 0x252   :  { %4997 = vmatpush1.bf16.msra.mxu1 %v6709_v19  ;;  %v6673_v19 = vld [vmem:[#allocation8 + $0x8] ss:$16 sps:$4 sm:$0xff]  }
 0x253   :  { %4948 = vmatpush1.bf16.msra.mxu0 %v6619_v2  ;;  %4998 = vmatprep.subr.bf16.mxu1 %v6714_v32  ;;  %v6747_v2 = vld [vmem:[#allocation8 + $0x304] ss:$16 sps:$4 sm:$0xff]   ;;  %v6676_v32 = vld [vmem:[#allocation8 + $0x1e8] ss:$16 sps:$4 sm:$0xff]  }
 0x254   :  { %4949 = vmatprep.subr.bf16.mxu0 %v6624_v29  ;;  %v6664_v29 = vld [vmem:[#allocation8 + $0x68] ss:$16 sps:$4 sm:$0xff]  }
 0x256   :  { %4999 = vmatpush1.bf16.msra.mxu1 %v6712_v33  ;;  %v6679_v33 = vld [vmem:[#allocation8 + $0x1c8] ss:$16 sps:$4 sm:$0xff]  }
 0x257   :  { %4950 = vmatpush1.bf16.msra.mxu0 %v6622_v55  ;;  %5000 = vmatprep.subr.bf16.mxu1 %v6717_v20  ;;  %v6667_v55 = vld [vmem:[#allocation8 + $0x48] ss:$16 sps:$4 sm:$0xff]  }
 0x258   :  { %4951 = vmatprep.subr.bf16.mxu0 %v6627_v1  ;;  %v6670_v1 = vld [vmem:[#allocation8 + $0x28] ss:$16 sps:$4 sm:$0xff]  }
 0x259   :  { %v6682_v20 = vld [vmem:[#allocation8 + $0x1a8] ss:$16 sps:$4 sm:$0xff]  }
 0x25a   :  { %5001 = vmatpush1.bf16.msra.mxu1 %v6715_v11  ;;  %v7246_v11 = vpop.f32.mrf.mxu0 }
 0x25b   :  { %4952 = vmatpush1.bf16.msra.mxu0 %v6625_v56  ;;  %5002 = vmatprep.subr.bf16.mxu1 %v6720_v34  ;;  %v6678_v56 = vld [vmem:[#allocation8 + $0x1ec] ss:$16 sps:$4 sm:$0xff]  }
 0x25c   :  { %4953 = vmatprep.subr.bf16.mxu0 %v6630_v8  ;;  %v6681_v8 = vld [vmem:[#allocation8 + $0x1cc] ss:$16 sps:$4 sm:$0xff]  }
 0x25d   :  { %v6690_v34 = vld [vmem:[#allocation8 + $0x16c] ss:$16 sps:$4 sm:$0xff]  }
 0x25e   :  { %5003 = vmatpush1.bf16.msra.mxu1 %v6718_v45  ;;  %v3735_v45 = vpop.f32.mrf.mxu0 }
 0x25f   :  { %4954 = vmatpush2.bf16.msra.mxu0 %v6628_v9  ;;  %5004 = vmatprep.subr.bf16.mxu1 %v6723_v18  ;;  %v6684_v9 = vld [vmem:[#allocation8 + $0x1ac] ss:$16 sps:$4 sm:$0xff]  }
 0x260   :  { %4955 = vmatprep.subr.bf16.mxu0 %v6633_v62  ;;  %v6687_v62 = vld [vmem:[#allocation8 + $0x18c] ss:$16 sps:$4 sm:$0xff]  }
 0x261   :  { %v6693_v18 = vld [vmem:[#allocation8 + $0x14c] ss:$16 sps:$4 sm:$0xff]  }
 0x262   :  { %5005 = vmatpush1.bf16.msra.mxu1 %v6721_v24  ;;  %v3737_v24 = vpop.f32.mrf.mxu0 }
 0x263   :  { %4956 = vmatpush2.bf16.msra.mxu0 %v6631_v13  ;;  %5006 = vmatprep.subr.bf16.mxu1 %v6726_v44  ;;  %v6685_v13 = vld [vmem:[#allocation8 + $0x188] ss:$16 sps:$4 sm:$0xff]   ;;  %v6696_v44 = vld [vmem:[#allocation8 + $0x12c] ss:$16 sps:$4 sm:$0xff]  }
 0x264   :  { %4957 = vmatprep.subr.bf16.mxu0 %v6636_v47  ;;  %v7248_v47 = vpop.f32.mrf.mxu1 }
 0x266   :  { %5007 = vmatpush2.bf16.msra.mxu1 %v6724_v21  ;;  %v3739_v21 = vpop.f32.mrf.mxu0 }
 0x267   :  { %4958 = vmatpush2.bf16.msra.mxu0 %v6634_v30  ;;  %5008 = vmatprep.subr.bf16.mxu1 %v6729_v15  ;;  %v6688_v30 = vld [vmem:[#allocation8 + $0x168] ss:$16 sps:$4 sm:$0xff]  }
 0x268   :  { %4959 = vmatprep.subr.bf16.mxu0 %v6639_v16  ;;  %v3788_v16 = vpop.f32.mrf.mxu1  ;;  %v7250_v15 = vpop.f32.mrf.mxu0 }
 0x26a   :  { %5009 = vmatpush2.bf16.msra.mxu1 %v6727_v49 }
 0x26b   :  { %4960 = vmatpush2.bf16.msra.mxu0 %v6637_v41  ;;  %5010 = vmatprep.subr.bf16.mxu1 %v6732_v61  ;;  %v6691_v41 = vld [vmem:[#allocation8 + $0x148] ss:$16 sps:$4 sm:$0xff]   ;;  %v3745_v61 = vpop.f32.mrf.mxu0 }
 0x26c   :  { %4961 = vmatprep.subr.bf16.mxu0 %v6642_v42  ;;  %v3790_v42 = vpop.f32.mrf.mxu1 }
 0x26e   :  { %5011 = vmatpush2.bf16.msra.mxu1 %v6730_v17  ;;  %v3792_v49 = vpop.f32.mrf.mxu1  ;;  %v3747_v17 = vpop.f32.mrf.mxu0 }
 0x26f   :  { %4962 = vmatpush2.bf16.msra.mxu0 %v6640_v38  ;;  %5012 = vmatprep.subr.bf16.mxu1 %v6735_v52  ;;  %v6694_v38 = vld [vmem:[#allocation8 + $0x128] ss:$16 sps:$4 sm:$0xff]  }
 0x270   :  { %4963 = vmatprep.subr.bf16.mxu0 %v6645_v58  ;;  %v6699_v58 = vld [vmem:[#allocation8 + $0x10c] ss:$16 sps:$4 sm:$0xff]   ;;  %v3749_v52 = vpop.f32.mrf.mxu0 }
 0x272   :  { %5013 = vmatpush2.bf16.msra.mxu1 %v6733_v12 }
 0x273   :  { %4964 = vmatpush2.bf16.msra.mxu0 %v6643_v31  ;;  %5014 = vmatprep.subr.bf16.mxu1 %v6738_v22  ;;  %v6697_v31 = vld [vmem:[#allocation8 + $0x108] ss:$16 sps:$4 sm:$0xff]  }
 0x274   :  { %4965 = vmatprep.subr.bf16.mxu0 %v6648_v39  ;;  %v7252_v39 = vpop.f32.mrf.mxu1 }
 0x276   :  { %5015 = vmatpush2.bf16.msra.mxu1 %v6736_v0 }
 0x277   :  { %4966 = vmatpush2.bf16.msra.mxu0 %v6646_v53  ;;  %5016 = vmatprep.subr.bf16.mxu1 %v6741_v60  ;;  %v3798_v53 = vpop.f32.mrf.mxu1 }
 0x278   :  { %4967 = vmatprep.subr.bf16.mxu0 %v6651_v36 }
 0x279   :  { %v7256_v36 = vpop.f32.mrf.mxu1 }
 0x27a   :  { %5017 = vmatpush2.bf16.msra.mxu1 %v6739_v50 }
 0x27b   :  { %4968 = vmatpush2.bf16.msra.mxu0 %v6649_v43  ;;  %5018 = vmatprep.subr.bf16.mxu1 %v6744_v3  ;;  %v7258_v43 = vpop.f32.mrf.mxu1 }
 0x27c   :  { %5043 = vmatprep.subr.bf16.mxu0 %v6654_v25 }
 0x27e   :  { %4970 = vmatmul.mubr.bf16.vlgmr.msra.gmra.mxu0 %v7205_v59  ;;  %5019 = vmatpush2.bf16.msra.mxu1 %v6742_v40  ;;  %v3839_v12 = vpop.f32.mrf.mxu0 }
 0x27f   :  { %4979 = vmatprep.mubr.bf16.mxu0 %v7213_v28  ;;  %5044 = vmatpush1.bf16.msra.mxu0 %v6652_v26  ;;  %v3892_v22 = vpop.f32.mrf.mxu1 }
 0x280   :  { %5045 = vmatprep.subr.bf16.mxu0 %v6657_v57  ;;  %5020 = vmatprep.subr.bf16.mxu1 %v6747_v2  ;;  %v3841_v25 = vpop.f32.mrf.mxu0 }
 0x281   :  { %v3894_v0 = vpop.f32.mrf.mxu1 }
 0x282   :  { %5021 = vmatpush2.bf16.msra.mxu1 %v6745_v27  ;;  %v3843_v26 = vpop.f32.mrf.mxu0  ;;  %v7309_v27 = vsub.s32 3, %v7060_v23 }
 0x283   :  { %5046 = vmatpush1.bf16.msra.mxu0 %v6655_v48  ;;  %5096 = vmatprep.subr.bf16.mxu1 %v6750_v4  ;;  %v3896_v57 = vpop.f32.mrf.mxu1 }
 0x284   :  { %5047 = vmatprep.subr.bf16.mxu0 %v6660_v6  ;;  %v3845_v48 = vpop.f32.mrf.mxu0 }
 0x285   :  { %v3898_v60 = vpop.f32.mrf.mxu1 }
 0x286   :  { %4980 = vmatmul.mubr.bf16.gmra.mxu0 %v7211_v14  ;;  %v3849_v6 = vpop.f32.mrf.mxu0 }
 0x287   :  { %5048 = vmatpush1.bf16.msra.mxu0 %v6658_v51  ;;  %5075 = vmatprep.mubr.bf16.mxu0 %v7237_v46  ;;  %v6675_v46 = vld [vmem:[#allocation8 + $0xc] ss:$16 sps:$4 sm:$0xff]   ;;  %v7261_v50 = vpop.f32.mrf.mxu1 }
 0x288   :  { %5049 = vmatprep.subr.bf16.mxu0 %v6663_v10 }
 0x28b   :  { %5050 = vmatpush1.bf16.msra.mxu0 %v6661_v63 }
 0x28c   :  { %5051 = vmatprep.subr.bf16.mxu0 %v6666_v54 }
 0x28f   :  { %5052 = vmatpush1.bf16.msra.mxu0 %v6664_v29  ;;  %v7310_v29 = vsub.s32 2, %v7060_v23 }
 0x290   :  { %5053 = vmatprep.subr.bf16.mxu0 %v6669_v7 }
 0x293   :  { %5054 = vmatpush1.bf16.msra.mxu0 %v6667_v55  ;;  %v6796_v55 = vld [vmem:[#allocation7] sm:$0xf] }
 0x294   :  { %5055 = vmatprep.subr.bf16.mxu0 %v6672_v37  ;;  %v710_v37 = vrot.slane %v6796_v55, %v7309_v27 }
 0x297   :  { %5056 = vmatpush1.bf16.msra.mxu0 %v6670_v1  ;;  %v706_v1 = vrot.slane %v6796_v55, %v7310_v29 }
 0x298   :  { %5057 = vmatprep.subr.bf16.mxu0 %v6675_v46 }
 0x299   :  { %v3748_v27 = vadd.f32 %v3747_v17, %v706_v1 }
 0x29b   :  { %5058 = vmatpush1.bf16.msra.mxu0 %v6673_v19 }
 0x29c   :  { %5059 = vmatprep.subr.bf16.mxu0 %v6678_v56  ;;  %v3736_v56 = vadd.f32 %v3735_v45, %v710_v37  ;;  %v3744_v45 = vadd.f32 %v7250_v15, %v706_v1 }
 0x29f   :  { %5060 = vmatpush2.bf16.msra.mxu0 %v6676_v32  ;;  %v3734_v32 = vadd.f32 %v7246_v11, %v706_v1 }
 0x2a0   :  { %5061 = vmatprep.subr.bf16.mxu0 %v6681_v8 }
 0x2a3   :  { %5062 = vmatpush2.bf16.msra.mxu0 %v6679_v33 }
 0x2a4   :  { %5063 = vmatprep.subr.bf16.mxu0 %v6684_v9  ;;  %v3738_v9 = vadd.f32 %v3737_v24, %v706_v1  ;;  %v3750_v24 = vadd.f32 %v3749_v52, %v710_v37 }
 0x2a7   :  { %5064 = vmatpush2.bf16.msra.mxu0 %v6682_v20  ;;  %v3789_v20 = vadd.f32 %v3788_v16, %v3736_v56 }
 0x2a8   :  { %5065 = vmatprep.subr.bf16.mxu0 %v6687_v62  ;;  %v3740_v62 = vadd.f32 %v3739_v21, %v710_v37 }
 0x2ab   :  { %5066 = vmatpush2.bf16.msra.mxu0 %v6685_v13  ;;  %v3787_v13 = vadd.f32 %v7248_v47, %v3734_v32  ;;  %v3797_v32 = vadd.f32 %v7252_v39, %v3744_v45 }
 0x2ac   :  { %5067 = vmatprep.subr.bf16.mxu0 %v6690_v34 }
 0x2ad   :  { %v3850_v17 = vadd.f32 %v3849_v6, %v3797_v32  ;;  %v6748_v32 = vld [vmem:[#allocation8 + $0x2e8] ss:$16 sps:$4 sm:$0xff]  }
 0x2af   :  { %5068 = vmatpush2.bf16.msra.mxu0 %v6688_v30 }
 0x2b0   :  { %5069 = vmatprep.subr.bf16.mxu0 %v6693_v18  ;;  %v3791_v18 = vadd.f32 %v3790_v42, %v3738_v9  ;;  %v3803_v9 = vadd.f32 %v7258_v43, %v3750_v24 }
 0x2b3   :  { %5070 = vmatpush2.bf16.msra.mxu0 %v6691_v41  ;;  %v3842_v41 = vadd.f32 %v3841_v25, %v3789_v20 }
 0x2b4   :  { %5071 = vmatprep.subr.bf16.mxu0 %v6696_v44  ;;  %v3840_v44 = vadd.f32 %v3839_v12, %v3787_v13 }
 0x2b5   :  { %v3895_v29 = vadd.f32 %v3894_v0, %v3842_v41 }
 0x2b6   :  { %v3893_v16 = vadd.f32 %v3892_v22, %v3840_v44 }
 0x2b7   :  { %5072 = vmatpush2.bf16.msra.mxu0 %v6694_v38  ;;  %v3793_v38 = vadd.f32 %v3792_v49, %v3740_v62  ;;  %v3801_v49 = vadd.f32 %v7256_v36, %v3748_v27 }
 0x2b8   :  { %5073 = vmatprep.subr.bf16.mxu0 %v6699_v58  ;;  %v3746_v58 = vadd.f32 %v3745_v61, %v710_v37 }
 0x2b9   :  { %v3846_v5 = vadd.f32 %v3845_v48, %v3793_v38 }
 0x2ba   :  { %v3799_v21 = vadd.f32 %v3798_v53, %v3746_v58 }
 0x2bb   :  { %5074 = vmatpush2.bf16.msra.mxu0 %v6697_v31  ;;  %v3844_v31 = vadd.f32 %v3843_v26, %v3791_v18  ;;  %v3899_v61 = vadd.f32 %v3898_v60, %v3846_v5  ;;  %v3903_v5 = vadd.f32 %v7261_v50, %v3850_v17 }
 0x2bd   :  { %v3897_v56 = vadd.f32 %v3896_v57, %v3844_v31 }
 0x2be   :  { %5076 = vmatmul.mubr.bf16.vlgmr.msra.gmra.mxu0 %v7205_v59  ;;  %v3851_v59 = vpop.f32.mrf.mxu0 }
 0x2bf   :  { %5085 = vmatprep.mubr.bf16.mxu0 %v7213_v28  ;;  %v7263_v28 = vpop.f32.mrf.mxu1  ;;  %v3852_v26 = vadd.f32 %v3851_v59, %v3799_v21 }
 0x2c0   :  { %v3853_v51 = vpop.f32.mrf.mxu0 }
 0x2c1   :  { %v7265_v3 = vpop.f32.mrf.mxu1  ;;  %v3854_v52 = vadd.f32 %v3853_v51, %v3801_v49 }
 0x2c2   :  { %v3855_v10 = vpop.f32.mrf.mxu0 }
 0x2c3   :  { %v7267_v40 = vpop.f32.mrf.mxu1  ;;  %v3856_v57 = vadd.f32 %v3855_v10, %v3803_v9  ;;  %v3907_v43 = vadd.f32 %v7265_v3, %v3854_v52  ;;  %v6751_v9 = vld [vmem:[#allocation8 + $0x2c8] ss:$16 sps:$4 sm:$0xff]  }
 0x2c4   :  { %v3945_v63 = vpop.f32.mrf.mxu0 }
 0x2c5   :  { %v3998_v2 = vpop.f32.mrf.mxu1  ;;  %v3946_v42 = vadd.f32 %v3945_v63, %v3893_v16  ;;  %v3905_v63 = vadd.f32 %v7263_v28, %v3852_v26 }
 0x2c6   :  { %5086 = vmatmul.mubr.bf16.gmra.mxu0 %v7211_v14  ;;  %v3947_v14 = vpop.f32.mrf.mxu0 }
 0x2c7   :  { %v4000_v54 = vpop.f32.mrf.mxu1  ;;  %v3948_v47 = vadd.f32 %v3947_v14, %v3895_v29  ;;  %v3999_v14 = vadd.f32 %v3998_v2, %v3946_v42 }
 0x2c8   :  { %v3949_v4 = vpop.f32.mrf.mxu0 }
 0x2c9   :  { %v4002_v7 = vpop.f32.mrf.mxu1  ;;  %v3950_v15 = vadd.f32 %v3949_v4, %v3897_v56  ;;  %v4001_v22 = vadd.f32 %v4000_v54, %v3948_v47  ;;  %v3909_v54 = vadd.f32 %v7267_v40, %v3856_v57 }
 0x2ca   :  { %v3951_v46 = vpop.f32.mrf.mxu0 }
 0x2cb   :  { %v4004_v19 = vpop.f32.mrf.mxu1  ;;  %v3952_v53 = vadd.f32 %v3951_v46, %v3899_v61  ;;  %v4003_v37 = vadd.f32 %v4002_v7, %v3950_v15 }
 0x2cc   :  { %v3955_v8 = vpop.f32.mrf.mxu0 }
 0x2cd   :  { %v7276_v33 = vpop.f32.mrf.mxu1  ;;  %v4005_v6 = vadd.f32 %v4004_v19, %v3952_v53  ;;  %v3956_v10 = vadd.f32 %v3955_v8, %v3903_v5  ;;  %v6754_v53 = vld [vmem:[#allocation8 + $0x2a8] ss:$16 sps:$4 sm:$0xff]   ;;  %v6768_v5 = vld [vmem:[#allocation8 + $0x22c] ss:$16 sps:$4 sm:$0xff]  }
 0x2ce   :  { %v3957_v34 = vpop.f32.mrf.mxu0 }
 0x2cf   :  { %v4010_v30 = vpop.f32.mrf.mxu1  ;;  %v3958_v27 = vadd.f32 %v3957_v34, %v3905_v63  ;;  %v4009_v3 = vadd.f32 %v7276_v33, %v3956_v10  ;;  %v6753_v33 = vld [vmem:[#allocation8 + $0x2cc] ss:$16 sps:$4 sm:$0xff]   ;;  %v6760_v63 = vld [vmem:[#allocation8 + $0x268] ss:$16 sps:$4 sm:$0xff]  }
 0x2d0   :  { %v3959_v55 = vpop.f32.mrf.mxu0  ;;  %v6778_v10 = vld [vmem:[#allocation8 + $0x3a8] ss:$16 sps:$4 sm:$0xff]  }
 0x2d1   :  { %v4012_v11 = vpop.f32.mrf.mxu1  ;;  %v3960_v46 = vadd.f32 %v3959_v55, %v3907_v43  ;;  %v4011_v18 = vadd.f32 %v4010_v30, %v3958_v27  ;;  %v6774_v43 = vld [vmem:[#allocation8 + $0x3ec] ss:$16 sps:$4 sm:$0xff]  }
 0x2d2   :  { %v3961_v25 = vpop.f32.mrf.mxu0  ;;  %v6777_v27 = vld [vmem:[#allocation8 + $0x3cc] ss:$16 sps:$4 sm:$0xff]  }
 0x2d3   :  { %v4014_v12 = vpop.f32.mrf.mxu1  ;;  %v3962_v41 = vadd.f32 %v3961_v25, %v3909_v54  ;;  %v4013_v58 = vadd.f32 %v4012_v11, %v3960_v46  ;;  %v6780_v54 = vld [vmem:[#allocation8 + $0x3ac] ss:$16 sps:$4 sm:$0xff]  }
 0x2d4   :  { %v6786_v46 = vld [vmem:[#allocation8 + $0x36c] ss:$16 sps:$4 sm:$0xff]  }
 0x2d5   :  { %v4015_v21 = vadd.f32 %v4014_v12, %v3962_v41  ;;  %v6756_v12 = vld [vmem:[#allocation8 + $0x2ac] ss:$16 sps:$4 sm:$0xff]  }
 0x2fe   :  { %v4051_v0 = vpop.f32.mrf.mxu0 }
 0x2ff   :  { %v4104_v48 = vpop.f32.mrf.mxu1  ;;  %v4052_v36 = vadd.f32 %v4051_v0, %v3999_v14  ;;  %v6759_v14 = vld [vmem:[#allocation8 + $0x28c] ss:$16 sps:$4 sm:$0xff]  }
 0x300   :  { %v4053_v29 = vpop.f32.mrf.mxu0 }
 0x301   :  { %v4106_v39 = vpop.f32.mrf.mxu1  ;;  %v4054_v1 = vadd.f32 %v4053_v29, %v4001_v22  ;;  %v4105_v62 = vadd.f32 %v4104_v48, %v4052_v36  ;;  %v6757_v29 = vld [vmem:[#allocation8 + $0x288] ss:$16 sps:$4 sm:$0xff]  }
 0x302   :  { %v4055_v60 = vpop.f32.mrf.mxu0  ;;  %v6766_v36 = vld [vmem:[#allocation8 + $0x228] ss:$16 sps:$4 sm:$0xff]  }
 0x303   :  { %v4108_v59 = vpop.f32.mrf.mxu1  ;;  %v4056_v51 = vadd.f32 %v4055_v60, %v4003_v37  ;;  %v4107_v20 = vadd.f32 %v4106_v39, %v4054_v1  ;;  %v4125_v45 = vmax.f32 %v4105_v62, 0.0  ;;  %v6762_v39 = vld [vmem:[#allocation8 + $0x26c] ss:$16 sps:$4 sm:$0xff]   ;;  %v6763_v1 = vld [vmem:[#allocation8 + $0x248] ss:$16 sps:$4 sm:$0xff]  }
 0x304   :  { %v4057_v2 = vpop.f32.mrf.mxu0  ;;  %v6765_v37 = vld [vmem:[#allocation8 + $0x24c] ss:$16 sps:$4 sm:$0xff]  }
 0x305   :  { %v4110_v4 = vpop.f32.mrf.mxu1  ;;  %v4109_v28 = vadd.f32 %v4108_v59, %v4056_v51  ;;  %v4058_v7 = vadd.f32 %v4057_v2, %v4005_v6  ;;  %v4126_v40 = vmax.f32 %v4107_v20, 0.0  ;;  %v6771_v60 = vld [vmem:[#allocation8 + $0x20c] ss:$16 sps:$4 sm:$0xff]   ;;  %v6769_v59 = vld [vmem:[#allocation8 + $0x208] ss:$16 sps:$4 sm:$0xff]  }
 0x306   :  { %v4061_v13 = vpop.f32.mrf.mxu0  ;;  %v6772_v6 = vld [vmem:[#allocation8 + $0x3e8] ss:$16 sps:$4 sm:$0xff]   ;;  %v6783_v2 = vld [vmem:[#allocation8 + $0x38c] ss:$16 sps:$4 sm:$0xff]  }
 0x307   :  { %v4114_v50 = vpop.f32.mrf.mxu1  ;;  %v4111_v44 = vadd.f32 %v4110_v4, %v4058_v7  ;;  %v4129_v19 = vmax.f32 %v4109_v28, 0.0  ;;  %v4062_v55 = vadd.f32 %v4061_v13, %v4009_v3  ;;  %v6775_v51 = vld [vmem:[#allocation8 + $0x3c8] ss:$16 sps:$4 sm:$0xff]   ;;  %v6789_v28 = vld [vmem:[#allocation8 + $0x34c] ss:$16 sps:$4 sm:$0xff]  }
 0x308   :  { %v4063_v34 = vpop.f32.mrf.mxu0  ;;  %v6781_v4 = vld [vmem:[#allocation8 + $0x388] ss:$16 sps:$4 sm:$0xff]   ;;  %v6792_v62 = vld [vmem:[#allocation8 + $0x32c] ss:$16 sps:$4 sm:$0xff]  }
 0x309   :  { %v4116_v38 = vpop.f32.mrf.mxu1  ;;  %v4130_v8 = vmax.f32 %v4111_v44, 0.0  ;;  %v4064_v31 = vadd.f32 %v4063_v34, %v4011_v18  ;;  %v7288_v30 = vpack.c.bf16 %v4129_v19, %v4125_v45  ;;  %v4115_v11 = vadd.f32 %v4114_v50, %v4062_v55  ;;  %v6784_v20 = vld [vmem:[#allocation8 + $0x368] ss:$16 sps:$4 sm:$0xff]   ;;  %v6795_v50 = vld [vmem:[#allocation8 + $0x30c] ss:$16 sps:$4 sm:$0xff]  }
 0x30a   :  { %v4065_v24 = vpop.f32.mrf.mxu0  ;;  %v6787_v7 = vld [vmem:[#allocation8 + $0x348] ss:$16 sps:$4 sm:$0xff]   ;;  %v4275_v19 = vld [vmem:[#allocation10] sm:$0xf] }
 0x30b   :  { %v4118_v16 = vpop.f32.mrf.mxu1  ;;  %v4142_v56 = vpack.c.bf16 %v4130_v8, %v4126_v40  ;;  %v4066_v47 = vadd.f32 %v4065_v24, %v4013_v58  ;;  %v4117_v49 = vadd.f32 %v4116_v38, %v4064_v31  ;;  %v4133_v52 = vmax.f32 %v4115_v11, 0.0  ;;  %v6790_v13 = vld [vmem:[#allocation8 + $0x328] ss:$16 sps:$4 sm:$0xff]  }
 0x30c   :  { %v4067_v42 = vpop.f32.mrf.mxu0  ;;  %v6793_v18 = vld [vmem:[#allocation8 + $0x308] ss:$16 sps:$4 sm:$0xff]   ;;  %v4280_v38 = vrot.slane %v4275_v19, %v697_v35  ;;  %v7312_v58 = vsub.s32 1, %v7060_v23 }
 0x30d   :  { %v4120_v25 = vpop.f32.mrf.mxu1  ;;  %v4068_v61 = vadd.f32 %v4067_v42, %v4015_v21  ;;  %v4119_v26 = vadd.f32 %v4118_v16, %v4066_v47  ;;  %5022 = vmatprep.mubr.bf16.mxu1 %v4142_v56  ;;  %v4134_v0 = vmax.f32 %v4117_v49, 0.0 }
 0x30e   :  { %5023 = vmatmul.mubr.bf16.vlgmr.msra.gmra.mxu1 %v7288_v30  ;;  %v4284_v40 = vrot.slane %v4275_v19, %v7312_v58 }
 0x30f   :  { %v4121_v15 = vadd.f32 %v4120_v25, %v4068_v61  ;;  %5097 = vmatpush1.bf16.msra.mxu1 %v6748_v32  ;;  %v4137_v17 = vmax.f32 %v4119_v26, 0.0 }
 0x310   :  { %5098 = vmatprep.subr.bf16.mxu1 %v6753_v33 }
 0x311   :  { %v4138_v48 = vmax.f32 %v4121_v15, 0.0  ;;  %v4145_v57 = vpack.c.bf16 %v4137_v17, %v4133_v52 }
 0x313   :  { %v4146_v22 = vpack.c.bf16 %v4138_v48, %v4134_v0  ;;  %5099 = vmatpush1.bf16.msra.mxu1 %v6751_v9 }
 0x314   :  { %5100 = vmatprep.subr.bf16.mxu1 %v6756_v12 }
 0x315   :  { %5032 = vmatprep.mubr.bf16.mxu1 %v4146_v22 }
 0x316   :  { %5033 = vmatmul.mubr.bf16.gmra.mxu1 %v4145_v57 }
 0x317   :  { %5101 = vmatpush1.bf16.msra.mxu1 %v6754_v53  ;;  %5128 = vmatprep.mubr.bf16.mxu1 %v4142_v56 }
 0x318   :  { %5102 = vmatprep.subr.bf16.mxu1 %v6759_v14 }
 0x31b   :  { %5103 = vmatpush1.bf16.msra.mxu1 %v6757_v29 }
 0x31c   :  { %5104 = vmatprep.subr.bf16.mxu1 %v6762_v39 }
 0x31f   :  { %5105 = vmatpush1.bf16.msra.mxu1 %v6760_v63  ;;  %v7313_v63 = vsub.s32 2, %v7060_v23 }
 0x320   :  { %5106 = vmatprep.subr.bf16.mxu1 %v6765_v37 }
 0x321   :  { %v4288_v37 = vrot.slane %v4275_v19, %v7313_v63 }
 0x323   :  { %5107 = vmatpush1.bf16.msra.mxu1 %v6763_v1  ;;  %v7314_v1 = vsub.s32 3, %v7060_v23 }
 0x324   :  { %5108 = vmatprep.subr.bf16.mxu1 %v6768_v5 }
 0x325   :  { %v4292_v5 = vrot.slane %v4275_v19, %v7314_v1 }
 0x327   :  { %5109 = vmatpush1.bf16.msra.mxu1 %v6766_v36 }
 0x328   :  { %5110 = vmatprep.subr.bf16.mxu1 %v6771_v60 }
 0x32b   :  { %5111 = vmatpush1.bf16.msra.mxu1 %v6769_v59 }
 0x32c   :  { %5112 = vmatprep.subr.bf16.mxu1 %v6774_v43 }
 0x32f   :  { %5113 = vmatpush2.bf16.msra.mxu1 %v6772_v6 }
 0x330   :  { %5114 = vmatprep.subr.bf16.mxu1 %v6777_v27 }
 0x333   :  { %5115 = vmatpush2.bf16.msra.mxu1 %v6775_v51 }
 0x334   :  { %5116 = vmatprep.subr.bf16.mxu1 %v6780_v54 }
 0x337   :  { %5117 = vmatpush2.bf16.msra.mxu1 %v6778_v10 }
 0x338   :  { %5118 = vmatprep.subr.bf16.mxu1 %v6783_v2 }
 0x33b   :  { %5119 = vmatpush2.bf16.msra.mxu1 %v6781_v4 }
 0x33c   :  { %5120 = vmatprep.subr.bf16.mxu1 %v6786_v46 }
 0x33e   :  { %v4971_v41 = vpop.f32.mrf.mxu0 }
 0x33f   :  { %5121 = vmatpush2.bf16.msra.mxu1 %v6784_v20  ;;  %v4972_v31 = vadd.f32 %v4971_v41, %v4280_v38 }
 0x340   :  { %5122 = vmatprep.subr.bf16.mxu1 %v6789_v28  ;;  %v4973_v44 = vpop.f32.mrf.mxu0 }
 0x341   :  { %v4974_v55 = vadd.f32 %v4973_v44, %v4284_v40 }
 0x342   :  { %v4975_v3 = vpop.f32.mrf.mxu0 }
 0x343   :  { %5123 = vmatpush2.bf16.msra.mxu1 %v6787_v7  ;;  %v4976_v56 = vadd.f32 %v4975_v3, %v4280_v38 }
 0x344   :  { %5124 = vmatprep.subr.bf16.mxu1 %v6792_v62  ;;  %v4977_v34 = vpop.f32.mrf.mxu0 }
 0x346   :  { %v4981_v8 = vpop.f32.mrf.mxu0 }
 0x347   :  { %5125 = vmatpush2.bf16.msra.mxu1 %v6790_v13  ;;  %v4982_v35 = vadd.f32 %v4981_v8, %v4280_v38 }
 0x348   :  { %5126 = vmatprep.subr.bf16.mxu1 %v6795_v50  ;;  %v4983_v16 = vpop.f32.mrf.mxu0 }
 0x349   :  { %v4984_v26 = vadd.f32 %v4983_v16, %v4284_v40 }
 0x34a   :  { %v4985_v25 = vpop.f32.mrf.mxu0 }
 0x34b   :  { %5127 = vmatpush2.bf16.msra.mxu1 %v6793_v18  ;;  %v4986_v17 = vadd.f32 %v4985_v25, %v4280_v38 }
 0x34c   :  { %v4987_v15 = vpop.f32.mrf.mxu0 }
 0x34d   :  { %v4988_v48 = vadd.f32 %v4987_v15, %v4284_v40 }
 0x34e   :  { %5129 = vmatmul.mubr.bf16.vlgmr.msra.gmra.mxu1 %v7288_v30  ;;  %v4978_v30 = vadd.f32 %v4977_v34, %v4284_v40 }
 0x34f   :  { %5138 = vmatprep.mubr.bf16.mxu1 %v4146_v22 }
 0x356   :  { %5139 = vmatmul.mubr.bf16.gmra.mxu1 %v4145_v57 }
 0x37e   :  { %v5077_v57 = vpop.f32.mrf.mxu0 }
 0x37f   :  { %v5078_v60 = vadd.f32 %v5077_v57, %v4288_v37 }
 0x380   :  { %v5079_v14 = vpop.f32.mrf.mxu0 }
 0x381   :  { %v5080_v43 = vadd.f32 %v5079_v14, %v4292_v5 }
 0x382   :  { %v5081_v29 = vpop.f32.mrf.mxu0 }
 0x383   :  { %v5082_v54 = vadd.f32 %v5081_v29, %v4288_v37 }
 0x384   :  { %v5083_v39 = vpop.f32.mrf.mxu0 }
 0x385   :  { %v5084_v4 = vadd.f32 %v5083_v39, %v4292_v5 }
 0x386   :  { %v5087_v36 = vpop.f32.mrf.mxu0 }
 0x387   :  { %v5088_v7 = vadd.f32 %v5087_v36, %v4288_v37 }
 0x388   :  { %v5089_v27 = vpop.f32.mrf.mxu0 }
 0x389   :  { %v5090_v13 = vadd.f32 %v5089_v27, %v4292_v5 }
 0x38a   :  { %v5091_v20 = vpop.f32.mrf.mxu0 }
 0x38b   :  { %v5092_v44 = vadd.f32 %v5091_v20, %v4288_v37 }
 0x38c   :  { %v5093_v18 = vpop.f32.mrf.mxu0 }
 0x38d   :  { %v5094_v34 = vadd.f32 %v5093_v18, %v4292_v5 }
 0x3ce   :  { %v5024_v45 = vpop.f32.mrf.mxu1 }
 0x3cf   :  { %v5025_v24 = vadd.f32 %v5024_v45, %v4972_v31 }
 0x3d0   :  { %v5026_v21 = vpop.f32.mrf.mxu1 }
 0x3d1   :  { %5149 = vst [vmem:[#allocation11] sm:$0xff] %v5025_v24  ;;  %v5027_v47 = vadd.f32 %v5026_v21, %v4974_v55 }
 0x3d2   :  { %v5028_v32 = vpop.f32.mrf.mxu1 }
 0x3d3   :  { %5150 = vst [vmem:[#allocation11 + $0x8] sm:$0xff] %v5027_v47  ;;  %v5029_v42 = vadd.f32 %v5028_v32, %v4976_v56 }
 0x3d4   :  { %v5030_v33 = vpop.f32.mrf.mxu1 }
 0x3d5   :  { %5153 = vst [vmem:[#allocation11 + $0x20] sm:$0xff] %v5029_v42  ;;  %v5031_v49 = vadd.f32 %v5030_v33, %v4978_v30 }
 0x3d6   :  { %v5034_v61 = vpop.f32.mrf.mxu1 }
 0x3d7   :  { %5154 = vst [vmem:[#allocation11 + $0x28] sm:$0xff] %v5031_v49  ;;  %v5035_v11 = vadd.f32 %v5034_v61, %v4982_v35 }
 0x3d8   :  { %v5036_v9 = vpop.f32.mrf.mxu1 }
 0x3d9   :  { %5157 = vst [vmem:[#allocation11 + $0x40] sm:$0xff] %v5035_v11  ;;  %v5037_v12 = vadd.f32 %v5036_v9, %v4984_v26 }
 0x3da   :  { %v5038_v0 = vpop.f32.mrf.mxu1 }
 0x3db   :  { %5158 = vst [vmem:[#allocation11 + $0x48] sm:$0xff] %v5037_v12  ;;  %v5039_v52 = vadd.f32 %v5038_v0, %v4986_v17 }
 0x3dc   :  { %v5040_v22 = vpop.f32.mrf.mxu1 }
 0x3dd   :  { %5161 = vst [vmem:[#allocation11 + $0x60] sm:$0xff] %v5039_v52  ;;  %v5041_v53 = vadd.f32 %v5040_v22, %v4988_v48 }
 0x3df   :  { %5162 = vst [vmem:[#allocation11 + $0x68] sm:$0xff] %v5041_v53 }
 0x40e   :  { %v5130_v59 = vpop.f32.mrf.mxu1 }
 0x40f   :  { %v5131_v6 = vadd.f32 %v5130_v59, %v5078_v60 }
 0x410   :  { %v5132_v51 = vpop.f32.mrf.mxu1 }
 0x411   :  { %5151 = vst [vmem:[#allocation11 + $0x10] sm:$0xff] %v5131_v6  ;;  %v5133_v10 = vadd.f32 %v5132_v51, %v5080_v43 }
 0x412   :  { %v5134_v2 = vpop.f32.mrf.mxu1 }
 0x413   :  { %5152 = vst [vmem:[#allocation11 + $0x18] sm:$0xff] %v5133_v10  ;;  %v5135_v46 = vadd.f32 %v5134_v2, %v5082_v54 }
 0x414   :  { %v5136_v28 = vpop.f32.mrf.mxu1 }
 0x415   :  { %5155 = vst [vmem:[#allocation11 + $0x30] sm:$0xff] %v5135_v46  ;;  %v5137_v23 = vadd.f32 %v5136_v28, %v5084_v4 }
 0x416   :  { %v5140_v62 = vpop.f32.mrf.mxu1 }
 0x417   :  { %5156 = vst [vmem:[#allocation11 + $0x38] sm:$0xff] %v5137_v23  ;;  %v5141_v50 = vadd.f32 %v5140_v62, %v5088_v7 }
 0x418   :  { %v5142_v41 = vpop.f32.mrf.mxu1 }
 0x419   :  { %5159 = vst [vmem:[#allocation11 + $0x50] sm:$0xff] %v5141_v50  ;;  %v5143_v3 = vadd.f32 %v5142_v41, %v5090_v13 }
 0x41a   :  { %v5144_v19 = vpop.f32.mrf.mxu1 }
 0x41b   :  { %5160 = vst [vmem:[#allocation11 + $0x58] sm:$0xff] %v5143_v3  ;;  %v5145_v38 = vadd.f32 %v5144_v19, %v5092_v44 }
 0x41c   :  { %v5146_v58 = vpop.f32.mrf.mxu1 }
 0x41d   :  { %5163 = vst [vmem:[#allocation11 + $0x70] sm:$0xff] %v5145_v38  ;;  %v5147_v40 = vadd.f32 %v5146_v58, %v5094_v34 }
 0x41f   :  { %5164 = vst [vmem:[#allocation11 + $0x78] sm:$0xff] %v5147_v40 }
 0x420   :  { %6908 = shalt.err (!%p6905_p1)
}
 0x421   :  { %s6935_s20 = smov 512   ;;  %s6936_s21 = smov 32  }
 0x422   :  { %5176 = dma.vmem_to_hbm [thread:$0]  %s5171_s4, 2048, %s7308_s5, [#allocation4], %s6935_s20, %s6935_s20, %s6936_s21  }
 0x423   :  { %6923 = dma.done.wait [#allocation4], 2048  }
 0x424   :  { %6924 = vsyncadd [#allocation4], 4294965248 }
 0x425   :  { %5180 = vsyncpa [#allocation3], 1 }
 0x426   :  { %5181 = vsyncpa [#allocation6], 1 }
 0x427   :  { %5182 = vsyncpa [#allocation9], 1 }
 0x428   :  { %5183 = vsyncpa [#allocation4], 1 }

</bundles_post_ra>
